<compile_context>
chip_gen: v5e
topology: v5e:2x2
jax: 0.10.0
libtpu: 0.0.40
codegen_flags: <defaults>
</compile_context>

<pallas_src>
import functools
import math

import jax
import jax.numpy as jnp
from jax.experimental import pallas as pl
from jax.experimental.pallas import tpu as pltpu

BN_EPS = 1e-5
BN_SCALE = 1.0 / math.sqrt(1.0 + BN_EPS)

# kernel_size=2, blocks=4, layers=4 -> dilations and receptive field of gwnet
DILATIONS = [1, 2, 4, 8] * 4
RECEPTIVE_FIELD = 1 + sum(DILATIONS)  # == 61

_VMEM = pltpu.MemorySpace.VMEM


def _sigmoid(v):
    return 1.0 / (1.0 + jnp.exp(-v))


# ----------------------------------------------------------------------------
# Adaptive adjacency: adp = softmax(relu(nodevec1 @ nodevec2), dim=1)
# ----------------------------------------------------------------------------
def _adp_kernel(nv1_ref, nv2_ref, adp_ref):
    logits = jnp.dot(nv1_ref[...], nv2_ref[...], preferred_element_type=jnp.float32)
    logits = jnp.maximum(logits, 0.0)
    m = jnp.max(logits, axis=1, keepdims=True)
    e = jnp.exp(logits - m)
    adp_ref[...] = e / jnp.sum(e, axis=1, keepdims=True)


def compute_adp(nv1, nv2):
    n = nv1.shape[0]
    return pl.pallas_call(
        _adp_kernel,
        out_shape=jax.ShapeDtypeStruct((n, n), jnp.float32),
        in_specs=[pl.BlockSpec(memory_space=_VMEM)] * 2,
        out_specs=pl.BlockSpec(memory_space=_VMEM),
    )(nv1, nv2)


# ----------------------------------------------------------------------------
# Weight packing (plain-JAX prep, once per forward).  Lane-dense layout is
# (time, nodes*channels); per-node 1x1 convs become kron(I_N, W), and one hop of
# graph propagation (adp^T applied over the node axis) becomes a right-matmul by
# kron(adp, I_C).  The gcn mlp + both hops fold into a single (NC, NC) matrix.
# ----------------------------------------------------------------------------
def _pack_params(params, adp):
    n = params["nodevec1"].shape[0]
    c = params["w_start"].shape[1]
    eye_n = jnp.eye(n, dtype=jnp.float32)
    eye_c = jnp.eye(c, dtype=jnp.float32)

    def kron_i(w):                      # per-node channel matmul: (n*ci, n*co)
        return jnp.kron(eye_n, w)

    def tile_b(b):                      # (1, co) -> (1, n*co)
        return jnp.tile(b, (1, n))

    m_hop = jnp.kron(adp, eye_c)        # one graph-propagation hop, lane-dense
    m_hop2 = jnp.dot(m_hop, m_hop)

    w_tap, b_fg, w_sg, b_sg = [], [], [], []
    for lp in params["layers"]:
        # rows [0:NC] multiply tap xa, rows [NC:2NC] multiply tap xb;
        # cols [0:NC] -> filter, cols [NC:2NC] -> gate.
        tap_a = jnp.concatenate([kron_i(lp["wf0"]), kron_i(lp["wg0"])], axis=1)
        tap_b = jnp.concatenate([kron_i(lp["wf1"]), kron_i(lp["wg1"])], axis=1)
        w_tap.append(jnp.concatenate([tap_a, tap_b], axis=0))          # (2NC, 2NC)
        b_fg.append(jnp.concatenate([tile_b(lp["bf"]), tile_b(lp["bg"])], axis=1))
        # full gcn (order=2, single adaptive support) folded into one matrix
        w_gcn = (kron_i(lp["wm0"])
                 + jnp.dot(m_hop, kron_i(lp["wm1"]))
                 + jnp.dot(m_hop2, kron_i(lp["wm2"])))
        w_sg.append(jnp.concatenate([kron_i(lp["ws"]), w_gcn], axis=1))  # (NC, 2NC)
        b_sg.append(jnp.concatenate([tile_b(lp["bs"]), tile_b(lp["bm"])], axis=1))

    return {
        "w_start": kron_i(params["w_start"]), "b_start": tile_b(params["b_start"]),
        "w_tap": jnp.stack(w_tap), "b_fg": jnp.stack(b_fg),
        "w_sg": jnp.stack(w_sg), "b_sg": jnp.stack(b_sg),
        "w_end1": kron_i(params["w_end1"]), "b_end1": tile_b(params["b_end1"]),
        "w_end2": kron_i(params["w_end2"]), "b_end2": tile_b(params["b_end2"]),
    }


# ----------------------------------------------------------------------------
# Fused network kernel: one grid step == one batch element, all layers in VMEM.
# ----------------------------------------------------------------------------
def _net_kernel(x_ref, tgt_ref,
                wstart_ref, bstart_ref, wtap_ref, bfg_ref,
                wsg_ref, bsg_ref, wend1_ref, bend1_ref, wend2_ref, bend2_ref,
                prob_ref, bce_ref, *, nc):
    dot = lambda a, w: jnp.dot(a, w, preferred_element_type=jnp.float32)

    # start_conv (1x1): lane-dense per-node channel matmul, (T0, N*F) @ (N*F, N*C)
    x = dot(x_ref[0], wstart_ref[...]) + bstart_ref[...]

    skip = None
    for l, d in enumerate(DILATIONS):
        t = x.shape[0]
        xa = x[:t - d]                                   # conv tap 0
        xb = x[d:]                                       # conv tap 1 (== residual tail)
        # fused filter|gate dilated conv: (t-d, 2NC) @ (2NC, 2NC)
        fg = dot(jnp.concatenate([xa, xb], axis=1), wtap_ref[l]) + bfg_ref[l]
        filt = jnp.tanh(fg[:, :nc])
        gate = _sigmoid(fg[:, nc:])
        g = filt * gate                                  # (t-d, N*C)
        # fused skip conv + full gcn: (t-d, NC) @ (NC, NCskip + NC)
        sh = dot(g, wsg_ref[l]) + bsg_ref[l]
        s = sh[:, :nc]
        h = sh[:, nc:]
        skip = s if skip is None else s + skip[d:]
        # residual add + eval-mode BatchNorm (scale by 1/sqrt(1+eps))
        x = (h + xb) * BN_SCALE

    # head (final time length == 1): relu -> end_conv_1 + relu -> end_conv_2
    sk = jnp.maximum(skip, 0.0)                          # (1, N*Cskip)
    hid = jnp.maximum(dot(sk, wend1_ref[...]) + bend1_ref[...], 0.0)
    z = dot(hid, wend2_ref[...]) + bend2_ref[...]        # logits, (1, N)

    tgt = tgt_ref[0]                                     # (1, N)
    # numerically stable BCE-with-logits; series branch avoids the 1+tiny
    # precision loss of log(1+u) for large |z| without relying on log1p lowering.
    u = jnp.exp(-jnp.abs(z))
    log_term = jnp.where(u > 1e-4, jnp.log(1.0 + u), u * (1.0 - 0.5 * u))
    bce_ref[0] = jnp.maximum(z, 0.0) - z * tgt + log_term
    prob_ref[0] = _sigmoid(z)


def _run_network(x_lane, tgt, pk, *, n, c):
    b = x_lane.shape[0]
    nc = n * c

    def batch_spec(shape):
        nd = len(shape)
        return pl.BlockSpec((1,) + tuple(shape[1:]),
                            lambda i, _nd=nd: (i,) + (0,) * (_nd - 1))

    def full_spec(arr):
        nd = arr.ndim
        return pl.BlockSpec(arr.shape, lambda i, _nd=nd: (0,) * _nd)

    weights = (pk["w_start"], pk["b_start"], pk["w_tap"], pk["b_fg"],
               pk["w_sg"], pk["b_sg"], pk["w_end1"], pk["b_end1"],
               pk["w_end2"], pk["b_end2"])

    prob, bce = pl.pallas_call(
        functools.partial(_net_kernel, nc=nc),
        grid=(b,),
        out_shape=(jax.ShapeDtypeStruct((b, 1, n), jnp.float32),
                   jax.ShapeDtypeStruct((b, 1, n), jnp.float32)),
        in_specs=[batch_spec(x_lane.shape), batch_spec(tgt.shape)]
                 + [full_spec(w) for w in weights],
        out_specs=(batch_spec((b, 1, n)), batch_spec((b, 1, n))),
        compiler_params=pltpu.CompilerParams(
            dimension_semantics=("parallel",),          # 2 TCs on v7x
            vmem_limit_bytes=32 * 1024 * 1024),
    )(x_lane, tgt, *weights)
    return prob, bce


# ----------------------------------------------------------------------------
# Full forward
# ----------------------------------------------------------------------------
def gwnet_forward(params, inputs, targets):
    """inputs: (B, T_in, N, F) float, targets: (B, N) float in [0,1]."""
    inputs = inputs.astype(jnp.float32)
    b, t_in, n, f = inputs.shape
    c = params["w_start"].shape[1]

    x = inputs
    if t_in < RECEPTIVE_FIELD:                  # left-pad time axis with zeros
        x = jnp.pad(x, ((0, 0), (RECEPTIVE_FIELD - t_in, 0), (0, 0), (0, 0)))
    t0 = x.shape[1]
    if t0 - sum(DILATIONS) != 1:
        raise ValueError("gwnet head expects a single remaining time step "
                         "(T_in must be <= receptive_field=61)")

    # adaptive adjacency (Pallas), then per-forward weight packing (plain-JAX prep)
    adp = compute_adp(params["nodevec1"], params["nodevec2"])
    pk = _pack_params(params, adp)

    x_lane = x.reshape(b, t0, n * f)                     # lane-dense over (node, feat)
    tgt = targets.astype(jnp.float32).reshape(b, 1, n)

    prob, bce = _run_network(x_lane, tgt, pk, n=n, c=c)
    loss = jnp.mean(bce)                                 # mean over B*N elements
    return loss, prob.reshape(-1)


# ----------------------------------------------------------------------------
# Deterministic parameter initialization (shapes follow gwnet.__init__)
# ----------------------------------------------------------------------------
def init_params(key, *, in_dim, num_nodes, h_dim):
    c = h_dim // 4  # residual = dilation = skip = end channels
    keys = iter(jax.random.split(key, 512))

    def nrm(shape, scale=0.1):
        return scale * jax.random.normal(next(keys), shape, dtype=jnp.float32)

    params = {
        "nodevec1": jax.random.normal(next(keys), (num_nodes, 10), dtype=jnp.float32),
        "nodevec2": jax.random.normal(next(keys), (10, num_nodes), dtype=jnp.float32),
        "w_start": nrm((in_dim, c)), "b_start": nrm((1, c)),
        "w_end1": nrm((c, c)), "b_end1": nrm((1, c)),
        "w_end2": nrm((c, 1)), "b_end2": nrm((1, 1)),
        "layers": [],
    }
    for _ in DILATIONS:
        params["layers"].append({
            # filter / gate dilated (1,2) convs: two taps, stored as (C_in, C_out)
            "wf0": nrm((c, c)), "wf1": nrm((c, c)), "bf": nrm((1, c)),
            "wg0": nrm((c, c)), "wg1": nrm((c, c)), "bg": nrm((1, c)),
            # skip 1x1 conv
            "ws": nrm((c, c)), "bs": nrm((1, c)),
            # gcn mlp (3*C_dil -> C_res) split along the concat axis [x, x1, x2]
            "wm0": nrm((c, c)), "wm1": nrm((c, c)), "wm2": nrm((c, c)),
            "bm": nrm((1, c)),
            # residual_convs exist in the torch module but are unused (gcn branch taken)
        })
    return params


if __name__ == "__main__":
    key = jax.random.PRNGKey(0)
    k_param, k_x, k_y = jax.random.split(key, 3)

    B, T_IN, N_NODES, F_IN, H_DIM = 2, 8, 16, 4, 32  # h_dim//4 = 8 channels, N*C = 128
    params = init_params(k_param, in_dim=F_IN, num_nodes=N_NODES, h_dim=H_DIM)
    inputs = jax.random.normal(k_x, (B, T_IN, N_NODES, F_IN), dtype=jnp.float32)
    targets = jax.random.bernoulli(k_y, 0.5, (B, N_NODES)).astype(jnp.float32)

    loss, prob = jax.jit(gwnet_forward)(params, inputs, targets)
    jax.block_until_ready((loss, prob))
    assert prob.shape == (B * N_NODES,) and loss.shape == ()
    print("KERNEL_OK")
</pallas_src>

<mosaic_0001>
module attributes {stable_mosaic.version = 11 : i64} {
  func.func @_adp_kernel(%arg0: memref<16x10xf32, #tpu.memory_space<vmem>>, %arg1: memref<10x16xf32, #tpu.memory_space<vmem>>, %arg2: memref<16x16xf32, #tpu.memory_space<vmem>>) attributes {dimension_semantics = [], scalar_prefetch = 0 : i64, scratch_operands = 0 : i64, tpu.core_type = #tpu.core_type<tc>} {
    %c0 = arith.constant 0 : index
    %c0_0 = arith.constant 0 : index
    %0 = vector.load %arg0[%c0, %c0_0] : memref<16x10xf32, #tpu.memory_space<vmem>>, vector<16x10xf32>
    %c0_1 = arith.constant 0 : index
    %c0_2 = arith.constant 0 : index
    %1 = vector.load %arg1[%c0_1, %c0_2] : memref<10x16xf32, #tpu.memory_space<vmem>>, vector<10x16xf32>
    %cst = arith.constant dense<0.000000e+00> : vector<16x16xf32>
    %2 = tpu.matmul %0, %1, %cst {dimension_numbers = #tpu.dot_dimension_numbers<[1], [0], [0], [1], [0, 0, 1, 1], [], []>} : vector<16x10xf32>, vector<10x16xf32>, vector<16x16xf32> -> vector<16x16xf32>
    %cst_3 = arith.constant 0.000000e+00 : f32
    %3 = vector.broadcast %cst_3 : f32 to vector<16x16xf32>
    %4 = arith.maximumf %2, %3 : vector<16x16xf32>
    %cst_4 = arith.constant dense<0xFF800000> : vector<16xf32>
    %5 = vector.multi_reduction <maximumf>, %4, %cst_4 [1] : vector<16x16xf32> to vector<16xf32>
    %6 = vector.shape_cast %5 : vector<16xf32> to vector<16x1xf32>
    %7 = vector.broadcast %6 : vector<16x1xf32> to vector<16x16xf32>
    %8 = arith.subf %4, %7 : vector<16x16xf32>
    %9 = math.exp %8 : vector<16x16xf32>
    %cst_5 = arith.constant dense<0.000000e+00> : vector<16xf32>
    %10 = vector.multi_reduction <add>, %9, %cst_5 [1] : vector<16x16xf32> to vector<16xf32>
    %11 = vector.shape_cast %10 : vector<16xf32> to vector<16x1xf32>
    %12 = vector.broadcast %11 : vector<16x1xf32> to vector<16x16xf32>
    %13 = arith.divf %9, %12 : vector<16x16xf32>
    %c0_6 = arith.constant 0 : index
    %c0_7 = arith.constant 0 : index
    %14 = vector.load %arg2[%c0_6, %c0_7] : memref<16x16xf32, #tpu.memory_space<vmem>>, vector<16x16xf32>
    tpu.vector_store %arg2[%c0_6, %c0_7], %13 {strides = array<i32>} : memref<16x16xf32, #tpu.memory_space<vmem>>, vector<16x16xf32>,
    return
  }
}

module attributes {stable_mosaic.version = 11 : i64} {
  func.func @_net_kernel(%arg0: i32, %arg1: memref<1x61x64xf32, #tpu.memory_space<vmem>>, %arg2: memref<1x1x16xf32, #tpu.memory_space<vmem>>, %arg3: memref<64x128xf32, #tpu.memory_space<vmem>>, %arg4: memref<1x128xf32, #tpu.memory_space<vmem>>, %arg5: memref<16x256x256xf32, #tpu.memory_space<vmem>>, %arg6: memref<16x1x256xf32, #tpu.memory_space<vmem>>, %arg7: memref<16x128x256xf32, #tpu.memory_space<vmem>>, %arg8: memref<16x1x256xf32, #tpu.memory_space<vmem>>, %arg9: memref<128x128xf32, #tpu.memory_space<vmem>>, %arg10: memref<1x128xf32, #tpu.memory_space<vmem>>, %arg11: memref<128x16xf32, #tpu.memory_space<vmem>>, %arg12: memref<1x16xf32, #tpu.memory_space<vmem>>, %arg13: memref<1x1x16xf32, #tpu.memory_space<vmem>>, %arg14: memref<1x1x16xf32, #tpu.memory_space<vmem>>) attributes {dimension_semantics = [#tpu.dimension_semantics<parallel>], iteration_bounds = array<i64: 2>, scalar_prefetch = 0 : i64, scratch_operands = 0 : i64, tpu.core_type = #tpu.core_type<tc>, window_params = [{transform_indices = @transform_0, window_bounds = array<i64: 1, 61, 64>}, {transform_indices = @transform_1, window_bounds = array<i64: 1, 1, 16>}, {pipeline_mode = #tpu.pipeline_mode<synchronous>, transform_indices = @transform_2, window_bounds = array<i64: 64, 128>}, {pipeline_mode = #tpu.pipeline_mode<synchronous>, transform_indices = @transform_3, window_bounds = array<i64: 1, 128>}, {pipeline_mode = #tpu.pipeline_mode<synchronous>, transform_indices = @transform_4, window_bounds = array<i64: 16, 256, 256>}, {pipeline_mode = #tpu.pipeline_mode<synchronous>, transform_indices = @transform_5, window_bounds = array<i64: 16, 1, 256>}, {pipeline_mode = #tpu.pipeline_mode<synchronous>, transform_indices = @transform_6, window_bounds = array<i64: 16, 128, 256>}, {pipeline_mode = #tpu.pipeline_mode<synchronous>, transform_indices = @transform_7, window_bounds = array<i64: 16, 1, 256>}, {pipeline_mode = #tpu.pipeline_mode<synchronous>, transform_indices = @transform_8, window_bounds = array<i64: 128, 128>}, {pipeline_mode = #tpu.pipeline_mode<synchronous>, transform_indices = @transform_9, window_bounds = array<i64: 1, 128>}, {pipeline_mode = #tpu.pipeline_mode<synchronous>, transform_indices = @transform_10, window_bounds = array<i64: 128, 16>}, {pipeline_mode = #tpu.pipeline_mode<synchronous>, transform_indices = @transform_11, window_bounds = array<i64: 1, 16>}, {transform_indices = @transform_12, window_bounds = array<i64: 1, 1, 16>}, {transform_indices = @transform_13, window_bounds = array<i64: 1, 1, 16>}]} {
    %c0 = arith.constant 0 : index
    %c0_0 = arith.constant 0 : index
    %c0_1 = arith.constant 0 : index
    %0 = vector.load %arg1[%c0, %c0_0, %c0_1] : memref<1x61x64xf32, #tpu.memory_space<vmem>>, vector<1x61x64xf32>
    %1 = vector.shape_cast %0 : vector<1x61x64xf32> to vector<61x64xf32>
    %c0_2 = arith.constant 0 : index
    %c0_3 = arith.constant 0 : index
    %2 = vector.load %arg3[%c0_2, %c0_3] : memref<64x128xf32, #tpu.memory_space<vmem>>, vector<64x128xf32>
    %cst = arith.constant dense<0.000000e+00> : vector<61x128xf32>
    %3 = tpu.matmul %1, %2, %cst {dimension_numbers = #tpu.dot_dimension_numbers<[1], [0], [0], [1], [0, 0, 1, 1], [], []>} : vector<61x64xf32>, vector<64x128xf32>, vector<61x128xf32> -> vector<61x128xf32>
    %c0_4 = arith.constant 0 : index
    %c0_5 = arith.constant 0 : index
    %4 = vector.load %arg4[%c0_4, %c0_5] : memref<1x128xf32, #tpu.memory_space<vmem>>, vector<1x128xf32>
    %5 = vector.broadcast %4 : vector<1x128xf32> to vector<61x128xf32>
    %6 = arith.addf %3, %5 : vector<61x128xf32>
    %7 = vector.extract_strided_slice %6 {offsets = [0, 0], sizes = [60, 128], strides = [1, 1]} : vector<61x128xf32> to vector<60x128xf32>
    %8 = vector.extract_strided_slice %6 {offsets = [1, 0], sizes = [60, 128], strides = [1, 1]} : vector<61x128xf32> to vector<60x128xf32>
    %9 = tpu.concatenate %7, %8 in 1 : vector<60x128xf32>, vector<60x128xf32> -> vector<60x256xf32>
    %c0_6 = arith.constant 0 : index
    %c0_7 = arith.constant 0 : index
    %c0_8 = arith.constant 0 : index
    %10 = vector.load %arg5[%c0_6, %c0_7, %c0_8] : memref<16x256x256xf32, #tpu.memory_space<vmem>>, vector<1x256x256xf32>
    %11 = vector.shape_cast %10 : vector<1x256x256xf32> to vector<256x256xf32>
    %cst_9 = arith.constant dense<0.000000e+00> : vector<60x256xf32>
    %12 = tpu.matmul %9, %11, %cst_9 {dimension_numbers = #tpu.dot_dimension_numbers<[1], [0], [0], [1], [0, 0, 1, 1], [], []>} : vector<60x256xf32>, vector<256x256xf32>, vector<60x256xf32> -> vector<60x256xf32>
    %c0_10 = arith.constant 0 : index
    %c0_11 = arith.constant 0 : index
    %c0_12 = arith.constant 0 : index
    %13 = vector.load %arg6[%c0_10, %c0_11, %c0_12] : memref<16x1x256xf32, #tpu.memory_space<vmem>>, vector<1x1x256xf32>
    %14 = vector.shape_cast %13 : vector<1x1x256xf32> to vector<1x256xf32>
    %15 = vector.broadcast %14 : vector<1x256xf32> to vector<60x256xf32>
    %16 = arith.addf %12, %15 : vector<60x256xf32>
    %17 = vector.extract_strided_slice %16 {offsets = [0, 0], sizes = [60, 128], strides = [1, 1]} : vector<60x256xf32> to vector<60x128xf32>
    %18 = math.tanh %17 : vector<60x128xf32>
    %19 = vector.extract_strided_slice %16 {offsets = [0, 128], sizes = [60, 128], strides = [1, 1]} : vector<60x256xf32> to vector<60x128xf32>
    %cst_13 = arith.constant 0.000000e+00 : f32
    %20 = vector.broadcast %cst_13 : f32 to vector<60x128xf32>
    %21 = arith.subf %20, %19 : vector<60x128xf32>
    %22 = math.exp %21 : vector<60x128xf32>
    %cst_14 = arith.constant 1.000000e+00 : f32
    %23 = vector.broadcast %cst_14 : f32 to vector<60x128xf32>
    %24 = arith.addf %23, %22 : vector<60x128xf32>
    %cst_15 = arith.constant 1.000000e+00 : f32
    %25 = vector.broadcast %cst_15 : f32 to vector<60x128xf32>
    %26 = arith.divf %25, %24 : vector<60x128xf32>
    %27 = arith.mulf %18, %26 : vector<60x128xf32>
    %c0_16 = arith.constant 0 : index
    %c0_17 = arith.constant 0 : index
    %c0_18 = arith.constant 0 : index
    %28 = vector.load %arg7[%c0_16, %c0_17, %c0_18] : memref<16x128x256xf32, #tpu.memory_space<vmem>>, vector<1x128x256xf32>
    %29 = vector.shape_cast %28 : vector<1x128x256xf32> to vector<128x256xf32>
    %cst_19 = arith.constant dense<0.000000e+00> : vector<60x256xf32>
    %30 = tpu.matmul %27, %29, %cst_19 {dimension_numbers = #tpu.dot_dimension_numbers<[1], [0], [0], [1], [0, 0, 1, 1], [], []>} : vector<60x128xf32>, vector<128x256xf32>, vector<60x256xf32> -> vector<60x256xf32>
    %c0_20 = arith.constant 0 : index
    %c0_21 = arith.constant 0 : index
    %c0_22 = arith.constant 0 : index
    %31 = vector.load %arg8[%c0_20, %c0_21, %c0_22] : memref<16x1x256xf32, #tpu.memory_space<vmem>>, vector<1x1x256xf32>
    %32 = vector.shape_cast %31 : vector<1x1x256xf32> to vector<1x256xf32>
    %33 = vector.broadcast %32 : vector<1x256xf32> to vector<60x256xf32>
    %34 = arith.addf %30, %33 : vector<60x256xf32>
    %35 = vector.extract_strided_slice %34 {offsets = [0, 0], sizes = [60, 128], strides = [1, 1]} : vector<60x256xf32> to vector<60x128xf32>
    %36 = vector.extract_strided_slice %34 {offsets = [0, 128], sizes = [60, 128], strides = [1, 1]} : vector<60x256xf32> to vector<60x128xf32>
    %37 = arith.addf %36, %8 : vector<60x128xf32>
    %cst_23 = arith.constant 0.999994993 : f32
    %38 = vector.broadcast %cst_23 : f32 to vector<60x128xf32>
    %39 = arith.mulf %37, %38 : vector<60x128xf32>
    %40 = vector.extract_strided_slice %39 {offsets = [0, 0], sizes = [58, 128], strides = [1, 1]} : vector<60x128xf32> to vector<58x128xf32>
    %41 = vector.extract_strided_slice %39 {offsets = [2, 0], sizes = [58, 128], strides = [1, 1]} : vector<60x128xf32> to vector<58x128xf32>
    %42 = tpu.concatenate %40, %41 in 1 : vector<58x128xf32>, vector<58x128xf32> -> vector<58x256xf32>
    %c1 = arith.constant 1 : index
    %c0_24 = arith.constant 0 : index
    %c0_25 = arith.constant 0 : index
    %43 = vector.load %arg5[%c1, %c0_24, %c0_25] : memref<16x256x256xf32, #tpu.memory_space<vmem>>, vector<1x256x256xf32>
    %44 = vector.shape_cast %43 : vector<1x256x256xf32> to vector<256x256xf32>
    %cst_26 = arith.constant dense<0.000000e+00> : vector<58x256xf32>
    %45 = tpu.matmul %42, %44, %cst_26 {dimension_numbers = #tpu.dot_dimension_numbers<[1], [0], [0], [1], [0, 0, 1, 1], [], []>} : vector<58x256xf32>, vector<256x256xf32>, vector<58x256xf32> -> vector<58x256xf32>
    %c1_27 = arith.constant 1 : index
    %c0_28 = arith.constant 0 : index
    %c0_29 = arith.constant 0 : index
    %46 = vector.load %arg6[%c1_27, %c0_28, %c0_29] : memref<16x1x256xf32, #tpu.memory_space<vmem>>, vector<1x1x256xf32>
    %47 = vector.shape_cast %46 : vector<1x1x256xf32> to vector<1x256xf32>
    %48 = vector.broadcast %47 : vector<1x256xf32> to vector<58x256xf32>
    %49 = arith.addf %45, %48 : vector<58x256xf32>
    %50 = vector.extract_strided_slice %49 {offsets = [0, 0], sizes = [58, 128], strides = [1, 1]} : vector<58x256xf32> to vector<58x128xf32>
    %51 = math.tanh %50 : vector<58x128xf32>
    %52 = vector.extract_strided_slice %49 {offsets = [0, 128], sizes = [58, 128], strides = [1, 1]} : vector<58x256xf32> to vector<58x128xf32>
    %cst_30 = arith.constant 0.000000e+00 : f32
    %53 = vector.broadcast %cst_30 : f32 to vector<58x128xf32>
    %54 = arith.subf %53, %52 : vector<58x128xf32>
    %55 = math.exp %54 : vector<58x128xf32>
    %cst_31 = arith.constant 1.000000e+00 : f32
    %56 = vector.broadcast %cst_31 : f32 to vector<58x128xf32>
    %57 = arith.addf %56, %55 : vector<58x128xf32>
    %cst_32 = arith.constant 1.000000e+00 : f32
    %58 = vector.broadcast %cst_32 : f32 to vector<58x128xf32>
    %59 = arith.divf %58, %57 : vector<58x128xf32>
    %60 = arith.mulf %51, %59 : vector<58x128xf32>
    %c1_33 = arith.constant 1 : index
    %c0_34 = arith.constant 0 : index
    %c0_35 = arith.constant 0 : index
    %61 = vector.load %arg7[%c1_33, %c0_34, %c0_35] : memref<16x128x256xf32, #tpu.memory_space<vmem>>, vector<1x128x256xf32>
    %62 = vector.shape_cast %61 : vector<1x128x256xf32> to vector<128x256xf32>
    %cst_36 = arith.constant dense<0.000000e+00> : vector<58x256xf32>
    %63 = tpu.matmul %60, %62, %cst_36 {dimension_numbers = #tpu.dot_dimension_numbers<[1], [0], [0], [1], [0, 0, 1, 1], [], []>} : vector<58x128xf32>, vector<128x256xf32>, vector<58x256xf32> -> vector<58x256xf32>
    %c1_37 = arith.constant 1 : index
    %c0_38 = arith.constant 0 : index
    %c0_39 = arith.constant 0 : index
    %64 = vector.load %arg8[%c1_37, %c0_38, %c0_39] : memref<16x1x256xf32, #tpu.memory_space<vmem>>, vector<1x1x256xf32>
    %65 = vector.shape_cast %64 : vector<1x1x256xf32> to vector<1x256xf32>
    %66 = vector.broadcast %65 : vector<1x256xf32> to vector<58x256xf32>
    %67 = arith.addf %63, %66 : vector<58x256xf32>
    %68 = vector.extract_strided_slice %67 {offsets = [0, 0], sizes = [58, 128], strides = [1, 1]} : vector<58x256xf32> to vector<58x128xf32>
    %69 = vector.extract_strided_slice %67 {offsets = [0, 128], sizes = [58, 128], strides = [1, 1]} : vector<58x256xf32> to vector<58x128xf32>
    %70 = vector.extract_strided_slice %35 {offsets = [2, 0], sizes = [58, 128], strides = [1, 1]} : vector<60x128xf32> to vector<58x128xf32>
    %71 = arith.addf %68, %70 : vector<58x128xf32>
    %72 = arith.addf %69, %41 : vector<58x128xf32>
    %cst_40 = arith.constant 0.999994993 : f32
    %73 = vector.broadcast %cst_40 : f32 to vector<58x128xf32>
    %74 = arith.mulf %72, %73 : vector<58x128xf32>
    %75 = vector.extract_strided_slice %74 {offsets = [0, 0], sizes = [54, 128], strides = [1, 1]} : vector<58x128xf32> to vector<54x128xf32>
    %76 = vector.extract_strided_slice %74 {offsets = [4, 0], sizes = [54, 128], strides = [1, 1]} : vector<58x128xf32> to vector<54x128xf32>
    %77 = tpu.concatenate %75, %76 in 1 : vector<54x128xf32>, vector<54x128xf32> -> vector<54x256xf32>
    %c2 = arith.constant 2 : index
    %c0_41 = arith.constant 0 : index
    %c0_42 = arith.constant 0 : index
    %78 = vector.load %arg5[%c2, %c0_41, %c0_42] : memref<16x256x256xf32, #tpu.memory_space<vmem>>, vector<1x256x256xf32>
    %79 = vector.shape_cast %78 : vector<1x256x256xf32> to vector<256x256xf32>
    %cst_43 = arith.constant dense<0.000000e+00> : vector<54x256xf32>
    %80 = tpu.matmul %77, %79, %cst_43 {dimension_numbers = #tpu.dot_dimension_numbers<[1], [0], [0], [1], [0, 0, 1, 1], [], []>} : vector<54x256xf32>, vector<256x256xf32>, vector<54x256xf32> -> vector<54x256xf32>
    %c2_44 = arith.constant 2 : index
    %c0_45 = arith.constant 0 : index
    %c0_46 = arith.constant 0 : index
    %81 = vector.load %arg6[%c2_44, %c0_45, %c0_46] : memref<16x1x256xf32, #tpu.memory_space<vmem>>, vector<1x1x256xf32>
    %82 = vector.shape_cast %81 : vector<1x1x256xf32> to vector<1x256xf32>
    %83 = vector.broadcast %82 : vector<1x256xf32> to vector<54x256xf32>
    %84 = arith.addf %80, %83 : vector<54x256xf32>
    %85 = vector.extract_strided_slice %84 {offsets = [0, 0], sizes = [54, 128], strides = [1, 1]} : vector<54x256xf32> to vector<54x128xf32>
    %86 = math.tanh %85 : vector<54x128xf32>
    %87 = vector.extract_strided_slice %84 {offsets = [0, 128], sizes = [54, 128], strides = [1, 1]} : vector<54x256xf32> to vector<54x128xf32>
    %cst_47 = arith.constant 0.000000e+00 : f32
    %88 = vector.broadcast %cst_47 : f32 to vector<54x128xf32>
    %89 = arith.subf %88, %87 : vector<54x128xf32>
    %90 = math.exp %89 : vector<54x128xf32>
    %cst_48 = arith.constant 1.000000e+00 : f32
    %91 = vector.broadcast %cst_48 : f32 to vector<54x128xf32>
    %92 = arith.addf %91, %90 : vector<54x128xf32>
    %cst_49 = arith.constant 1.000000e+00 : f32
    %93 = vector.broadcast %cst_49 : f32 to vector<54x128xf32>
    %94 = arith.divf %93, %92 : vector<54x128xf32>
    %95 = arith.mulf %86, %94 : vector<54x128xf32>
    %c2_50 = arith.constant 2 : index
    %c0_51 = arith.constant 0 : index
    %c0_52 = arith.constant 0 : index
    %96 = vector.load %arg7[%c2_50, %c0_51, %c0_52] : memref<16x128x256xf32, #tpu.memory_space<vmem>>, vector<1x128x256xf32>
    %97 = vector.shape_cast %96 : vector<1x128x256xf32> to vector<128x256xf32>
    %cst_53 = arith.constant dense<0.000000e+00> : vector<54x256xf32>
    %98 = tpu.matmul %95, %97, %cst_53 {dimension_numbers = #tpu.dot_dimension_numbers<[1], [0], [0], [1], [0, 0, 1, 1], [], []>} : vector<54x128xf32>, vector<128x256xf32>, vector<54x256xf32> -> vector<54x256xf32>
    %c2_54 = arith.constant 2 : index
    %c0_55 = arith.constant 0 : index
    %c0_56 = arith.constant 0 : index
    %99 = vector.load %arg8[%c2_54, %c0_55, %c0_56] : memref<16x1x256xf32, #tpu.memory_space<vmem>>, vector<1x1x256xf32>
    %100 = vector.shape_cast %99 : vector<1x1x256xf32> to vector<1x256xf32>
    %101 = vector.broadcast %100 : vector<1x256xf32> to vector<54x256xf32>
    %102 = arith.addf %98, %101 : vector<54x256xf32>
    %103 = vector.extract_strided_slice %102 {offsets = [0, 0], sizes = [54, 128], strides = [1, 1]} : vector<54x256xf32> to vector<54x128xf32>
    %104 = vector.extract_strided_slice %102 {offsets = [0, 128], sizes = [54, 128], strides = [1, 1]} : vector<54x256xf32> to vector<54x128xf32>
    %105 = vector.extract_strided_slice %71 {offsets = [4, 0], sizes = [54, 128], strides = [1, 1]} : vector<58x128xf32> to vector<54x128xf32>
    %106 = arith.addf %103, %105 : vector<54x128xf32>
    %107 = arith.addf %104, %76 : vector<54x128xf32>
    %cst_57 = arith.constant 0.999994993 : f32
    %108 = vector.broadcast %cst_57 : f32 to vector<54x128xf32>
    %109 = arith.mulf %107, %108 : vector<54x128xf32>
    %110 = vector.extract_strided_slice %109 {offsets = [0, 0], sizes = [46, 128], strides = [1, 1]} : vector<54x128xf32> to vector<46x128xf32>
    %111 = vector.extract_strided_slice %109 {offsets = [8, 0], sizes = [46, 128], strides = [1, 1]} : vector<54x128xf32> to vector<46x128xf32>
    %112 = tpu.concatenate %110, %111 in 1 : vector<46x128xf32>, vector<46x128xf32> -> vector<46x256xf32>
    %c3 = arith.constant 3 : index
    %c0_58 = arith.constant 0 : index
    %c0_59 = arith.constant 0 : index
    %113 = vector.load %arg5[%c3, %c0_58, %c0_59] : memref<16x256x256xf32, #tpu.memory_space<vmem>>, vector<1x256x256xf32>
    %114 = vector.shape_cast %113 : vector<1x256x256xf32> to vector<256x256xf32>
    %cst_60 = arith.constant dense<0.000000e+00> : vector<46x256xf32>
    %115 = tpu.matmul %112, %114, %cst_60 {dimension_numbers = #tpu.dot_dimension_numbers<[1], [0], [0], [1], [0, 0, 1, 1], [], []>} : vector<46x256xf32>, vector<256x256xf32>, vector<46x256xf32> -> vector<46x256xf32>
    %c3_61 = arith.constant 3 : index
    %c0_62 = arith.constant 0 : index
    %c0_63 = arith.constant 0 : index
    %116 = vector.load %arg6[%c3_61, %c0_62, %c0_63] : memref<16x1x256xf32, #tpu.memory_space<vmem>>, vector<1x1x256xf32>
    %117 = vector.shape_cast %116 : vector<1x1x256xf32> to vector<1x256xf32>
    %118 = vector.broadcast %117 : vector<1x256xf32> to vector<46x256xf32>
    %119 = arith.addf %115, %118 : vector<46x256xf32>
    %120 = vector.extract_strided_slice %119 {offsets = [0, 0], sizes = [46, 128], strides = [1, 1]} : vector<46x256xf32> to vector<46x128xf32>
    %121 = math.tanh %120 : vector<46x128xf32>
    %122 = vector.extract_strided_slice %119 {offsets = [0, 128], sizes = [46, 128], strides = [1, 1]} : vector<46x256xf32> to vector<46x128xf32>
    %cst_64 = arith.constant 0.000000e+00 : f32
    %123 = vector.broadcast %cst_64 : f32 to vector<46x128xf32>
    %124 = arith.subf %123, %122 : vector<46x128xf32>
    %125 = math.exp %124 : vector<46x128xf32>
    %cst_65 = arith.constant 1.000000e+00 : f32
    %126 = vector.broadcast %cst_65 : f32 to vector<46x128xf32>
    %127 = arith.addf %126, %125 : vector<46x128xf32>
    %cst_66 = arith.constant 1.000000e+00 : f32
    %128 = vector.broadcast %cst_66 : f32 to vector<46x128xf32>
    %129 = arith.divf %128, %127 : vector<46x128xf32>
    %130 = arith.mulf %121, %129 : vector<46x128xf32>
    %c3_67 = arith.constant 3 : index
    %c0_68 = arith.constant 0 : index
    %c0_69 = arith.constant 0 : index
    %131 = vector.load %arg7[%c3_67, %c0_68, %c0_69] : memref<16x128x256xf32, #tpu.memory_space<vmem>>, vector<1x128x256xf32>
    %132 = vector.shape_cast %131 : vector<1x128x256xf32> to vector<128x256xf32>
    %cst_70 = arith.constant dense<0.000000e+00> : vector<46x256xf32>
    %133 = tpu.matmul %130, %132, %cst_70 {dimension_numbers = #tpu.dot_dimension_numbers<[1], [0], [0], [1], [0, 0, 1, 1], [], []>} : vector<46x128xf32>, vector<128x256xf32>, vector<46x256xf32> -> vector<46x256xf32>
    %c3_71 = arith.constant 3 : index
    %c0_72 = arith.constant 0 : index
    %c0_73 = arith.constant 0 : index
    %134 = vector.load %arg8[%c3_71, %c0_72, %c0_73] : memref<16x1x256xf32, #tpu.memory_space<vmem>>, vector<1x1x256xf32>
    %135 = vector.shape_cast %134 : vector<1x1x256xf32> to vector<1x256xf32>
    %136 = vector.broadcast %135 : vector<1x256xf32> to vector<46x256xf32>
    %137 = arith.addf %133, %136 : vector<46x256xf32>
    %138 = vector.extract_strided_slice %137 {offsets = [0, 0], sizes = [46, 128], strides = [1, 1]} : vector<46x256xf32> to vector<46x128xf32>
    %139 = vector.extract_strided_slice %137 {offsets = [0, 128], sizes = [46, 128], strides = [1, 1]} : vector<46x256xf32> to vector<46x128xf32>
    %140 = vector.extract_strided_slice %106 {offsets = [8, 0], sizes = [46, 128], strides = [1, 1]} : vector<54x128xf32> to vector<46x128xf32>
    %141 = arith.addf %138, %140 : vector<46x128xf32>
    %142 = arith.addf %139, %111 : vector<46x128xf32>
    %cst_74 = arith.constant 0.999994993 : f32
    %143 = vector.broadcast %cst_74 : f32 to vector<46x128xf32>
    %144 = arith.mulf %142, %143 : vector<46x128xf32>
    %145 = vector.extract_strided_slice %144 {offsets = [0, 0], sizes = [45, 128], strides = [1, 1]} : vector<46x128xf32> to vector<45x128xf32>
    %146 = vector.extract_strided_slice %144 {offsets = [1, 0], sizes = [45, 128], strides = [1, 1]} : vector<46x128xf32> to vector<45x128xf32>
    %147 = tpu.concatenate %145, %146 in 1 : vector<45x128xf32>, vector<45x128xf32> -> vector<45x256xf32>
    %c4 = arith.constant 4 : index
    %c0_75 = arith.constant 0 : index
    %c0_76 = arith.constant 0 : index
    %148 = vector.load %arg5[%c4, %c0_75, %c0_76] : memref<16x256x256xf32, #tpu.memory_space<vmem>>, vector<1x256x256xf32>
    %149 = vector.shape_cast %148 : vector<1x256x256xf32> to vector<256x256xf32>
    %cst_77 = arith.constant dense<0.000000e+00> : vector<45x256xf32>
    %150 = tpu.matmul %147, %149, %cst_77 {dimension_numbers = #tpu.dot_dimension_numbers<[1], [0], [0], [1], [0, 0, 1, 1], [], []>} : vector<45x256xf32>, vector<256x256xf32>, vector<45x256xf32> -> vector<45x256xf32>
    %c4_78 = arith.constant 4 : index
    %c0_79 = arith.constant 0 : index
    %c0_80 = arith.constant 0 : index
    %151 = vector.load %arg6[%c4_78, %c0_79, %c0_80] : memref<16x1x256xf32, #tpu.memory_space<vmem>>, vector<1x1x256xf32>
    %152 = vector.shape_cast %151 : vector<1x1x256xf32> to vector<1x256xf32>
    %153 = vector.broadcast %152 : vector<1x256xf32> to vector<45x256xf32>
    %154 = arith.addf %150, %153 : vector<45x256xf32>
    %155 = vector.extract_strided_slice %154 {offsets = [0, 0], sizes = [45, 128], strides = [1, 1]} : vector<45x256xf32> to vector<45x128xf32>
    %156 = math.tanh %155 : vector<45x128xf32>
    %157 = vector.extract_strided_slice %154 {offsets = [0, 128], sizes = [45, 128], strides = [1, 1]} : vector<45x256xf32> to vector<45x128xf32>
    %cst_81 = arith.constant 0.000000e+00 : f32
    %158 = vector.broadcast %cst_81 : f32 to vector<45x128xf32>
    %159 = arith.subf %158, %157 : vector<45x128xf32>
    %160 = math.exp %159 : vector<45x128xf32>
    %cst_82 = arith.constant 1.000000e+00 : f32
    %161 = vector.broadcast %cst_82 : f32 to vector<45x128xf32>
    %162 = arith.addf %161, %160 : vector<45x128xf32>
    %cst_83 = arith.constant 1.000000e+00 : f32
    %163 = vector.broadcast %cst_83 : f32 to vector<45x128xf32>
    %164 = arith.divf %163, %162 : vector<45x128xf32>
    %165 = arith.mulf %156, %164 : vector<45x128xf32>
    %c4_84 = arith.constant 4 : index
    %c0_85 = arith.constant 0 : index
    %c0_86 = arith.constant 0 : index
    %166 = vector.load %arg7[%c4_84, %c0_85, %c0_86] : memref<16x128x256xf32, #tpu.memory_space<vmem>>, vector<1x128x256xf32>
    %167 = vector.shape_cast %166 : vector<1x128x256xf32> to vector<128x256xf32>
    %cst_87 = arith.constant dense<0.000000e+00> : vector<45x256xf32>
    %168 = tpu.matmul %165, %167, %cst_87 {dimension_numbers = #tpu.dot_dimension_numbers<[1], [0], [0], [1], [0, 0, 1, 1], [], []>} : vector<45x128xf32>, vector<128x256xf32>, vector<45x256xf32> -> vector<45x256xf32>
    %c4_88 = arith.constant 4 : index
    %c0_89 = arith.constant 0 : index
    %c0_90 = arith.constant 0 : index
    %169 = vector.load %arg8[%c4_88, %c0_89, %c0_90] : memref<16x1x256xf32, #tpu.memory_space<vmem>>, vector<1x1x256xf32>
    %170 = vector.shape_cast %169 : vector<1x1x256xf32> to vector<1x256xf32>
    %171 = vector.broadcast %170 : vector<1x256xf32> to vector<45x256xf32>
    %172 = arith.addf %168, %171 : vector<45x256xf32>
    %173 = vector.extract_strided_slice %172 {offsets = [0, 0], sizes = [45, 128], strides = [1, 1]} : vector<45x256xf32> to vector<45x128xf32>
    %174 = vector.extract_strided_slice %172 {offsets = [0, 128], sizes = [45, 128], strides = [1, 1]} : vector<45x256xf32> to vector<45x128xf32>
    %175 = vector.extract_strided_slice %141 {offsets = [1, 0], sizes = [45, 128], strides = [1, 1]} : vector<46x128xf32> to vector<45x128xf32>
    %176 = arith.addf %173, %175 : vector<45x128xf32>
    %177 = arith.addf %174, %146 : vector<45x128xf32>
    %cst_91 = arith.constant 0.999994993 : f32
    %178 = vector.broadcast %cst_91 : f32 to vector<45x128xf32>
    %179 = arith.mulf %177, %178 : vector<45x128xf32>
    %180 = vector.extract_strided_slice %179 {offsets = [0, 0], sizes = [43, 128], strides = [1, 1]} : vector<45x128xf32> to vector<43x128xf32>
    %181 = vector.extract_strided_slice %179 {offsets = [2, 0], sizes = [43, 128], strides = [1, 1]} : vector<45x128xf32> to vector<43x128xf32>
    %182 = tpu.concatenate %180, %181 in 1 : vector<43x128xf32>, vector<43x128xf32> -> vector<43x256xf32>
    %c5 = arith.constant 5 : index
    %c0_92 = arith.constant 0 : index
    %c0_93 = arith.constant 0 : index
    %183 = vector.load %arg5[%c5, %c0_92, %c0_93] : memref<16x256x256xf32, #tpu.memory_space<vmem>>, vector<1x256x256xf32>
    %184 = vector.shape_cast %183 : vector<1x256x256xf32> to vector<256x256xf32>
    %cst_94 = arith.constant dense<0.000000e+00> : vector<43x256xf32>
    %185 = tpu.matmul %182, %184, %cst_94 {dimension_numbers = #tpu.dot_dimension_numbers<[1], [0], [0], [1], [0, 0, 1, 1], [], []>} : vector<43x256xf32>, vector<256x256xf32>, vector<43x256xf32> -> vector<43x256xf32>
    %c5_95 = arith.constant 5 : index
    %c0_96 = arith.constant 0 : index
    %c0_97 = arith.constant 0 : index
    %186 = vector.load %arg6[%c5_95, %c0_96, %c0_97] : memref<16x1x256xf32, #tpu.memory_space<vmem>>, vector<1x1x256xf32>
    %187 = vector.shape_cast %186 : vector<1x1x256xf32> to vector<1x256xf32>
    %188 = vector.broadcast %187 : vector<1x256xf32> to vector<43x256xf32>
    %189 = arith.addf %185, %188 : vector<43x256xf32>
    %190 = vector.extract_strided_slice %189 {offsets = [0, 0], sizes = [43, 128], strides = [1, 1]} : vector<43x256xf32> to vector<43x128xf32>
    %191 = math.tanh %190 : vector<43x128xf32>
    %192 = vector.extract_strided_slice %189 {offsets = [0, 128], sizes = [43, 128], strides = [1, 1]} : vector<43x256xf32> to vector<43x128xf32>
    %cst_98 = arith.constant 0.000000e+00 : f32
    %193 = vector.broadcast %cst_98 : f32 to vector<43x128xf32>
    %194 = arith.subf %193, %192 : vector<43x128xf32>
    %195 = math.exp %194 : vector<43x128xf32>
    %cst_99 = arith.constant 1.000000e+00 : f32
    %196 = vector.broadcast %cst_99 : f32 to vector<43x128xf32>
    %197 = arith.addf %196, %195 : vector<43x128xf32>
    %cst_100 = arith.constant 1.000000e+00 : f32
    %198 = vector.broadcast %cst_100 : f32 to vector<43x128xf32>
    %199 = arith.divf %198, %197 : vector<43x128xf32>
    %200 = arith.mulf %191, %199 : vector<43x128xf32>
    %c5_101 = arith.constant 5 : index
    %c0_102 = arith.constant 0 : index
    %c0_103 = arith.constant 0 : index
    %201 = vector.load %arg7[%c5_101, %c0_102, %c0_103] : memref<16x128x256xf32, #tpu.memory_space<vmem>>, vector<1x128x256xf32>
    %202 = vector.shape_cast %201 : vector<1x128x256xf32> to vector<128x256xf32>
    %cst_104 = arith.constant dense<0.000000e+00> : vector<43x256xf32>
    %203 = tpu.matmul %200, %202, %cst_104 {dimension_numbers = #tpu.dot_dimension_numbers<[1], [0], [0], [1], [0, 0, 1, 1], [], []>} : vector<43x128xf32>, vector<128x256xf32>, vector<43x256xf32> -> vector<43x256xf32>
    %c5_105 = arith.constant 5 : index
    %c0_106 = arith.constant 0 : index
    %c0_107 = arith.constant 0 : index
    %204 = vector.load %arg8[%c5_105, %c0_106, %c0_107] : memref<16x1x256xf32, #tpu.memory_space<vmem>>, vector<1x1x256xf32>
    %205 = vector.shape_cast %204 : vector<1x1x256xf32> to vector<1x256xf32>
    %206 = vector.broadcast %205 : vector<1x256xf32> to vector<43x256xf32>
    %207 = arith.addf %203, %206 : vector<43x256xf32>
    %208 = vector.extract_strided_slice %207 {offsets = [0, 0], sizes = [43, 128], strides = [1, 1]} : vector<43x256xf32> to vector<43x128xf32>
    %209 = vector.extract_strided_slice %207 {offsets = [0, 128], sizes = [43, 128], strides = [1, 1]} : vector<43x256xf32> to vector<43x128xf32>
    %210 = vector.extract_strided_slice %176 {offsets = [2, 0], sizes = [43, 128], strides = [1, 1]} : vector<45x128xf32> to vector<43x128xf32>
    %211 = arith.addf %208, %210 : vector<43x128xf32>
    %212 = arith.addf %209, %181 : vector<43x128xf32>
    %cst_108 = arith.constant 0.999994993 : f32
    %213 = vector.broadcast %cst_108 : f32 to vector<43x128xf32>
    %214 = arith.mulf %212, %213 : vector<43x128xf32>
    %215 = vector.extract_strided_slice %214 {offsets = [0, 0], sizes = [39, 128], strides = [1, 1]} : vector<43x128xf32> to vector<39x128xf32>
    %216 = vector.extract_strided_slice %214 {offsets = [4, 0], sizes = [39, 128], strides = [1, 1]} : vector<43x128xf32> to vector<39x128xf32>
    %217 = tpu.concatenate %215, %216 in 1 : vector<39x128xf32>, vector<39x128xf32> -> vector<39x256xf32>
    %c6 = arith.constant 6 : index
    %c0_109 = arith.constant 0 : index
    %c0_110 = arith.constant 0 : index
    %218 = vector.load %arg5[%c6, %c0_109, %c0_110] : memref<16x256x256xf32, #tpu.memory_space<vmem>>, vector<1x256x256xf32>
    %219 = vector.shape_cast %218 : vector<1x256x256xf32> to vector<256x256xf32>
    %cst_111 = arith.constant dense<0.000000e+00> : vector<39x256xf32>
    %220 = tpu.matmul %217, %219, %cst_111 {dimension_numbers = #tpu.dot_dimension_numbers<[1], [0], [0], [1], [0, 0, 1, 1], [], []>} : vector<39x256xf32>, vector<256x256xf32>, vector<39x256xf32> -> vector<39x256xf32>
    %c6_112 = arith.constant 6 : index
    %c0_113 = arith.constant 0 : index
    %c0_114 = arith.constant 0 : index
    %221 = vector.load %arg6[%c6_112, %c0_113, %c0_114] : memref<16x1x256xf32, #tpu.memory_space<vmem>>, vector<1x1x256xf32>
    %222 = vector.shape_cast %221 : vector<1x1x256xf32> to vector<1x256xf32>
    %223 = vector.broadcast %222 : vector<1x256xf32> to vector<39x256xf32>
    %224 = arith.addf %220, %223 : vector<39x256xf32>
    %225 = vector.extract_strided_slice %224 {offsets = [0, 0], sizes = [39, 128], strides = [1, 1]} : vector<39x256xf32> to vector<39x128xf32>
    %226 = math.tanh %225 : vector<39x128xf32>
    %227 = vector.extract_strided_slice %224 {offsets = [0, 128], sizes = [39, 128], strides = [1, 1]} : vector<39x256xf32> to vector<39x128xf32>
    %cst_115 = arith.constant 0.000000e+00 : f32
    %228 = vector.broadcast %cst_115 : f32 to vector<39x128xf32>
    %229 = arith.subf %228, %227 : vector<39x128xf32>
    %230 = math.exp %229 : vector<39x128xf32>
    %cst_116 = arith.constant 1.000000e+00 : f32
    %231 = vector.broadcast %cst_116 : f32 to vector<39x128xf32>
    %232 = arith.addf %231, %230 : vector<39x128xf32>
    %cst_117 = arith.constant 1.000000e+00 : f32
    %233 = vector.broadcast %cst_117 : f32 to vector<39x128xf32>
    %234 = arith.divf %233, %232 : vector<39x128xf32>
    %235 = arith.mulf %226, %234 : vector<39x128xf32>
    %c6_118 = arith.constant 6 : index
    %c0_119 = arith.constant 0 : index
    %c0_120 = arith.constant 0 : index
    %236 = vector.load %arg7[%c6_118, %c0_119, %c0_120] : memref<16x128x256xf32, #tpu.memory_space<vmem>>, vector<1x128x256xf32>
    %237 = vector.shape_cast %236 : vector<1x128x256xf32> to vector<128x256xf32>
    %cst_121 = arith.constant dense<0.000000e+00> : vector<39x256xf32>
    %238 = tpu.matmul %235, %237, %cst_121 {dimension_numbers = #tpu.dot_dimension_numbers<[1], [0], [0], [1], [0, 0, 1, 1], [], []>} : vector<39x128xf32>, vector<128x256xf32>, vector<39x256xf32> -> vector<39x256xf32>
    %c6_122 = arith.constant 6 : index
    %c0_123 = arith.constant 0 : index
    %c0_124 = arith.constant 0 : index
    %239 = vector.load %arg8[%c6_122, %c0_123, %c0_124] : memref<16x1x256xf32, #tpu.memory_space<vmem>>, vector<1x1x256xf32>
    %240 = vector.shape_cast %239 : vector<1x1x256xf32> to vector<1x256xf32>
    %241 = vector.broadcast %240 : vector<1x256xf32> to vector<39x256xf32>
    %242 = arith.addf %238, %241 : vector<39x256xf32>
    %243 = vector.extract_strided_slice %242 {offsets = [0, 0], sizes = [39, 128], strides = [1, 1]} : vector<39x256xf32> to vector<39x128xf32>
    %244 = vector.extract_strided_slice %242 {offsets = [0, 128], sizes = [39, 128], strides = [1, 1]} : vector<39x256xf32> to vector<39x128xf32>
    %245 = vector.extract_strided_slice %211 {offsets = [4, 0], sizes = [39, 128], strides = [1, 1]} : vector<43x128xf32> to vector<39x128xf32>
    %246 = arith.addf %243, %245 : vector<39x128xf32>
    %247 = arith.addf %244, %216 : vector<39x128xf32>
    %cst_125 = arith.constant 0.999994993 : f32
    %248 = vector.broadcast %cst_125 : f32 to vector<39x128xf32>
    %249 = arith.mulf %247, %248 : vector<39x128xf32>
    %250 = vector.extract_strided_slice %249 {offsets = [0, 0], sizes = [31, 128], strides = [1, 1]} : vector<39x128xf32> to vector<31x128xf32>
    %251 = vector.extract_strided_slice %249 {offsets = [8, 0], sizes = [31, 128], strides = [1, 1]} : vector<39x128xf32> to vector<31x128xf32>
    %252 = tpu.concatenate %250, %251 in 1 : vector<31x128xf32>, vector<31x128xf32> -> vector<31x256xf32>
    %c7 = arith.constant 7 : index
    %c0_126 = arith.constant 0 : index
    %c0_127 = arith.constant 0 : index
    %253 = vector.load %arg5[%c7, %c0_126, %c0_127] : memref<16x256x256xf32, #tpu.memory_space<vmem>>, vector<1x256x256xf32>
    %254 = vector.shape_cast %253 : vector<1x256x256xf32> to vector<256x256xf32>
    %cst_128 = arith.constant dense<0.000000e+00> : vector<31x256xf32>
    %255 = tpu.matmul %252, %254, %cst_128 {dimension_numbers = #tpu.dot_dimension_numbers<[1], [0], [0], [1], [0, 0, 1, 1], [], []>} : vector<31x256xf32>, vector<256x256xf32>, vector<31x256xf32> -> vector<31x256xf32>
    %c7_129 = arith.constant 7 : index
    %c0_130 = arith.constant 0 : index
    %c0_131 = arith.constant 0 : index
    %256 = vector.load %arg6[%c7_129, %c0_130, %c0_131] : memref<16x1x256xf32, #tpu.memory_space<vmem>>, vector<1x1x256xf32>
    %257 = vector.shape_cast %256 : vector<1x1x256xf32> to vector<1x256xf32>
    %258 = vector.broadcast %257 : vector<1x256xf32> to vector<31x256xf32>
    %259 = arith.addf %255, %258 : vector<31x256xf32>
    %260 = vector.extract_strided_slice %259 {offsets = [0, 0], sizes = [31, 128], strides = [1, 1]} : vector<31x256xf32> to vector<31x128xf32>
    %261 = math.tanh %260 : vector<31x128xf32>
    %262 = vector.extract_strided_slice %259 {offsets = [0, 128], sizes = [31, 128], strides = [1, 1]} : vector<31x256xf32> to vector<31x128xf32>
    %cst_132 = arith.constant 0.000000e+00 : f32
    %263 = vector.broadcast %cst_132 : f32 to vector<31x128xf32>
    %264 = arith.subf %263, %262 : vector<31x128xf32>
    %265 = math.exp %264 : vector<31x128xf32>
    %cst_133 = arith.constant 1.000000e+00 : f32
    %266 = vector.broadcast %cst_133 : f32 to vector<31x128xf32>
    %267 = arith.addf %266, %265 : vector<31x128xf32>
    %cst_134 = arith.constant 1.000000e+00 : f32
    %268 = vector.broadcast %cst_134 : f32 to vector<31x128xf32>
    %269 = arith.divf %268, %267 : vector<31x128xf32>
    %270 = arith.mulf %261, %269 : vector<31x128xf32>
    %c7_135 = arith.constant 7 : index
    %c0_136 = arith.constant 0 : index
    %c0_137 = arith.constant 0 : index
    %271 = vector.load %arg7[%c7_135, %c0_136, %c0_137] : memref<16x128x256xf32, #tpu.memory_space<vmem>>, vector<1x128x256xf32>
    %272 = vector.shape_cast %271 : vector<1x128x256xf32> to vector<128x256xf32>
    %cst_138 = arith.constant dense<0.000000e+00> : vector<31x256xf32>
    %273 = tpu.matmul %270, %272, %cst_138 {dimension_numbers = #tpu.dot_dimension_numbers<[1], [0], [0], [1], [0, 0, 1, 1], [], []>} : vector<31x128xf32>, vector<128x256xf32>, vector<31x256xf32> -> vector<31x256xf32>
    %c7_139 = arith.constant 7 : index
    %c0_140 = arith.constant 0 : index
    %c0_141 = arith.constant 0 : index
    %274 = vector.load %arg8[%c7_139, %c0_140, %c0_141] : memref<16x1x256xf32, #tpu.memory_space<vmem>>, vector<1x1x256xf32>
    %275 = vector.shape_cast %274 : vector<1x1x256xf32> to vector<1x256xf32>
    %276 = vector.broadcast %275 : vector<1x256xf32> to vector<31x256xf32>
    %277 = arith.addf %273, %276 : vector<31x256xf32>
    %278 = vector.extract_strided_slice %277 {offsets = [0, 0], sizes = [31, 128], strides = [1, 1]} : vector<31x256xf32> to vector<31x128xf32>
    %279 = vector.extract_strided_slice %277 {offsets = [0, 128], sizes = [31, 128], strides = [1, 1]} : vector<31x256xf32> to vector<31x128xf32>
    %280 = vector.extract_strided_slice %246 {offsets = [8, 0], sizes = [31, 128], strides = [1, 1]} : vector<39x128xf32> to vector<31x128xf32>
    %281 = arith.addf %278, %280 : vector<31x128xf32>
    %282 = arith.addf %279, %251 : vector<31x128xf32>
    %cst_142 = arith.constant 0.999994993 : f32
    %283 = vector.broadcast %cst_142 : f32 to vector<31x128xf32>
    %284 = arith.mulf %282, %283 : vector<31x128xf32>
    %285 = vector.extract_strided_slice %284 {offsets = [0, 0], sizes = [30, 128], strides = [1, 1]} : vector<31x128xf32> to vector<30x128xf32>
    %286 = vector.extract_strided_slice %284 {offsets = [1, 0], sizes = [30, 128], strides = [1, 1]} : vector<31x128xf32> to vector<30x128xf32>
    %287 = tpu.concatenate %285, %286 in 1 : vector<30x128xf32>, vector<30x128xf32> -> vector<30x256xf32>
    %c8 = arith.constant 8 : index
    %c0_143 = arith.constant 0 : index
    %c0_144 = arith.constant 0 : index
    %288 = vector.load %arg5[%c8, %c0_143, %c0_144] : memref<16x256x256xf32, #tpu.memory_space<vmem>>, vector<1x256x256xf32>
    %289 = vector.shape_cast %288 : vector<1x256x256xf32> to vector<256x256xf32>
    %cst_145 = arith.constant dense<0.000000e+00> : vector<30x256xf32>
    %290 = tpu.matmul %287, %289, %cst_145 {dimension_numbers = #tpu.dot_dimension_numbers<[1], [0], [0], [1], [0, 0, 1, 1], [], []>} : vector<30x256xf32>, vector<256x256xf32>, vector<30x256xf32> -> vector<30x256xf32>
    %c8_146 = arith.constant 8 : index
    %c0_147 = arith.constant 0 : index
    %c0_148 = arith.constant 0 : index
    %291 = vector.load %arg6[%c8_146, %c0_147, %c0_148] : memref<16x1x256xf32, #tpu.memory_space<vmem>>, vector<1x1x256xf32>
    %292 = vector.shape_cast %291 : vector<1x1x256xf32> to vector<1x256xf32>
    %293 = vector.broadcast %292 : vector<1x256xf32> to vector<30x256xf32>
    %294 = arith.addf %290, %293 : vector<30x256xf32>
    %295 = vector.extract_strided_slice %294 {offsets = [0, 0], sizes = [30, 128], strides = [1, 1]} : vector<30x256xf32> to vector<30x128xf32>
    %296 = math.tanh %295 : vector<30x128xf32>
    %297 = vector.extract_strided_slice %294 {offsets = [0, 128], sizes = [30, 128], strides = [1, 1]} : vector<30x256xf32> to vector<30x128xf32>
    %cst_149 = arith.constant 0.000000e+00 : f32
    %298 = vector.broadcast %cst_149 : f32 to vector<30x128xf32>
    %299 = arith.subf %298, %297 : vector<30x128xf32>
    %300 = math.exp %299 : vector<30x128xf32>
    %cst_150 = arith.constant 1.000000e+00 : f32
    %301 = vector.broadcast %cst_150 : f32 to vector<30x128xf32>
    %302 = arith.addf %301, %300 : vector<30x128xf32>
    %cst_151 = arith.constant 1.000000e+00 : f32
    %303 = vector.broadcast %cst_151 : f32 to vector<30x128xf32>
    %304 = arith.divf %303, %302 : vector<30x128xf32>
    %305 = arith.mulf %296, %304 : vector<30x128xf32>
    %c8_152 = arith.constant 8 : index
    %c0_153 = arith.constant 0 : index
    %c0_154 = arith.constant 0 : index
    %306 = vector.load %arg7[%c8_152, %c0_153, %c0_154] : memref<16x128x256xf32, #tpu.memory_space<vmem>>, vector<1x128x256xf32>
    %307 = vector.shape_cast %306 : vector<1x128x256xf32> to vector<128x256xf32>
    %cst_155 = arith.constant dense<0.000000e+00> : vector<30x256xf32>
    %308 = tpu.matmul %305, %307, %cst_155 {dimension_numbers = #tpu.dot_dimension_numbers<[1], [0], [0], [1], [0, 0, 1, 1], [], []>} : vector<30x128xf32>, vector<128x256xf32>, vector<30x256xf32> -> vector<30x256xf32>
    %c8_156 = arith.constant 8 : index
    %c0_157 = arith.constant 0 : index
    %c0_158 = arith.constant 0 : index
    %309 = vector.load %arg8[%c8_156, %c0_157, %c0_158] : memref<16x1x256xf32, #tpu.memory_space<vmem>>, vector<1x1x256xf32>
    %310 = vector.shape_cast %309 : vector<1x1x256xf32> to vector<1x256xf32>
    %311 = vector.broadcast %310 : vector<1x256xf32> to vector<30x256xf32>
    %312 = arith.addf %308, %311 : vector<30x256xf32>
    %313 = vector.extract_strided_slice %312 {offsets = [0, 0], sizes = [30, 128], strides = [1, 1]} : vector<30x256xf32> to vector<30x128xf32>
    %314 = vector.extract_strided_slice %312 {offsets = [0, 128], sizes = [30, 128], strides = [1, 1]} : vector<30x256xf32> to vector<30x128xf32>
    %315 = vector.extract_strided_slice %281 {offsets = [1, 0], sizes = [30, 128], strides = [1, 1]} : vector<31x128xf32> to vector<30x128xf32>
    %316 = arith.addf %313, %315 : vector<30x128xf32>
    %317 = arith.addf %314, %286 : vector<30x128xf32>
    %cst_159 = arith.constant 0.999994993 : f32
    %318 = vector.broadcast %cst_159 : f32 to vector<30x128xf32>
    %319 = arith.mulf %317, %318 : vector<30x128xf32>
    %320 = vector.extract_strided_slice %319 {offsets = [0, 0], sizes = [28, 128], strides = [1, 1]} : vector<30x128xf32> to vector<28x128xf32>
    %321 = vector.extract_strided_slice %319 {offsets = [2, 0], sizes = [28, 128], strides = [1, 1]} : vector<30x128xf32> to vector<28x128xf32>
    %322 = tpu.concatenate %320, %321 in 1 : vector<28x128xf32>, vector<28x128xf32> -> vector<28x256xf32>
    %c9 = arith.constant 9 : index
    %c0_160 = arith.constant 0 : index
    %c0_161 = arith.constant 0 : index
    %323 = vector.load %arg5[%c9, %c0_160, %c0_161] : memref<16x256x256xf32, #tpu.memory_space<vmem>>, vector<1x256x256xf32>
    %324 = vector.shape_cast %323 : vector<1x256x256xf32> to vector<256x256xf32>
    %cst_162 = arith.constant dense<0.000000e+00> : vector<28x256xf32>
    %325 = tpu.matmul %322, %324, %cst_162 {dimension_numbers = #tpu.dot_dimension_numbers<[1], [0], [0], [1], [0, 0, 1, 1], [], []>} : vector<28x256xf32>, vector<256x256xf32>, vector<28x256xf32> -> vector<28x256xf32>
    %c9_163 = arith.constant 9 : index
    %c0_164 = arith.constant 0 : index
    %c0_165 = arith.constant 0 : index
    %326 = vector.load %arg6[%c9_163, %c0_164, %c0_165] : memref<16x1x256xf32, #tpu.memory_space<vmem>>, vector<1x1x256xf32>
    %327 = vector.shape_cast %326 : vector<1x1x256xf32> to vector<1x256xf32>
    %328 = vector.broadcast %327 : vector<1x256xf32> to vector<28x256xf32>
    %329 = arith.addf %325, %328 : vector<28x256xf32>
    %330 = vector.extract_strided_slice %329 {offsets = [0, 0], sizes = [28, 128], strides = [1, 1]} : vector<28x256xf32> to vector<28x128xf32>
    %331 = math.tanh %330 : vector<28x128xf32>
    %332 = vector.extract_strided_slice %329 {offsets = [0, 128], sizes = [28, 128], strides = [1, 1]} : vector<28x256xf32> to vector<28x128xf32>
    %cst_166 = arith.constant 0.000000e+00 : f32
    %333 = vector.broadcast %cst_166 : f32 to vector<28x128xf32>
    %334 = arith.subf %333, %332 : vector<28x128xf32>
    %335 = math.exp %334 : vector<28x128xf32>
    %cst_167 = arith.constant 1.000000e+00 : f32
    %336 = vector.broadcast %cst_167 : f32 to vector<28x128xf32>
    %337 = arith.addf %336, %335 : vector<28x128xf32>
    %cst_168 = arith.constant 1.000000e+00 : f32
    %338 = vector.broadcast %cst_168 : f32 to vector<28x128xf32>
    %339 = arith.divf %338, %337 : vector<28x128xf32>
    %340 = arith.mulf %331, %339 : vector<28x128xf32>
    %c9_169 = arith.constant 9 : index
    %c0_170 = arith.constant 0 : index
    %c0_171 = arith.constant 0 : index
    %341 = vector.load %arg7[%c9_169, %c0_170, %c0_171] : memref<16x128x256xf32, #tpu.memory_space<vmem>>, vector<1x128x256xf32>
    %342 = vector.shape_cast %341 : vector<1x128x256xf32> to vector<128x256xf32>
    %cst_172 = arith.constant dense<0.000000e+00> : vector<28x256xf32>
    %343 = tpu.matmul %340, %342, %cst_172 {dimension_numbers = #tpu.dot_dimension_numbers<[1], [0], [0], [1], [0, 0, 1, 1], [], []>} : vector<28x128xf32>, vector<128x256xf32>, vector<28x256xf32> -> vector<28x256xf32>
    %c9_173 = arith.constant 9 : index
    %c0_174 = arith.constant 0 : index
    %c0_175 = arith.constant 0 : index
    %344 = vector.load %arg8[%c9_173, %c0_174, %c0_175] : memref<16x1x256xf32, #tpu.memory_space<vmem>>, vector<1x1x256xf32>
    %345 = vector.shape_cast %344 : vector<1x1x256xf32> to vector<1x256xf32>
    %346 = vector.broadcast %345 : vector<1x256xf32> to vector<28x256xf32>
    %347 = arith.addf %343, %346 : vector<28x256xf32>
    %348 = vector.extract_strided_slice %347 {offsets = [0, 0], sizes = [28, 128], strides = [1, 1]} : vector<28x256xf32> to vector<28x128xf32>
    %349 = vector.extract_strided_slice %347 {offsets = [0, 128], sizes = [28, 128], strides = [1, 1]} : vector<28x256xf32> to vector<28x128xf32>
    %350 = vector.extract_strided_slice %316 {offsets = [2, 0], sizes = [28, 128], strides = [1, 1]} : vector<30x128xf32> to vector<28x128xf32>
    %351 = arith.addf %348, %350 : vector<28x128xf32>
    %352 = arith.addf %349, %321 : vector<28x128xf32>
    %cst_176 = arith.constant 0.999994993 : f32
    %353 = vector.broadcast %cst_176 : f32 to vector<28x128xf32>
    %354 = arith.mulf %352, %353 : vector<28x128xf32>
    %355 = vector.extract_strided_slice %354 {offsets = [0, 0], sizes = [24, 128], strides = [1, 1]} : vector<28x128xf32> to vector<24x128xf32>
    %356 = vector.extract_strided_slice %354 {offsets = [4, 0], sizes = [24, 128], strides = [1, 1]} : vector<28x128xf32> to vector<24x128xf32>
    %357 = tpu.concatenate %355, %356 in 1 : vector<24x128xf32>, vector<24x128xf32> -> vector<24x256xf32>
    %c10 = arith.constant 10 : index
    %c0_177 = arith.constant 0 : index
    %c0_178 = arith.constant 0 : index
    %358 = vector.load %arg5[%c10, %c0_177, %c0_178] : memref<16x256x256xf32, #tpu.memory_space<vmem>>, vector<1x256x256xf32>
    %359 = vector.shape_cast %358 : vector<1x256x256xf32> to vector<256x256xf32>
    %cst_179 = arith.constant dense<0.000000e+00> : vector<24x256xf32>
    %360 = tpu.matmul %357, %359, %cst_179 {dimension_numbers = #tpu.dot_dimension_numbers<[1], [0], [0], [1], [0, 0, 1, 1], [], []>} : vector<24x256xf32>, vector<256x256xf32>, vector<24x256xf32> -> vector<24x256xf32>
    %c10_180 = arith.constant 10 : index
    %c0_181 = arith.constant 0 : index
    %c0_182 = arith.constant 0 : index
    %361 = vector.load %arg6[%c10_180, %c0_181, %c0_182] : memref<16x1x256xf32, #tpu.memory_space<vmem>>, vector<1x1x256xf32>
    %362 = vector.shape_cast %361 : vector<1x1x256xf32> to vector<1x256xf32>
    %363 = vector.broadcast %362 : vector<1x256xf32> to vector<24x256xf32>
    %364 = arith.addf %360, %363 : vector<24x256xf32>
    %365 = vector.extract_strided_slice %364 {offsets = [0, 0], sizes = [24, 128], strides = [1, 1]} : vector<24x256xf32> to vector<24x128xf32>
    %366 = math.tanh %365 : vector<24x128xf32>
    %367 = vector.extract_strided_slice %364 {offsets = [0, 128], sizes = [24, 128], strides = [1, 1]} : vector<24x256xf32> to vector<24x128xf32>
    %cst_183 = arith.constant 0.000000e+00 : f32
    %368 = vector.broadcast %cst_183 : f32 to vector<24x128xf32>
    %369 = arith.subf %368, %367 : vector<24x128xf32>
    %370 = math.exp %369 : vector<24x128xf32>
    %cst_184 = arith.constant 1.000000e+00 : f32
    %371 = vector.broadcast %cst_184 : f32 to vector<24x128xf32>
    %372 = arith.addf %371, %370 : vector<24x128xf32>
    %cst_185 = arith.constant 1.000000e+00 : f32
    %373 = vector.broadcast %cst_185 : f32 to vector<24x128xf32>
    %374 = arith.divf %373, %372 : vector<24x128xf32>
    %375 = arith.mulf %366, %374 : vector<24x128xf32>
    %c10_186 = arith.constant 10 : index
    %c0_187 = arith.constant 0 : index
    %c0_188 = arith.constant 0 : index
    %376 = vector.load %arg7[%c10_186, %c0_187, %c0_188] : memref<16x128x256xf32, #tpu.memory_space<vmem>>, vector<1x128x256xf32>
    %377 = vector.shape_cast %376 : vector<1x128x256xf32> to vector<128x256xf32>
    %cst_189 = arith.constant dense<0.000000e+00> : vector<24x256xf32>
    %378 = tpu.matmul %375, %377, %cst_189 {dimension_numbers = #tpu.dot_dimension_numbers<[1], [0], [0], [1], [0, 0, 1, 1], [], []>} : vector<24x128xf32>, vector<128x256xf32>, vector<24x256xf32> -> vector<24x256xf32>
    %c10_190 = arith.constant 10 : index
    %c0_191 = arith.constant 0 : index
    %c0_192 = arith.constant 0 : index
    %379 = vector.load %arg8[%c10_190, %c0_191, %c0_192] : memref<16x1x256xf32, #tpu.memory_space<vmem>>, vector<1x1x256xf32>
    %380 = vector.shape_cast %379 : vector<1x1x256xf32> to vector<1x256xf32>
    %381 = vector.broadcast %380 : vector<1x256xf32> to vector<24x256xf32>
    %382 = arith.addf %378, %381 : vector<24x256xf32>
    %383 = vector.extract_strided_slice %382 {offsets = [0, 0], sizes = [24, 128], strides = [1, 1]} : vector<24x256xf32> to vector<24x128xf32>
    %384 = vector.extract_strided_slice %382 {offsets = [0, 128], sizes = [24, 128], strides = [1, 1]} : vector<24x256xf32> to vector<24x128xf32>
    %385 = vector.extract_strided_slice %351 {offsets = [4, 0], sizes = [24, 128], strides = [1, 1]} : vector<28x128xf32> to vector<24x128xf32>
    %386 = arith.addf %383, %385 : vector<24x128xf32>
    %387 = arith.addf %384, %356 : vector<24x128xf32>
    %cst_193 = arith.constant 0.999994993 : f32
    %388 = vector.broadcast %cst_193 : f32 to vector<24x128xf32>
    %389 = arith.mulf %387, %388 : vector<24x128xf32>
    %390 = vector.extract_strided_slice %389 {offsets = [0, 0], sizes = [16, 128], strides = [1, 1]} : vector<24x128xf32> to vector<16x128xf32>
    %391 = vector.extract_strided_slice %389 {offsets = [8, 0], sizes = [16, 128], strides = [1, 1]} : vector<24x128xf32> to vector<16x128xf32>
    %392 = tpu.concatenate %390, %391 in 1 : vector<16x128xf32>, vector<16x128xf32> -> vector<16x256xf32>
    %c11 = arith.constant 11 : index
    %c0_194 = arith.constant 0 : index
    %c0_195 = arith.constant 0 : index
    %393 = vector.load %arg5[%c11, %c0_194, %c0_195] : memref<16x256x256xf32, #tpu.memory_space<vmem>>, vector<1x256x256xf32>
    %394 = vector.shape_cast %393 : vector<1x256x256xf32> to vector<256x256xf32>
    %cst_196 = arith.constant dense<0.000000e+00> : vector<16x256xf32>
    %395 = tpu.matmul %392, %394, %cst_196 {dimension_numbers = #tpu.dot_dimension_numbers<[1], [0], [0], [1], [0, 0, 1, 1], [], []>} : vector<16x256xf32>, vector<256x256xf32>, vector<16x256xf32> -> vector<16x256xf32>
    %c11_197 = arith.constant 11 : index
    %c0_198 = arith.constant 0 : index
    %c0_199 = arith.constant 0 : index
    %396 = vector.load %arg6[%c11_197, %c0_198, %c0_199] : memref<16x1x256xf32, #tpu.memory_space<vmem>>, vector<1x1x256xf32>
    %397 = vector.shape_cast %396 : vector<1x1x256xf32> to vector<1x256xf32>
    %398 = vector.broadcast %397 : vector<1x256xf32> to vector<16x256xf32>
    %399 = arith.addf %395, %398 : vector<16x256xf32>
    %400 = vector.extract_strided_slice %399 {offsets = [0, 0], sizes = [16, 128], strides = [1, 1]} : vector<16x256xf32> to vector<16x128xf32>
    %401 = math.tanh %400 : vector<16x128xf32>
    %402 = vector.extract_strided_slice %399 {offsets = [0, 128], sizes = [16, 128], strides = [1, 1]} : vector<16x256xf32> to vector<16x128xf32>
    %cst_200 = arith.constant 0.000000e+00 : f32
    %403 = vector.broadcast %cst_200 : f32 to vector<16x128xf32>
    %404 = arith.subf %403, %402 : vector<16x128xf32>
    %405 = math.exp %404 : vector<16x128xf32>
    %cst_201 = arith.constant 1.000000e+00 : f32
    %406 = vector.broadcast %cst_201 : f32 to vector<16x128xf32>
    %407 = arith.addf %406, %405 : vector<16x128xf32>
    %cst_202 = arith.constant 1.000000e+00 : f32
    %408 = vector.broadcast %cst_202 : f32 to vector<16x128xf32>
    %409 = arith.divf %408, %407 : vector<16x128xf32>
    %410 = arith.mulf %401, %409 : vector<16x128xf32>
    %c11_203 = arith.constant 11 : index
    %c0_204 = arith.constant 0 : index
    %c0_205 = arith.constant 0 : index
    %411 = vector.load %arg7[%c11_203, %c0_204, %c0_205] : memref<16x128x256xf32, #tpu.memory_space<vmem>>, vector<1x128x256xf32>
    %412 = vector.shape_cast %411 : vector<1x128x256xf32> to vector<128x256xf32>
    %cst_206 = arith.constant dense<0.000000e+00> : vector<16x256xf32>
    %413 = tpu.matmul %410, %412, %cst_206 {dimension_numbers = #tpu.dot_dimension_numbers<[1], [0], [0], [1], [0, 0, 1, 1], [], []>} : vector<16x128xf32>, vector<128x256xf32>, vector<16x256xf32> -> vector<16x256xf32>
    %c11_207 = arith.constant 11 : index
    %c0_208 = arith.constant 0 : index
    %c0_209 = arith.constant 0 : index
    %414 = vector.load %arg8[%c11_207, %c0_208, %c0_209] : memref<16x1x256xf32, #tpu.memory_space<vmem>>, vector<1x1x256xf32>
    %415 = vector.shape_cast %414 : vector<1x1x256xf32> to vector<1x256xf32>
    %416 = vector.broadcast %415 : vector<1x256xf32> to vector<16x256xf32>
    %417 = arith.addf %413, %416 : vector<16x256xf32>
    %418 = vector.extract_strided_slice %417 {offsets = [0, 0], sizes = [16, 128], strides = [1, 1]} : vector<16x256xf32> to vector<16x128xf32>
    %419 = vector.extract_strided_slice %417 {offsets = [0, 128], sizes = [16, 128], strides = [1, 1]} : vector<16x256xf32> to vector<16x128xf32>
    %420 = vector.extract_strided_slice %386 {offsets = [8, 0], sizes = [16, 128], strides = [1, 1]} : vector<24x128xf32> to vector<16x128xf32>
    %421 = arith.addf %418, %420 : vector<16x128xf32>
    %422 = arith.addf %419, %391 : vector<16x128xf32>
    %cst_210 = arith.constant 0.999994993 : f32
    %423 = vector.broadcast %cst_210 : f32 to vector<16x128xf32>
    %424 = arith.mulf %422, %423 : vector<16x128xf32>
    %425 = vector.extract_strided_slice %424 {offsets = [0, 0], sizes = [15, 128], strides = [1, 1]} : vector<16x128xf32> to vector<15x128xf32>
    %426 = vector.extract_strided_slice %424 {offsets = [1, 0], sizes = [15, 128], strides = [1, 1]} : vector<16x128xf32> to vector<15x128xf32>
    %427 = tpu.concatenate %425, %426 in 1 : vector<15x128xf32>, vector<15x128xf32> -> vector<15x256xf32>
    %c12 = arith.constant 12 : index
    %c0_211 = arith.constant 0 : index
    %c0_212 = arith.constant 0 : index
    %428 = vector.load %arg5[%c12, %c0_211, %c0_212] : memref<16x256x256xf32, #tpu.memory_space<vmem>>, vector<1x256x256xf32>
    %429 = vector.shape_cast %428 : vector<1x256x256xf32> to vector<256x256xf32>
    %cst_213 = arith.constant dense<0.000000e+00> : vector<15x256xf32>
    %430 = tpu.matmul %427, %429, %cst_213 {dimension_numbers = #tpu.dot_dimension_numbers<[1], [0], [0], [1], [0, 0, 1, 1], [], []>} : vector<15x256xf32>, vector<256x256xf32>, vector<15x256xf32> -> vector<15x256xf32>
    %c12_214 = arith.constant 12 : index
    %c0_215 = arith.constant 0 : index
    %c0_216 = arith.constant 0 : index
    %431 = vector.load %arg6[%c12_214, %c0_215, %c0_216] : memref<16x1x256xf32, #tpu.memory_space<vmem>>, vector<1x1x256xf32>
    %432 = vector.shape_cast %431 : vector<1x1x256xf32> to vector<1x256xf32>
    %433 = vector.broadcast %432 : vector<1x256xf32> to vector<15x256xf32>
    %434 = arith.addf %430, %433 : vector<15x256xf32>
    %435 = vector.extract_strided_slice %434 {offsets = [0, 0], sizes = [15, 128], strides = [1, 1]} : vector<15x256xf32> to vector<15x128xf32>
    %436 = math.tanh %435 : vector<15x128xf32>
    %437 = vector.extract_strided_slice %434 {offsets = [0, 128], sizes = [15, 128], strides = [1, 1]} : vector<15x256xf32> to vector<15x128xf32>
    %cst_217 = arith.constant 0.000000e+00 : f32
    %438 = vector.broadcast %cst_217 : f32 to vector<15x128xf32>
    %439 = arith.subf %438, %437 : vector<15x128xf32>
    %440 = math.exp %439 : vector<15x128xf32>
    %cst_218 = arith.constant 1.000000e+00 : f32
    %441 = vector.broadcast %cst_218 : f32 to vector<15x128xf32>
    %442 = arith.addf %441, %440 : vector<15x128xf32>
    %cst_219 = arith.constant 1.000000e+00 : f32
    %443 = vector.broadcast %cst_219 : f32 to vector<15x128xf32>
    %444 = arith.divf %443, %442 : vector<15x128xf32>
    %445 = arith.mulf %436, %444 : vector<15x128xf32>
    %c12_220 = arith.constant 12 : index
    %c0_221 = arith.constant 0 : index
    %c0_222 = arith.constant 0 : index
    %446 = vector.load %arg7[%c12_220, %c0_221, %c0_222] : memref<16x128x256xf32, #tpu.memory_space<vmem>>, vector<1x128x256xf32>
    %447 = vector.shape_cast %446 : vector<1x128x256xf32> to vector<128x256xf32>
    %cst_223 = arith.constant dense<0.000000e+00> : vector<15x256xf32>
    %448 = tpu.matmul %445, %447, %cst_223 {dimension_numbers = #tpu.dot_dimension_numbers<[1], [0], [0], [1], [0, 0, 1, 1], [], []>} : vector<15x128xf32>, vector<128x256xf32>, vector<15x256xf32> -> vector<15x256xf32>
    %c12_224 = arith.constant 12 : index
    %c0_225 = arith.constant 0 : index
    %c0_226 = arith.constant 0 : index
    %449 = vector.load %arg8[%c12_224, %c0_225, %c0_226] : memref<16x1x256xf32, #tpu.memory_space<vmem>>, vector<1x1x256xf32>
    %450 = vector.shape_cast %449 : vector<1x1x256xf32> to vector<1x256xf32>
    %451 = vector.broadcast %450 : vector<1x256xf32> to vector<15x256xf32>
    %452 = arith.addf %448, %451 : vector<15x256xf32>
    %453 = vector.extract_strided_slice %452 {offsets = [0, 0], sizes = [15, 128], strides = [1, 1]} : vector<15x256xf32> to vector<15x128xf32>
    %454 = vector.extract_strided_slice %452 {offsets = [0, 128], sizes = [15, 128], strides = [1, 1]} : vector<15x256xf32> to vector<15x128xf32>
    %455 = vector.extract_strided_slice %421 {offsets = [1, 0], sizes = [15, 128], strides = [1, 1]} : vector<16x128xf32> to vector<15x128xf32>
    %456 = arith.addf %453, %455 : vector<15x128xf32>
    %457 = arith.addf %454, %426 : vector<15x128xf32>
    %cst_227 = arith.constant 0.999994993 : f32
    %458 = vector.broadcast %cst_227 : f32 to vector<15x128xf32>
    %459 = arith.mulf %457, %458 : vector<15x128xf32>
    %460 = vector.extract_strided_slice %459 {offsets = [0, 0], sizes = [13, 128], strides = [1, 1]} : vector<15x128xf32> to vector<13x128xf32>
    %461 = vector.extract_strided_slice %459 {offsets = [2, 0], sizes = [13, 128], strides = [1, 1]} : vector<15x128xf32> to vector<13x128xf32>
    %462 = tpu.concatenate %460, %461 in 1 : vector<13x128xf32>, vector<13x128xf32> -> vector<13x256xf32>
    %c13 = arith.constant 13 : index
    %c0_228 = arith.constant 0 : index
    %c0_229 = arith.constant 0 : index
    %463 = vector.load %arg5[%c13, %c0_228, %c0_229] : memref<16x256x256xf32, #tpu.memory_space<vmem>>, vector<1x256x256xf32>
    %464 = vector.shape_cast %463 : vector<1x256x256xf32> to vector<256x256xf32>
    %cst_230 = arith.constant dense<0.000000e+00> : vector<13x256xf32>
    %465 = tpu.matmul %462, %464, %cst_230 {dimension_numbers = #tpu.dot_dimension_numbers<[1], [0], [0], [1], [0, 0, 1, 1], [], []>} : vector<13x256xf32>, vector<256x256xf32>, vector<13x256xf32> -> vector<13x256xf32>
    %c13_231 = arith.constant 13 : index
    %c0_232 = arith.constant 0 : index
    %c0_233 = arith.constant 0 : index
    %466 = vector.load %arg6[%c13_231, %c0_232, %c0_233] : memref<16x1x256xf32, #tpu.memory_space<vmem>>, vector<1x1x256xf32>
    %467 = vector.shape_cast %466 : vector<1x1x256xf32> to vector<1x256xf32>
    %468 = vector.broadcast %467 : vector<1x256xf32> to vector<13x256xf32>
    %469 = arith.addf %465, %468 : vector<13x256xf32>
    %470 = vector.extract_strided_slice %469 {offsets = [0, 0], sizes = [13, 128], strides = [1, 1]} : vector<13x256xf32> to vector<13x128xf32>
    %471 = math.tanh %470 : vector<13x128xf32>
    %472 = vector.extract_strided_slice %469 {offsets = [0, 128], sizes = [13, 128], strides = [1, 1]} : vector<13x256xf32> to vector<13x128xf32>
    %cst_234 = arith.constant 0.000000e+00 : f32
    %473 = vector.broadcast %cst_234 : f32 to vector<13x128xf32>
    %474 = arith.subf %473, %472 : vector<13x128xf32>
    %475 = math.exp %474 : vector<13x128xf32>
    %cst_235 = arith.constant 1.000000e+00 : f32
    %476 = vector.broadcast %cst_235 : f32 to vector<13x128xf32>
    %477 = arith.addf %476, %475 : vector<13x128xf32>
    %cst_236 = arith.constant 1.000000e+00 : f32
    %478 = vector.broadcast %cst_236 : f32 to vector<13x128xf32>
    %479 = arith.divf %478, %477 : vector<13x128xf32>
    %480 = arith.mulf %471, %479 : vector<13x128xf32>
    %c13_237 = arith.constant 13 : index
    %c0_238 = arith.constant 0 : index
    %c0_239 = arith.constant 0 : index
    %481 = vector.load %arg7[%c13_237, %c0_238, %c0_239] : memref<16x128x256xf32, #tpu.memory_space<vmem>>, vector<1x128x256xf32>
    %482 = vector.shape_cast %481 : vector<1x128x256xf32> to vector<128x256xf32>
    %cst_240 = arith.constant dense<0.000000e+00> : vector<13x256xf32>
    %483 = tpu.matmul %480, %482, %cst_240 {dimension_numbers = #tpu.dot_dimension_numbers<[1], [0], [0], [1], [0, 0, 1, 1], [], []>} : vector<13x128xf32>, vector<128x256xf32>, vector<13x256xf32> -> vector<13x256xf32>
    %c13_241 = arith.constant 13 : index
    %c0_242 = arith.constant 0 : index
    %c0_243 = arith.constant 0 : index
    %484 = vector.load %arg8[%c13_241, %c0_242, %c0_243] : memref<16x1x256xf32, #tpu.memory_space<vmem>>, vector<1x1x256xf32>
    %485 = vector.shape_cast %484 : vector<1x1x256xf32> to vector<1x256xf32>
    %486 = vector.broadcast %485 : vector<1x256xf32> to vector<13x256xf32>
    %487 = arith.addf %483, %486 : vector<13x256xf32>
    %488 = vector.extract_strided_slice %487 {offsets = [0, 0], sizes = [13, 128], strides = [1, 1]} : vector<13x256xf32> to vector<13x128xf32>
    %489 = vector.extract_strided_slice %487 {offsets = [0, 128], sizes = [13, 128], strides = [1, 1]} : vector<13x256xf32> to vector<13x128xf32>
    %490 = vector.extract_strided_slice %456 {offsets = [2, 0], sizes = [13, 128], strides = [1, 1]} : vector<15x128xf32> to vector<13x128xf32>
    %491 = arith.addf %488, %490 : vector<13x128xf32>
    %492 = arith.addf %489, %461 : vector<13x128xf32>
    %cst_244 = arith.constant 0.999994993 : f32
    %493 = vector.broadcast %cst_244 : f32 to vector<13x128xf32>
    %494 = arith.mulf %492, %493 : vector<13x128xf32>
    %495 = vector.extract_strided_slice %494 {offsets = [0, 0], sizes = [9, 128], strides = [1, 1]} : vector<13x128xf32> to vector<9x128xf32>
    %496 = vector.extract_strided_slice %494 {offsets = [4, 0], sizes = [9, 128], strides = [1, 1]} : vector<13x128xf32> to vector<9x128xf32>
    %497 = tpu.concatenate %495, %496 in 1 : vector<9x128xf32>, vector<9x128xf32> -> vector<9x256xf32>
    %c14 = arith.constant 14 : index
    %c0_245 = arith.constant 0 : index
    %c0_246 = arith.constant 0 : index
    %498 = vector.load %arg5[%c14, %c0_245, %c0_246] : memref<16x256x256xf32, #tpu.memory_space<vmem>>, vector<1x256x256xf32>
    %499 = vector.shape_cast %498 : vector<1x256x256xf32> to vector<256x256xf32>
    %cst_247 = arith.constant dense<0.000000e+00> : vector<9x256xf32>
    %500 = tpu.matmul %497, %499, %cst_247 {dimension_numbers = #tpu.dot_dimension_numbers<[1], [0], [0], [1], [0, 0, 1, 1], [], []>} : vector<9x256xf32>, vector<256x256xf32>, vector<9x256xf32> -> vector<9x256xf32>
    %c14_248 = arith.constant 14 : index
    %c0_249 = arith.constant 0 : index
    %c0_250 = arith.constant 0 : index
    %501 = vector.load %arg6[%c14_248, %c0_249, %c0_250] : memref<16x1x256xf32, #tpu.memory_space<vmem>>, vector<1x1x256xf32>
    %502 = vector.shape_cast %501 : vector<1x1x256xf32> to vector<1x256xf32>
    %503 = vector.broadcast %502 : vector<1x256xf32> to vector<9x256xf32>
    %504 = arith.addf %500, %503 : vector<9x256xf32>
    %505 = vector.extract_strided_slice %504 {offsets = [0, 0], sizes = [9, 128], strides = [1, 1]} : vector<9x256xf32> to vector<9x128xf32>
    %506 = math.tanh %505 : vector<9x128xf32>
    %507 = vector.extract_strided_slice %504 {offsets = [0, 128], sizes = [9, 128], strides = [1, 1]} : vector<9x256xf32> to vector<9x128xf32>
    %cst_251 = arith.constant 0.000000e+00 : f32
    %508 = vector.broadcast %cst_251 : f32 to vector<9x128xf32>
    %509 = arith.subf %508, %507 : vector<9x128xf32>
    %510 = math.exp %509 : vector<9x128xf32>
    %cst_252 = arith.constant 1.000000e+00 : f32
    %511 = vector.broadcast %cst_252 : f32 to vector<9x128xf32>
    %512 = arith.addf %511, %510 : vector<9x128xf32>
    %cst_253 = arith.constant 1.000000e+00 : f32
    %513 = vector.broadcast %cst_253 : f32 to vector<9x128xf32>
    %514 = arith.divf %513, %512 : vector<9x128xf32>
    %515 = arith.mulf %506, %514 : vector<9x128xf32>
    %c14_254 = arith.constant 14 : index
    %c0_255 = arith.constant 0 : index
    %c0_256 = arith.constant 0 : index
    %516 = vector.load %arg7[%c14_254, %c0_255, %c0_256] : memref<16x128x256xf32, #tpu.memory_space<vmem>>, vector<1x128x256xf32>
    %517 = vector.shape_cast %516 : vector<1x128x256xf32> to vector<128x256xf32>
    %cst_257 = arith.constant dense<0.000000e+00> : vector<9x256xf32>
    %518 = tpu.matmul %515, %517, %cst_257 {dimension_numbers = #tpu.dot_dimension_numbers<[1], [0], [0], [1], [0, 0, 1, 1], [], []>} : vector<9x128xf32>, vector<128x256xf32>, vector<9x256xf32> -> vector<9x256xf32>
    %c14_258 = arith.constant 14 : index
    %c0_259 = arith.constant 0 : index
    %c0_260 = arith.constant 0 : index
    %519 = vector.load %arg8[%c14_258, %c0_259, %c0_260] : memref<16x1x256xf32, #tpu.memory_space<vmem>>, vector<1x1x256xf32>
    %520 = vector.shape_cast %519 : vector<1x1x256xf32> to vector<1x256xf32>
    %521 = vector.broadcast %520 : vector<1x256xf32> to vector<9x256xf32>
    %522 = arith.addf %518, %521 : vector<9x256xf32>
    %523 = vector.extract_strided_slice %522 {offsets = [0, 0], sizes = [9, 128], strides = [1, 1]} : vector<9x256xf32> to vector<9x128xf32>
    %524 = vector.extract_strided_slice %522 {offsets = [0, 128], sizes = [9, 128], strides = [1, 1]} : vector<9x256xf32> to vector<9x128xf32>
    %525 = vector.extract_strided_slice %491 {offsets = [4, 0], sizes = [9, 128], strides = [1, 1]} : vector<13x128xf32> to vector<9x128xf32>
    %526 = arith.addf %523, %525 : vector<9x128xf32>
    %527 = arith.addf %524, %496 : vector<9x128xf32>
    %cst_261 = arith.constant 0.999994993 : f32
    %528 = vector.broadcast %cst_261 : f32 to vector<9x128xf32>
    %529 = arith.mulf %527, %528 : vector<9x128xf32>
    %530 = vector.extract_strided_slice %529 {offsets = [0, 0], sizes = [1, 128], strides = [1, 1]} : vector<9x128xf32> to vector<1x128xf32>
    %531 = vector.extract_strided_slice %529 {offsets = [8, 0], sizes = [1, 128], strides = [1, 1]} : vector<9x128xf32> to vector<1x128xf32>
    %532 = tpu.concatenate %530, %531 in 1 : vector<1x128xf32>, vector<1x128xf32> -> vector<1x256xf32>
    %c15 = arith.constant 15 : index
    %c0_262 = arith.constant 0 : index
    %c0_263 = arith.constant 0 : index
    %533 = vector.load %arg5[%c15, %c0_262, %c0_263] : memref<16x256x256xf32, #tpu.memory_space<vmem>>, vector<1x256x256xf32>
    %534 = vector.shape_cast %533 : vector<1x256x256xf32> to vector<256x256xf32>
    %cst_264 = arith.constant dense<0.000000e+00> : vector<1x256xf32>
    %535 = tpu.matmul %532, %534, %cst_264 {dimension_numbers = #tpu.dot_dimension_numbers<[1], [0], [0], [1], [0, 0, 1, 1], [], []>} : vector<1x256xf32>, vector<256x256xf32>, vector<1x256xf32> -> vector<1x256xf32>
    %c15_265 = arith.constant 15 : index
    %c0_266 = arith.constant 0 : index
    %c0_267 = arith.constant 0 : index
    %536 = vector.load %arg6[%c15_265, %c0_266, %c0_267] : memref<16x1x256xf32, #tpu.memory_space<vmem>>, vector<1x1x256xf32>
    %537 = vector.shape_cast %536 : vector<1x1x256xf32> to vector<1x256xf32>
    %538 = arith.addf %535, %537 : vector<1x256xf32>
    %539 = vector.extract_strided_slice %538 {offsets = [0, 0], sizes = [1, 128], strides = [1, 1]} : vector<1x256xf32> to vector<1x128xf32>
    %540 = math.tanh %539 : vector<1x128xf32>
    %541 = vector.extract_strided_slice %538 {offsets = [0, 128], sizes = [1, 128], strides = [1, 1]} : vector<1x256xf32> to vector<1x128xf32>
    %cst_268 = arith.constant 0.000000e+00 : f32
    %542 = vector.broadcast %cst_268 : f32 to vector<1x128xf32>
    %543 = arith.subf %542, %541 : vector<1x128xf32>
    %544 = math.exp %543 : vector<1x128xf32>
    %cst_269 = arith.constant 1.000000e+00 : f32
    %545 = vector.broadcast %cst_269 : f32 to vector<1x128xf32>
    %546 = arith.addf %545, %544 : vector<1x128xf32>
    %cst_270 = arith.constant 1.000000e+00 : f32
    %547 = vector.broadcast %cst_270 : f32 to vector<1x128xf32>
    %548 = arith.divf %547, %546 : vector<1x128xf32>
    %549 = arith.mulf %540, %548 : vector<1x128xf32>
    %c15_271 = arith.constant 15 : index
    %c0_272 = arith.constant 0 : index
    %c0_273 = arith.constant 0 : index
    %550 = vector.load %arg7[%c15_271, %c0_272, %c0_273] : memref<16x128x256xf32, #tpu.memory_space<vmem>>, vector<1x128x256xf32>
    %551 = vector.shape_cast %550 : vector<1x128x256xf32> to vector<128x256xf32>
    %cst_274 = arith.constant dense<0.000000e+00> : vector<1x256xf32>
    %552 = tpu.matmul %549, %551, %cst_274 {dimension_numbers = #tpu.dot_dimension_numbers<[1], [0], [0], [1], [0, 0, 1, 1], [], []>} : vector<1x128xf32>, vector<128x256xf32>, vector<1x256xf32> -> vector<1x256xf32>
    %c15_275 = arith.constant 15 : index
    %c0_276 = arith.constant 0 : index
    %c0_277 = arith.constant 0 : index
    %553 = vector.load %arg8[%c15_275, %c0_276, %c0_277] : memref<16x1x256xf32, #tpu.memory_space<vmem>>, vector<1x1x256xf32>
    %554 = vector.shape_cast %553 : vector<1x1x256xf32> to vector<1x256xf32>
    %555 = arith.addf %552, %554 : vector<1x256xf32>
    %556 = vector.extract_strided_slice %555 {offsets = [0, 0], sizes = [1, 128], strides = [1, 1]} : vector<1x256xf32> to vector<1x128xf32>
    %557 = vector.extract_strided_slice %526 {offsets = [8, 0], sizes = [1, 128], strides = [1, 1]} : vector<9x128xf32> to vector<1x128xf32>
    %558 = arith.addf %556, %557 : vector<1x128xf32>
    %cst_278 = arith.constant 0.000000e+00 : f32
    %559 = vector.broadcast %cst_278 : f32 to vector<1x128xf32>
    %560 = arith.maximumf %558, %559 : vector<1x128xf32>
    %c0_279 = arith.constant 0 : index
    %c0_280 = arith.constant 0 : index
    %561 = vector.load %arg9[%c0_279, %c0_280] : memref<128x128xf32, #tpu.memory_space<vmem>>, vector<128x128xf32>
    %cst_281 = arith.constant dense<0.000000e+00> : vector<1x128xf32>
    %562 = tpu.matmul %560, %561, %cst_281 {dimension_numbers = #tpu.dot_dimension_numbers<[1], [0], [0], [1], [0, 0, 1, 1], [], []>} : vector<1x128xf32>, vector<128x128xf32>, vector<1x128xf32> -> vector<1x128xf32>
    %c0_282 = arith.constant 0 : index
    %c0_283 = arith.constant 0 : index
    %563 = vector.load %arg10[%c0_282, %c0_283] : memref<1x128xf32, #tpu.memory_space<vmem>>, vector<1x128xf32>
    %564 = arith.addf %562, %563 : vector<1x128xf32>
    %cst_284 = arith.constant 0.000000e+00 : f32
    %565 = vector.broadcast %cst_284 : f32 to vector<1x128xf32>
    %566 = arith.maximumf %564, %565 : vector<1x128xf32>
    %c0_285 = arith.constant 0 : index
    %c0_286 = arith.constant 0 : index
    %567 = vector.load %arg11[%c0_285, %c0_286] : memref<128x16xf32, #tpu.memory_space<vmem>>, vector<128x16xf32>
    %cst_287 = arith.constant dense<0.000000e+00> : vector<1x16xf32>
    %568 = tpu.matmul %566, %567, %cst_287 {dimension_numbers = #tpu.dot_dimension_numbers<[1], [0], [0], [1], [0, 0, 1, 1], [], []>} : vector<1x128xf32>, vector<128x16xf32>, vector<1x16xf32> -> vector<1x16xf32>
    %c0_288 = arith.constant 0 : index
    %c0_289 = arith.constant 0 : index
    %569 = vector.load %arg12[%c0_288, %c0_289] : memref<1x16xf32, #tpu.memory_space<vmem>>, vector<1x16xf32>
    %570 = arith.addf %568, %569 : vector<1x16xf32>
    %c0_290 = arith.constant 0 : index
    %c0_291 = arith.constant 0 : index
    %c0_292 = arith.constant 0 : index
    %571 = vector.load %arg2[%c0_290, %c0_291, %c0_292] : memref<1x1x16xf32, #tpu.memory_space<vmem>>, vector<1x1x16xf32>
    %572 = vector.shape_cast %571 : vector<1x1x16xf32> to vector<1x16xf32>
    %573 = math.absf %570 : vector<1x16xf32>
    %cst_293 = arith.constant 0.000000e+00 : f32
    %574 = vector.broadcast %cst_293 : f32 to vector<1x16xf32>
    %575 = arith.subf %574, %573 : vector<1x16xf32>
    %576 = math.exp %575 : vector<1x16xf32>
    %cst_294 = arith.constant 9.99999974E-5 : f32
    %577 = vector.broadcast %cst_294 : f32 to vector<1x16xf32>
    %578 = arith.cmpf ogt, %576, %577 : vector<1x16xf32>
    %cst_295 = arith.constant 1.000000e+00 : f32
    %579 = vector.broadcast %cst_295 : f32 to vector<1x16xf32>
    %580 = arith.addf %579, %576 : vector<1x16xf32>
    %581 = math.log %580 : vector<1x16xf32>
    %cst_296 = arith.constant 5.000000e-01 : f32
    %582 = vector.broadcast %cst_296 : f32 to vector<1x16xf32>
    %583 = arith.mulf %582, %576 : vector<1x16xf32>
    %cst_297 = arith.constant 1.000000e+00 : f32
    %584 = vector.broadcast %cst_297 : f32 to vector<1x16xf32>
    %585 = arith.subf %584, %583 : vector<1x16xf32>
    %586 = arith.mulf %576, %585 : vector<1x16xf32>
    %587 = arith.select %578, %581, %586 : vector<1x16xi1>, vector<1x16xf32>
    %cst_298 = arith.constant 0.000000e+00 : f32
    %588 = vector.broadcast %cst_298 : f32 to vector<1x16xf32>
    %589 = arith.maximumf %570, %588 : vector<1x16xf32>
    %590 = arith.mulf %570, %572 : vector<1x16xf32>
    %591 = arith.subf %589, %590 : vector<1x16xf32>
    %592 = arith.addf %591, %587 : vector<1x16xf32>
    %c0_299 = arith.constant 0 : index
    %c0_300 = arith.constant 0 : index
    %c0_301 = arith.constant 0 : index
    %593 = vector.load %arg14[%c0_299, %c0_300, %c0_301] : memref<1x1x16xf32, #tpu.memory_space<vmem>>, vector<1x1x16xf32>
    %594 = vector.shape_cast %593 : vector<1x1x16xf32> to vector<1x16xf32>
    %595 = vector.shape_cast %592 : vector<1x16xf32> to vector<1x1x16xf32>
    tpu.vector_store %arg14[%c0_299, %c0_300, %c0_301], %595 {strides = array<i32>} : memref<1x1x16xf32, #tpu.memory_space<vmem>>, vector<1x1x16xf32>,
    %cst_302 = arith.constant 0.000000e+00 : f32
    %596 = vector.broadcast %cst_302 : f32 to vector<1x16xf32>
    %597 = arith.subf %596, %570 : vector<1x16xf32>
    %598 = math.exp %597 : vector<1x16xf32>
    %cst_303 = arith.constant 1.000000e+00 : f32
    %599 = vector.broadcast %cst_303 : f32 to vector<1x16xf32>
    %600 = arith.addf %599, %598 : vector<1x16xf32>
    %cst_304 = arith.constant 1.000000e+00 : f32
    %601 = vector.broadcast %cst_304 : f32 to vector<1x16xf32>
    %602 = arith.divf %601, %600 : vector<1x16xf32>
    %c0_305 = arith.constant 0 : index
    %c0_306 = arith.constant 0 : index
    %c0_307 = arith.constant 0 : index
    %603 = vector.load %arg13[%c0_305, %c0_306, %c0_307] : memref<1x1x16xf32, #tpu.memory_space<vmem>>, vector<1x1x16xf32>
    %604 = vector.shape_cast %603 : vector<1x1x16xf32> to vector<1x16xf32>
    %605 = vector.shape_cast %602 : vector<1x16xf32> to vector<1x1x16xf32>
    tpu.vector_store %arg13[%c0_305, %c0_306, %c0_307], %605 {strides = array<i32>} : memref<1x1x16xf32, #tpu.memory_space<vmem>>, vector<1x1x16xf32>,
    return
  }
  func.func @transform_0(%arg0: i32) -> (i32, i32, i32) {
    %c0_i32 = arith.constant 0 : i32
    %c0_i32_0 = arith.constant 0 : i32
    %c0_i32_1 = arith.constant 0 : i32
    return %arg0, %c0_i32, %c0_i32_0 : i32, i32, i32
  }
  func.func @transform_1(%arg0: i32) -> (i32, i32, i32) {
    %c0_i32 = arith.constant 0 : i32
    %c0_i32_0 = arith.constant 0 : i32
    %c0_i32_1 = arith.constant 0 : i32
    return %arg0, %c0_i32, %c0_i32_0 : i32, i32, i32
  }
  func.func @transform_2(%arg0: i32) -> (i32, i32) {
    %c0_i32 = arith.constant 0 : i32
    %c0_i32_0 = arith.constant 0 : i32
    %c0_i32_1 = arith.constant 0 : i32
    return %c0_i32, %c0_i32_0 : i32, i32
  }
  func.func @transform_3(%arg0: i32) -> (i32, i32) {
    %c0_i32 = arith.constant 0 : i32
    %c0_i32_0 = arith.constant 0 : i32
    %c0_i32_1 = arith.constant 0 : i32
    return %c0_i32, %c0_i32_0 : i32, i32
  }
  func.func @transform_4(%arg0: i32) -> (i32, i32, i32) {
    %c0_i32 = arith.constant 0 : i32
    %c0_i32_0 = arith.constant 0 : i32
    %c0_i32_1 = arith.constant 0 : i32
    %c0_i32_2 = arith.constant 0 : i32
    return %c0_i32, %c0_i32_0, %c0_i32_1 : i32, i32, i32
  }
  func.func @transform_5(%arg0: i32) -> (i32, i32, i32) {
    %c0_i32 = arith.constant 0 : i32
    %c0_i32_0 = arith.constant 0 : i32
    %c0_i32_1 = arith.constant 0 : i32
    %c0_i32_2 = arith.constant 0 : i32
    return %c0_i32, %c0_i32_0, %c0_i32_1 : i32, i32, i32
  }
  func.func @transform_6(%arg0: i32) -> (i32, i32, i32) {
    %c0_i32 = arith.constant 0 : i32
    %c0_i32_0 = arith.constant 0 : i32
    %c0_i32_1 = arith.constant 0 : i32
    %c0_i32_2 = arith.constant 0 : i32
    return %c0_i32, %c0_i32_0, %c0_i32_1 : i32, i32, i32
  }
  func.func @transform_7(%arg0: i32) -> (i32, i32, i32) {
    %c0_i32 = arith.constant 0 : i32
    %c0_i32_0 = arith.constant 0 : i32
    %c0_i32_1 = arith.constant 0 : i32
    %c0_i32_2 = arith.constant 0 : i32
    return %c0_i32, %c0_i32_0, %c0_i32_1 : i32, i32, i32
  }
  func.func @transform_8(%arg0: i32) -> (i32, i32) {
    %c0_i32 = arith.constant 0 : i32
    %c0_i32_0 = arith.constant 0 : i32
    %c0_i32_1 = arith.constant 0 : i32
    return %c0_i32, %c0_i32_0 : i32, i32
  }
  func.func @transform_9(%arg0: i32) -> (i32, i32) {
    %c0_i32 = arith.constant 0 : i32
    %c0_i32_0 = arith.constant 0 : i32
    %c0_i32_1 = arith.constant 0 : i32
    return %c0_i32, %c0_i32_0 : i32, i32
  }
  func.func @transform_10(%arg0: i32) -> (i32, i32) {
    %c0_i32 = arith.constant 0 : i32
    %c0_i32_0 = arith.constant 0 : i32
    %c0_i32_1 = arith.constant 0 : i32
    return %c0_i32, %c0_i32_0 : i32, i32
  }
  func.func @transform_11(%arg0: i32) -> (i32, i32) {
    %c0_i32 = arith.constant 0 : i32
    %c0_i32_0 = arith.constant 0 : i32
    %c0_i32_1 = arith.constant 0 : i32
    return %c0_i32, %c0_i32_0 : i32, i32
  }
  func.func @transform_12(%arg0: i32) -> (i32, i32, i32) {
    %c0_i32 = arith.constant 0 : i32
    %c0_i32_0 = arith.constant 0 : i32
    %c0_i32_1 = arith.constant 0 : i32
    return %arg0, %c0_i32, %c0_i32_0 : i32, i32, i32
  }
  func.func @transform_13(%arg0: i32) -> (i32, i32, i32) {
    %c0_i32 = arith.constant 0 : i32
    %c0_i32_0 = arith.constant 0 : i32
    %c0_i32_1 = arith.constant 0 : i32
    return %arg0, %c0_i32, %c0_i32_0 : i32, i32, i32
  }
}

</mosaic_0001>

<bundles_post_ra>
// kernel: gwnet_forward.2
= control target key start
LH: loop header
LB: loop body
LE: loop exit
PB: predicated region body
PF: predicated region fallthrough
CT: control target
= control target key end

     0   :  { %7 = vsyncpa [#allocation3], 0  ;;  %s246_s0 = inlined_call_operand.hbm [shape: f32[16,10], index: 0, kind: input, shape index: {}]   ;;  %s247_s1 = inlined_call_operand.hbm [shape: f32[10,16], index: 1, kind: input, shape index: {}]   ;;  %s248_s2 = inlined_call_operand.vmem [shape: f32[16,16], index: 2, kind: output, shape index: {}]  }
   0x1   :  { %s13_s11 = sshll.u32 %s246_s0, 4  ;;  %s14_s11 = int_to_ptr.hbm [resolvable:$true] %s13_s11 }
   0x2   :  { %8 = vsyncpa [#allocation5], 0  ;;  %s209_s12 = smov [#allocation2]   ;;  %s26_s16 = sshll.u32 %s247_s1, 4  ;;  %s27_s16 = int_to_ptr.hbm [resolvable:$true] %s26_s16 }
   0x3   :  { %s15_s13 = sshll.u32 %s209_s12, 4  ;;  %s210_s17 = smov 128   ;;  %s16_s13 = int_to_ptr.vmem [resolvable:$true] %s15_s13 }
   0x4   :  { %s211_s18 = smov 8   ;;  %s212_s19 = smov [#allocation4]  }
   0x5   :  { %21 = dma.hbm_to_vmem [thread:$0]  %s14_s11, 256, %s16_s13, [#allocation3], %s210_s17, %s210_s17, %s211_s18  }
   0x6   :  { %s28_s20 = sshll.u32 %s212_s19, 4  ;;  %s29_s20 = int_to_ptr.vmem [resolvable:$true] %s28_s20 }
   0x7   :  { %34 = dma.hbm_to_vmem [thread:$0]  %s27_s16, 256, %s29_s20, [#allocation5], %s210_s17, %s210_s17, %s211_s18  }
   0x8   :  { %205 = dma.done.wait [#allocation3], 256  }
   0x9   :  { %206 = vsyncadd [#allocation3], 4294967040 }
   0xa   :  { %207 = dma.done.wait [#allocation5], 256  }
   0xb   :  { %208 = vsyncadd [#allocation5], 4294967040  ;;  %vm54_vm0 = vcmask 1041408   ;;  %v46_v0 = vld [vmem:[#allocation4 + $0x8] sm:$0x3]  ;;  %v45_v1 = vld [vmem:[#allocation4] sm:$0xff] }
   0xc   :  { %140 = vmatpush.msk.msra.mxu0 %vm54_vm0, %v46_v0  ;;  %v43_v2 = vld [vmem:[#allocation2] sm:$0xff]  ;;  %vm47_vm1 = vcmask 80896   ;;  %143 = vmatpush.msk.msra.mxu1 %vm54_vm0, %v46_v0  ;;  %v44_v3 = vld [vmem:[#allocation2 + $0x8] sm:$0xff]  ;;  %vm83_vm2 = vcmask 130048  }
   0xe   :  { %73 = vmatpush.msra.mxu0 %v45_v1  ;;  %144 = vmatpush.msra.mxu1 %v45_v1 }
   0xf   :  { %141 = vmatmul.msk.f32.vlgmr.msra.gmra.mxu0 %vm47_vm1, %v43_v2  ;;  %142 = vmatmul.msk.f32.vlgmr.msra.gmra.mxu1 %vm47_vm1, %v44_v3 }
  0x8c   :  { %v75_v4 = vpop.f32.mrf.mxu0  ;;  %v78_v6 = vpop.f32.mrf.mxu1 }
  0x8d   :  { %v81_v5 = vmax.f32 %v75_v4, 0.0  ;;  %v82_v8 = vmax.f32 %v78_v6, 0.0 }
  0x8f   :  { %v84_v7 = vsel %vm83_vm2, %v81_v5, -inf  ;;  %v87_v9 = vsel %vm83_vm2, %v82_v8, -inf }
  0x90   :  { %85 = vmax.xlane.f32.xlu0 %v84_v7 }
  0x98   :  { %88 = vmax.xlane.f32.xlu0 %v87_v9 }
 0x103   :  { %v86_v10 = vpop.xlane.xlu0 %85 }
 0x104   :  { %v90_v11 = vsub.f32 %v81_v5, %v86_v10 }
 0x106   :  { %v92_v12 = vmul.f32 1.442695, %v90_v11 }
 0x108   :  { %149 = vpow2.f32 %v92_v12 }
 0x10b   :  { %v89_v13 = vpop.xlane.xlu0 %88 }
 0x10c   :  { %v91_v14 = vsub.f32 %v82_v8, %v89_v13 }
 0x10e   :  { %v150_v15 = vpop.eup %149  ;;  %v94_v16 = vmul.f32 1.442695, %v91_v14 }
 0x10f   :  { %v96_v17 = vsel %vm83_vm2, %v150_v15, 0.0 }
 0x110   :  { %151 = vpow2.f32 %v94_v16  ;;  %97 = vadd.xlane.f32.xlu1 %v96_v17 }
 0x116   :  { %v152_v18 = vpop.eup %151 }
 0x117   :  { %v99_v19 = vsel %vm83_vm2, %v152_v18, 0.0 }
 0x118   :  { %100 = vadd.xlane.f32.xlu1 %v99_v19 }
 0x183   :  { %v98_v20 = vpop.xlane.xlu1 %97 }
 0x184   :  { %153 = vrcp.f32 %v98_v20  ;;  %v113_v25 = vand.u32 2147483648, %v98_v20  ;;  %v111_v27 = vand.u32 2147483647, %v98_v20  ;;  %vm107_vm4 = vweird.f32 %v98_v20 }
 0x186   :  { %v114_v30 = vor.u32 1.1754944e-38, %v113_v25  ;;  %vm112_vm6 = vcmp.eq.f32.partialorder %v111_v27, 8.507059e+37 }
 0x18a   :  { %v154_v21 = vpop.eup %153 }
 0x18b   :  { %v103_v22 = vmul.f32 %v154_v21, %v98_v20  ;;  %v101_v23 = vpop.xlane.xlu1 %100  ;;  %vm108_vm3 = vweird.f32 %v154_v21 }
 0x18c   :  { %155 = vrcp.f32 %v101_v23  ;;  %vm109_vm5 = vmor %vm107_vm4, %vm108_vm3  ;;  %v128_v36 = vand.u32 2147483648, %v101_v23  ;;  %v126_v38 = vand.u32 2147483647, %v101_v23  ;;  %vm122_vm8 = vweird.f32 %v101_v23 }
 0x18d   :  { %v104_v24 = vsub.f32 1.0, %v103_v22 }
 0x18e   :  { %v129_v40 = vor.u32 1.1754944e-38, %v128_v36  ;;  %vm127_vm10 = vcmp.eq.f32.partialorder %v126_v38, 8.507059e+37 }
 0x18f   :  { %v105_v26 = vmul.f32 %v154_v21, %v104_v24 }
 0x191   :  { %v106_v28 = vadd.f32 %v154_v21, %v105_v26 }
 0x192   :  { %v156_v29 = vpop.eup %155 }
 0x193   :  { %v110_v31 = vsel %vm109_vm5, %v154_v21, %v106_v28  ;;  %v118_v32 = vmul.f32 %v156_v29, %v101_v23  ;;  %vm123_vm7 = vweird.f32 %v156_v29 }
 0x194   :  { %v115_v33 = vsel %vm112_vm6, %v114_v30, %v110_v31  ;;  %vm124_vm9 = vmor %vm122_vm8, %vm123_vm7 }
 0x195   :  { %v116_v34 = vmul.f32 %v150_v15, %v115_v33  ;;  %v119_v35 = vsub.f32 1.0, %v118_v32 }
 0x197   :  { %132 = vst.msk [vmem:[%s248_s2] sm:$0xff] %vm83_vm2, %v116_v34  ;;  %v120_v37 = vmul.f32 %v156_v29, %v119_v35 }
 0x199   :  { %v121_v39 = vadd.f32 %v156_v29, %v120_v37 }
 0x19b   :  { %v125_v41 = vsel %vm124_vm9, %v156_v29, %v121_v39 }
 0x19c   :  { %v130_v42 = vsel %vm127_vm10, %v129_v40, %v125_v41 }
 0x19d   :  { %v131_v43 = vmul.f32 %v152_v18, %v130_v42 }
 0x19f   :  { %133 = vst.msk [vmem:[%s248_s2 + $0x8] sm:$0xff] %vm83_vm2, %v131_v43 }
 0x1a0   :  { %138 = vsyncpa [#allocation3], 1 }
 0x1a1   :  { %139 = vsyncpa [#allocation5], 1 }

// kernel: gwnet_forward.3
= control target key start
LH: loop header
LB: loop body
LE: loop exit
PB: predicated region body
PF: predicated region fallthrough
CT: control target
= control target key end

     0   :  { %s9293_s25 = smov 0   ;;  %s15602_s0 = inlined_call_operand.vmem [shape: f32[2,61,64], index: 0, kind: input, shape index: {}]   ;;  %s15603_s1 = inlined_call_operand.vmem [shape: f32[2,1,16], index: 1, kind: input, shape index: {}]   ;;  %s15604_s2 = inlined_call_operand.vmem [shape: f32[64,128], index: 2, kind: input, shape index: {}]   ;;  %s15605_s3 = inlined_call_operand.vmem [shape: f32[1,128], index: 3, kind: input, shape index: {}]   ;;  %s15606_s4 = inlined_call_operand.vmem [shape: f32[16,256,256], index: 4, kind: input, shape index: {}]   ;;  %s15607_s5 = inlined_call_operand.vmem [shape: f32[16,1,256], index: 5, kind: input, shape index: {}]   ;;  %s15608_s6 = inlined_call_operand.vmem [shape: f32[16,128,256], index: 6, kind: input, shape index: {}]   ;;  %s15609_s7 = inlined_call_operand.vmem [shape: f32[16,1,256], index: 7, kind: input, shape index: {}]   ;;  %s15610_s8 = inlined_call_operand.vmem [shape: f32[128,128], index: 8, kind: input, shape index: {}]   ;;  %s15611_s9 = inlined_call_operand.vmem [shape: f32[1,128], index: 9, kind: input, shape index: {}]   ;;  %s15612_s10 = inlined_call_operand.vmem [shape: f32[128,16], index: 10, kind: input, shape index: {}]   ;;  %s15613_s11 = inlined_call_operand.vmem [shape: f32[1,16], index: 11, kind: input, shape index: {}]   ;;  %s15614_s12 = inlined_call_operand.vmem [shape: f32[2,1,16], index: 12, kind: output, shape index: {0}]   ;;  %s15615_s13 = inlined_call_operand.vmem [shape: f32[2,1,16], index: 13, kind: output, shape index: {1}]  }
   0x1 LB: > { %s7304_s26 = sadd.s32 4294967295, %s9221_s25   ;;  %p7308_p0 = scmp.ge.s32.totalorder %s9221_s25, 1  ;;  %s9221_s25 = sphi %s9293_s25, %s24_s25  }
   0x2   : > { %p398_p1 = scmp.lt.s32.totalorder %s9221_s25, 3 }
   0x4   : > { %p399_p2 = pnand %p7308_p0, %p398_p1 }
   0x5   : > { %p446_p3 = scmp.lt.s32.totalorder (!%p399_p2), %s7304_s26, 1 }
   0x6   : > { %402 = sbr.rel (%p399_p2) target bundleno = 5450 (0x154a), region = 68 }
   0xb   : > { %v475_v0 = vld [vmem:[%s15604_s2 + $0x38] sm:$0xff]  ;;  %v474_v1 = vld [vmem:[%s15604_s2 + $0x30] sm:$0xff]  ;;  %v473_v2 = vld [vmem:[%s15604_s2 + $0x28] sm:$0xff]  ;;  %s15649_s26 = smov (!%p446_p3, %s7304_s26), 1  ;;  %vm480_vm0 = vcmask 523264   ;;  %vm554_vm1 = vcmask 1046528  }
   0xc   : > { %513 = vmatpush.msra.mxu0 %v475_v0  ;;  %v472_v3 = vld [vmem:[%s15604_s2 + $0x20] sm:$0xff]  ;;  %v471_v4 = vld [vmem:[%s15604_s2 + $0x18] sm:$0xff]  ;;  %s8775_s20 = sshll.u32 %s15649_s26, 6  ;;  %v470_v5 = vld [vmem:[%s15604_s2 + $0x10] sm:$0xff]  ;;  %s453_s22 = scalar_lea.vmem %s15603_s1, %s15649_s26 }
   0xd   : > { %v469_v6 = vld [vmem:[%s15604_s2 + $0x8] sm:$0xff]  ;;  %s9328_s29 = scalar_lea.vmem %s15602_s0, %s8775_s20  ;;  %v468_v7 = vld [vmem:[%s15604_s2] sm:$0xff]  ;;  %v641_v12 = vld [vmem:[%s15606_s4 + $0x1f8] sm:$0xff]  ;;  %s459_s24 = scalar_lea.vmem %s15615_s13, %s15649_s26 }
   0xe   : > { %514 = vmatpush.msra.mxu0 %v474_v1  ;;  %v460_v8 = vld [vmem:[%s9328_s29] sm:$0xff]  ;;  %v461_v9 = vld [vmem:[%s9328_s29 + $0x8] sm:$0xff]  ;;  %v462_v10 = vld [vmem:[%s9328_s29 + $0x10] sm:$0xff]  ;;  %s456_s30 = scalar_lea.vmem %s15614_s12, %s15649_s26 }
   0xf   : > { %v463_v11 = vld [vmem:[%s9328_s29 + $0x18] sm:$0xff]  ;;  %v639_v13 = vld [vmem:[%s15606_s4 + $0x1e8] sm:$0xff]  ;;  %v608_v15 = vld [vmem:[%s15606_s4 + $0xf0] sm:$0xff] }
  0x10   : > { %515 = vmatpush.msra.mxu0 %v473_v2  ;;  %v637_v14 = vld [vmem:[%s15606_s4 + $0x1d8] sm:$0xff]  ;;  %v606_v17 = vld [vmem:[%s15606_s4 + $0xe0] sm:$0xff]  ;;  %648 = vmatpush.msra.mxu1 %v608_v15  ;;  %v607_v18 = vld [vmem:[%s15606_s4 + $0xe8] sm:$0xff] }
  0x11   : > { %v609_v16 = vld [vmem:[%s15606_s4 + $0xf8] sm:$0xff]  ;;  %v635_v19 = vld [vmem:[%s15606_s4 + $0x1c8] sm:$0xff]  ;;  %v604_v20 = vld [vmem:[%s15606_s4 + $0xd0] sm:$0xff] }
  0x12   : > { %516 = vmatpush.msra.mxu0 %v472_v3  ;;  %730 = vmatpush.msra.mxu3 %v609_v16  ;;  %v464_v21 = vld [vmem:[%s9328_s29 + $0x20] sm:$0xff]  ;;  %v605_v22 = vld [vmem:[%s15606_s4 + $0xd8] sm:$0xff]  ;;  %v603_v25 = vld [vmem:[%s15606_s4 + $0xc8] sm:$0xff] }
  0x13   : > { %649 = vmatpush.msra.mxu1 %v606_v17  ;;  %v633_v23 = vld [vmem:[%s15606_s4 + $0x1b8] sm:$0xff]  ;;  %v602_v24 = vld [vmem:[%s15606_s4 + $0xc0] sm:$0xff]  ;;  %v640_v26 = vld [vmem:[%s15606_s4 + $0x1f0] sm:$0xff] }
  0x14   : > { %517 = vmatpush.msra.mxu0 %v471_v4  ;;  %731 = vmatpush.msra.mxu3 %v607_v18  ;;  %v631_v27 = vld [vmem:[%s15606_s4 + $0x1a8] sm:$0xff]  ;;  %v600_v28 = vld [vmem:[%s15606_s4 + $0xb0] sm:$0xff]  ;;  %v601_v29 = vld [vmem:[%s15606_s4 + $0xb8] sm:$0xff] }
  0x15   : > { %650 = vmatpush.msra.mxu1 %v604_v20  ;;  %v638_v30 = vld [vmem:[%s15606_s4 + $0x1e0] sm:$0xff]  ;;  %v629_v31 = vld [vmem:[%s15606_s4 + $0x198] sm:$0xff]  ;;  %689 = vmatpush.msra.mxu2 %v640_v26  ;;  %v599_v33 = vld [vmem:[%s15606_s4 + $0xa8] sm:$0xff] }
  0x16   : > { %518 = vmatpush.msra.mxu0 %v470_v5  ;;  %732 = vmatpush.msra.mxu3 %v605_v22  ;;  %v598_v32 = vld [vmem:[%s15606_s4 + $0xa0] sm:$0xff]  ;;  %v636_v34 = vld [vmem:[%s15606_s4 + $0x1d0] sm:$0xff]  ;;  %v627_v35 = vld [vmem:[%s15606_s4 + $0x188] sm:$0xff] }
  0x17   : > { %651 = vmatpush.msra.mxu1 %v602_v24  ;;  %v596_v36 = vld [vmem:[%s15606_s4 + $0x90] sm:$0xff]  ;;  %690 = vmatpush.msra.mxu2 %v638_v30  ;;  %v465_v37 = vld [vmem:[%s9328_s29 + $0x28] sm:$0xff]  ;;  %v597_v38 = vld [vmem:[%s15606_s4 + $0x98] sm:$0xff] }
  0x18   : > { %519 = vmatpush.msra.mxu0 %v469_v6  ;;  %733 = vmatpush.msra.mxu3 %v603_v25  ;;  %v625_v39 = vld [vmem:[%s15606_s4 + $0x178] sm:$0xff]  ;;  %v594_v40 = vld [vmem:[%s15606_s4 + $0x80] sm:$0xff]  ;;  %v595_v41 = vld [vmem:[%s15606_s4 + $0x88] sm:$0xff] }
  0x19   : > { %652 = vmatpush.msra.mxu1 %v600_v28  ;;  %691 = vmatpush.msra.mxu2 %v636_v34  ;;  %v634_v42 = vld [vmem:[%s15606_s4 + $0x1c0] sm:$0xff]  ;;  %v623_v43 = vld [vmem:[%s15606_s4 + $0x168] sm:$0xff]  ;;  %v592_v44 = vld [vmem:[%s15606_s4 + $0x70] sm:$0xff] }
  0x1a   : > { %520 = vmatpush.msra.mxu0 %v468_v7  ;;  %734 = vmatpush.msra.mxu3 %v601_v29  ;;  %v593_v45 = vld [vmem:[%s15606_s4 + $0x78] sm:$0xff]  ;;  %v632_v46 = vld [vmem:[%s15606_s4 + $0x1b0] sm:$0xff]  ;;  %v590_v47 = vld [vmem:[%s15606_s4 + $0x60] sm:$0xff] }
  0x1b   : > { %7311 = vmatmul.msk.f32.vlgmr.msra.gmra.mxu0 %vm480_vm0, %v460_v8  ;;  %653 = vmatpush.msra.mxu1 %v598_v32  ;;  %v621_v48 = vld [vmem:[%s15606_s4 + $0x158] sm:$0xff]  ;;  %v591_v49 = vld [vmem:[%s15606_s4 + $0x68] sm:$0xff]  ;;  %v630_v50 = vld [vmem:[%s15606_s4 + $0x1a0] sm:$0xff] }
  0x1c   : > { %771 = vmatpush.msrb.mxu0 %v641_v12  ;;  %735 = vmatpush.msra.mxu3 %v599_v33  ;;  %v588_v51 = vld [vmem:[%s15606_s4 + $0x50] sm:$0xff]  ;;  %v619_v52 = vld [vmem:[%s15606_s4 + $0x148] sm:$0xff]  ;;  %v589_v54 = vld [vmem:[%s15606_s4 + $0x58] sm:$0xff] }
  0x1d   : > { %654 = vmatpush.msra.mxu1 %v596_v36  ;;  %692 = vmatpush.msra.mxu2 %v634_v42  ;;  %v466_v53 = vld [vmem:[%s9328_s29 + $0x30] sm:$0xff]  ;;  %v586_v55 = vld [vmem:[%s15606_s4 + $0x40] sm:$0xff]  ;;  %v587_v57 = vld [vmem:[%s15606_s4 + $0x48] sm:$0xff] }
  0x1e   : > { %772 = vmatpush.msrb.mxu0 %v639_v13  ;;  %736 = vmatpush.msra.mxu3 %v597_v38  ;;  %v628_v56 = vld [vmem:[%s15606_s4 + $0x190] sm:$0xff]  ;;  %v617_v58 = vld [vmem:[%s15606_s4 + $0x138] sm:$0xff]  ;;  %v626_v60 = vld [vmem:[%s15606_s4 + $0x180] sm:$0xff] }
  0x1f   : > { %655 = vmatpush.msra.mxu1 %v594_v40  ;;  %693 = vmatpush.msra.mxu2 %v632_v46  ;;  %v584_v59 = vld [vmem:[%s15606_s4 + $0x30] sm:$0xff]  ;;  %v585_v61 = vld [vmem:[%s15606_s4 + $0x38] sm:$0xff]  ;;  %v582_v62 = vld [vmem:[%s15606_s4 + $0x20] sm:$0xff] }
  0x20   : > { %773 = vmatpush.msrb.mxu0 %v637_v14  ;;  %737 = vmatpush.msra.mxu3 %v595_v41  ;;  %v624_v63 = vld [vmem:[%s15606_s4 + $0x170] sm:$0xff]  ;;  %v583_v0 = vld [vmem:[%s15606_s4 + $0x28] sm:$0xff]  ;;  %v467_v1 = vld [vmem:[%s9328_s29 + $0x38] sm:$0x1f] }
  0x21   : > { %656 = vmatpush.msra.mxu1 %v592_v44  ;;  %694 = vmatpush.msra.mxu2 %v630_v50  ;;  %v580_v2 = vld [vmem:[%s15606_s4 + $0x10] sm:$0xff]  ;;  %v581_v3 = vld [vmem:[%s15606_s4 + $0x18] sm:$0xff]  ;;  %v622_v4 = vld [vmem:[%s15606_s4 + $0x160] sm:$0xff] }
  0x22   : > { %774 = vmatpush.msrb.mxu0 %v635_v19  ;;  %738 = vmatpush.msra.mxu3 %v593_v45  ;;  %v578_v5 = vld [vmem:[%s15606_s4] sm:$0xff]  ;;  %v579_v6 = vld [vmem:[%s15606_s4 + $0x8] sm:$0xff]  ;;  %v620_v8 = vld [vmem:[%s15606_s4 + $0x150] sm:$0xff] }
  0x23   : > { %7312 = vmatmul.msk.f32.gmra.mxu0 %vm480_vm0, %v461_v9  ;;  %657 = vmatpush.msra.mxu1 %v590_v47  ;;  %v615_v7 = vld [vmem:[%s15606_s4 + $0x128] sm:$0xff]  ;;  %v618_v9 = vld [vmem:[%s15606_s4 + $0x140] sm:$0xff]  ;;  %v612_v14 = vld [vmem:[%s15606_s4 + $0x110] sm:$0xff] }
  0x24   : > { %775 = vmatpush.msrb.mxu0 %v633_v23  ;;  %739 = vmatpush.msra.mxu3 %v591_v49  ;;  %v614_v12 = vld [vmem:[%s15606_s4 + $0x120] sm:$0xff]  ;;  %v611_v13 = vld [vmem:[%s15606_s4 + $0x108] sm:$0xff]  ;;  %v1011_v36 = vld [vmem:[%s15608_s6 + $0xf8] sm:$0xff] }
  0x25   : > { %658 = vmatpush.msra.mxu1 %v588_v51  ;;  %695 = vmatpush.msra.mxu2 %v628_v56  ;;  %v610_v15 = vld [vmem:[%s15606_s4 + $0x100] sm:$0xff]  ;;  %v1007_v40 = vld [vmem:[%s15608_s6 + $0xd8] sm:$0xff]  ;;  %v1005_v42 = vld [vmem:[%s15608_s6 + $0xc8] sm:$0xff] }
  0x26   : > { %776 = vmatpush.msrb.mxu0 %v631_v27  ;;  %740 = vmatpush.msra.mxu3 %v589_v54  ;;  %v9544_v16 = vld [vmem:[%s15605_s3] ss:$0 sm:$0xff]  ;;  %v1003_v44 = vld [vmem:[%s15608_s6 + $0xb8] sm:$0xff]  ;;  %v1010_v56 = vld [vmem:[%s15608_s6 + $0xf0] sm:$0xff] }
  0x27   : > { %659 = vmatpush.msra.mxu1 %v586_v55  ;;  %696 = vmatpush.msra.mxu2 %v626_v60  ;;  %v999_v54 = vld [vmem:[%s15608_s6 + $0x98] sm:$0xff]  ;;  %v997_v55 = vld [vmem:[%s15608_s6 + $0x88] sm:$0xff]  ;;  %v1002_v60 = vld [vmem:[%s15608_s6 + $0xb0] sm:$0xff] }
  0x28   : > { %777 = vmatpush.msrb.mxu0 %v629_v31  ;;  %741 = vmatpush.msra.mxu3 %v587_v57  ;;  %v1008_v57 = vld [vmem:[%s15608_s6 + $0xe0] sm:$0xff] }
  0x29   : > { %660 = vmatpush.msra.mxu1 %v584_v59  ;;  %697 = vmatpush.msra.mxu2 %v624_v63  ;;  %v1004_v59 = vld [vmem:[%s15608_s6 + $0xc0] sm:$0xff]  ;;  %v995_v63 = vld [vmem:[%s15608_s6 + $0x78] sm:$0xff] }
  0x2a   : > { %778 = vmatpush.msrb.mxu0 %v627_v35  ;;  %742 = vmatpush.msra.mxu3 %v585_v61  ;;  %v1000_v61 = vld [vmem:[%s15608_s6 + $0xa0] sm:$0xff] }
  0x2b   : > { %7313 = vmatmul.msk.f32.gmra.mxu0 %vm480_vm0, %v462_v10  ;;  %661 = vmatpush.msra.mxu1 %v582_v62  ;;  %v613_v10 = vld [vmem:[%s15606_s4 + $0x118] sm:$0xff]  ;;  %v998_v62 = vld [vmem:[%s15608_s6 + $0x90] sm:$0xff] }
  0x2c   : > { %779 = vmatpush.msrb.mxu0 %v625_v39  ;;  %743 = vmatpush.msra.mxu3 %v583_v0  ;;  %v993_v0 = vld [vmem:[%s15608_s6 + $0x68] sm:$0xff] }
  0x2d   : > { %662 = vmatpush.msra.mxu1 %v580_v2  ;;  %698 = vmatpush.msra.mxu2 %v622_v4  ;;  %v994_v2 = vld [vmem:[%s15608_s6 + $0x70] sm:$0xff]  ;;  %v991_v4 = vld [vmem:[%s15608_s6 + $0x58] sm:$0xff] }
  0x2e   : > { %780 = vmatpush.msrb.mxu0 %v623_v43  ;;  %744 = vmatpush.msra.mxu3 %v581_v3  ;;  %v992_v3 = vld [vmem:[%s15608_s6 + $0x60] sm:$0xff] }
  0x2f   : > { %663 = vmatpush.msra.mxu1 %v578_v5  ;;  %699 = vmatpush.msra.mxu2 %v620_v8  ;;  %v990_v5 = vld [vmem:[%s15608_s6 + $0x50] sm:$0xff]  ;;  %v642_v8 = vld [vmem:[%s15607_s5] sm:$0x3] }
  0x30   : > { %781 = vmatpush.msrb.mxu0 %v621_v48  ;;  %745 = vmatpush.msra.mxu3 %v579_v6  ;;  %v989_v6 = vld [vmem:[%s15608_s6 + $0x48] sm:$0xff] }
  0x31   : > { %700 = vmatpush.msra.mxu2 %v618_v9  ;;  %1018 = vmatpush.msrb.mxu1 %v1010_v56  ;;  %v9669_v9 = vperm.slane %v642_v8, 1 }
  0x32   : > { %782 = vmatpush.msrb.mxu0 %v619_v52 }
  0x33   : > { %7314 = vmatmul.msk.f32.gmra.mxu0 %vm480_vm0, %v463_v11  ;;  %v616_v11 = vld [vmem:[%s15606_s4 + $0x130] sm:$0xff]  ;;  %1019 = vmatpush.msrb.mxu1 %v1008_v57 }
  0x34   : > { %783 = vmatpush.msrb.mxu0 %v617_v58  ;;  %701 = vmatpush.msra.mxu2 %v616_v11  ;;  %v1006_v58 = vld [vmem:[%s15608_s6 + $0xd0] sm:$0xff]  ;;  %v987_v11 = vld [vmem:[%s15608_s6 + $0x38] sm:$0xff] }
  0x35   : > { %1020 = vmatpush.msrb.mxu1 %v1006_v58 }
  0x36   : > { %784 = vmatpush.msrb.mxu0 %v615_v7  ;;  %702 = vmatpush.msra.mxu2 %v614_v12  ;;  %v988_v7 = vld [vmem:[%s15608_s6 + $0x40] sm:$0xff]  ;;  %v986_v12 = vld [vmem:[%s15608_s6 + $0x30] sm:$0xff] }
  0x37   : > { %1021 = vmatpush.msrb.mxu1 %v1004_v59 }
  0x38   : > { %785 = vmatpush.msrb.mxu0 %v613_v10  ;;  %703 = vmatpush.msra.mxu2 %v612_v14  ;;  %v984_v14 = vld [vmem:[%s15608_s6 + $0x20] sm:$0xff] }
  0x39   : > { %1022 = vmatpush.msrb.mxu1 %v1002_v60 }
  0x3a   : > { %786 = vmatpush.msrb.mxu0 %v611_v13  ;;  %704 = vmatpush.msra.mxu2 %v610_v15  ;;  %v985_v13 = vld [vmem:[%s15608_s6 + $0x28] sm:$0xff] }
  0x3b   : > { %7315 = vmatmul.msk.f32.gmra.mxu0 %vm480_vm0, %v464_v21  ;;  %1023 = vmatpush.msrb.mxu1 %v1000_v61 }
  0x3c   : > { %1055 = vmatpush.msrb.mxu2 %v1011_v36 }
  0x3d   : > { %1024 = vmatpush.msrb.mxu1 %v998_v62 }
  0x43   : > { %7316 = vmatmul.msk.f32.gmra.mxu0 %vm480_vm0, %v465_v37  ;;  %v1009_v37 = vld [vmem:[%s15608_s6 + $0xe8] sm:$0xff] }
  0x44   : > { %1056 = vmatpush.msrb.mxu2 %v1009_v37 }
  0x46   : > { %1057 = vmatpush.msrb.mxu2 %v1007_v40 }
  0x48   : > { %1058 = vmatpush.msrb.mxu2 %v1005_v42  ;;  %v9698_v42 = vperm.slane %v642_v8, 0 }
  0x4a   : > { %1059 = vmatpush.msrb.mxu2 %v1003_v44 }
  0x4b   : > { %7317 = vmatmul.msk.f32.gmra.mxu0 %vm480_vm0, %v466_v53  ;;  %v1001_v53 = vld [vmem:[%s15608_s6 + $0xa8] sm:$0xff] }
  0x4c   : > { %1060 = vmatpush.msrb.mxu2 %v1001_v53 }
  0x4e   : > { %1061 = vmatpush.msrb.mxu2 %v999_v54 }
  0x50   : > { %1062 = vmatpush.msrb.mxu2 %v997_v55 }
  0x52   : > { %1063 = vmatpush.msrb.mxu2 %v995_v63 }
  0x53   : > { %7318 = vmatmul.msk.f32.gmra.mxu0 %vm480_vm0, %v467_v1  ;;  %v996_v1 = vld [vmem:[%s15608_s6 + $0x80] sm:$0xff] }
  0x54   : > { %1025 = vmatpush.msrb.mxu1 %v996_v1  ;;  %1064 = vmatpush.msrb.mxu2 %v993_v0 }
  0x56   : > { %1026 = vmatpush.msrb.mxu1 %v994_v2  ;;  %1065 = vmatpush.msrb.mxu2 %v991_v4 }
  0x58   : > { %1027 = vmatpush.msrb.mxu1 %v992_v3  ;;  %1066 = vmatpush.msrb.mxu2 %v989_v6 }
  0x5a   : > { %1028 = vmatpush.msrb.mxu1 %v990_v5  ;;  %1067 = vmatpush.msrb.mxu2 %v987_v11 }
  0x5c   : > { %1029 = vmatpush.msrb.mxu1 %v988_v7  ;;  %1068 = vmatpush.msrb.mxu2 %v985_v13 }
  0x5e   : > { %1030 = vmatpush.msrb.mxu1 %v986_v12 }
  0x60   : > { %1031 = vmatpush.msrb.mxu1 %v984_v14 }
  0x98   : > { %v522_v17 = vpop.f32.mrf.mxu0 }
  0x99   : > { %v523_v18 = vadd.f32 %v9544_v16, %v522_v17  ;;  %v982_v17 = vld [vmem:[%s15608_s6 + $0x10] sm:$0xff] }
  0x9a   : > { %1032 = vmatpush.msrb.mxu1 %v982_v17 }
  0x9b   : > { %664 = vmatmul.f32.vlgmr.msra.gmra.mxu1 %v523_v18  ;;  %746 = vmatmul.f32.vlgmr.msra.gmra.mxu3 %v523_v18  ;;  %v555_v21 = vrot.slane %v523_v18, 1 }
  0xa0   : > { %v525_v19 = vpop.f32.mrf.mxu0 }
  0xa1   : > { %v526_v20 = vadd.f32 %v9544_v16, %v525_v19 }
  0xa3   : > { %667 = vmatmul.f32.gmra.mxu1 %v526_v20  ;;  %749 = vmatmul.f32.gmra.mxu3 %v526_v20  ;;  %v556_v22 = vrot.slane %v526_v20, 1  ;;  %v981_v20 = vld [vmem:[%s15608_s6 + $0x8] sm:$0xff] }
  0xa5   : > { %v9549_v23 = vsel %vm554_vm1, %v555_v21, %v556_v22  ;;  %v980_v21 = vld [vmem:[%s15608_s6] sm:$0xff] }
  0xa6   : > { %705 = vmatmul.f32.vlgmr.msra.gmra.mxu2 %v9549_v23  ;;  %787 = vmatmul.f32.vlgmr.msrb.gmra.mxu0 %v9549_v23 }
  0xa7   : > { %1033 = vmatpush.msrb.mxu1 %v980_v21 }
  0xa8   : > { %v528_v24 = vpop.f32.mrf.mxu0 }
  0xa9   : > { %v529_v25 = vadd.f32 %v9544_v16, %v528_v24 }
  0xab   : > { %670 = vmatmul.f32.gmra.mxu1 %v529_v25  ;;  %752 = vmatmul.f32.gmra.mxu3 %v529_v25  ;;  %v558_v26 = vrot.slane %v529_v25, 1 }
  0xad   : > { %v9555_v27 = vsel %vm554_vm1, %v556_v22, %v558_v26 }
  0xae   : > { %708 = vmatmul.f32.gmra.mxu2 %v9555_v27  ;;  %790 = vmatmul.f32.gmra.mxu0 %v9555_v27 }
  0xb0   : > { %v531_v28 = vpop.f32.mrf.mxu0 }
  0xb1   : > { %v532_v29 = vadd.f32 %v9544_v16, %v531_v28 }
  0xb3   : > { %673 = vmatmul.f32.gmra.mxu1 %v532_v29  ;;  %755 = vmatmul.f32.gmra.mxu3 %v532_v29  ;;  %v560_v30 = vrot.slane %v532_v29, 1 }
  0xb5   : > { %v9561_v31 = vsel %vm554_vm1, %v558_v26, %v560_v30 }
  0xb6   : > { %711 = vmatmul.f32.gmra.mxu2 %v9561_v31  ;;  %793 = vmatmul.f32.gmra.mxu0 %v9561_v31 }
  0xb8   : > { %v534_v32 = vpop.f32.mrf.mxu0 }
  0xb9   : > { %v535_v33 = vadd.f32 %v9544_v16, %v534_v32 }
  0xbb   : > { %676 = vmatmul.f32.gmra.mxu1 %v535_v33  ;;  %758 = vmatmul.f32.gmra.mxu3 %v535_v33  ;;  %v562_v34 = vrot.slane %v535_v33, 1 }
  0xbd   : > { %v9567_v35 = vsel %vm554_vm1, %v560_v30, %v562_v34 }
  0xbe   : > { %714 = vmatmul.f32.gmra.mxu2 %v9567_v35  ;;  %796 = vmatmul.f32.gmra.mxu0 %v9567_v35 }
  0xc0   : > { %v537_v38 = vpop.f32.mrf.mxu0 }
  0xc1   : > { %v538_v39 = vadd.f32 %v9544_v16, %v537_v38 }
  0xc3   : > { %679 = vmatmul.f32.gmra.mxu1 %v538_v39  ;;  %761 = vmatmul.f32.gmra.mxu3 %v538_v39  ;;  %v564_v41 = vrot.slane %v538_v39, 1 }
  0xc5   : > { %v9585_v43 = vsel %vm554_vm1, %v562_v34, %v564_v41 }
  0xc6   : > { %717 = vmatmul.f32.gmra.mxu2 %v9585_v43  ;;  %799 = vmatmul.f32.gmra.mxu0 %v9585_v43 }
  0xc8   : > { %v540_v45 = vpop.f32.mrf.mxu0 }
  0xc9   : > { %v541_v46 = vadd.f32 %v9544_v16, %v540_v45 }
  0xcb   : > { %682 = vmatmul.f32.gmra.mxu1 %v541_v46  ;;  %764 = vmatmul.f32.gmra.mxu3 %v541_v46  ;;  %v566_v47 = vrot.slane %v541_v46, 1 }
  0xcd   : > { %v9594_v48 = vsel %vm554_vm1, %v564_v41, %v566_v47 }
  0xce   : > { %720 = vmatmul.f32.gmra.mxu2 %v9594_v48  ;;  %802 = vmatmul.f32.gmra.mxu0 %v9594_v48 }
  0xd0   : > { %v543_v49 = vpop.f32.mrf.mxu0 }
  0xd1   : > { %v544_v50 = vadd.f32 %v9544_v16, %v543_v49  ;;  %v983_v16 = vld [vmem:[%s15608_s6 + $0x18] sm:$0xff] }
  0xd2   : > { %1069 = vmatpush.msrb.mxu2 %v983_v16 }
  0xd3   : > { %v9599_v51 = vrot.slane %v544_v50, 1  ;;  %685 = vmatmul.f32.gmra.mxu1 %v544_v50  ;;  %767 = vmatmul.f32.gmra.mxu3 %v544_v50 }
  0xd4   : > { %1070 = vmatpush.msrb.mxu2 %v981_v20 }
  0xd5   : > { %v9603_v52 = vsel %vm554_vm1, %v566_v47, %v9599_v51 }
  0xd6   : > { %723 = vmatmul.f32.gmra.mxu2 %v9603_v52  ;;  %805 = vmatmul.f32.gmra.mxu0 %v9603_v52 }
  0xde   : > { %726 = vmatmul.f32.gmra.mxu2 %v9599_v51  ;;  %808 = vmatmul.f32.gmra.mxu0 %v9599_v51 }
 0x118   : > { %v665_v22 = vpop.f32.mrf.mxu1 }
 0x119   : > { %v666_v49 = vadd.f32 %v665_v22, %v9698_v42 }
 0x11e   : > { %v747_v10 = vpop.f32.mrf.mxu3 }
 0x11f   : > { %v748_v15 = vadd.f32 %v747_v10, %v9669_v9 }
 0x120   : > { %v668_v37 = vpop.f32.mrf.mxu1 }
 0x121   : > { %v669_v5 = vadd.f32 %v668_v37, %v9698_v42 }
 0x123   : > { %v788_v18 = vpop.f32.mrf.mxu0 }
 0x124   : > { %v789_v19 = vadd.f32 %v788_v18, %v748_v15 }
 0x126   : > { %v820_v24 = vsub.f32 0.0, %v789_v19  ;;  %v750_v25 = vpop.f32.mrf.mxu3 }
 0x127   : > { %v751_v29 = vadd.f32 %v750_v25, %v9669_v9 }
 0x128   : > { %v828_v26 = vmul.f32 1.442695, %v820_v24  ;;  %v671_v57 = vpop.f32.mrf.mxu1 }
 0x129   : > { %v706_v28 = vpop.f32.mrf.mxu2 }
 0x12a   : > { %8785 = vpow2.f32 %v828_v26  ;;  %v707_v55 = vadd.f32 %v706_v28, %v666_v49 }
 0x12b   : > { %v791_v30 = vpop.f32.mrf.mxu0 }
 0x12c   : > { %v792_v32 = vadd.f32 %v791_v30, %v751_v29 }
 0x12e   : > { %v821_v33 = vsub.f32 0.0, %v792_v32  ;;  %v753_v34 = vpop.f32.mrf.mxu3 }
 0x12f   : > { %v754_v40 = vadd.f32 %v753_v34, %v9669_v9 }
 0x130   : > { %v8786_v36 = vpop.eup %8785  ;;  %v830_v38 = vmul.f32 1.442695, %v821_v33  ;;  %v674_v20 = vpop.f32.mrf.mxu1  ;;  %v672_v33 = vadd.f32 %v671_v57, %v9698_v42 }
 0x131   : > { %v844_v39 = vadd.f32 1.0, %v8786_v36  ;;  %v709_v41 = vpop.f32.mrf.mxu2 }
 0x132   : > { %8787 = vpow2.f32 %v830_v38  ;;  %v710_v11 = vadd.f32 %v709_v41, %v669_v5 }
 0x133   : > { %8789 = vrcp.f32 %v844_v39  ;;  %v794_v44 = vpop.f32.mrf.mxu0  ;;  %v861_v0 = vand.u32 2147483647, %v844_v39  ;;  %v863_v1 = vand.u32 2147483648, %v844_v39  ;;  %vm857_vm3 = vweird.f32 %v844_v39 }
 0x134   : > { %v795_v45 = vadd.f32 %v794_v44, %v754_v40 }
 0x135   : > { %vm862_vm5 = vcmp.eq.f32.partialorder %v861_v0, 8.507059e+37  ;;  %v864_v13 = vor.u32 1.1754944e-38, %v863_v1 }
 0x136   : > { %v822_v46 = vsub.f32 0.0, %v795_v45  ;;  %v756_v47 = vpop.f32.mrf.mxu3 }
 0x137   : > { %v757_v58 = vadd.f32 %v756_v47, %v9669_v9 }
 0x138   : > { %v8788_v50 = vpop.eup %8787  ;;  %v832_v53 = vmul.f32 1.442695, %v822_v46 }
 0x139   : > { %v8790_v54 = vpop.eup %8789  ;;  %v845_v56 = vadd.f32 1.0, %v8788_v50  ;;  %v712_v61 = vpop.f32.mrf.mxu2 }
 0x13a   : > { %8791 = vpow2.f32 %v832_v53  ;;  %v853_v59 = vmul.f32 %v8790_v54, %v844_v39  ;;  %vm858_vm2 = vweird.f32 %v8790_v54  ;;  %v713_v39 = vadd.f32 %v712_v61, %v672_v33 }
 0x13b   : > { %8793 = vrcp.f32 %v845_v56  ;;  %v797_v60 = vpop.f32.mrf.mxu0  ;;  %vm859_vm4 = vmor %vm857_vm3, %vm858_vm2  ;;  %v876_v25 = vand.u32 2147483647, %v845_v56  ;;  %v878_v26 = vand.u32 2147483648, %v845_v56  ;;  %vm872_vm7 = vweird.f32 %v845_v56 }
 0x13c   : > { %v798_v62 = vadd.f32 %v797_v60, %v757_v58  ;;  %v854_v63 = vsub.f32 1.0, %v853_v59  ;;  %8795 = vtanh.f32 %v707_v55  ;;  %v677_v58 = vpop.f32.mrf.mxu1 }
 0x13d   : > { %vm877_vm9 = vcmp.eq.f32.partialorder %v876_v25, 8.507059e+37  ;;  %v879_v41 = vor.u32 1.1754944e-38, %v878_v26 }
 0x13e   : > { %v823_v2 = vsub.f32 0.0, %v798_v62  ;;  %v759_v3 = vpop.f32.mrf.mxu3  ;;  %v855_v4 = vmul.f32 %v8790_v54, %v854_v63  ;;  %v675_v62 = vadd.f32 %v674_v20, %v9698_v42 }
 0x13f   : > { %v760_v14 = vadd.f32 %v759_v3, %v9669_v9 }
 0x140   : > { %v8792_v6 = vpop.eup %8791  ;;  %v834_v7 = vmul.f32 1.442695, %v823_v2  ;;  %v856_v8 = vadd.f32 %v8790_v54, %v855_v4 }
 0x141   : > { %v8794_v10 = vpop.eup %8793  ;;  %v9703_v12 = vadd.f32 1.0, %v8792_v6  ;;  %v715_v28 = vpop.f32.mrf.mxu2 }
 0x142   : > { %8797 = vpow2.f32 %v834_v7  ;;  %v860_v15 = vsel %vm859_vm4, %v8790_v54, %v856_v8  ;;  %v868_v16 = vmul.f32 %v8794_v10, %v845_v56  ;;  %v8796_v17 = vpop.eup %8795  ;;  %vm873_vm6 = vweird.f32 %v8794_v10 }
 0x143   : > { %8799 = vrcp.f32 %v9703_v12  ;;  %v800_v18 = vpop.f32.mrf.mxu0  ;;  %v865_v19 = vsel %vm862_vm5, %v864_v13, %v860_v15  ;;  %vm874_vm8 = vmor %vm872_vm7, %vm873_vm6  ;;  %v891_v56 = vand.u32 2147483647, %v9703_v12  ;;  %v893_v57 = vand.u32 2147483648, %v9703_v12 }
 0x144   : > { %v801_v21 = vadd.f32 %v800_v18, %v760_v14  ;;  %v972_v22 = vmul.f32 %v8796_v17, %v865_v19  ;;  %v869_v24 = vsub.f32 1.0, %v868_v16  ;;  %8801 = vtanh.f32 %v710_v11  ;;  %v680_v25 = vpop.f32.mrf.mxu1 }
 0x145   : > { %vm887_vm11 = vweird.f32 %v9703_v12  ;;  %v716_v4 = vadd.f32 %v715_v28, %v675_v62  ;;  %vm892_vm13 = vcmp.eq.f32.partialorder %v891_v56, 8.507059e+37  ;;  %v894_v6 = vor.u32 1.1754944e-38, %v893_v57  ;;  %v7348_v57 = vld [vmem:[%s15606_s4 + $0x2e8] sm:$0xff]  ;;  %v7346_v62 = vld [vmem:[%s15606_s4 + $0x2d8] sm:$0xff] }
 0x146   : > { %v824_v29 = vsub.f32 0.0, %v801_v21  ;;  %v762_v30 = vpop.f32.mrf.mxu3  ;;  %1034 = vmatmul.f32.vlgmr.msrb.gmra.mxu1 %v972_v22  ;;  %1071 = vmatmul.f32.vlgmr.msrb.gmra.mxu2 %v972_v22  ;;  %v870_v32 = vmul.f32 %v8794_v10, %v869_v24  ;;  %v678_v21 = vadd.f32 %v677_v58, %v9698_v42  ;;  %v681_v56 = vadd.f32 %v680_v25, %v9698_v42  ;;  %v7372_v25 = vld [vmem:[%s15606_s4 + $0x3a8] sm:$0xff] }
 0x147   : > { %v763_v44 = vadd.f32 %v762_v30, %v9669_v9 }
 0x148   : > { %v8798_v34 = vpop.eup %8797  ;;  %v836_v36 = vmul.f32 1.442695, %v824_v29  ;;  %v871_v37 = vadd.f32 %v8794_v10, %v870_v32 }
 0x149   : > { %v8800_v38 = vpop.eup %8799  ;;  %v9708_v40 = vadd.f32 1.0, %v8798_v34  ;;  %v718_v0 = vpop.f32.mrf.mxu2 }
 0x14a   : > { %8803 = vpow2.f32 %v836_v36  ;;  %v875_v45 = vsel %vm874_vm8, %v8794_v10, %v871_v37  ;;  %v883_v46 = vmul.f32 %v8800_v38, %v9703_v12  ;;  %v8802_v47 = vpop.eup %8801  ;;  %vm888_vm10 = vweird.f32 %v8800_v38 }
 0x14b   : > { %8805 = vrcp.f32 %v9708_v40  ;;  %v803_v49 = vpop.f32.mrf.mxu0  ;;  %v880_v50 = vsel %vm877_vm9, %v879_v41, %v875_v45  ;;  %vm889_vm12 = vmor %vm887_vm11, %vm888_vm10  ;;  %v906_v17 = vand.u32 2147483647, %v9708_v40  ;;  %v908_v18 = vand.u32 2147483648, %v9708_v40 }
 0x14c   : > { %v804_v53 = vadd.f32 %v803_v49, %v763_v44  ;;  %v973_v54 = vmul.f32 %v8802_v47, %v880_v50  ;;  %v884_v55 = vsub.f32 1.0, %v883_v46  ;;  %8807 = vtanh.f32 %v713_v39 }
 0x14d   : > { %vm902_vm15 = vweird.f32 %v9708_v40  ;;  %v719_v30 = vadd.f32 %v718_v0, %v678_v21  ;;  %vm907_vm2 = vcmp.eq.f32.partialorder %v906_v17, 8.507059e+37  ;;  %v909_v33 = vor.u32 1.1754944e-38, %v908_v18  ;;  %v7374_v17 = vld [vmem:[%s15606_s4 + $0x3b8] sm:$0xff]  ;;  %v7381_v21 = vld [vmem:[%s15606_s4 + $0x3f0] sm:$0xff] }
 0x14e   : > { %v825_v59 = vsub.f32 0.0, %v804_v53  ;;  %v765_v60 = vpop.f32.mrf.mxu3  ;;  %1036 = vmatmul.f32.gmra.mxu1 %v973_v54  ;;  %1074 = vmatmul.f32.gmra.mxu2 %v973_v54  ;;  %v885_v61 = vmul.f32 %v8800_v38, %v884_v55  ;;  %v7382_v53 = vld [vmem:[%s15606_s4 + $0x3f8] sm:$0xff]  ;;  %v7380_v55 = vld [vmem:[%s15606_s4 + $0x3e8] sm:$0xff] }
 0x14f   : > { %v766_v7 = vadd.f32 %v765_v60, %v9669_v9  ;;  %v7350_v54 = vld [vmem:[%s15606_s4 + $0x2f8] sm:$0xff]  ;;  %1339 = vmatpush.msra.mxu2 %v7382_v53  ;;  %1257 = vmatpush.msra.mxu0 %v7381_v21 }
 0x150   : > { %v8804_v63 = vpop.eup %8803  ;;  %v838_v1 = vmul.f32 1.442695, %v825_v59  ;;  %v886_v2 = vadd.f32 %v8800_v38, %v885_v61  ;;  %1298 = vmatpush.msra.mxu1 %v7350_v54  ;;  %v7378_v61 = vld [vmem:[%s15606_s4 + $0x3d8] sm:$0xff] }
 0x151   : > { %v8806_v3 = vpop.eup %8805  ;;  %v9717_v5 = vadd.f32 1.0, %v8804_v63  ;;  %v721_v34 = vpop.f32.mrf.mxu2  ;;  %1340 = vmatpush.msra.mxu2 %v7380_v55  ;;  %v7342_v18 = vld [vmem:[%s15606_s4 + $0x2b8] sm:$0xff] }
 0x152   : > { %8809 = vpow2.f32 %v838_v1  ;;  %v890_v8 = vsel %vm889_vm12, %v8800_v38, %v886_v2  ;;  %v898_v10 = vmul.f32 %v8806_v3, %v9708_v40  ;;  %v8808_v11 = vpop.eup %8807  ;;  %vm903_vm14 = vweird.f32 %v8806_v3  ;;  %1299 = vmatpush.msra.mxu1 %v7348_v57  ;;  %v7339_v57 = vld [vmem:[%s15606_s4 + $0x2a0] sm:$0xff]  ;;  %v7337_v2 = vld [vmem:[%s15606_s4 + $0x290] sm:$0xff] }
 0x153   : > { %8811 = vrcp.f32 %v9717_v5  ;;  %v806_v13 = vpop.f32.mrf.mxu0  ;;  %v895_v14 = vsel %vm892_vm13, %v894_v6, %v890_v8  ;;  %vm904_vm0 = vmor %vm902_vm15, %vm903_vm14  ;;  %v923_v47 = vand.u32 2147483648, %v9717_v5  ;;  %vm917_vm4 = vweird.f32 %v9717_v5  ;;  %v7376_v8 = vld [vmem:[%s15606_s4 + $0x3c8] sm:$0xff]  ;;  %1341 = vmatpush.msra.mxu2 %v7378_v61  ;;  %v7375_v61 = vld [vmem:[%s15606_s4 + $0x3c0] sm:$0xff] }
 0x154   : > { %v807_v15 = vadd.f32 %v806_v13, %v766_v7  ;;  %v974_v12 = vmul.f32 %v8808_v11, %v895_v14  ;;  %v899_v16 = vsub.f32 1.0, %v898_v10  ;;  %8813 = vtanh.f32 %v716_v4  ;;  %v7349_v4 = vld [vmem:[%s15606_s4 + $0x2f0] sm:$0xff]  ;;  %v7344_v10 = vld [vmem:[%s15606_s4 + $0x2c8] sm:$0xff]  ;;  %v7347_v11 = vld [vmem:[%s15606_s4 + $0x2e0] sm:$0xff]  ;;  %1300 = vmatpush.msra.mxu1 %v7346_v62 }
 0x155   : > { %v722_v0 = vadd.f32 %v721_v34, %v681_v56  ;;  %1216 = vmatpush.msrb.mxu3 %v7349_v4  ;;  %1342 = vmatpush.msra.mxu2 %v7376_v8 }
 0x156   : > { %v826_v19 = vsub.f32 0.0, %v807_v15  ;;  %1038 = vmatmul.f32.gmra.mxu1 %v974_v12  ;;  %1077 = vmatmul.f32.gmra.mxu2 %v974_v12  ;;  %v900_v20 = vmul.f32 %v8806_v3, %v899_v16  ;;  %v768_v22 = vpop.f32.mrf.mxu3 }
 0x157   : > { %v769_v36 = vadd.f32 %v768_v22, %v9669_v9  ;;  %v921_v9 = vand.u32 2147483647, %v9717_v5  ;;  %1217 = vmatpush.msrb.mxu3 %v7347_v11  ;;  %1301 = vmatpush.msra.mxu1 %v7344_v10 }
 0x158   : > { %v8810_v24 = vpop.eup %8809  ;;  %v840_v26 = vmul.f32 1.442695, %v826_v19  ;;  %v901_v28 = vadd.f32 %v8806_v3, %v900_v20  ;;  %v7345_v20 = vld [vmem:[%s15606_s4 + $0x2d0] sm:$0xff]  ;;  %1343 = vmatpush.msra.mxu2 %v7374_v17 }
 0x159   : > { %v8812_v29 = vpop.eup %8811  ;;  %v9726_v32 = vadd.f32 1.0, %v8810_v24  ;;  %vm922_vm6 = vcmp.eq.f32.partialorder %v921_v9, 8.507059e+37  ;;  %v724_v15 = vpop.f32.mrf.mxu2  ;;  %1302 = vmatpush.msra.mxu1 %v7342_v18  ;;  %1218 = vmatpush.msrb.mxu3 %v7345_v20 }
 0x15a   : > { %8815 = vpow2.f32 %v840_v26  ;;  %v905_v37 = vsel %vm904_vm0, %v8806_v3, %v901_v28  ;;  %v913_v38 = vmul.f32 %v8812_v29, %v9717_v5  ;;  %v8814_v39 = vpop.eup %8813  ;;  %vm918_vm3 = vweird.f32 %v8812_v29  ;;  %v683_v5 = vpop.f32.mrf.mxu1  ;;  %v7340_v26 = vld [vmem:[%s15606_s4 + $0x2a8] sm:$0xff]  ;;  %1344 = vmatpush.msra.mxu2 %v7372_v25 }
 0x15b   : > { %8817 = vrcp.f32 %v9726_v32  ;;  %v809_v41 = vpop.f32.mrf.mxu0  ;;  %v910_v44 = vsel %vm907_vm2, %v909_v33, %v905_v37  ;;  %vm9758_vm5 = vmor %vm917_vm4, %vm918_vm3  ;;  %v924_v3 = vor.u32 1.1754944e-38, %v923_v47  ;;  %v938_v19 = vand.u32 2147483648, %v9726_v32  ;;  %v7338_v37 = vld [vmem:[%s15606_s4 + $0x298] sm:$0xff]  ;;  %1303 = vmatpush.msra.mxu1 %v7340_v26  ;;  %v7331_v26 = vld [vmem:[%s15606_s4 + $0x260] sm:$0xff] }
 0x15c   : > { %v810_v40 = vadd.f32 %v809_v41, %v769_v36  ;;  %v975_v45 = vmul.f32 %v8814_v39, %v910_v44  ;;  %v914_v46 = vsub.f32 1.0, %v913_v38  ;;  %8819 = vtanh.f32 %v719_v30  ;;  %v7379_v30 = vld [vmem:[%s15606_s4 + $0x3e0] sm:$0xff]  ;;  %v7370_v36 = vld [vmem:[%s15606_s4 + $0x398] sm:$0xff]  ;;  %v7325_v44 = vld [vmem:[%s15606_s4 + $0x230] sm:$0xff] }
 0x15d   : > { %v936_v24 = vand.u32 2147483647, %v9726_v32  ;;  %v684_v28 = vadd.f32 %v683_v5, %v9698_v42  ;;  %vm932_vm8 = vweird.f32 %v9726_v32  ;;  %1258 = vmatpush.msra.mxu0 %v7379_v30  ;;  %1345 = vmatpush.msra.mxu2 %v7370_v36  ;;  %v7373_v30 = vld [vmem:[%s15606_s4 + $0x3b0] sm:$0xff]  ;;  %v7371_v36 = vld [vmem:[%s15606_s4 + $0x3a0] sm:$0xff]  ;;  %vm1120_vm4 = vcmask 1045504  }
 0x15e   : > { %v827_v49 = vsub.f32 0.0, %v810_v40  ;;  %1040 = vmatmul.f32.gmra.mxu1 %v975_v45  ;;  %1080 = vmatmul.f32.gmra.mxu2 %v975_v45  ;;  %v915_v50 = vmul.f32 %v8812_v29, %v914_v46  ;;  %v7341_v40 = vld [vmem:[%s15606_s4 + $0x2b0] sm:$0xff] }
 0x15f   : > { %v725_v39 = vadd.f32 %v724_v15, %v684_v28  ;;  %v7377_v45 = vld [vmem:[%s15606_s4 + $0x3d0] sm:$0xff]  ;;  %vm937_vm10 = vcmp.eq.f32.partialorder %v936_v24, 8.507059e+37  ;;  %1304 = vmatpush.msra.mxu1 %v7338_v37  ;;  %v7332_v28 = vld [vmem:[%s15606_s4 + $0x268] sm:$0xff]  ;;  %v7327_v37 = vld [vmem:[%s15606_s4 + $0x240] sm:$0xff] }
 0x160   : > { %v8816_v58 = vpop.eup %8815  ;;  %v842_v59 = vmul.f32 1.442695, %v827_v49  ;;  %v916_v60 = vadd.f32 %v8812_v29, %v915_v50  ;;  %v7368_v49 = vld [vmem:[%s15606_s4 + $0x388] sm:$0xff]  ;;  %1259 = vmatpush.msra.mxu0 %v7377_v45  ;;  %v7323_v45 = vld [vmem:[%s15606_s4 + $0x220] sm:$0xff] }
 0x161   : > { %v9753_v63 = vpop.eup %8817  ;;  %v9755_v1 = vadd.f32 1.0, %v8816_v58  ;;  %v7336_v50 = vld [vmem:[%s15606_s4 + $0x288] sm:$0xff]  ;;  %v7366_v58 = vld [vmem:[%s15606_s4 + $0x378] sm:$0xff]  ;;  %1346 = vmatpush.msra.mxu2 %v7368_v49  ;;  %v727_v62 = vpop.f32.mrf.mxu2  ;;  %v7365_v49 = vld [vmem:[%s15606_s4 + $0x370] sm:$0xff] }
 0x162   : > { %8821 = vpow2.f32 %v842_v59  ;;  %v920_v6 = vsel %vm9758_vm5, %v8812_v29, %v916_v60  ;;  %v928_v7 = vmul.f32 %v9753_v63, %v9726_v32  ;;  %v8820_v13 = vpop.eup %8819  ;;  %vm933_vm7 = vweird.f32 %v9753_v63  ;;  %v7343_v29 = vld [vmem:[%s15606_s4 + $0x2c0] sm:$0xff]  ;;  %v686_v54 = vpop.f32.mrf.mxu1  ;;  %1305 = vmatpush.msra.mxu1 %v7336_v50  ;;  %v7334_v60 = vld [vmem:[%s15606_s4 + $0x278] sm:$0xff]  ;;  %1260 = vmatpush.msra.mxu0 %v7375_v61  ;;  %v7321_v50 = vld [vmem:[%s15606_s4 + $0x210] sm:$0xff] }
 0x163   : > { %8823 = vrcp.f32 %v9755_v1  ;;  %v925_v14 = vsel %vm922_vm6, %v924_v3, %v920_v6  ;;  %vm9822_vm9 = vmor %vm932_vm8, %vm933_vm7  ;;  %v939_v32 = vor.u32 1.1754944e-38, %v938_v19  ;;  %1219 = vmatpush.msrb.mxu3 %v7343_v29  ;;  %v953_v59 = vand.u32 2147483648, %v9755_v1  ;;  %v7364_v3 = vld [vmem:[%s15606_s4 + $0x368] sm:$0xff]  ;;  %1347 = vmatpush.msra.mxu2 %v7366_v58  ;;  %v7335_v6 = vld [vmem:[%s15606_s4 + $0x280] sm:$0xff] }
 0x164   : > { %v976_v12 = vmul.f32 %v8820_v13, %v925_v14  ;;  %v929_v16 = vsub.f32 1.0, %v928_v7  ;;  %8825 = vtanh.f32 %v722_v0  ;;  %v951_v0 = vand.u32 2147483647, %v9755_v1  ;;  %1306 = vmatpush.msra.mxu1 %v7334_v60  ;;  %v7362_v29 = vld [vmem:[%s15606_s4 + $0x358] sm:$0xff]  ;;  %1261 = vmatpush.msra.mxu0 %v7373_v30  ;;  %v7359_v58 = vld [vmem:[%s15606_s4 + $0x340] sm:$0xff]  ;;  %v7357_v60 = vld [vmem:[%s15606_s4 + $0x330] sm:$0xff] }
 0x165   : > { %1220 = vmatpush.msrb.mxu3 %v7341_v40  ;;  %v687_v4 = vadd.f32 %v686_v54, %v9698_v42  ;;  %vm947_vm12 = vweird.f32 %v9755_v1  ;;  %v954_v10 = vor.u32 1.1754944e-38, %v953_v59  ;;  %1348 = vmatpush.msra.mxu2 %v7364_v3  ;;  %v7367_v40 = vld [vmem:[%s15606_s4 + $0x380] sm:$0xff]  ;;  %v7354_v59 = vld [vmem:[%s15606_s4 + $0x318] sm:$0xff] }
 0x166   : > { %1042 = vmatmul.f32.gmra.mxu1 %v976_v12  ;;  %1083 = vmatmul.f32.gmra.mxu2 %v976_v12  ;;  %v930_v22 = vmul.f32 %v9753_v63, %v929_v16  ;;  %vm952_vm14 = vcmp.eq.f32.partialorder %v951_v0, 8.507059e+37  ;;  %v7319_v54 = vld [vmem:[%s15606_s4 + $0x200] sm:$0xff] }
 0x167   : > { %1221 = vmatpush.msrb.mxu3 %v7339_v57  ;;  %v728_v8 = vadd.f32 %v727_v62, %v687_v4  ;;  %1307 = vmatpush.msra.mxu1 %v7332_v28  ;;  %v7361_v57 = vld [vmem:[%s15606_s4 + $0x350] sm:$0xff]  ;;  %v7355_v61 = vld [vmem:[%s15606_s4 + $0x320] sm:$0xff]  ;;  %v7352_v62 = vld [vmem:[%s15606_s4 + $0x308] sm:$0xff] }
 0x168   : > { %v8822_v33 = vpop.eup %8821  ;;  %v931_v34 = vadd.f32 %v9753_v63, %v930_v22  ;;  %1349 = vmatpush.msra.mxu2 %v7362_v29  ;;  %1262 = vmatpush.msra.mxu0 %v7371_v36  ;;  %v7351_v0 = vld [vmem:[%s15606_s4 + $0x300] sm:$0xff] }
 0x169   : > { %v9816_v38 = vpop.eup %8823  ;;  %v9818_v41 = vadd.f32 1.0, %v8822_v33  ;;  %1222 = vmatpush.msrb.mxu3 %v7337_v2  ;;  %v7329_v33 = vld [vmem:[%s15606_s4 + $0x250] sm:$0xff]  ;;  %v1012_v3 = vld [vmem:[%s15609_s7] sm:$0x3] }
 0x16a   : > { %v935_v46 = vsel %vm9822_vm9, %v9753_v63, %v931_v34  ;;  %v943_v47 = vmul.f32 %v9816_v38, %v9755_v1  ;;  %v8826_v9 = vpop.eup %8825  ;;  %vm948_vm11 = vweird.f32 %v9816_v38  ;;  %v7333_v1 = vld [vmem:[%s15606_s4 + $0x270] sm:$0xff]  ;;  %v7330_v34 = vld [vmem:[%s15606_s4 + $0x258] sm:$0xff]  ;;  %v9979_v4 = vperm.slane %v1012_v3, 1 }
 0x16b   : > { %8827 = vrcp.f32 %v9818_v41  ;;  %v940_v53 = vsel %vm937_vm10, %v939_v32, %v935_v46  ;;  %vm949_vm13 = vmor %vm947_vm12, %vm948_vm11  ;;  %1223 = vmatpush.msrb.mxu3 %v7335_v6  ;;  %v968_v16 = vand.u32 2147483648, %v9818_v41  ;;  %v966_v18 = vand.u32 2147483647, %v9818_v41  ;;  %1308 = vmatpush.msra.mxu1 %v7330_v34  ;;  %v7326_v32 = vld [vmem:[%s15606_s4 + $0x238] sm:$0xff]  ;;  %v7324_v46 = vld [vmem:[%s15606_s4 + $0x228] sm:$0xff] }
 0x16c   : > { %v977_v55 = vmul.f32 %v8826_v9, %v940_v53  ;;  %v944_v56 = vsub.f32 1.0, %v943_v47  ;;  %8829 = vtanh.f32 %v725_v39  ;;  %vm962_vm0 = vweird.f32 %v9818_v41  ;;  %v7360_v39 = vld [vmem:[%s15606_s4 + $0x348] sm:$0xff]  ;;  %v7358_v47 = vld [vmem:[%s15606_s4 + $0x338] sm:$0xff]  ;;  %v7363_v53 = vld [vmem:[%s15606_s4 + $0x360] sm:$0xff] }
 0x16d   : > { %8831 = vtanh.f32 %v728_v8  ;;  %1224 = vmatpush.msrb.mxu3 %v7333_v1  ;;  %v969_v20 = vor.u32 1.1754944e-38, %v968_v16  ;;  %vm967_vm3 = vcmp.eq.f32.partialorder %v966_v18, 8.507059e+37  ;;  %1350 = vmatpush.msra.mxu2 %v7360_v39  ;;  %v7322_v9 = vld [vmem:[%s15606_s4 + $0x218] sm:$0xff] }
 0x16e   : > { %1045 = vmatmul.f32.gmra.mxu1 %v977_v55  ;;  %1086 = vmatmul.f32.gmra.mxu2 %v977_v55  ;;  %v945_v63 = vmul.f32 %v9816_v38, %v944_v56  ;;  %v7320_v55 = vld [vmem:[%s15606_s4 + $0x208] sm:$0xff]  ;;  %v7415_v39 = vld [vmem:[%s15608_s6 + $0x1f8] sm:$0xff] }
 0x16f   : > { %1225 = vmatpush.msrb.mxu3 %v7331_v26  ;;  %1351 = vmatpush.msra.mxu2 %v7358_v47  ;;  %v7356_v56 = vld [vmem:[%s15606_s4 + $0x328] sm:$0xff] }
 0x170   : > { %v946_v5 = vadd.f32 %v9816_v38, %v945_v63  ;;  %v7353_v63 = vld [vmem:[%s15606_s4 + $0x310] sm:$0xff] }
 0x171   : > { %v8828_v7 = vpop.eup %8827  ;;  %1226 = vmatpush.msrb.mxu3 %v7329_v33  ;;  %1352 = vmatpush.msra.mxu2 %v7356_v56 }
 0x172   : > { %v950_v42 = vsel %vm949_vm13, %v9816_v38, %v946_v5  ;;  %v958_v11 = vmul.f32 %v8828_v7, %v9818_v41  ;;  %v8830_v13 = vpop.eup %8829  ;;  %vm963_vm15 = vweird.f32 %v8828_v7  ;;  %v7328_v38 = vld [vmem:[%s15606_s4 + $0x248] sm:$0xff]  ;;  %v7369_v41 = vld [vmem:[%s15606_s4 + $0x390] sm:$0xff] }
 0x173   : > { %v955_v14 = vsel %vm952_vm14, %v954_v10, %v950_v42  ;;  %vm964_vm2 = vmor %vm962_vm0, %vm963_vm15  ;;  %v8832_v22 = vpop.eup %8831  ;;  %1227 = vmatpush.msrb.mxu3 %v7327_v37  ;;  %1309 = vmatpush.msra.mxu1 %v7328_v38 }
 0x174   : > { %v978_v15 = vmul.f32 %v8830_v13, %v955_v14  ;;  %v959_v12 = vsub.f32 1.0, %v958_v11  ;;  %1263 = vmatpush.msra.mxu0 %v7369_v41  ;;  %1353 = vmatpush.msra.mxu2 %v7354_v59  ;;  %v7407_v59 = vld [vmem:[%s15608_s6 + $0x1b8] sm:$0xff] }
 0x175   : > { %1228 = vmatpush.msrb.mxu3 %v7325_v44  ;;  %1310 = vmatpush.msra.mxu1 %v7326_v32  ;;  %v7411_v32 = vld [vmem:[%s15608_s6 + $0x1d8] sm:$0xff] }
 0x176   : > { %1048 = vmatmul.f32.gmra.mxu1 %v978_v15  ;;  %1089 = vmatmul.f32.gmra.mxu2 %v978_v15  ;;  %v960_v17 = vmul.f32 %v8828_v7, %v959_v12 }
 0x177   : > { %1264 = vmatpush.msra.mxu0 %v7367_v40  ;;  %1229 = vmatpush.msrb.mxu3 %v7323_v45 }
 0x178   : > { %v961_v19 = vadd.f32 %v8828_v7, %v960_v17  ;;  %1311 = vmatpush.msra.mxu1 %v7324_v46  ;;  %1354 = vmatpush.msra.mxu2 %v7352_v62 }
 0x179   : > { %1265 = vmatpush.msra.mxu0 %v7365_v49  ;;  %1230 = vmatpush.msrb.mxu3 %v7321_v50 }
 0x17a   : > { %v965_v21 = vsel %vm964_vm2, %v8828_v7, %v961_v19  ;;  %1312 = vmatpush.msra.mxu1 %v7322_v9 }
 0x17b   : > { %v970_v24 = vsel %vm967_vm3, %v969_v20, %v965_v21  ;;  %1266 = vmatpush.msra.mxu0 %v7363_v53  ;;  %1231 = vmatpush.msrb.mxu3 %v7319_v54 }
 0x17c   : > { %v979_v25 = vmul.f32 %v8832_v22, %v970_v24  ;;  %1313 = vmatpush.msra.mxu1 %v7320_v55 }
 0x17d   : > { %1267 = vmatpush.msra.mxu0 %v7361_v57 }
 0x17e   : > { %1051 = vmatmul.f32.gmra.mxu1 %v979_v25  ;;  %1092 = vmatmul.f32.gmra.mxu2 %v979_v25 }
 0x17f   : > { %1268 = vmatpush.msra.mxu0 %v7359_v58 }
 0x181   : > { %1269 = vmatpush.msra.mxu0 %v7357_v60 }
 0x183   : > { %1270 = vmatpush.msra.mxu0 %v7355_v61  ;;  %v7405_v61 = vld [vmem:[%s15608_s6 + $0x1a8] sm:$0xff] }
 0x185   : > { %1271 = vmatpush.msra.mxu0 %v7353_v63  ;;  %v7403_v63 = vld [vmem:[%s15608_s6 + $0x198] sm:$0xff] }
 0x187   : > { %1272 = vmatpush.msra.mxu0 %v7351_v0  ;;  %v7401_v0 = vld [vmem:[%s15608_s6 + $0x188] sm:$0xff] }
 0x189   : > { %1625 = vmatpush.msrb.mxu0 %v7415_v39  ;;  %v7385_v39 = vld [vmem:[%s15608_s6 + $0x108] sm:$0xff] }
 0x1c3   : > { %v1035_v2 = vpop.f32.mrf.mxu1 }
 0x1c4   : > { %v7414_v2 = vld [vmem:[%s15608_s6 + $0x1f0] sm:$0xff] }
 0x1c5   : > { %1588 = vmatpush.msra.mxu3 %v7414_v2 }
 0x1c9   : > { %v1072_v5 = vpop.f32.mrf.mxu2 }
 0x1ca   : > { %v1073_v6 = vadd.f32 %v1072_v5, %v9979_v4  ;;  %v7410_v5 = vld [vmem:[%s15608_s6 + $0x1d0] sm:$0xff] }
 0x1cb   : > { %v1037_v7 = vpop.f32.mrf.mxu1 }
 0x1cc   : > { %v1096_v8 = vadd.f32 %v1073_v6, %v9549_v23  ;;  %v7408_v6 = vld [vmem:[%s15608_s6 + $0x1c0] sm:$0xff]  ;;  %v7406_v7 = vld [vmem:[%s15608_s6 + $0x1b0] sm:$0xff] }
 0x1ce   : > { %v1104_v10 = vmul.f32 0.999995, %v1096_v8 }
 0x1d0   : > { %1232 = vmatmul.f32.vlgmr.msrb.gmra.mxu3 %v1104_v10  ;;  %1314 = vmatmul.f32.vlgmr.msra.gmra.mxu1 %v1104_v10  ;;  %v1121_v15 = vrot.slane %v1104_v10, 2  ;;  %v7404_v10 = vld [vmem:[%s15608_s6 + $0x1a0] sm:$0xff] }
 0x1d1   : > { %v1075_v42 = vpop.f32.mrf.mxu2 }
 0x1d2   : > { %v1076_v11 = vadd.f32 %v1075_v42, %v9979_v4  ;;  %v7402_v42 = vld [vmem:[%s15608_s6 + $0x190] sm:$0xff] }
 0x1d3   : > { %v1039_v1 = vpop.f32.mrf.mxu1 }
 0x1d4   : > { %v1097_v13 = vadd.f32 %v1076_v11, %v9555_v27  ;;  %v7400_v11 = vld [vmem:[%s15608_s6 + $0x180] sm:$0xff]  ;;  %v7399_v1 = vld [vmem:[%s15608_s6 + $0x178] sm:$0xff] }
 0x1d6   : > { %v1105_v14 = vmul.f32 0.999995, %v1097_v13  ;;  %v7398_v13 = vld [vmem:[%s15608_s6 + $0x170] sm:$0xff] }
 0x1d8   : > { %1235 = vmatmul.f32.gmra.mxu3 %v1105_v14  ;;  %1317 = vmatmul.f32.gmra.mxu1 %v1105_v14  ;;  %v1122_v12 = vrot.slane %v1105_v14, 2 }
 0x1d9   : > { %v1078_v16 = vpop.f32.mrf.mxu2 }
 0x1da   : > { %v1079_v17 = vadd.f32 %v1078_v16, %v9979_v4  ;;  %v9987_v23 = vsel %vm1120_vm4, %v1121_v15, %v1122_v12  ;;  %v7397_v15 = vld [vmem:[%s15608_s6 + $0x168] sm:$0xff]  ;;  %v7383_v16 = vld [vmem:[%s15607_s5 + $0x2] sm:$0x3] }
 0x1db   : > { %v1041_v18 = vpop.f32.mrf.mxu1  ;;  %1273 = vmatmul.f32.vlgmr.msra.gmra.mxu0 %v9987_v23  ;;  %1355 = vmatmul.f32.vlgmr.msra.gmra.mxu2 %v9987_v23 }
 0x1dc   : > { %v1098_v19 = vadd.f32 %v1079_v17, %v9561_v31  ;;  %v7395_v17 = vld [vmem:[%s15608_s6 + $0x158] sm:$0xff]  ;;  %v7393_v18 = vld [vmem:[%s15608_s6 + $0x148] sm:$0xff] }
 0x1de   : > { %v1106_v27 = vmul.f32 0.999995, %v1098_v19  ;;  %v7394_v19 = vld [vmem:[%s15608_s6 + $0x150] sm:$0xff] }
 0x1e0   : > { %1238 = vmatmul.f32.gmra.mxu3 %v1106_v27  ;;  %1320 = vmatmul.f32.gmra.mxu1 %v1106_v27  ;;  %v1124_v20 = vrot.slane %v1106_v27, 2  ;;  %v10117_v27 = vperm.slane %v7383_v16, 1 }
 0x1e1   : > { %v1081_v21 = vpop.f32.mrf.mxu2 }
 0x1e2   : > { %v1082_v22 = vadd.f32 %v1081_v21, %v9979_v4  ;;  %v9994_v24 = vsel %vm1120_vm4, %v1122_v12, %v1124_v20  ;;  %v7396_v12 = vld [vmem:[%s15608_s6 + $0x160] sm:$0xff]  ;;  %v7391_v21 = vld [vmem:[%s15608_s6 + $0x138] sm:$0xff] }
 0x1e3   : > { %1276 = vmatmul.f32.gmra.mxu0 %v9994_v24  ;;  %1358 = vmatmul.f32.gmra.mxu2 %v9994_v24  ;;  %v10046_v58 = vpop.f32.mrf.mxu1 }
 0x1e4   : > { %v1099_v25 = vadd.f32 %v1082_v22, %v9567_v35  ;;  %v7390_v22 = vld [vmem:[%s15608_s6 + $0x130] sm:$0xff] }
 0x1e6   : > { %v1107_v26 = vmul.f32 0.999995, %v1099_v25 }
 0x1e8   : > { %1241 = vmatmul.f32.gmra.mxu3 %v1107_v26  ;;  %1323 = vmatmul.f32.gmra.mxu1 %v1107_v26  ;;  %v1126_v31 = vrot.slane %v1107_v26, 2  ;;  %v7389_v26 = vld [vmem:[%s15608_s6 + $0x128] sm:$0xff] }
 0x1e9   : > { %v1084_v28 = vpop.f32.mrf.mxu2 }
 0x1ea   : > { %v1085_v29 = vadd.f32 %v1084_v28, %v9979_v4  ;;  %v10001_v30 = vsel %vm1120_vm4, %v1124_v20, %v1126_v31  ;;  %v7392_v20 = vld [vmem:[%s15608_s6 + $0x140] sm:$0xff] }
 0x1eb   : > { %1279 = vmatmul.f32.gmra.mxu0 %v10001_v30  ;;  %1361 = vmatmul.f32.gmra.mxu2 %v10001_v30  ;;  %v10054_v60 = vpop.f32.mrf.mxu1 }
 0x1ec   : > { %v1100_v33 = vadd.f32 %v1085_v29, %v9585_v43  ;;  %v7413_v43 = vld [vmem:[%s15608_s6 + $0x1e8] sm:$0xff] }
 0x1ed   : > { %1626 = vmatpush.msrb.mxu0 %v7413_v43  ;;  %v7384_v43 = vld [vmem:[%s15608_s6 + $0x100] sm:$0xff] }
 0x1ee   : > { %v1108_v34 = vmul.f32 0.999995, %v1100_v33 }
 0x1ef   : > { %1627 = vmatpush.msrb.mxu0 %v7411_v32 }
 0x1f0   : > { %1244 = vmatmul.f32.gmra.mxu3 %v1108_v34  ;;  %1326 = vmatmul.f32.gmra.mxu1 %v1108_v34  ;;  %v1128_v35 = vrot.slane %v1108_v34, 2  ;;  %v7387_v34 = vld [vmem:[%s15608_s6 + $0x118] sm:$0xff] }
 0x1f1   : > { %v1087_v36 = vpop.f32.mrf.mxu2 }
 0x1f2   : > { %v1088_v37 = vadd.f32 %v1087_v36, %v9979_v4  ;;  %v10008_v38 = vsel %vm1120_vm4, %v1126_v31, %v1128_v35  ;;  %v7388_v31 = vld [vmem:[%s15608_s6 + $0x120] sm:$0xff] }
 0x1f3   : > { %1282 = vmatmul.f32.gmra.mxu0 %v10008_v38  ;;  %1364 = vmatmul.f32.gmra.mxu2 %v10008_v38  ;;  %v10059_v62 = vpop.f32.mrf.mxu1 }
 0x1f4   : > { %v1101_v41 = vadd.f32 %v1088_v37, %v9594_v48 }
 0x1f6   : > { %v1109_v44 = vmul.f32 0.999995, %v1101_v41 }
 0x1f8   : > { %1247 = vmatmul.f32.gmra.mxu3 %v1109_v44  ;;  %1329 = vmatmul.f32.gmra.mxu1 %v1109_v44  ;;  %v1130_v40 = vrot.slane %v1109_v44, 2 }
 0x1f9   : > { %v1090_v45 = vpop.f32.mrf.mxu2 }
 0x1fa   : > { %v1091_v46 = vadd.f32 %v1090_v45, %v9979_v4  ;;  %v10024_v47 = vsel %vm1120_vm4, %v1128_v35, %v1130_v40  ;;  %v7386_v35 = vld [vmem:[%s15608_s6 + $0x110] sm:$0xff] }
 0x1fb   : > { %1285 = vmatmul.f32.gmra.mxu0 %v10024_v47  ;;  %1367 = vmatmul.f32.gmra.mxu2 %v10024_v47  ;;  %v10070_v3 = vpop.f32.mrf.mxu1 }
 0x1fc   : > { %v1102_v48 = vadd.f32 %v1091_v46, %v9603_v52 }
 0x1fe   : > { %v1110_v49 = vmul.f32 0.999995, %v1102_v48 }
 0x200   : > { %1250 = vmatmul.f32.gmra.mxu3 %v1110_v49  ;;  %1332 = vmatmul.f32.gmra.mxu1 %v1110_v49  ;;  %v1132_v50 = vrot.slane %v1110_v49, 2 }
 0x201   : > { %v1093_v9 = vpop.f32.mrf.mxu2 }
 0x202   : > { %v1094_v53 = vadd.f32 %v1093_v9, %v9979_v4  ;;  %v10031_v54 = vsel %vm1120_vm4, %v1130_v40, %v1132_v50  ;;  %v7412_v4 = vld [vmem:[%s15608_s6 + $0x1e0] sm:$0xff] }
 0x203   : > { %1288 = vmatmul.f32.gmra.mxu0 %v10031_v54  ;;  %1370 = vmatmul.f32.gmra.mxu2 %v10031_v54 }
 0x204   : > { %v1103_v55 = vadd.f32 %v1094_v53, %v9599_v51  ;;  %v7409_v51 = vld [vmem:[%s15608_s6 + $0x1c8] sm:$0xff]  ;;  %1589 = vmatpush.msra.mxu3 %v7412_v4 }
 0x205   : > { %1628 = vmatpush.msrb.mxu0 %v7409_v51  ;;  %v10149_v51 = vperm.slane %v7383_v16, 0 }
 0x206   : > { %v1111_v56 = vmul.f32 0.999995, %v1103_v55  ;;  %1590 = vmatpush.msra.mxu3 %v7410_v5 }
 0x207   : > { %1629 = vmatpush.msrb.mxu0 %v7407_v59 }
 0x208   : > { %v10036_v57 = vrot.slane %v1111_v56, 2  ;;  %1253 = vmatmul.f32.gmra.mxu3 %v1111_v56  ;;  %1335 = vmatmul.f32.gmra.mxu1 %v1111_v56 }
 0x209   : > { %1630 = vmatpush.msrb.mxu0 %v7405_v61  ;;  %1591 = vmatpush.msra.mxu3 %v7408_v6 }
 0x20a   : > { %v10040_v52 = vsel %vm1120_vm4, %v1132_v50, %v10036_v57 }
 0x20b   : > { %1291 = vmatmul.f32.gmra.mxu0 %v10040_v52  ;;  %1373 = vmatmul.f32.gmra.mxu2 %v10040_v52 }
 0x20c   : > { %1631 = vmatpush.msrb.mxu0 %v7403_v63  ;;  %1592 = vmatpush.msra.mxu3 %v7406_v7 }
 0x20e   : > { %1632 = vmatpush.msrb.mxu0 %v7401_v0  ;;  %1593 = vmatpush.msra.mxu3 %v7404_v10 }
 0x210   : > { %1594 = vmatpush.msra.mxu3 %v7402_v42  ;;  %1633 = vmatpush.msrb.mxu0 %v7399_v1 }
 0x212   : > { %1595 = vmatpush.msra.mxu3 %v7400_v11  ;;  %1634 = vmatpush.msrb.mxu0 %v7397_v15 }
 0x213   : > { %1294 = vmatmul.f32.gmra.mxu0 %v10036_v57  ;;  %1376 = vmatmul.f32.gmra.mxu2 %v10036_v57 }
 0x214   : > { %1596 = vmatpush.msra.mxu3 %v7398_v13  ;;  %1635 = vmatpush.msrb.mxu0 %v7395_v17 }
 0x216   : > { %1597 = vmatpush.msra.mxu3 %v7396_v12  ;;  %1636 = vmatpush.msrb.mxu0 %v7393_v18 }
 0x218   : > { %1598 = vmatpush.msra.mxu3 %v7394_v19  ;;  %1637 = vmatpush.msrb.mxu0 %v7391_v21 }
 0x21a   : > { %1599 = vmatpush.msra.mxu3 %v7392_v20  ;;  %1638 = vmatpush.msrb.mxu0 %v7389_v26 }
 0x21c   : > { %1600 = vmatpush.msra.mxu3 %v7390_v22  ;;  %1639 = vmatpush.msrb.mxu0 %v7387_v34 }
 0x21e   : > { %1601 = vmatpush.msra.mxu3 %v7388_v31  ;;  %1640 = vmatpush.msrb.mxu0 %v7385_v39 }
 0x220   : > { %1602 = vmatpush.msra.mxu3 %v7386_v35 }
 0x222   : > { %1603 = vmatpush.msra.mxu3 %v7384_v43 }
 0x24d   : > { %v1315_v8 = vpop.f32.mrf.mxu1 }
 0x24e   : > { %v1316_v25 = vadd.f32 %v1315_v8, %v10117_v27 }
 0x253   : > { %v1233_v36 = vpop.f32.mrf.mxu3 }
 0x254   : > { %v1234_v0 = vadd.f32 %v1233_v36, %v10149_v51 }
 0x255   : > { %v1318_v14 = vpop.f32.mrf.mxu1 }
 0x256   : > { %v1319_v32 = vadd.f32 %v1318_v14, %v10117_v27 }
 0x258   : > { %v1274_v41 = vpop.f32.mrf.mxu0 }
 0x259   : > { %v1275_v7 = vadd.f32 %v1274_v41, %v1234_v0 }
 0x25b   : > { %v1236_v50 = vpop.f32.mrf.mxu3 }
 0x25c   : > { %v1237_v19 = vadd.f32 %v1236_v50, %v10149_v51 }
 0x25d   : > { %v1321_v29 = vpop.f32.mrf.mxu1 }
 0x25e   : > { %v1356_v28 = vpop.f32.mrf.mxu2  ;;  %v1322_v55 = vadd.f32 %v1321_v29, %v10117_v27 }
 0x25f   : > { %v1357_v33 = vadd.f32 %v1356_v28, %v1316_v25 }
 0x260   : > { %v1277_v56 = vpop.f32.mrf.mxu0 }
 0x261   : > { %v1388_v37 = vsub.f32 0.0, %v1357_v33  ;;  %v1278_v26 = vadd.f32 %v1277_v56, %v1237_v19 }
 0x263   : > { %v1396_v44 = vmul.f32 1.442695, %v1388_v37  ;;  %v1239_v42 = vpop.f32.mrf.mxu3 }
 0x264   : > { %v1240_v50 = vadd.f32 %v1239_v42, %v10149_v51 }
 0x265   : > { %8833 = vpow2.f32 %v1396_v44  ;;  %v1324_v46 = vpop.f32.mrf.mxu1 }
 0x266   : > { %v1359_v40 = vpop.f32.mrf.mxu2  ;;  %v1325_v11 = vadd.f32 %v1324_v46, %v10117_v27 }
 0x267   : > { %v1360_v45 = vadd.f32 %v1359_v40, %v1319_v32 }
 0x268   : > { %v1280_v14 = vpop.f32.mrf.mxu0 }
 0x269   : > { %v1389_v48 = vsub.f32 0.0, %v1360_v45 }
 0x26b   : > { %v8834_v49 = vpop.eup %8833  ;;  %v1398_v9 = vmul.f32 1.442695, %v1389_v48  ;;  %v1242_v43 = vpop.f32.mrf.mxu3 }
 0x26c   : > { %v1412_v53 = vadd.f32 1.0, %v8834_v49 }
 0x26d   : > { %8835 = vpow2.f32 %v1398_v9  ;;  %v1327_v4 = vpop.f32.mrf.mxu1 }
 0x26e   : > { %8837 = vrcp.f32 %v1412_v53  ;;  %v1362_v59 = vpop.f32.mrf.mxu2  ;;  %v1431_v12 = vand.u32 2147483648, %v1412_v53  ;;  %v1429_v18 = vand.u32 2147483647, %v1412_v53  ;;  %vm1425_vm6 = vweird.f32 %v1412_v53 }
 0x26f   : > { %v1363_v61 = vadd.f32 %v1362_v59, %v1322_v55  ;;  %v1328_v31 = vadd.f32 %v1327_v4, %v10117_v27  ;;  %v1281_v59 = vadd.f32 %v1280_v14, %v1240_v50 }
 0x270   : > { %v1432_v29 = vor.u32 1.1754944e-38, %v1431_v12  ;;  %vm1430_vm8 = vcmp.eq.f32.partialorder %v1429_v18, 8.507059e+37  ;;  %v1283_v45 = vpop.f32.mrf.mxu0 }
 0x271   : > { %v1390_v63 = vsub.f32 0.0, %v1363_v61 }
 0x273   : > { %v8836_v2 = vpop.eup %8835  ;;  %v1400_v5 = vmul.f32 1.442695, %v1390_v63 }
 0x274   : > { %v8838_v6 = vpop.eup %8837  ;;  %v10152_v8 = vadd.f32 1.0, %v8836_v2 }
 0x275   : > { %v1421_v10 = vmul.f32 %v8838_v6, %v1412_v53  ;;  %8839 = vpow2.f32 %v1400_v5  ;;  %vm1426_vm5 = vweird.f32 %v8838_v6  ;;  %v1330_v33 = vpop.f32.mrf.mxu1 }
 0x276   : > { %8841 = vrcp.f32 %v10152_v8  ;;  %v1365_v1 = vpop.f32.mrf.mxu2  ;;  %vm1427_vm7 = vmor %vm1425_vm6, %vm1426_vm5  ;;  %v1446_v40 = vand.u32 2147483648, %v10152_v8  ;;  %v1444_v49 = vand.u32 2147483647, %v10152_v8  ;;  %vm1440_vm10 = vweird.f32 %v10152_v8 }
 0x277   : > { %v1422_v13 = vsub.f32 1.0, %v1421_v10  ;;  %v1366_v15 = vadd.f32 %v1365_v1, %v1325_v11  ;;  %8843 = vtanh.f32 %v1275_v7  ;;  %v1331_v61 = vadd.f32 %v1330_v33, %v10117_v27 }
 0x278   : > { %v1447_v0 = vor.u32 1.1754944e-38, %v1446_v40  ;;  %vm1445_vm12 = vcmp.eq.f32.partialorder %v1444_v49, 8.507059e+37  ;;  %v1286_v18 = vpop.f32.mrf.mxu0 }
 0x279   : > { %v1391_v16 = vsub.f32 0.0, %v1366_v15  ;;  %v1423_v17 = vmul.f32 %v8838_v6, %v1422_v13  ;;  %v1245_v13 = vpop.f32.mrf.mxu3 }
 0x27b   : > { %v8840_v20 = vpop.eup %8839  ;;  %v1402_v21 = vmul.f32 1.442695, %v1391_v16  ;;  %v1424_v22 = vadd.f32 %v8838_v6, %v1423_v17  ;;  %v1243_v16 = vadd.f32 %v1242_v43, %v10149_v51 }
 0x27c   : > { %v8842_v25 = vpop.eup %8841  ;;  %v10158_v28 = vadd.f32 1.0, %v8840_v20 }
 0x27d   : > { %8845 = vpow2.f32 %v1402_v21  ;;  %v1428_v34 = vsel %vm1427_vm7, %v8838_v6, %v1424_v22  ;;  %v1436_v35 = vmul.f32 %v8842_v25, %v10152_v8  ;;  %v8844_v36 = vpop.eup %8843  ;;  %vm1441_vm9 = vweird.f32 %v8842_v25  ;;  %v1333_v10 = vpop.f32.mrf.mxu1 }
 0x27e   : > { %8847 = vrcp.f32 %v10158_v28  ;;  %v1368_v37 = vpop.f32.mrf.mxu2  ;;  %v1433_v39 = vsel %vm1430_vm8, %v1432_v29, %v1428_v34  ;;  %vm1442_vm11 = vmor %vm1440_vm10, %vm1441_vm9  ;;  %v1461_v1 = vand.u32 2147483648, %v10158_v28  ;;  %v1459_v12 = vand.u32 2147483647, %v10158_v28 }
 0x27f   : > { %v1369_v41 = vadd.f32 %v1368_v37, %v1328_v31  ;;  %v1540_v44 = vmul.f32 %v8844_v36, %v1433_v39  ;;  %v1437_v32 = vsub.f32 1.0, %v1436_v35  ;;  %8849 = vtanh.f32 %v1278_v26 }
 0x280   : > { %vm1455_vm14 = vweird.f32 %v10158_v28  ;;  %v1284_v22 = vadd.f32 %v1283_v45, %v1243_v16  ;;  %v1462_v31 = vor.u32 1.1754944e-38, %v1461_v1  ;;  %vm1460_vm0 = vcmp.eq.f32.partialorder %v1459_v12, 8.507059e+37  ;;  %v7448_v1 = vld [vmem:[%s15606_s4 + $0x4f8] sm:$0xff]  ;;  %v7478_v12 = vld [vmem:[%s15606_s4 + $0x5e8] sm:$0xff] }
 0x281   : > { %v1392_v46 = vsub.f32 0.0, %v1369_v41  ;;  %1604 = vmatmul.f32.vlgmr.msra.gmra.mxu3 %v1540_v44  ;;  %1641 = vmatmul.f32.vlgmr.msrb.gmra.mxu0 %v1540_v44  ;;  %v1438_v48 = vmul.f32 %v8842_v25, %v1437_v32  ;;  %v1246_v45 = vadd.f32 %v1245_v13, %v10149_v51  ;;  %v7446_v13 = vld [vmem:[%s15606_s4 + $0x4e8] sm:$0xff] }
 0x282   : > { %1880 = vmatpush.msrb.mxu3 %v7448_v1  ;;  %v7434_v1 = vld [vmem:[%s15606_s4 + $0x488] sm:$0xff] }
 0x283   : > { %v8846_v9 = vpop.eup %8845  ;;  %v1404_v53 = vmul.f32 1.442695, %v1392_v46  ;;  %v1439_v55 = vadd.f32 %v8842_v25, %v1438_v48  ;;  %v1248_v48 = vpop.f32.mrf.mxu3 }
 0x284   : > { %v8848_v56 = vpop.eup %8847  ;;  %v10167_v63 = vadd.f32 1.0, %v8846_v9  ;;  %1881 = vmatpush.msrb.mxu3 %v7446_v13  ;;  %v7468_v13 = vld [vmem:[%s15606_s4 + $0x598] sm:$0xff] }
 0x285   : > { %8851 = vpow2.f32 %v1404_v53  ;;  %v1443_v2 = vsel %vm1442_vm11, %v8842_v25, %v1439_v55  ;;  %v1451_v4 = vmul.f32 %v8848_v56, %v10158_v28  ;;  %v8850_v5 = vpop.eup %8849  ;;  %vm1456_vm13 = vweird.f32 %v8848_v56  ;;  %v1336_v41 = vpop.f32.mrf.mxu1 }
 0x286   : > { %8853 = vrcp.f32 %v10167_v63  ;;  %v1371_v6 = vpop.f32.mrf.mxu2  ;;  %v1448_v7 = vsel %vm1445_vm12, %v1447_v0, %v1443_v2  ;;  %v1334_v25 = vadd.f32 %v1333_v10, %v10117_v27  ;;  %vm1457_vm15 = vmor %vm1455_vm14, %vm1456_vm13  ;;  %v1476_v43 = vand.u32 2147483648, %v10167_v63 }
 0x287   : > { %v1372_v8 = vadd.f32 %v1371_v6, %v1331_v61  ;;  %v1541_v42 = vmul.f32 %v8850_v5, %v1448_v7  ;;  %v1452_v11 = vsub.f32 1.0, %v1451_v4  ;;  %8855 = vtanh.f32 %v1281_v59  ;;  %v1289_v61 = vpop.f32.mrf.mxu0 }
 0x288   : > { %v1474_v40 = vand.u32 2147483647, %v10167_v63  ;;  %vm1470_vm3 = vweird.f32 %v10167_v63  ;;  %v1287_v53 = vadd.f32 %v1286_v18, %v1246_v45  ;;  %v1337_v55 = vadd.f32 %v1336_v41, %v10117_v27 }
 0x289   : > { %v1393_v14 = vsub.f32 0.0, %v1372_v8  ;;  %1606 = vmatmul.f32.gmra.mxu3 %v1541_v42  ;;  %1644 = vmatmul.f32.gmra.mxu0 %v1541_v42  ;;  %v1453_v15 = vmul.f32 %v8848_v56, %v1452_v11  ;;  %v1477_v59 = vor.u32 1.1754944e-38, %v1476_v43 }
 0x28a   : > { %vm1475_vm6 = vcmp.eq.f32.partialorder %v1474_v40, 8.507059e+37  ;;  %v7474_v40 = vld [vmem:[%s15606_s4 + $0x5c8] sm:$0xff] }
 0x28b   : > { %v8852_v17 = vpop.eup %8851  ;;  %v1406_v19 = vmul.f32 1.442695, %v1393_v14  ;;  %v1454_v20 = vadd.f32 %v8848_v56, %v1453_v15  ;;  %v1249_v14 = vadd.f32 %v1248_v48, %v10149_v51  ;;  %v7480_v15 = vld [vmem:[%s15606_s4 + $0x5f8] sm:$0xff]  ;;  %v7475_v48 = vld [vmem:[%s15606_s4 + $0x5d0] sm:$0xff] }
 0x28c   : > { %v8854_v21 = vpop.eup %8853  ;;  %v10176_v26 = vadd.f32 1.0, %v8852_v17  ;;  %1918 = vmatpush.msra.mxu0 %v7480_v15 }
 0x28d   : > { %8857 = vpow2.f32 %v1406_v19  ;;  %v1458_v29 = vsel %vm1457_vm15, %v8848_v56, %v1454_v20  ;;  %v1466_v33 = vmul.f32 %v8854_v21, %v10167_v63  ;;  %v8856_v34 = vpop.eup %8855  ;;  %vm1471_vm2 = vweird.f32 %v8854_v21  ;;  %v7444_v19 = vld [vmem:[%s15606_s4 + $0x4d8] sm:$0xff] }
 0x28e   : > { %8859 = vrcp.f32 %v10176_v26  ;;  %v1374_v35 = vpop.f32.mrf.mxu2  ;;  %v1463_v36 = vsel %vm1460_vm0, %v1462_v31, %v1458_v29  ;;  %vm1472_vm5 = vmor %vm1470_vm3, %vm1471_vm2  ;;  %v1491_v27 = vand.u32 2147483648, %v10176_v26  ;;  %v1489_v11 = vand.u32 2147483647, %v10176_v26  ;;  %v7476_v31 = vld [vmem:[%s15606_s4 + $0x5d8] sm:$0xff]  ;;  %v1251_v29 = vpop.f32.mrf.mxu3  ;;  %1919 = vmatpush.msra.mxu0 %v7478_v12  ;;  %1882 = vmatpush.msrb.mxu3 %v7444_v19  ;;  %v7466_v19 = vld [vmem:[%s15606_s4 + $0x588] sm:$0xff] }
 0x28f   : > { %v1375_v37 = vadd.f32 %v1374_v35, %v1334_v25  ;;  %v1542_v28 = vmul.f32 %v8856_v34, %v1463_v36  ;;  %v1467_v39 = vsub.f32 1.0, %v1466_v33  ;;  %8861 = vtanh.f32 %v1284_v22  ;;  %v7442_v34 = vld [vmem:[%s15606_s4 + $0x4c8] sm:$0xff]  ;;  %v7479_v35 = vld [vmem:[%s15606_s4 + $0x5f0] sm:$0xff]  ;;  %v1292_v43 = vpop.f32.mrf.mxu0 }
 0x290   : > { %vm1485_vm8 = vweird.f32 %v10176_v26  ;;  %v1492_v25 = vor.u32 1.1754944e-38, %v1491_v27  ;;  %vm1490_vm10 = vcmp.eq.f32.partialorder %v1489_v11, 8.507059e+37  ;;  %1842 = vmatpush.msrb.mxu2 %v7479_v35  ;;  %1920 = vmatpush.msra.mxu0 %v7476_v31  ;;  %v7441_v27 = vld [vmem:[%s15606_s4 + $0x4c0] sm:$0xff] }
 0x291   : > { %v1394_v44 = vsub.f32 0.0, %v1375_v37  ;;  %1608 = vmatmul.f32.gmra.mxu3 %v1542_v28  ;;  %1647 = vmatmul.f32.gmra.mxu0 %v1542_v28  ;;  %v1468_v32 = vmul.f32 %v8854_v21, %v1467_v39  ;;  %v7447_v28 = vld [vmem:[%s15606_s4 + $0x4f0] sm:$0xff]  ;;  %v7477_v39 = vld [vmem:[%s15606_s4 + $0x5e0] sm:$0xff] }
 0x292   : > { %1804 = vmatpush.msrb.mxu1 %v7447_v28  ;;  %1883 = vmatpush.msrb.mxu3 %v7442_v34  ;;  %v7464_v34 = vld [vmem:[%s15606_s4 + $0x578] sm:$0xff] }
 0x293   : > { %v8858_v46 = vpop.eup %8857  ;;  %v1408_v49 = vmul.f32 1.442695, %v1394_v44  ;;  %v1469_v50 = vadd.f32 %v8854_v21, %v1468_v32  ;;  %v7440_v32 = vld [vmem:[%s15606_s4 + $0x4b8] sm:$0xff]  ;;  %1843 = vmatpush.msrb.mxu2 %v7477_v39  ;;  %1921 = vmatpush.msra.mxu0 %v7474_v40 }
 0x294   : > { %v8860_v9 = vpop.eup %8859  ;;  %v10185_v56 = vadd.f32 1.0, %v8858_v46  ;;  %v7445_v46 = vld [vmem:[%s15606_s4 + $0x4e0] sm:$0xff]  ;;  %1884 = vmatpush.msrb.mxu3 %v7440_v32  ;;  %v7428_v39 = vld [vmem:[%s15606_s4 + $0x458] sm:$0xff] }
 0x295   : > { %8863 = vpow2.f32 %v1408_v49  ;;  %v1473_v0 = vsel %vm1472_vm5, %v8854_v21, %v1469_v50  ;;  %v1481_v2 = vmul.f32 %v8860_v9, %v10176_v26  ;;  %v8862_v4 = vpop.eup %8861  ;;  %vm1486_vm7 = vweird.f32 %v8860_v9  ;;  %1805 = vmatpush.msrb.mxu1 %v7445_v46  ;;  %1844 = vmatpush.msrb.mxu2 %v7475_v48  ;;  %v7465_v32 = vld [vmem:[%s15606_s4 + $0x580] sm:$0xff]  ;;  %v7426_v46 = vld [vmem:[%s15606_s4 + $0x448] sm:$0xff]  ;;  %v7460_v48 = vld [vmem:[%s15606_s4 + $0x558] sm:$0xff] }
 0x296   : > { %8865 = vrcp.f32 %v10185_v56  ;;  %v1377_v5 = vpop.f32.mrf.mxu2  ;;  %v1478_v6 = vsel %vm1475_vm6, %v1477_v59, %v1473_v0  ;;  %v1290_v21 = vadd.f32 %v1289_v61, %v1249_v14  ;;  %vm1487_vm9 = vmor %vm1485_vm8, %vm1486_vm7  ;;  %v1506_v45 = vand.u32 2147483648, %v10185_v56  ;;  %v7443_v59 = vld [vmem:[%s15606_s4 + $0x4d0] sm:$0xff]  ;;  %v7473_v61 = vld [vmem:[%s15606_s4 + $0x5c0] sm:$0xff]  ;;  %v1254_v12 = vpop.f32.mrf.mxu3 }
 0x297   : > { %v1378_v63 = vadd.f32 %v1377_v5, %v1337_v55  ;;  %v1543_v7 = vmul.f32 %v8862_v4, %v1478_v6  ;;  %v1482_v10 = vsub.f32 1.0, %v1481_v2  ;;  %8867 = vtanh.f32 %v1287_v53  ;;  %v7472_v53 = vld [vmem:[%s15606_s4 + $0x5b8] sm:$0xff]  ;;  %v7470_v5 = vld [vmem:[%s15606_s4 + $0x5a8] sm:$0xff]  ;;  %1806 = vmatpush.msrb.mxu1 %v7443_v59  ;;  %1845 = vmatpush.msrb.mxu2 %v7473_v61  ;;  %v1295_v31 = vpop.f32.mrf.mxu0 }
 0x298   : > { %v1504_v50 = vand.u32 2147483647, %v10185_v56  ;;  %v1252_v55 = vadd.f32 %v1251_v29, %v10149_v51  ;;  %vm1500_vm12 = vweird.f32 %v10185_v56  ;;  %v7436_v4 = vld [vmem:[%s15606_s4 + $0x498] sm:$0xff]  ;;  %1922 = vmatpush.msra.mxu0 %v7472_v53  ;;  %v1255_v35 = vadd.f32 %v1254_v12, %v10149_v51  ;;  %v7462_v51 = vld [vmem:[%s15606_s4 + $0x568] sm:$0xff] }
 0x299   : > { %v1395_v8 = vsub.f32 0.0, %v1378_v63  ;;  %1610 = vmatmul.f32.gmra.mxu3 %v1543_v7  ;;  %1650 = vmatmul.f32.gmra.mxu0 %v1543_v7  ;;  %v1483_v42 = vmul.f32 %v8860_v9, %v1482_v10  ;;  %v7424_v59 = vld [vmem:[%s15606_s4 + $0x438] sm:$0xff]  ;;  %v7429_v10 = vld [vmem:[%s15606_s4 + $0x460] sm:$0xff] }
 0x29a   : > { %v1293_v63 = vadd.f32 %v1292_v43, %v1252_v55  ;;  %vm1505_vm14 = vcmp.eq.f32.partialorder %v1504_v50, 8.507059e+37  ;;  %1923 = vmatpush.msra.mxu0 %v7470_v5  ;;  %1807 = vmatpush.msrb.mxu1 %v7441_v27  ;;  %v7433_v55 = vld [vmem:[%s15606_s4 + $0x480] sm:$0xff]  ;;  %v7431_v5 = vld [vmem:[%s15606_s4 + $0x470] sm:$0xff]  ;;  %v7420_v12 = vld [vmem:[%s15606_s4 + $0x418] sm:$0xff] }
 0x29b   : > { %v8864_v16 = vpop.eup %8863  ;;  %v1410_v17 = vmul.f32 1.442695, %v1395_v8  ;;  %v1484_v18 = vadd.f32 %v8860_v9, %v1483_v42  ;;  %v7471_v8 = vld [vmem:[%s15606_s4 + $0x5b0] sm:$0xff] }
 0x29c   : > { %v10208_v20 = vpop.eup %8865  ;;  %v10210_v22 = vadd.f32 1.0, %v8864_v16  ;;  %1846 = vmatpush.msrb.mxu2 %v7471_v8  ;;  %1924 = vmatpush.msra.mxu0 %v7468_v13  ;;  %v7427_v8 = vld [vmem:[%s15606_s4 + $0x450] sm:$0xff] }
 0x29d   : > { %8869 = vpow2.f32 %v1410_v17  ;;  %v1488_v26 = vsel %vm1487_vm9, %v8860_v9, %v1484_v18  ;;  %v1496_v33 = vmul.f32 %v10208_v20, %v10185_v56  ;;  %v8868_v36 = vpop.eup %8867  ;;  %vm1501_vm11 = vweird.f32 %v10208_v20  ;;  %v7438_v9 = vld [vmem:[%s15606_s4 + $0x4a8] sm:$0xff]  ;;  %v7432_v18 = vld [vmem:[%s15606_s4 + $0x478] sm:$0xff]  ;;  %v7423_v13 = vld [vmem:[%s15606_s4 + $0x430] sm:$0xff] }
 0x29e   : > { %8871 = vrcp.f32 %v10210_v22  ;;  %v1493_v37 = vsel %vm1490_vm10, %v1492_v25, %v1488_v26  ;;  %vm10274_vm13 = vmor %vm1500_vm12, %vm1501_vm11  ;;  %v1507_v56 = vor.u32 1.1754944e-38, %v1506_v45  ;;  %1885 = vmatpush.msrb.mxu3 %v7438_v9  ;;  %v7469_v25 = vld [vmem:[%s15606_s4 + $0x5a0] sm:$0xff]  ;;  %v1519_v26 = vand.u32 2147483647, %v10210_v22  ;;  %1925 = vmatpush.msra.mxu0 %v7466_v19 }
 0x29f   : > { %v1544_v41 = vmul.f32 %v8868_v36, %v1493_v37  ;;  %v1497_v44 = vsub.f32 1.0, %v1496_v33  ;;  %8873 = vtanh.f32 %v1290_v21  ;;  %v7439_v21 = vld [vmem:[%s15606_s4 + $0x4b0] sm:$0xff]  ;;  %v7430_v33 = vld [vmem:[%s15606_s4 + $0x468] sm:$0xff]  ;;  %v7437_v36 = vld [vmem:[%s15606_s4 + $0x4a0] sm:$0xff]  ;;  %vm1515_vm0 = vweird.f32 %v10210_v22  ;;  %1847 = vmatpush.msrb.mxu2 %v7469_v25 }
 0x2a0   : > { %1886 = vmatpush.msrb.mxu3 %v7436_v4  ;;  %v7467_v37 = vld [vmem:[%s15606_s4 + $0x590] sm:$0xff]  ;;  %1808 = vmatpush.msrb.mxu1 %v7439_v21  ;;  %vm1520_vm3 = vcmp.eq.f32.partialorder %v1519_v26, 8.507059e+37  ;;  %v7417_v19 = vld [vmem:[%s15606_s4 + $0x400] sm:$0xff]  ;;  %v7454_v21 = vld [vmem:[%s15606_s4 + $0x528] sm:$0xff]  ;;  %vm1709_vm9 = vcmask 1043456  }
 0x2a1   : > { %1612 = vmatmul.f32.gmra.mxu3 %v1544_v41  ;;  %1653 = vmatmul.f32.gmra.mxu0 %v1544_v41  ;;  %v1498_v49 = vmul.f32 %v10208_v20, %v1497_v44  ;;  %v1296_v41 = vadd.f32 %v1295_v31, %v1255_v35  ;;  %v7459_v25 = vld [vmem:[%s15606_s4 + $0x550] sm:$0xff]  ;;  %v7457_v31 = vld [vmem:[%s15606_s4 + $0x540] sm:$0xff] }
 0x2a2   : > { %1887 = vmatpush.msrb.mxu3 %v7434_v1  ;;  %1926 = vmatpush.msra.mxu0 %v7464_v34  ;;  %v7455_v26 = vld [vmem:[%s15606_s4 + $0x530] sm:$0xff]  ;;  %v7450_v34 = vld [vmem:[%s15606_s4 + $0x508] sm:$0xff] }
 0x2a3   : > { %v8870_v0 = vpop.eup %8869  ;;  %v1499_v2 = vadd.f32 %v10208_v20, %v1498_v49  ;;  %1809 = vmatpush.msrb.mxu1 %v7437_v36  ;;  %1848 = vmatpush.msrb.mxu2 %v7467_v37  ;;  %v7451_v35 = vld [vmem:[%s15606_s4 + $0x510] sm:$0xff]  ;;  %v7449_v36 = vld [vmem:[%s15606_s4 + $0x500] sm:$0xff] }
 0x2a4   : > { %v10268_v6 = vpop.eup %8871  ;;  %v10270_v7 = vadd.f32 1.0, %v8870_v0  ;;  %1888 = vmatpush.msrb.mxu3 %v7432_v18  ;;  %1927 = vmatpush.msra.mxu0 %v7462_v51  ;;  %v7458_v0 = vld [vmem:[%s15606_s4 + $0x548] sm:$0xff]  ;;  %v7456_v18 = vld [vmem:[%s15606_s4 + $0x538] sm:$0xff]  ;;  %v7416_v37 = vld [vmem:[%s15609_s7 + $0x2] sm:$0x3] }
 0x2a5   : > { %v1503_v42 = vsel %vm10274_vm13, %v10208_v20, %v1499_v2  ;;  %v1511_v11 = vmul.f32 %v10268_v6, %v10210_v22  ;;  %v8874_v14 = vpop.eup %8873  ;;  %v1521_v20 = vand.u32 2147483648, %v10210_v22  ;;  %vm1516_vm15 = vweird.f32 %v10268_v6  ;;  %v7435_v22 = vld [vmem:[%s15606_s4 + $0x490] sm:$0xff]  ;;  %1849 = vmatpush.msrb.mxu2 %v7465_v32 }
 0x2a6   : > { %8875 = vrcp.f32 %v10270_v7  ;;  %v1508_v15 = vsel %vm1505_vm14, %v1507_v56, %v1503_v42  ;;  %vm1517_vm2 = vmor %vm1515_vm0, %vm1516_vm15  ;;  %1889 = vmatpush.msrb.mxu3 %v7430_v33  ;;  %1810 = vmatpush.msrb.mxu1 %v7435_v22  ;;  %v1536_v61 = vand.u32 2147483648, %v10270_v7  ;;  %v1534_v4 = vand.u32 2147483647, %v10270_v7  ;;  %v7453_v33 = vld [vmem:[%s15606_s4 + $0x520] sm:$0xff] }
 0x2a7   : > { %v1545_v16 = vmul.f32 %v8874_v14, %v1508_v15  ;;  %v1512_v17 = vsub.f32 1.0, %v1511_v11  ;;  %8877 = vtanh.f32 %v1293_v63  ;;  %v1522_v44 = vor.u32 1.1754944e-38, %v1521_v20  ;;  %1928 = vmatpush.msra.mxu0 %v7460_v48  ;;  %v7421_v14 = vld [vmem:[%s15606_s4 + $0x420] sm:$0xff]  ;;  %v7463_v15 = vld [vmem:[%s15606_s4 + $0x570] sm:$0xff]  ;;  %v7418_v20 = vld [vmem:[%s15606_s4 + $0x408] sm:$0xff] }
 0x2a8   : > { %1890 = vmatpush.msrb.mxu3 %v7428_v39  ;;  %8879 = vtanh.f32 %v1296_v41  ;;  %1811 = vmatpush.msrb.mxu1 %v7433_v55  ;;  %vm1530_vm6 = vweird.f32 %v10270_v7  ;;  %v1537_v56 = vor.u32 1.1754944e-38, %v1536_v61  ;;  %vm1535_vm8 = vcmp.eq.f32.partialorder %v1534_v4, 8.507059e+37 }
 0x2a9   : > { %1615 = vmatmul.f32.gmra.mxu3 %v1545_v16  ;;  %1656 = vmatmul.f32.gmra.mxu0 %v1545_v16  ;;  %v1513_v29 = vmul.f32 %v10268_v6, %v1512_v17  ;;  %v7419_v16 = vld [vmem:[%s15606_s4 + $0x410] sm:$0xff]  ;;  %v7461_v17 = vld [vmem:[%s15606_s4 + $0x560] sm:$0xff] }
 0x2aa   : > { %1891 = vmatpush.msrb.mxu3 %v7426_v46  ;;  %1929 = vmatpush.msra.mxu0 %v7458_v0 }
 0x2ab   : > { %v1514_v28 = vadd.f32 %v10268_v6, %v1513_v29  ;;  %1812 = vmatpush.msrb.mxu1 %v7431_v5  ;;  %1850 = vmatpush.msrb.mxu2 %v7463_v15  ;;  %v7452_v29 = vld [vmem:[%s15606_s4 + $0x518] sm:$0xff] }
 0x2ac   : > { %v8876_v43 = vpop.eup %8875  ;;  %1892 = vmatpush.msrb.mxu3 %v7424_v59  ;;  %1930 = vmatpush.msra.mxu0 %v7456_v18 }
 0x2ad   : > { %v1518_v40 = vsel %vm1517_vm2, %v10268_v6, %v1514_v28  ;;  %v1526_v45 = vmul.f32 %v8876_v43, %v10270_v7  ;;  %v8878_v49 = vpop.eup %8877  ;;  %vm1531_vm5 = vweird.f32 %v8876_v43  ;;  %v7422_v6 = vld [vmem:[%s15606_s4 + $0x428] sm:$0xff]  ;;  %1813 = vmatpush.msrb.mxu1 %v7429_v10  ;;  %v7425_v7 = vld [vmem:[%s15606_s4 + $0x440] sm:$0xff]  ;;  %1851 = vmatpush.msrb.mxu2 %v7461_v17  ;;  %v10433_v28 = vperm.slane %v7416_v37, 1 }
 0x2ae   : > { %v1523_v50 = vsel %vm1520_vm3, %v1522_v44, %v1518_v40  ;;  %vm1532_vm7 = vmor %vm1530_vm6, %vm1531_vm5  ;;  %1893 = vmatpush.msrb.mxu3 %v7422_v6  ;;  %v8880_v42 = vpop.eup %8879  ;;  %1931 = vmatpush.msra.mxu0 %v7454_v21 }
 0x2af   : > { %v1546_v9 = vmul.f32 %v8878_v49, %v1523_v50  ;;  %v1527_v53 = vsub.f32 1.0, %v1526_v45  ;;  %1814 = vmatpush.msrb.mxu1 %v7427_v8  ;;  %1852 = vmatpush.msrb.mxu2 %v7459_v25  ;;  %v7511_v8 = vld [vmem:[%s15608_s6 + $0x2e8] sm:$0xff] }
 0x2b0   : > { %1894 = vmatpush.msrb.mxu3 %v7420_v12  ;;  %1932 = vmatpush.msra.mxu0 %v7452_v29 }
 0x2b1   : > { %1618 = vmatmul.f32.gmra.mxu3 %v1546_v9  ;;  %1659 = vmatmul.f32.gmra.mxu0 %v1546_v9  ;;  %v1528_v2 = vmul.f32 %v8876_v43, %v1527_v53 }
 0x2b2   : > { %1815 = vmatpush.msrb.mxu1 %v7425_v7  ;;  %1895 = vmatpush.msrb.mxu3 %v7418_v20 }
 0x2b3   : > { %v1529_v63 = vadd.f32 %v8876_v43, %v1528_v2  ;;  %1853 = vmatpush.msrb.mxu2 %v7457_v31  ;;  %1933 = vmatpush.msra.mxu0 %v7450_v34 }
 0x2b4   : > { %1816 = vmatpush.msrb.mxu1 %v7423_v13 }
 0x2b5   : > { %v1533_v27 = vsel %vm1532_vm7, %v8876_v43, %v1529_v63  ;;  %1854 = vmatpush.msrb.mxu2 %v7455_v26 }
 0x2b6   : > { %v1538_v11 = vsel %vm1535_vm8, %v1537_v56, %v1533_v27  ;;  %1817 = vmatpush.msrb.mxu1 %v7421_v14 }
 0x2b7   : > { %v1547_v1 = vmul.f32 %v8880_v42, %v1538_v11  ;;  %1855 = vmatpush.msrb.mxu2 %v7453_v33  ;;  %v7509_v11 = vld [vmem:[%s15608_s6 + $0x2d8] sm:$0xff] }
 0x2b8   : > { %1818 = vmatpush.msrb.mxu1 %v7419_v16 }
 0x2b9   : > { %1621 = vmatmul.f32.gmra.mxu3 %v1547_v1  ;;  %1662 = vmatmul.f32.gmra.mxu0 %v1547_v1 }
 0x2ba   : > { %1819 = vmatpush.msrb.mxu1 %v7417_v19  ;;  %1856 = vmatpush.msrb.mxu2 %v7451_v35  ;;  %v7507_v35 = vld [vmem:[%s15608_s6 + $0x2c8] sm:$0xff] }
 0x2bc   : > { %1857 = vmatpush.msrb.mxu2 %v7449_v36  ;;  %v7505_v36 = vld [vmem:[%s15608_s6 + $0x2b8] sm:$0xff] }
 0x2fe   : > { %v1642_v39 = vpop.f32.mrf.mxu0 }
 0x2ff   : > { %v1643_v51 = vadd.f32 %v1642_v39, %v10433_v28  ;;  %v7510_v39 = vld [vmem:[%s15608_s6 + $0x2e0] sm:$0xff] }
 0x301   : > { %v1685_v43 = vadd.f32 %v1643_v51, %v9987_v23 }
 0x303   : > { %v1693_v41 = vmul.f32 0.999995, %v1685_v43  ;;  %v7508_v43 = vld [vmem:[%s15608_s6 + $0x2d0] sm:$0xff] }
 0x304   : > { %v1605_v44 = vpop.f32.mrf.mxu3 }
 0x305   : > { %1820 = vmatmul.f32.vlgmr.msrb.gmra.mxu1 %v1693_v41  ;;  %1896 = vmatmul.f32.vlgmr.msrb.gmra.mxu3 %v1693_v41  ;;  %v1710_v48 = vrot.slane %v1693_v41, 4  ;;  %v7506_v41 = vld [vmem:[%s15608_s6 + $0x2c0] sm:$0xff]  ;;  %v7504_v44 = vld [vmem:[%s15608_s6 + $0x2b0] sm:$0xff] }
 0x306   : > { %v1645_v22 = vpop.f32.mrf.mxu0 }
 0x307   : > { %v1646_v32 = vadd.f32 %v1645_v22, %v10433_v28  ;;  %v7502_v22 = vld [vmem:[%s15608_s6 + $0x2a0] sm:$0xff] }
 0x309   : > { %v1686_v40 = vadd.f32 %v1646_v32, %v9994_v24  ;;  %v7501_v32 = vld [vmem:[%s15608_s6 + $0x298] sm:$0xff] }
 0x30b   : > { %v1694_v45 = vmul.f32 0.999995, %v1686_v40  ;;  %v7500_v40 = vld [vmem:[%s15608_s6 + $0x290] sm:$0xff] }
 0x30c   : > { %v1607_v46 = vpop.f32.mrf.mxu3 }
 0x30d   : > { %v1711_v49 = vrot.slane %v1694_v45, 4  ;;  %1823 = vmatmul.f32.gmra.mxu1 %v1694_v45  ;;  %1899 = vmatmul.f32.gmra.mxu3 %v1694_v45  ;;  %v7499_v46 = vld [vmem:[%s15608_s6 + $0x288] sm:$0xff] }
 0x30e   : > { %v1648_v50 = vpop.f32.mrf.mxu0 }
 0x30f   : > { %v1649_v9 = vadd.f32 %v1648_v50, %v10433_v28  ;;  %v10441_v23 = vsel %vm1709_vm9, %v1710_v48, %v1711_v49  ;;  %v7498_v48 = vld [vmem:[%s15608_s6 + $0x280] sm:$0xff]  ;;  %v7496_v50 = vld [vmem:[%s15608_s6 + $0x270] sm:$0xff] }
 0x310   : > { %1858 = vmatmul.f32.vlgmr.msrb.gmra.mxu2 %v10441_v23  ;;  %1934 = vmatmul.f32.vlgmr.msra.gmra.mxu0 %v10441_v23 }
 0x311   : > { %v1687_v53 = vadd.f32 %v1649_v9, %v10001_v30  ;;  %v7495_v9 = vld [vmem:[%s15608_s6 + $0x268] sm:$0xff] }
 0x313   : > { %v1695_v24 = vmul.f32 0.999995, %v1687_v53  ;;  %v7494_v53 = vld [vmem:[%s15608_s6 + $0x260] sm:$0xff] }
 0x314   : > { %v1609_v55 = vpop.f32.mrf.mxu3 }
 0x315   : > { %1826 = vmatmul.f32.gmra.mxu1 %v1695_v24  ;;  %1902 = vmatmul.f32.gmra.mxu3 %v1695_v24  ;;  %v1713_v59 = vrot.slane %v1695_v24, 4  ;;  %v7493_v24 = vld [vmem:[%s15608_s6 + $0x258] sm:$0xff]  ;;  %v7492_v55 = vld [vmem:[%s15608_s6 + $0x250] sm:$0xff] }
 0x316   : > { %v1651_v61 = vpop.f32.mrf.mxu0 }
 0x317   : > { %v1652_v0 = vadd.f32 %v1651_v61, %v10433_v28  ;;  %v10448_v2 = vsel %vm1709_vm9, %v1711_v49, %v1713_v59  ;;  %v7497_v49 = vld [vmem:[%s15608_s6 + $0x278] sm:$0xff] }
 0x318   : > { %1861 = vmatmul.f32.gmra.mxu2 %v10448_v2  ;;  %1937 = vmatmul.f32.gmra.mxu0 %v10448_v2 }
 0x319   : > { %v1688_v4 = vadd.f32 %v1652_v0, %v10008_v38  ;;  %v7513_v38 = vld [vmem:[%s15608_s6 + $0x2f8] sm:$0xff] }
 0x31a   : > { %2177 = vmatpush.msra.mxu2 %v7513_v38 }
 0x31b   : > { %v1696_v5 = vmul.f32 0.999995, %v1688_v4  ;;  %v7491_v4 = vld [vmem:[%s15608_s6 + $0x248] sm:$0xff] }
 0x31c   : > { %v1611_v6 = vpop.f32.mrf.mxu3  ;;  %2178 = vmatpush.msra.mxu2 %v7511_v8 }
 0x31d   : > { %1829 = vmatmul.f32.gmra.mxu1 %v1696_v5  ;;  %1905 = vmatmul.f32.gmra.mxu3 %v1696_v5  ;;  %v1715_v30 = vrot.slane %v1696_v5, 4  ;;  %v7490_v5 = vld [vmem:[%s15608_s6 + $0x240] sm:$0xff]  ;;  %v7489_v6 = vld [vmem:[%s15608_s6 + $0x238] sm:$0xff] }
 0x31e   : > { %v1654_v63 = vpop.f32.mrf.mxu0  ;;  %2179 = vmatpush.msra.mxu2 %v7509_v11  ;;  %v7484_v11 = vld [vmem:[%s15608_s6 + $0x210] sm:$0xff] }
 0x31f   : > { %v1655_v10 = vadd.f32 %v1654_v63, %v10433_v28  ;;  %v10455_v56 = vsel %vm1709_vm9, %v1713_v59, %v1715_v30  ;;  %v7481_v59 = vld [vmem:[%s15607_s5 + $0x4] sm:$0x3] }
 0x320   : > { %1864 = vmatmul.f32.gmra.mxu2 %v10455_v56  ;;  %1940 = vmatmul.f32.gmra.mxu0 %v10455_v56  ;;  %v10563_v61 = vperm.slane %v7481_v59, 1 }
 0x321   : > { %v1689_v27 = vadd.f32 %v1655_v10, %v10024_v47  ;;  %2180 = vmatpush.msra.mxu2 %v7507_v35  ;;  %v7487_v10 = vld [vmem:[%s15608_s6 + $0x228] sm:$0xff] }
 0x323   : > { %v1697_v42 = vmul.f32 0.999995, %v1689_v27  ;;  %2181 = vmatpush.msra.mxu2 %v7505_v36  ;;  %v7486_v27 = vld [vmem:[%s15608_s6 + $0x220] sm:$0xff]  ;;  %v10598_v36 = vperm.slane %v7481_v59, 0 }
 0x324   : > { %v10495_v34 = vpop.f32.mrf.mxu3 }
 0x325   : > { %1832 = vmatmul.f32.gmra.mxu1 %v1697_v42  ;;  %1908 = vmatmul.f32.gmra.mxu3 %v1697_v42  ;;  %v1717_v1 = vrot.slane %v1697_v42, 4  ;;  %v7485_v42 = vld [vmem:[%s15608_s6 + $0x218] sm:$0xff] }
 0x326   : > { %v1657_v7 = vpop.f32.mrf.mxu0 }
 0x327   : > { %v1658_v47 = vadd.f32 %v1657_v7, %v10433_v28  ;;  %v10471_v13 = vsel %vm1709_vm9, %v1715_v30, %v1717_v1  ;;  %v7488_v30 = vld [vmem:[%s15608_s6 + $0x230] sm:$0xff] }
 0x328   : > { %1867 = vmatmul.f32.gmra.mxu2 %v10471_v13  ;;  %1943 = vmatmul.f32.gmra.mxu0 %v10471_v13 }
 0x329   : > { %v1690_v14 = vadd.f32 %v1658_v47, %v10031_v54  ;;  %v7483_v47 = vld [vmem:[%s15608_s6 + $0x208] sm:$0xff] }
 0x32b   : > { %v1698_v15 = vmul.f32 0.999995, %v1690_v14  ;;  %v7482_v14 = vld [vmem:[%s15608_s6 + $0x200] sm:$0xff] }
 0x32c   : > { %v10506_v37 = vpop.f32.mrf.mxu3 }
 0x32d   : > { %1835 = vmatmul.f32.gmra.mxu1 %v1698_v15  ;;  %1911 = vmatmul.f32.gmra.mxu3 %v1698_v15  ;;  %v1719_v12 = vrot.slane %v1698_v15, 4 }
 0x32e   : > { %v1660_v16 = vpop.f32.mrf.mxu0 }
 0x32f   : > { %v1661_v17 = vadd.f32 %v1660_v16, %v10433_v28  ;;  %v10478_v18 = vsel %vm1709_vm9, %v1717_v1, %v1719_v12 }
 0x330   : > { %1870 = vmatmul.f32.gmra.mxu2 %v10478_v18  ;;  %1946 = vmatmul.f32.gmra.mxu0 %v10478_v18 }
 0x331   : > { %v1691_v19 = vadd.f32 %v1661_v17, %v10040_v52 }
 0x333   : > { %v1699_v20 = vmul.f32 0.999995, %v1691_v19 }
 0x334   : > { %v10514_v51 = vpop.f32.mrf.mxu3 }
 0x335   : > { %1838 = vmatmul.f32.gmra.mxu1 %v1699_v20  ;;  %1914 = vmatmul.f32.gmra.mxu3 %v1699_v20  ;;  %v1721_v54 = vrot.slane %v1699_v20, 4 }
 0x336   : > { %v1663_v21 = vpop.f32.mrf.mxu0 }
 0x337   : > { %v1664_v25 = vadd.f32 %v1663_v21, %v10433_v28  ;;  %v10485_v31 = vsel %vm1709_vm9, %v1719_v12, %v1721_v54  ;;  %v7512_v28 = vld [vmem:[%s15608_s6 + $0x2f0] sm:$0xff] }
 0x338   : > { %1873 = vmatmul.f32.gmra.mxu2 %v10485_v31  ;;  %1949 = vmatmul.f32.gmra.mxu0 %v10485_v31 }
 0x339   : > { %v1692_v29 = vadd.f32 %v1664_v25, %v10036_v57  ;;  %v7503_v57 = vld [vmem:[%s15608_s6 + $0x2a8] sm:$0xff]  ;;  %2143 = vmatpush.msra.mxu1 %v7512_v28 }
 0x33a   : > { %2182 = vmatpush.msra.mxu2 %v7503_v57 }
 0x33b   : > { %v1700_v26 = vmul.f32 0.999995, %v1692_v29  ;;  %2144 = vmatpush.msra.mxu1 %v7510_v39 }
 0x33c   : > { %2183 = vmatpush.msra.mxu2 %v7501_v32  ;;  %v10534_v45 = vpop.f32.mrf.mxu3 }
 0x33d   : > { %v1723_v33 = vrot.slane %v1700_v26, 4  ;;  %2145 = vmatpush.msra.mxu1 %v7508_v43 }
 0x33e   : > { %2184 = vmatpush.msra.mxu2 %v7499_v46 }
 0x33f   : > { %v10491_v52 = vsel %vm1709_vm9, %v1721_v54, %v1723_v33  ;;  %2146 = vmatpush.msra.mxu1 %v7506_v41 }
 0x340   : > { %1876 = vmatmul.f32.gmra.mxu2 %v10491_v52  ;;  %1952 = vmatmul.f32.gmra.mxu0 %v10491_v52 }
 0x341   : > { %2147 = vmatpush.msra.mxu1 %v7504_v44  ;;  %2185 = vmatpush.msra.mxu2 %v7497_v49 }
 0x343   : > { %2148 = vmatpush.msra.mxu1 %v7502_v22  ;;  %2186 = vmatpush.msra.mxu2 %v7495_v9 }
 0x345   : > { %2149 = vmatpush.msra.mxu1 %v7500_v40  ;;  %2187 = vmatpush.msra.mxu2 %v7493_v24 }
 0x347   : > { %2150 = vmatpush.msra.mxu1 %v7498_v48  ;;  %2188 = vmatpush.msra.mxu2 %v7491_v4 }
 0x349   : > { %2151 = vmatpush.msra.mxu1 %v7496_v50  ;;  %2189 = vmatpush.msra.mxu2 %v7489_v6 }
 0x34b   : > { %2152 = vmatpush.msra.mxu1 %v7494_v53  ;;  %2190 = vmatpush.msra.mxu2 %v7487_v10 }
 0x34d   : > { %2153 = vmatpush.msra.mxu1 %v7492_v55  ;;  %2191 = vmatpush.msra.mxu2 %v7485_v42 }
 0x34f   : > { %2154 = vmatpush.msra.mxu1 %v7490_v5  ;;  %2192 = vmatpush.msra.mxu2 %v7483_v47 }
 0x351   : > { %2155 = vmatpush.msra.mxu1 %v7488_v30 }
 0x353   : > { %2156 = vmatpush.msra.mxu1 %v7486_v27 }
 0x355   : > { %2157 = vmatpush.msra.mxu1 %v7484_v11 }
 0x357   : > { %2158 = vmatpush.msra.mxu1 %v7482_v14 }
 0x382   : > { %v1821_v15 = vpop.f32.mrf.mxu1 }
 0x383   : > { %v1822_v44 = vadd.f32 %v1821_v15, %v10598_v36 }
 0x388   : > { %v1897_v0 = vpop.f32.mrf.mxu3 }
 0x389   : > { %v1898_v63 = vadd.f32 %v1897_v0, %v10563_v61 }
 0x38a   : > { %v1824_v33 = vpop.f32.mrf.mxu1 }
 0x38d   : > { %v1935_v38 = vpop.f32.mrf.mxu0 }
 0x38e   : > { %v1936_v8 = vadd.f32 %v1935_v38, %v1898_v63  ;;  %v1825_v63 = vadd.f32 %v1824_v33, %v10598_v36 }
 0x390   : > { %v1963_v1 = vsub.f32 0.0, %v1936_v8  ;;  %v1900_v7 = vpop.f32.mrf.mxu3 }
 0x391   : > { %v1901_v16 = vadd.f32 %v1900_v7, %v10563_v61 }
 0x392   : > { %v1970_v12 = vmul.f32 1.442695, %v1963_v1  ;;  %v1827_v24 = vpop.f32.mrf.mxu1 }
 0x393   : > { %v1859_v17 = vpop.f32.mrf.mxu2 }
 0x394   : > { %8881 = vpow2.f32 %v1970_v12  ;;  %v1860_v46 = vadd.f32 %v1859_v17, %v1822_v44 }
 0x395   : > { %v1938_v19 = vpop.f32.mrf.mxu0 }
 0x396   : > { %v1939_v20 = vadd.f32 %v1938_v19, %v1901_v16 }
 0x398   : > { %v1964_v54 = vsub.f32 0.0, %v1939_v20  ;;  %v1903_v21 = vpop.f32.mrf.mxu3 }
 0x399   : > { %v1904_v35 = vadd.f32 %v1903_v21, %v10563_v61 }
 0x39a   : > { %v8882_v25 = vpop.eup %8881  ;;  %v1972_v29 = vmul.f32 1.442695, %v1964_v54 }
 0x39b   : > { %v1984_v26 = vadd.f32 1.0, %v8882_v25  ;;  %v1862_v28 = vpop.f32.mrf.mxu2  ;;  %v1830_v25 = vpop.f32.mrf.mxu1 }
 0x39c   : > { %8883 = vpow2.f32 %v1972_v29  ;;  %v1863_v11 = vadd.f32 %v1862_v28, %v1825_v63 }
 0x39d   : > { %8885 = vrcp.f32 %v1984_v26  ;;  %v1941_v57 = vpop.f32.mrf.mxu0  ;;  %v2000_v59 = vand.u32 2147483647, %v1984_v26  ;;  %v2002_v0 = vand.u32 2147483648, %v1984_v26  ;;  %vm1996_vm11 = vweird.f32 %v1984_v26 }
 0x39e   : > { %v1942_v39 = vadd.f32 %v1941_v57, %v1904_v35  ;;  %v1828_v35 = vadd.f32 %v1827_v24, %v10598_v36 }
 0x39f   : > { %vm2001_vm13 = vcmp.eq.f32.partialorder %v2000_v59, 8.507059e+37  ;;  %v2003_v42 = vor.u32 1.1754944e-38, %v2002_v0 }
 0x3a0   : > { %v1965_v43 = vsub.f32 0.0, %v1942_v39  ;;  %v1906_v41 = vpop.f32.mrf.mxu3 }
 0x3a1   : > { %v1907_v50 = vadd.f32 %v1906_v41, %v10563_v61 }
 0x3a2   : > { %v8884_v22 = vpop.eup %8883  ;;  %v1974_v32 = vmul.f32 1.442695, %v1965_v43 }
 0x3a3   : > { %v8886_v40 = vpop.eup %8885  ;;  %v1985_v48 = vadd.f32 1.0, %v8884_v22  ;;  %v1865_v5 = vpop.f32.mrf.mxu2 }
 0x3a4   : > { %v1992_v49 = vmul.f32 %v8886_v40, %v1984_v26  ;;  %8887 = vpow2.f32 %v1974_v32  ;;  %vm1997_vm10 = vweird.f32 %v8886_v40  ;;  %v1866_v44 = vadd.f32 %v1865_v5, %v1828_v35 }
 0x3a5   : > { %8889 = vrcp.f32 %v1985_v48  ;;  %v1944_v9 = vpop.f32.mrf.mxu0  ;;  %vm1998_vm12 = vmor %vm1996_vm11, %vm1997_vm10  ;;  %v2015_v54 = vand.u32 2147483647, %v1985_v48  ;;  %v2017_v21 = vand.u32 2147483648, %v1985_v48  ;;  %vm2011_vm15 = vweird.f32 %v1985_v48 }
 0x3a6   : > { %v1993_v53 = vsub.f32 1.0, %v1992_v49  ;;  %v1945_v55 = vadd.f32 %v1944_v9, %v1907_v50  ;;  %8891 = vtanh.f32 %v1860_v46 }
 0x3a7   : > { %vm2016_vm2 = vcmp.eq.f32.partialorder %v2015_v54, 8.507059e+37  ;;  %v2018_v32 = vor.u32 1.1754944e-38, %v2017_v21 }
 0x3a8   : > { %v1994_v4 = vmul.f32 %v8886_v40, %v1993_v53  ;;  %v1966_v6 = vsub.f32 0.0, %v1945_v55  ;;  %v1909_v30 = vpop.f32.mrf.mxu3 }
 0x3a9   : > { %v1910_v47 = vadd.f32 %v1909_v30, %v10563_v61 }
 0x3aa   : > { %v8888_v10 = vpop.eup %8887  ;;  %v1995_v27 = vadd.f32 %v8886_v40, %v1994_v4  ;;  %v1976_v38 = vmul.f32 1.442695, %v1966_v6  ;;  %v1831_v6 = vadd.f32 %v1830_v25, %v10598_v36 }
 0x3ab   : > { %v8890_v8 = vpop.eup %8889  ;;  %v10603_v1 = vadd.f32 1.0, %v8888_v10  ;;  %v1868_v28 = vpop.f32.mrf.mxu2 }
 0x3ac   : > { %v1999_v7 = vsel %vm1998_vm12, %v8886_v40, %v1995_v27  ;;  %8893 = vpow2.f32 %v1976_v38  ;;  %v2007_v14 = vmul.f32 %v8890_v8, %v1985_v48  ;;  %v8892_v15 = vpop.eup %8891  ;;  %vm2012_vm14 = vweird.f32 %v8890_v8  ;;  %v1833_v10 = vpop.f32.mrf.mxu1 }
 0x3ad   : > { %v2004_v12 = vsel %vm2001_vm13, %v2003_v42, %v1999_v7  ;;  %8895 = vrcp.f32 %v10603_v1  ;;  %v1947_v16 = vpop.f32.mrf.mxu0  ;;  %vm2013_vm0 = vmor %vm2011_vm15, %vm2012_vm14  ;;  %v2030_v59 = vand.u32 2147483647, %v10603_v1  ;;  %v2032_v0 = vand.u32 2147483648, %v10603_v1 }
 0x3ae   : > { %v2096_v17 = vmul.f32 %v8892_v15, %v2004_v12  ;;  %v1948_v19 = vadd.f32 %v1947_v16, %v1910_v47  ;;  %v2008_v20 = vsub.f32 1.0, %v2007_v14  ;;  %8897 = vtanh.f32 %v1863_v11 }
 0x3af   : > { %vm2026_vm5 = vweird.f32 %v10603_v1  ;;  %v1869_v42 = vadd.f32 %v1868_v28, %v1831_v6  ;;  %vm2031_vm7 = vcmp.eq.f32.partialorder %v2030_v59, 8.507059e+37  ;;  %v2033_v7 = vor.u32 1.1754944e-38, %v2032_v0 }
 0x3b0   : > { %v1967_v29 = vsub.f32 0.0, %v1948_v19  ;;  %v1912_v26 = vpop.f32.mrf.mxu3  ;;  %2159 = vmatmul.f32.vlgmr.msra.gmra.mxu1 %v2096_v17  ;;  %2193 = vmatmul.f32.vlgmr.msra.gmra.mxu2 %v2096_v17  ;;  %v2009_v33 = vmul.f32 %v8890_v8, %v2008_v20  ;;  %v1834_v35 = vadd.f32 %v1833_v10, %v10598_v36 }
 0x3b1   : > { %v1913_v40 = vadd.f32 %v1912_v26, %v10563_v61  ;;  %v7545_v26 = vld [vmem:[%s15606_s4 + $0x6f0] sm:$0xff] }
 0x3b2   : > { %v8894_v57 = vpop.eup %8893  ;;  %v1978_v39 = vmul.f32 1.442695, %v1967_v29  ;;  %v2010_v43 = vadd.f32 %v8890_v8, %v2009_v33  ;;  %v7543_v33 = vld [vmem:[%s15606_s4 + $0x6e0] sm:$0xff]  ;;  %2318 = vmatpush.msra.mxu3 %v7545_v26 }
 0x3b3   : > { %v8896_v41 = vpop.eup %8895  ;;  %v10608_v22 = vadd.f32 1.0, %v8894_v57  ;;  %v1871_v47 = vpop.f32.mrf.mxu2 }
 0x3b4   : > { %8899 = vpow2.f32 %v1978_v39  ;;  %v2014_v46 = vsel %vm2013_vm0, %v8890_v8, %v2010_v43  ;;  %v2022_v49 = vmul.f32 %v8896_v41, %v10603_v1  ;;  %v8898_v50 = vpop.eup %8897  ;;  %vm2027_vm3 = vweird.f32 %v8896_v41  ;;  %v7541_v43 = vld [vmem:[%s15606_s4 + $0x6d0] sm:$0xff]  ;;  %2319 = vmatpush.msra.mxu3 %v7543_v33 }
 0x3b5   : > { %8901 = vrcp.f32 %v10608_v22  ;;  %v1950_v9 = vpop.f32.mrf.mxu0  ;;  %v2019_v53 = vsel %vm2016_vm2, %v2018_v32, %v2014_v46  ;;  %vm2028_vm6 = vmor %vm2026_vm5, %vm2027_vm3  ;;  %v2047_v21 = vand.u32 2147483648, %v10608_v22  ;;  %vm2041_vm10 = vweird.f32 %v10608_v22 }
 0x3b6   : > { %v1951_v24 = vadd.f32 %v1950_v9, %v1913_v40  ;;  %v2097_v48 = vmul.f32 %v8898_v50, %v2019_v53  ;;  %v2023_v55 = vsub.f32 1.0, %v2022_v49  ;;  %8903 = vtanh.f32 %v1866_v44  ;;  %v7577_v49 = vld [vmem:[%s15606_s4 + $0x7f0] sm:$0xff]  ;;  %v1836_v50 = vpop.f32.mrf.mxu1  ;;  %2320 = vmatpush.msra.mxu3 %v7541_v43  ;;  %v7527_v40 = vld [vmem:[%s15606_s4 + $0x660] sm:$0xff] }
 0x3b7   : > { %v1872_v44 = vadd.f32 %v1871_v47, %v1834_v35  ;;  %v2048_v46 = vor.u32 1.1754944e-38, %v2047_v21  ;;  %2353 = vmatpush.msrb.mxu0 %v7577_v49  ;;  %v1837_v47 = vadd.f32 %v1836_v50, %v10598_v36 }
 0x3b8   : > { %v1968_v4 = vsub.f32 0.0, %v1951_v24  ;;  %2161 = vmatmul.f32.gmra.mxu1 %v2097_v48  ;;  %2196 = vmatmul.f32.gmra.mxu2 %v2097_v48  ;;  %v2024_v5 = vmul.f32 %v8896_v41, %v2023_v55  ;;  %v1915_v30 = vpop.f32.mrf.mxu3  ;;  %v7539_v24 = vld [vmem:[%s15606_s4 + $0x6c0] sm:$0xff]  ;;  %v7576_v55 = vld [vmem:[%s15606_s4 + $0x7e8] sm:$0xff] }
 0x3b9   : > { %v1916_v14 = vadd.f32 %v1915_v30, %v10563_v61  ;;  %v2045_v61 = vand.u32 2147483647, %v10608_v22  ;;  %v7575_v48 = vld [vmem:[%s15606_s4 + $0x7e0] sm:$0xff]  ;;  %v7537_v30 = vld [vmem:[%s15606_s4 + $0x6b0] sm:$0xff]  ;;  %2321 = vmatpush.msra.mxu3 %v7539_v24 }
 0x3ba   : > { %v8900_v63 = vpop.eup %8899  ;;  %v1980_v27 = vmul.f32 1.442695, %v1968_v4  ;;  %v2025_v38 = vadd.f32 %v8896_v41, %v2024_v5  ;;  %2354 = vmatpush.msrb.mxu0 %v7575_v48 }
 0x3bb   : > { %v8902_v8 = vpop.eup %8901  ;;  %v10617_v11 = vadd.f32 1.0, %v8900_v63  ;;  %vm2046_vm12 = vcmp.eq.f32.partialorder %v2045_v61, 8.507059e+37  ;;  %v1874_v4 = vpop.f32.mrf.mxu2  ;;  %v7573_v63 = vld [vmem:[%s15606_s4 + $0x7d0] sm:$0xff]  ;;  %2322 = vmatpush.msra.mxu3 %v7537_v30 }
 0x3bc   : > { %8905 = vpow2.f32 %v1980_v27  ;;  %v2029_v15 = vsel %vm2028_vm6, %v8896_v41, %v2025_v38  ;;  %v2037_v12 = vmul.f32 %v8902_v8, %v10608_v22  ;;  %v8904_v16 = vpop.eup %8903  ;;  %vm2042_vm8 = vweird.f32 %v8902_v8  ;;  %v7578_v22 = vld [vmem:[%s15606_s4 + $0x7f8] sm:$0xff]  ;;  %2355 = vmatpush.msrb.mxu0 %v7573_v63 }
 0x3bd   : > { %8907 = vrcp.f32 %v10617_v11  ;;  %v1953_v17 = vpop.f32.mrf.mxu0  ;;  %v2034_v19 = vsel %vm2031_vm7, %v2033_v7, %v2029_v15  ;;  %vm10639_vm11 = vmor %vm2041_vm10, %vm2042_vm8  ;;  %2423 = vmatpush.msrb.mxu1 %v7578_v22  ;;  %v2062_v10 = vand.u32 2147483648, %v10617_v11  ;;  %v7574_v27 = vld [vmem:[%s15606_s4 + $0x7d8] sm:$0xff]  ;;  %v7571_v7 = vld [vmem:[%s15606_s4 + $0x7c0] sm:$0xff]  ;;  %vm2056_vm14 = vweird.f32 %v10617_v11 }
 0x3be   : > { %v1954_v1 = vadd.f32 %v1953_v17, %v1916_v14  ;;  %v2098_v20 = vmul.f32 %v8904_v16, %v2034_v19  ;;  %v2038_v54 = vsub.f32 1.0, %v2037_v12  ;;  %8909 = vtanh.f32 %v1869_v42  ;;  %v7535_v42 = vld [vmem:[%s15606_s4 + $0x6a0] sm:$0xff]  ;;  %v7572_v14 = vld [vmem:[%s15606_s4 + $0x7c8] sm:$0xff]  ;;  %v7533_v16 = vld [vmem:[%s15606_s4 + $0x690] sm:$0xff]  ;;  %2356 = vmatpush.msrb.mxu0 %v7571_v7  ;;  %v1839_v33 = vpop.f32.mrf.mxu1 }
 0x3bf   : > { %2424 = vmatpush.msrb.mxu1 %v7576_v55  ;;  %v7569_v17 = vld [vmem:[%s15606_s4 + $0x7b0] sm:$0xff]  ;;  %2323 = vmatpush.msra.mxu3 %v7535_v42  ;;  %v7567_v7 = vld [vmem:[%s15606_s4 + $0x7a0] sm:$0xff] }
 0x3c0   : > { %v1969_v25 = vsub.f32 0.0, %v1954_v1  ;;  %2163 = vmatmul.f32.gmra.mxu1 %v2098_v20  ;;  %2199 = vmatmul.f32.gmra.mxu2 %v2098_v20  ;;  %v2039_v29 = vmul.f32 %v8902_v8, %v2038_v54  ;;  %v1875_v1 = vadd.f32 %v1874_v4, %v1837_v47  ;;  %v2063_v54 = vor.u32 1.1754944e-38, %v2062_v10  ;;  %v7525_v22 = vld [vmem:[%s15606_s4 + $0x650] sm:$0xff]  ;;  %v7568_v47 = vld [vmem:[%s15606_s4 + $0x7a8] sm:$0xff] }
 0x3c1   : > { %2425 = vmatpush.msrb.mxu1 %v7574_v27  ;;  %2324 = vmatpush.msra.mxu3 %v7533_v16  ;;  %v7521_v4 = vld [vmem:[%s15606_s4 + $0x630] sm:$0xff]  ;;  %v7563_v16 = vld [vmem:[%s15606_s4 + $0x780] sm:$0xff] }
 0x3c2   : > { %v8906_v57 = vpop.eup %8905  ;;  %v1982_v28 = vmul.f32 1.442695, %v1969_v25  ;;  %v2040_v39 = vadd.f32 %v8902_v8, %v2039_v29  ;;  %v7531_v29 = vld [vmem:[%s15606_s4 + $0x680] sm:$0xff]  ;;  %2357 = vmatpush.msrb.mxu0 %v7569_v17  ;;  %v7564_v17 = vld [vmem:[%s15606_s4 + $0x788] sm:$0xff] }
 0x3c3   : > { %v10635_v41 = vpop.eup %8907  ;;  %v10637_v32 = vadd.f32 1.0, %v8906_v57  ;;  %2426 = vmatpush.msrb.mxu1 %v7572_v14  ;;  %2325 = vmatpush.msra.mxu3 %v7531_v29  ;;  %v1877_v43 = vpop.f32.mrf.mxu2  ;;  %v7565_v14 = vld [vmem:[%s15606_s4 + $0x790] sm:$0xff]  ;;  %v7558_v29 = vld [vmem:[%s15606_s4 + $0x758] sm:$0xff] }
 0x3c4   : > { %8911 = vpow2.f32 %v1982_v28  ;;  %v2044_v9 = vsel %vm10639_vm11, %v8902_v8, %v2040_v39  ;;  %v2052_v53 = vmul.f32 %v10635_v41, %v10617_v11  ;;  %v8910_v59 = vpop.eup %8909  ;;  %vm2057_vm13 = vweird.f32 %v10635_v41  ;;  %v7529_v28 = vld [vmem:[%s15606_s4 + $0x670] sm:$0xff]  ;;  %2358 = vmatpush.msrb.mxu0 %v7567_v7 }
 0x3c5   : > { %8913 = vrcp.f32 %v10637_v32  ;;  %v2049_v0 = vsel %vm2046_vm12, %v2048_v46, %v2044_v9  ;;  %v2060_v8 = vand.u32 2147483647, %v10617_v11  ;;  %vm2058_vm15 = vmor %vm2056_vm14, %vm2057_vm13  ;;  %v7570_v11 = vld [vmem:[%s15606_s4 + $0x7b8] sm:$0xff]  ;;  %v2077_v39 = vand.u32 2147483648, %v10637_v32  ;;  %2326 = vmatpush.msra.mxu3 %v7529_v28  ;;  %v7551_v28 = vld [vmem:[%s15606_s4 + $0x720] sm:$0xff] }
 0x3c6   : > { %v2099_v5 = vmul.f32 %v8910_v59, %v2049_v0  ;;  %v2053_v6 = vsub.f32 1.0, %v2052_v53  ;;  %8915 = vtanh.f32 %v1872_v44  ;;  %2427 = vmatpush.msrb.mxu1 %v7570_v11  ;;  %v2075_v44 = vand.u32 2147483647, %v10637_v32  ;;  %2359 = vmatpush.msrb.mxu0 %v7565_v14  ;;  %v7517_v11 = vld [vmem:[%s15606_s4 + $0x610] sm:$0xff] }
 0x3c7   : > { %vm2061_vm0 = vcmp.eq.f32.partialorder %v2060_v8, 8.507059e+37  ;;  %v1840_v46 = vadd.f32 %v1839_v33, %v10598_v36  ;;  %vm2071_vm3 = vweird.f32 %v10637_v32  ;;  %v2078_v53 = vor.u32 1.1754944e-38, %v2077_v39  ;;  %2327 = vmatpush.msra.mxu3 %v7527_v40  ;;  %v7523_v36 = vld [vmem:[%s15606_s4 + $0x640] sm:$0xff]  ;;  %v7546_v33 = vld [vmem:[%s15606_s4 + $0x6f8] sm:$0xff]  ;;  %v7552_v39 = vld [vmem:[%s15606_s4 + $0x728] sm:$0xff] }
 0x3c8   : > { %2165 = vmatmul.f32.gmra.mxu1 %v2099_v5  ;;  %2202 = vmatmul.f32.gmra.mxu2 %v2099_v5  ;;  %v2054_v38 = vmul.f32 %v10635_v41, %v2053_v6  ;;  %vm2076_vm6 = vcmp.eq.f32.partialorder %v2075_v44, 8.507059e+37  ;;  %v7550_v44 = vld [vmem:[%s15606_s4 + $0x718] sm:$0xff] }
 0x3c9   : > { %v1878_v9 = vadd.f32 %v1877_v43, %v1840_v46  ;;  %2328 = vmatpush.msra.mxu3 %v7525_v22  ;;  %2428 = vmatpush.msrb.mxu1 %v7568_v47  ;;  %v7544_v43 = vld [vmem:[%s15606_s4 + $0x6e8] sm:$0xff]  ;;  %v7542_v40 = vld [vmem:[%s15606_s4 + $0x6d8] sm:$0xff]  ;;  %v7547_v46 = vld [vmem:[%s15606_s4 + $0x700] sm:$0xff] }
 0x3ca   : > { %v8912_v15 = vpop.eup %8911  ;;  %v2055_v12 = vadd.f32 %v10635_v41, %v2054_v38  ;;  %2360 = vmatpush.msrb.mxu0 %v7563_v16  ;;  %v7540_v22 = vld [vmem:[%s15606_s4 + $0x6c8] sm:$0xff]  ;;  %v9214_v16 = vld [vmem:[%s15609_s7 + $0x2] sm:$0x3] }
 0x3cb   : > { %v8914_v19 = vpop.eup %8913  ;;  %v10694_v20 = vadd.f32 1.0, %v8912_v15  ;;  %2329 = vmatpush.msra.mxu3 %v7523_v36  ;;  %v7566_v15 = vld [vmem:[%s15606_s4 + $0x798] sm:$0xff] }
 0x3cc   : > { %v2059_v21 = vsel %vm2058_vm15, %v10635_v41, %v2055_v12  ;;  %v2067_v25 = vmul.f32 %v8914_v19, %v10637_v32  ;;  %v8916_v61 = vpop.eup %8915  ;;  %vm2072_vm2 = vweird.f32 %v8914_v19  ;;  %v7519_v12 = vld [vmem:[%s15606_s4 + $0x620] sm:$0xff]  ;;  %2429 = vmatpush.msrb.mxu1 %v7566_v15  ;;  %v7534_v36 = vld [vmem:[%s15606_s4 + $0x698] sm:$0xff]  ;;  %v7524_v15 = vld [vmem:[%s15606_s4 + $0x648] sm:$0xff] }
 0x3cd   : > { %8917 = vrcp.f32 %v10694_v20  ;;  %v2064_v26 = vsel %vm2061_vm0, %v2063_v54, %v2059_v21  ;;  %vm2073_vm5 = vmor %vm2071_vm3, %vm2072_vm2  ;;  %v2092_v5 = vand.u32 2147483648, %v10694_v20  ;;  %v2090_v30 = vand.u32 2147483647, %v10694_v20  ;;  %2330 = vmatpush.msra.mxu3 %v7521_v4  ;;  %v7560_v54 = vld [vmem:[%s15606_s4 + $0x768] sm:$0xff]  ;;  %v7515_v21 = vld [vmem:[%s15606_s4 + $0x600] sm:$0xff] }
 0x3ce   : > { %v2100_v35 = vmul.f32 %v8916_v61, %v2064_v26  ;;  %v2068_v57 = vsub.f32 1.0, %v2067_v25  ;;  %8919 = vtanh.f32 %v1875_v1  ;;  %vm2086_vm8 = vweird.f32 %v10694_v20  ;;  %2430 = vmatpush.msrb.mxu1 %v7564_v17  ;;  %v7562_v1 = vld [vmem:[%s15606_s4 + $0x778] sm:$0xff]  ;;  %v7557_v25 = vld [vmem:[%s15606_s4 + $0x750] sm:$0xff]  ;;  %v7555_v61 = vld [vmem:[%s15606_s4 + $0x740] sm:$0xff] }
 0x3cf   : > { %8921 = vtanh.f32 %v1878_v9  ;;  %v2093_v10 = vor.u32 1.1754944e-38, %v2092_v5  ;;  %vm2091_vm11 = vcmp.eq.f32.partialorder %v2090_v30, 8.507059e+37  ;;  %2331 = vmatpush.msra.mxu3 %v7519_v12  ;;  %v7556_v26 = vld [vmem:[%s15606_s4 + $0x748] sm:$0xff]  ;;  %v7522_v12 = vld [vmem:[%s15606_s4 + $0x638] sm:$0xff]  ;;  %v1584_v17 = vperm.slane %v9214_v16, 0 }
 0x3d0   : > { %2167 = vmatmul.f32.gmra.mxu1 %v2100_v35  ;;  %2205 = vmatmul.f32.gmra.mxu2 %v2100_v35  ;;  %v2069_v41 = vmul.f32 %v8914_v19, %v2068_v57  ;;  %v7553_v35 = vld [vmem:[%s15606_s4 + $0x730] sm:$0xff]  ;;  %v7554_v57 = vld [vmem:[%s15606_s4 + $0x738] sm:$0xff]  ;;  %v7536_v9 = vld [vmem:[%s15606_s4 + $0x6a8] sm:$0xff] }
 0x3d1   : > { %2431 = vmatpush.msrb.mxu1 %v7562_v1  ;;  %2332 = vmatpush.msra.mxu3 %v7517_v11  ;;  %v7528_v30 = vld [vmem:[%s15606_s4 + $0x668] sm:$0xff] }
 0x3d2   : > { %v2070_v49 = vadd.f32 %v8914_v19, %v2069_v41  ;;  %v7549_v41 = vld [vmem:[%s15606_s4 + $0x710] sm:$0xff] }
 0x3d3   : > { %v8918_v50 = vpop.eup %8917  ;;  %2432 = vmatpush.msrb.mxu1 %v7560_v54  ;;  %2333 = vmatpush.msra.mxu3 %v7515_v21 }
 0x3d4   : > { %v2074_v24 = vsel %vm2073_vm5, %v8914_v19, %v2070_v49  ;;  %v2082_v48 = vmul.f32 %v8918_v50, %v10694_v20  ;;  %v8920_v55 = vpop.eup %8919  ;;  %vm2087_vm7 = vweird.f32 %v8918_v50  ;;  %v7561_v19 = vld [vmem:[%s15606_s4 + $0x770] sm:$0xff]  ;;  %v7559_v20 = vld [vmem:[%s15606_s4 + $0x760] sm:$0xff]  ;;  %v7548_v49 = vld [vmem:[%s15606_s4 + $0x708] sm:$0xff] }
 0x3d5   : > { %v2079_v59 = vsel %vm2076_vm6, %v2078_v53, %v2074_v24  ;;  %vm2088_vm10 = vmor %vm2086_vm8, %vm2087_vm7  ;;  %v8922_v38 = vpop.eup %8921  ;;  %2361 = vmatpush.msrb.mxu0 %v7561_v19  ;;  %2433 = vmatpush.msrb.mxu1 %v7558_v29  ;;  %v7514_v24 = vld [vmem:[%s15609_s7 + $0x4] sm:$0x3]  ;;  %v1617_v19 = vadd.f32 %v10506_v37, %v1584_v17  ;;  %v7518_v37 = vld [vmem:[%s15606_s4 + $0x618] sm:$0xff] }
 0x3d6   : > { %v2101_v32 = vmul.f32 %v8920_v55, %v2079_v59  ;;  %v2083_v0 = vsub.f32 1.0, %v2082_v48  ;;  %2388 = vmatpush.msrb.mxu3 %v7546_v33  ;;  %v10826_v48 = vperm.slane %v7514_v24, 1  ;;  %v7532_v55 = vld [vmem:[%s15606_s4 + $0x688] sm:$0xff]  ;;  %v7530_v59 = vld [vmem:[%s15606_s4 + $0x678] sm:$0xff] }
 0x3d7   : > { %2362 = vmatpush.msrb.mxu0 %v7559_v20  ;;  %2434 = vmatpush.msrb.mxu1 %v7556_v26  ;;  %v7516_v26 = vld [vmem:[%s15606_s4 + $0x608] sm:$0xff] }
 0x3d8   : > { %2170 = vmatmul.f32.gmra.mxu1 %v2101_v32  ;;  %2208 = vmatmul.f32.gmra.mxu2 %v2101_v32  ;;  %v2084_v6 = vmul.f32 %v8918_v50, %v2083_v0 }
 0x3d9   : > { %2363 = vmatpush.msrb.mxu0 %v7557_v25  ;;  %2435 = vmatpush.msrb.mxu1 %v7554_v57 }
 0x3da   : > { %v2085_v63 = vadd.f32 %v8918_v50, %v2084_v6  ;;  %2389 = vmatpush.msrb.mxu3 %v7544_v43 }
 0x3db   : > { %2364 = vmatpush.msrb.mxu0 %v7555_v61  ;;  %2436 = vmatpush.msrb.mxu1 %v7552_v39  ;;  %v1620_v39 = vadd.f32 %v10514_v51, %v1584_v17 }
 0x3dc   : > { %v2089_v27 = vsel %vm2088_vm10, %v8918_v50, %v2085_v63  ;;  %2390 = vmatpush.msrb.mxu3 %v7542_v40  ;;  %v7538_v50 = vld [vmem:[%s15606_s4 + $0x6b8] sm:$0xff] }
 0x3dd   : > { %v2094_v8 = vsel %vm2091_vm11, %v2093_v10, %v2089_v27  ;;  %2365 = vmatpush.msrb.mxu0 %v7553_v35  ;;  %2437 = vmatpush.msrb.mxu1 %v7550_v44  ;;  %v7526_v63 = vld [vmem:[%s15606_s4 + $0x658] sm:$0xff]  ;;  %v9213_v27 = vld [vmem:[%s15609_s7] sm:$0x3] }
 0x3de   : > { %v2102_v42 = vmul.f32 %v8922_v38, %v2094_v8  ;;  %2391 = vmatpush.msrb.mxu3 %v7540_v22 }
 0x3df   : > { %2366 = vmatpush.msrb.mxu0 %v7551_v28  ;;  %2438 = vmatpush.msrb.mxu1 %v7548_v49 }
 0x3e0   : > { %2173 = vmatmul.f32.gmra.mxu1 %v2102_v42  ;;  %2211 = vmatmul.f32.gmra.mxu2 %v2102_v42 }
 0x3e1   : > { %2367 = vmatpush.msrb.mxu0 %v7549_v41  ;;  %2392 = vmatpush.msrb.mxu3 %v7538_v50 }
 0x3e3   : > { %2368 = vmatpush.msrb.mxu0 %v7547_v46  ;;  %2393 = vmatpush.msrb.mxu3 %v7536_v9 }
 0x3e5   : > { %2394 = vmatpush.msrb.mxu3 %v7534_v36  ;;  %v1623_v36 = vadd.f32 %v10534_v45, %v1584_v17 }
 0x3e7   : > { %2395 = vmatpush.msrb.mxu3 %v7532_v55 }
 0x3e9   : > { %2396 = vmatpush.msrb.mxu3 %v7530_v59 }
 0x3eb   : > { %2397 = vmatpush.msrb.mxu3 %v7528_v30 }
 0x3ed   : > { %2398 = vmatpush.msrb.mxu3 %v7526_v63 }
 0x3ef   : > { %2399 = vmatpush.msrb.mxu3 %v7524_v15 }
 0x3f1   : > { %2400 = vmatpush.msrb.mxu3 %v7522_v12 }
 0x42d   : > { %v2160_v53 = vpop.f32.mrf.mxu1 }
 0x433   : > { %v2194_v32 = vpop.f32.mrf.mxu2 }
 0x434   : > { %v2195_v0 = vadd.f32 %v2194_v32, %v10826_v48 }
 0x435   : > { %v2162_v4 = vpop.f32.mrf.mxu1 }
 0x436   : > { %v2232_v5 = vadd.f32 %v2195_v0, %v10441_v23  ;;  %v1014_v23 = vperm.slane %v9213_v27, 0 }
 0x438   : > { %v10839_v6 = vmul.f32 0.999995, %v2232_v5  ;;  %v1050_v42 = vadd.f32 %v10059_v62, %v1014_v23  ;;  %v1047_v47 = vadd.f32 %v10054_v60, %v1014_v23  ;;  %v1044_v62 = vadd.f32 %v10046_v58, %v1014_v23  ;;  %v7520_v60 = vld [vmem:[%s15606_s4 + $0x628] sm:$0xff] }
 0x439   : > { %v1614_v58 = vadd.f32 %v10495_v34, %v1584_v17  ;;  %2401 = vmatpush.msrb.mxu3 %v7520_v60  ;;  %v1053_v25 = vadd.f32 %v10070_v3, %v1014_v23  ;;  %v7607_v17 = vld [vmem:[%s15608_s6 + $0x3d8] sm:$0xff]  ;;  %v7610_v60 = vld [vmem:[%s15608_s6 + $0x3f0] sm:$0xff] }
 0x43a   : > { %2334 = vmatmul.f32.vlgmr.msra.gmra.mxu3 %v10839_v6  ;;  %v1671_v20 = vrot.slane %v1047_v47, 2  ;;  %v1670_v21 = vrot.slane %v1044_v62, 2  ;;  %v7605_v62 = vld [vmem:[%s15608_s6 + $0x3c8] sm:$0xff]  ;;  %2624 = vmatpush.msrb.mxu2 %v7610_v60 }
 0x43b   : > { %v2197_v10 = vpop.f32.mrf.mxu2  ;;  %2402 = vmatpush.msrb.mxu3 %v7518_v37  ;;  %v1675_v3 = vrot.slane %v1053_v25, 2  ;;  %v7601_v25 = vld [vmem:[%s15608_s6 + $0x3a8] sm:$0xff]  ;;  %v7598_v37 = vld [vmem:[%s15608_s6 + $0x390] sm:$0xff] }
 0x43c   : > { %v2198_v38 = vadd.f32 %v2197_v10, %v10826_v48  ;;  %v1672_v34 = vsel %vm1120_vm4, %v1670_v21, %v1671_v20 }
 0x43d   : > { %v2164_v8 = vpop.f32.mrf.mxu1  ;;  %v1681_v57 = vadd.f32 %v1672_v34, %v1614_v58  ;;  %2403 = vmatpush.msrb.mxu3 %v7516_v26  ;;  %v1684_v4 = vadd.f32 %v1675_v3, %v1623_v36  ;;  %v7603_v58 = vld [vmem:[%s15608_s6 + $0x3b8] sm:$0xff]  ;;  %v7597_v26 = vld [vmem:[%s15608_s6 + $0x388] sm:$0xff] }
 0x43e   : > { %v2233_v7 = vadd.f32 %v2198_v38, %v10448_v2  ;;  %v1673_v2 = vrot.slane %v1050_v42, 2  ;;  %v7595_v34 = vld [vmem:[%s15608_s6 + $0x378] sm:$0xff]  ;;  %v7585_v36 = vld [vmem:[%s15608_s6 + $0x328] sm:$0xff] }
 0x43f   : > { %v2219_v44 = vrot.slane %v1681_v57, 4  ;;  %v2224_v45 = vrot.slane %v1684_v4, 4  ;;  %v7594_v57 = vld [vmem:[%s15608_s6 + $0x370] sm:$0xff] }
 0x440   : > { %v10855_v14 = vmul.f32 0.999995, %v2233_v7  ;;  %v1674_v29 = vsel %vm1120_vm4, %v1671_v20, %v1673_v2  ;;  %v1676_v46 = vsel %vm1120_vm4, %v1673_v2, %v1675_v3  ;;  %v7606_v20 = vld [vmem:[%s15608_s6 + $0x3d0] sm:$0xff] }
 0x441   : > { %v1682_v33 = vadd.f32 %v1674_v29, %v1617_v19  ;;  %v1683_v50 = vadd.f32 %v1676_v46, %v1620_v39  ;;  %v7600_v29 = vld [vmem:[%s15608_s6 + $0x3a0] sm:$0xff]  ;;  %v7589_v46 = vld [vmem:[%s15608_s6 + $0x348] sm:$0xff] }
 0x442   : > { %2337 = vmatmul.f32.gmra.mxu3 %v10855_v14  ;;  %2369 = vmatmul.f32.vlgmr.msrb.gmra.mxu0 %v10855_v14  ;;  %v7592_v39 = vld [vmem:[%s15608_s6 + $0x360] sm:$0xff] }
 0x443   : > { %2439 = vmatmul.f32.vlgmr.msrb.gmra.mxu1 %v10855_v14  ;;  %v2200_v1 = vpop.f32.mrf.mxu2  ;;  %v2220_v28 = vrot.slane %v1682_v33, 4  ;;  %v2222_v51 = vrot.slane %v1683_v50, 4  ;;  %v7596_v33 = vld [vmem:[%s15608_s6 + $0x380] sm:$0xff]  ;;  %v7586_v50 = vld [vmem:[%s15608_s6 + $0x330] sm:$0xff] }
 0x444   : > { %v2201_v54 = vadd.f32 %v2200_v1, %v10826_v48  ;;  %v7608_v1 = vld [vmem:[%s15608_s6 + $0x3e0] sm:$0xff] }
 0x445   : > { %v2166_v11 = vpop.f32.mrf.mxu1  ;;  %v2221_v9 = vsel %vm1709_vm9, %v2219_v44, %v2220_v28  ;;  %v2223_v5 = vsel %vm1709_vm9, %v2220_v28, %v2222_v51  ;;  %v2225_v8 = vsel %vm1709_vm9, %v2222_v51, %v2224_v45  ;;  %2625 = vmatpush.msrb.mxu2 %v7608_v1  ;;  %v7593_v28 = vld [vmem:[%s15608_s6 + $0x368] sm:$0xff]  ;;  %v7579_v44 = vld [vmem:[%s15607_s5 + $0x6] sm:$0x3] }
 0x446   : > { %v2234_v61 = vadd.f32 %v2201_v54, %v10455_v56  ;;  %v2139_v56 = vperm.slane %v7514_v24, 0  ;;  %v7604_v54 = vld [vmem:[%s15608_s6 + $0x3c0] sm:$0xff]  ;;  %v7602_v11 = vld [vmem:[%s15608_s6 + $0x3b0] sm:$0xff] }
 0x447   : > { %2626 = vmatpush.msrb.mxu2 %v7606_v20  ;;  %v7580_v45 = vld [vmem:[%s15608_s6 + $0x300] sm:$0xff] }
 0x448   : > { %v10886_v35 = vmul.f32 0.999995, %v2234_v61  ;;  %v7599_v61 = vld [vmem:[%s15608_s6 + $0x398] sm:$0xff] }
 0x449   : > { %2627 = vmatpush.msrb.mxu2 %v7604_v54 }
 0x44a   : > { %2340 = vmatmul.f32.gmra.mxu3 %v10886_v35  ;;  %2372 = vmatmul.f32.gmra.mxu0 %v10886_v35 }
 0x44b   : > { %2442 = vmatmul.f32.gmra.mxu1 %v10886_v35  ;;  %v2203_v43 = vpop.f32.mrf.mxu2  ;;  %2628 = vmatpush.msrb.mxu2 %v7602_v11 }
 0x44c   : > { %v2204_v41 = vadd.f32 %v2203_v43, %v10826_v48  ;;  %v7591_v43 = vld [vmem:[%s15608_s6 + $0x358] sm:$0xff] }
 0x44d   : > { %v2168_v40 = vpop.f32.mrf.mxu1  ;;  %2629 = vmatpush.msrb.mxu2 %v7600_v29 }
 0x44e   : > { %v2235_v49 = vadd.f32 %v2204_v41, %v10471_v13  ;;  %v2169_v22 = vadd.f32 %v2168_v40, %v2139_v56  ;;  %v7590_v41 = vld [vmem:[%s15608_s6 + $0x350] sm:$0xff]  ;;  %v11017_v40 = vperm.slane %v7579_v44, 1 }
 0x44f   : > { %2630 = vmatpush.msrb.mxu2 %v7598_v37 }
 0x450   : > { %v10896_v53 = vmul.f32 0.999995, %v2235_v49  ;;  %v10898_v24 = vadd.f32 %v2221_v9, %v2169_v22  ;;  %v7588_v49 = vld [vmem:[%s15608_s6 + $0x340] sm:$0xff]  ;;  %v7587_v22 = vld [vmem:[%s15608_s6 + $0x338] sm:$0xff] }
 0x451   : > { %2631 = vmatpush.msrb.mxu2 %v7596_v33 }
 0x452   : > { %2343 = vmatmul.f32.gmra.mxu3 %v10896_v53  ;;  %2375 = vmatmul.f32.gmra.mxu0 %v10896_v53 }
 0x453   : > { %2445 = vmatmul.f32.gmra.mxu1 %v10896_v53  ;;  %v2206_v55 = vpop.f32.mrf.mxu2  ;;  %2632 = vmatpush.msrb.mxu2 %v7594_v57 }
 0x454   : > { %v2207_v13 = vadd.f32 %v2206_v55, %v10826_v48  ;;  %v7584_v55 = vld [vmem:[%s15608_s6 + $0x320] sm:$0xff] }
 0x455   : > { %v2171_v59 = vpop.f32.mrf.mxu1  ;;  %2633 = vmatpush.msrb.mxu2 %v7592_v39 }
 0x456   : > { %v2236_v32 = vadd.f32 %v2207_v13, %v10478_v18  ;;  %v2172_v0 = vadd.f32 %v2171_v59, %v2139_v56 }
 0x457   : > { %2634 = vmatpush.msrb.mxu2 %v7590_v41 }
 0x458   : > { %v10907_v30 = vmul.f32 0.999995, %v2236_v32  ;;  %v10909_v63 = vadd.f32 %v2223_v5, %v2172_v0  ;;  %v7583_v32 = vld [vmem:[%s15608_s6 + $0x318] sm:$0xff]  ;;  %v7582_v0 = vld [vmem:[%s15608_s6 + $0x310] sm:$0xff]  ;;  %v7581_v5 = vld [vmem:[%s15608_s6 + $0x308] sm:$0xff] }
 0x459   : > { %2635 = vmatpush.msrb.mxu2 %v7588_v49 }
 0x45a   : > { %2346 = vmatmul.f32.gmra.mxu3 %v10907_v30  ;;  %2378 = vmatmul.f32.gmra.mxu0 %v10907_v30 }
 0x45b   : > { %2448 = vmatmul.f32.gmra.mxu1 %v10907_v30  ;;  %v2209_v10 = vpop.f32.mrf.mxu2  ;;  %2636 = vmatpush.msrb.mxu2 %v7586_v50 }
 0x45c   : > { %v2210_v27 = vadd.f32 %v2209_v10, %v10826_v48 }
 0x45d   : > { %v2174_v23 = vpop.f32.mrf.mxu1  ;;  %2637 = vmatpush.msrb.mxu2 %v7584_v55 }
 0x45e   : > { %v2237_v18 = vadd.f32 %v2210_v27, %v10485_v31  ;;  %v2175_v38 = vadd.f32 %v2174_v23, %v2139_v56 }
 0x45f   : > { %2638 = vmatpush.msrb.mxu2 %v7582_v0 }
 0x460   : > { %v10917_v42 = vmul.f32 0.999995, %v2237_v18  ;;  %v10919_v7 = vadd.f32 %v2225_v8, %v2175_v38 }
 0x461   : > { %2639 = vmatpush.msrb.mxu2 %v7580_v45 }
 0x462   : > { %2349 = vmatmul.f32.gmra.mxu3 %v10917_v42  ;;  %2381 = vmatmul.f32.gmra.mxu0 %v10917_v42 }
 0x463   : > { %2451 = vmatmul.f32.gmra.mxu1 %v10917_v42  ;;  %v2212_v47 = vpop.f32.mrf.mxu2 }
 0x464   : > { %v2213_v15 = vadd.f32 %v2212_v47, %v10826_v48 }
 0x466   : > { %v2238_v12 = vadd.f32 %v2213_v15, %v10491_v52  ;;  %v7611_v52 = vld [vmem:[%s15608_s6 + $0x3f8] sm:$0xff] }
 0x467   : > { %2656 = vmatpush.msra.mxu0 %v7611_v52  ;;  %v11051_v52 = vperm.slane %v7579_v44, 0 }
 0x468   : > { %v10926_v16 = vmul.f32 0.999995, %v2238_v12 }
 0x46a   : > { %2384 = vmatmul.f32.gmra.mxu0 %v10926_v16  ;;  %2404 = vmatmul.f32.vlgmr.msrb.gmra.mxu3 %v10839_v6  ;;  %v7609_v6 = vld [vmem:[%s15608_s6 + $0x3e8] sm:$0xff] }
 0x46b   : > { %2454 = vmatmul.f32.gmra.mxu1 %v10926_v16  ;;  %2657 = vmatpush.msra.mxu0 %v7609_v6 }
 0x46d   : > { %2658 = vmatpush.msra.mxu0 %v7607_v17 }
 0x46f   : > { %2659 = vmatpush.msra.mxu0 %v7605_v62 }
 0x471   : > { %2660 = vmatpush.msra.mxu0 %v7603_v58 }
 0x472   : > { %2407 = vmatmul.f32.gmra.mxu3 %v10855_v14 }
 0x473   : > { %2661 = vmatpush.msra.mxu0 %v7601_v25 }
 0x475   : > { %2662 = vmatpush.msra.mxu0 %v7599_v61 }
 0x477   : > { %2663 = vmatpush.msra.mxu0 %v7597_v26 }
 0x479   : > { %2664 = vmatpush.msra.mxu0 %v7595_v34 }
 0x47a   : > { %2410 = vmatmul.f32.gmra.mxu3 %v10886_v35 }
 0x47b   : > { %2665 = vmatpush.msra.mxu0 %v7593_v28 }
 0x47d   : > { %2666 = vmatpush.msra.mxu0 %v7591_v43 }
 0x47f   : > { %2667 = vmatpush.msra.mxu0 %v7589_v46 }
 0x481   : > { %2668 = vmatpush.msra.mxu0 %v7587_v22 }
 0x482   : > { %2413 = vmatmul.f32.gmra.mxu3 %v10896_v53 }
 0x483   : > { %2669 = vmatpush.msra.mxu0 %v7585_v36 }
 0x485   : > { %2670 = vmatpush.msra.mxu0 %v7583_v32 }
 0x487   : > { %2671 = vmatpush.msra.mxu0 %v7581_v5 }
 0x48a   : > { %2416 = vmatmul.f32.gmra.mxu3 %v10907_v30 }
 0x492   : > { %2419 = vmatmul.f32.gmra.mxu3 %v10917_v42 }
 0x4bd   : > { %v10936_v31 = vpop.f32.mrf.mxu3 }
 0x4be   : > { %v2336_v1 = vadd.f32 %v10936_v31, %v11051_v52 }
 0x4bf   : > { %v2370_v18 = vpop.f32.mrf.mxu0 }
 0x4c0   : > { %v2440_v3 = vpop.f32.mrf.mxu1  ;;  %v2371_v61 = vadd.f32 %v2370_v18, %v2336_v1 }
 0x4c5   : > { %v10941_v48 = vpop.f32.mrf.mxu3 }
 0x4c6   : > { %v2339_v31 = vadd.f32 %v10941_v48, %v11051_v52 }
 0x4c7   : > { %v2373_v20 = vpop.f32.mrf.mxu0 }
 0x4c8   : > { %v2443_v13 = vpop.f32.mrf.mxu1 }
 0x4cd   : > { %v10952_v2 = vpop.f32.mrf.mxu3 }
 0x4cf   : > { %v2376_v46 = vpop.f32.mrf.mxu0 }
 0x4d0   : > { %v2446_v8 = vpop.f32.mrf.mxu1 }
 0x4d5   : > { %v10957_v19 = vpop.f32.mrf.mxu3 }
 0x4d8   : > { %v2449_v58 = vpop.f32.mrf.mxu1 }
 0x4dd   : > { %v10974_v21 = vpop.f32.mrf.mxu3 }
 0x4e5   : > { %v11000_v56 = vpop.f32.mrf.mxu3 }
 0x4ed   : > { %v2405_v9 = vpop.f32.mrf.mxu3 }
 0x4ee   : > { %v2406_v51 = vadd.f32 %v2405_v9, %v11017_v40  ;;  %v2374_v9 = vadd.f32 %v2373_v20, %v2339_v31  ;;  %v7644_v31 = vld [vmem:[%s15606_s4 + $0x8f8] sm:$0xff] }
 0x4ef   : > { %2871 = vmatpush.msra.mxu2 %v7644_v31 }
 0x4f0   : > { %v2441_v59 = vadd.f32 %v2440_v3, %v2406_v51  ;;  %v2452_v51 = vpop.f32.mrf.mxu1 }
 0x4f2   : > { %v2464_v4 = vsub.f32 0.0, %v2441_v59 }
 0x4f4   : > { %v2470_v10 = vmul.f32 1.442695, %v2464_v4 }
 0x4f5   : > { %v2408_v27 = vpop.f32.mrf.mxu3 }
 0x4f6   : > { %8923 = vpow2.f32 %v2470_v10  ;;  %v2409_v23 = vadd.f32 %v2408_v27, %v11017_v40  ;;  %v2342_v27 = vadd.f32 %v10952_v2, %v11051_v52  ;;  %v2379_v2 = vpop.f32.mrf.mxu0 }
 0x4f8   : > { %v2444_v38 = vadd.f32 %v2443_v13, %v2409_v23 }
 0x4fa   : > { %v2465_v47 = vsub.f32 0.0, %v2444_v38 }
 0x4fc   : > { %v8924_v15 = vpop.eup %8923  ;;  %v2472_v12 = vmul.f32 1.442695, %v2465_v47 }
 0x4fd   : > { %v2482_v6 = vadd.f32 1.0, %v8924_v15  ;;  %v2411_v17 = vpop.f32.mrf.mxu3 }
 0x4fe   : > { %8925 = vpow2.f32 %v2472_v12  ;;  %v2412_v62 = vadd.f32 %v2411_v17, %v11017_v40  ;;  %v2377_v17 = vadd.f32 %v2376_v46, %v2342_v27  ;;  %v7640_v46 = vld [vmem:[%s15606_s4 + $0x8d8] sm:$0xff] }
 0x4ff   : > { %8927 = vrcp.f32 %v2482_v6  ;;  %v2497_v28 = vand.u32 2147483647, %v2482_v6  ;;  %v2499_v39 = vand.u32 2147483648, %v2482_v6  ;;  %vm2493_vm13 = vweird.f32 %v2482_v6 }
 0x500   : > { %v2447_v60 = vadd.f32 %v2446_v8, %v2412_v62 }
 0x501   : > { %vm2498_vm15 = vcmp.eq.f32.partialorder %v2497_v28, 8.507059e+37  ;;  %v2500_v13 = vor.u32 1.1754944e-38, %v2499_v39  ;;  %v7642_v28 = vld [vmem:[%s15606_s4 + $0x8e8] sm:$0xff] }
 0x502   : > { %v2466_v54 = vsub.f32 0.0, %v2447_v60  ;;  %v7674_v39 = vld [vmem:[%s15606_s4 + $0x9e8] sm:$0xff]  ;;  %2872 = vmatpush.msra.mxu2 %v7642_v28 }
 0x504   : > { %v8926_v11 = vpop.eup %8925  ;;  %v2474_v25 = vmul.f32 1.442695, %v2466_v54  ;;  %2873 = vmatpush.msra.mxu2 %v7640_v46  ;;  %v7662_v46 = vld [vmem:[%s15606_s4 + $0x988] sm:$0xff] }
 0x505   : > { %v8928_v29 = vpop.eup %8927  ;;  %v2483_v37 = vadd.f32 1.0, %v8926_v11  ;;  %v2414_v26 = vpop.f32.mrf.mxu3 }
 0x506   : > { %v2489_v33 = vmul.f32 %v8928_v29, %v2482_v6  ;;  %8929 = vpow2.f32 %v2474_v25  ;;  %v2415_v34 = vadd.f32 %v2414_v26, %v11017_v40  ;;  %vm2494_vm12 = vweird.f32 %v8928_v29  ;;  %v2455_v25 = vpop.f32.mrf.mxu1 }
 0x507   : > { %8931 = vrcp.f32 %v2483_v37  ;;  %vm2495_vm14 = vmor %vm2493_vm13, %vm2494_vm12  ;;  %v2512_v23 = vand.u32 2147483647, %v2483_v37  ;;  %v2514_v18 = vand.u32 2147483648, %v2483_v37  ;;  %vm2508_vm2 = vweird.f32 %v2483_v37 }
 0x508   : > { %v2490_v57 = vsub.f32 1.0, %v2489_v33  ;;  %v2450_v3 = vadd.f32 %v2449_v58, %v2415_v34  ;;  %8933 = vtanh.f32 %v2371_v61  ;;  %v2345_v33 = vadd.f32 %v10957_v19, %v11051_v52  ;;  %v7676_v19 = vld [vmem:[%s15606_s4 + $0x9f8] sm:$0xff] }
 0x509   : > { %vm2513_vm5 = vcmp.eq.f32.partialorder %v2512_v23, 8.507059e+37  ;;  %v2515_v1 = vor.u32 1.1754944e-38, %v2514_v18  ;;  %2906 = vmatpush.msrb.mxu0 %v7676_v19  ;;  %v7636_v23 = vld [vmem:[%s15606_s4 + $0x8b8] sm:$0xff]  ;;  %v7670_v18 = vld [vmem:[%s15606_s4 + $0x9c8] sm:$0xff] }
 0x50a   : > { %v2467_v43 = vsub.f32 0.0, %v2450_v3  ;;  %v2491_v41 = vmul.f32 %v8928_v29, %v2490_v57 }
 0x50b   : > { %2907 = vmatpush.msrb.mxu0 %v7674_v39  ;;  %v7628_v39 = vld [vmem:[%s15606_s4 + $0x878] sm:$0xff] }
 0x50c   : > { %v8930_v44 = vpop.eup %8929  ;;  %v2476_v49 = vmul.f32 1.442695, %v2467_v43  ;;  %v2492_v22 = vadd.f32 %v8928_v29, %v2491_v41 }
 0x50d   : > { %v8932_v50 = vpop.eup %8931  ;;  %v11059_v36 = vadd.f32 1.0, %v8930_v44  ;;  %v2417_v55 = vpop.f32.mrf.mxu3 }
 0x50e   : > { %8935 = vpow2.f32 %v2476_v49  ;;  %v2418_v48 = vadd.f32 %v2417_v55, %v11017_v40  ;;  %v2496_v59 = vsel %vm2495_vm14, %v8928_v29, %v2492_v22  ;;  %v2504_v32 = vmul.f32 %v8932_v50, %v2483_v37  ;;  %v8934_v0 = vpop.eup %8933  ;;  %v7643_v49 = vld [vmem:[%s15606_s4 + $0x8f0] sm:$0xff]  ;;  %v7672_v55 = vld [vmem:[%s15606_s4 + $0x9d8] sm:$0xff] }
 0x50f   : > { %8937 = vrcp.f32 %v11059_v36  ;;  %v2501_v4 = vsel %vm2498_vm15, %v2500_v13, %v2496_v59  ;;  %vm2509_vm0 = vweird.f32 %v8932_v50  ;;  %v2529_v34 = vand.u32 2147483648, %v11059_v36  ;;  %2801 = vmatpush.msra.mxu3 %v7643_v49  ;;  %v7641_v13 = vld [vmem:[%s15606_s4 + $0x8e0] sm:$0xff]  ;;  %2908 = vmatpush.msrb.mxu0 %v7672_v55  ;;  %v7667_v55 = vld [vmem:[%s15606_s4 + $0x9b0] sm:$0xff] }
 0x510   : > { %v2453_v5 = vadd.f32 %v2452_v51, %v2418_v48  ;;  %v2578_v45 = vmul.f32 %v8934_v0, %v2501_v4  ;;  %v2505_v10 = vsub.f32 1.0, %v2504_v32  ;;  %8939 = vtanh.f32 %v2374_v9  ;;  %vm2510_vm3 = vmor %vm2508_vm2, %vm2509_vm0  ;;  %v7638_v32 = vld [vmem:[%s15606_s4 + $0x8c8] sm:$0xff]  ;;  %v7639_v0 = vld [vmem:[%s15606_s4 + $0x8d0] sm:$0xff] }
 0x511   : > { %v2527_v3 = vand.u32 2147483647, %v11059_v36  ;;  %vm2523_vm7 = vweird.f32 %v11059_v36  ;;  %2802 = vmatpush.msra.mxu3 %v7641_v13  ;;  %2874 = vmatpush.msra.mxu2 %v7638_v32  ;;  %v7669_v49 = vld [vmem:[%s15606_s4 + $0x9c0] sm:$0xff] }
 0x512   : > { %v2468_v38 = vsub.f32 0.0, %v2453_v5  ;;  %2640 = vmatmul.f32.vlgmr.msrb.gmra.mxu2 %v2578_v45  ;;  %2672 = vmatmul.f32.vlgmr.msra.gmra.mxu0 %v2578_v45  ;;  %v2506_v8 = vmul.f32 %v8932_v50, %v2505_v10  ;;  %v2382_v45 = vpop.f32.mrf.mxu0  ;;  %v7629_v51 = vld [vmem:[%s15606_s4 + $0x880] sm:$0xff] }
 0x513   : > { %vm2528_vm10 = vcmp.eq.f32.partialorder %v2527_v3, 8.507059e+37  ;;  %2803 = vmatpush.msra.mxu3 %v7639_v0  ;;  %2875 = vmatpush.msra.mxu2 %v7636_v23  ;;  %v7622_v23 = vld [vmem:[%s15606_s4 + $0x848] sm:$0xff] }
 0x514   : > { %v8936_v47 = vpop.eup %8935  ;;  %v2478_v15 = vmul.f32 1.442695, %v2468_v38  ;;  %v2507_v12 = vadd.f32 %v8932_v50, %v2506_v8  ;;  %v2348_v38 = vadd.f32 %v10974_v21, %v11051_v52  ;;  %2909 = vmatpush.msrb.mxu0 %v7670_v18 }
 0x515   : > { %v8938_v6 = vpop.eup %8937  ;;  %v11065_v62 = vadd.f32 1.0, %v8936_v47  ;;  %v2420_v60 = vpop.f32.mrf.mxu3  ;;  %v7637_v47 = vld [vmem:[%s15606_s4 + $0x8c0] sm:$0xff] }
 0x516   : > { %8941 = vpow2.f32 %v2478_v15  ;;  %v2421_v20 = vadd.f32 %v2420_v60, %v11017_v40  ;;  %v2511_v54 = vsel %vm2510_vm3, %v8932_v50, %v2507_v12  ;;  %v2519_v58 = vmul.f32 %v8938_v6, %v11059_v36  ;;  %v8940_v11 = vpop.eup %8939  ;;  %v7675_v15 = vld [vmem:[%s15606_s4 + $0x9f0] sm:$0xff]  ;;  %2804 = vmatpush.msra.mxu3 %v7637_v47 }
 0x517   : > { %8943 = vrcp.f32 %v11065_v62  ;;  %v2516_v29 = vsel %vm2513_vm5, %v2515_v1, %v2511_v54  ;;  %vm2524_vm6 = vweird.f32 %v8938_v6  ;;  %v2380_v50 = vadd.f32 %v2379_v2, %v2345_v33  ;;  %v7635_v60 = vld [vmem:[%s15606_s4 + $0x8b0] sm:$0xff]  ;;  %v7673_v1 = vld [vmem:[%s15606_s4 + $0x9e0] sm:$0xff]  ;;  %v7632_v54 = vld [vmem:[%s15606_s4 + $0x898] sm:$0xff]  ;;  %2836 = vmatpush.msra.mxu1 %v7675_v15 }
 0x518   : > { %v2456_v61 = vadd.f32 %v2455_v25, %v2421_v20  ;;  %v2579_v37 = vmul.f32 %v8940_v11, %v2516_v29  ;;  %v2520_v26 = vsub.f32 1.0, %v2519_v58  ;;  %8945 = vtanh.f32 %v2377_v17  ;;  %vm11098_vm8 = vmor %vm2523_vm7, %vm2524_vm6  ;;  %v7668_v17 = vld [vmem:[%s15606_s4 + $0x9b8] sm:$0xff]  ;;  %v7666_v58 = vld [vmem:[%s15606_s4 + $0x9a8] sm:$0xff]  ;;  %2805 = vmatpush.msra.mxu3 %v7635_v60 }
 0x519   : > { %v2530_v36 = vor.u32 1.1754944e-38, %v2529_v34  ;;  %v2544_v8 = vand.u32 2147483648, %v11065_v62  ;;  %v2542_v21 = vand.u32 2147483647, %v11065_v62  ;;  %vm2538_vm12 = vweird.f32 %v11065_v62  ;;  %2910 = vmatpush.msrb.mxu0 %v7668_v17  ;;  %2837 = vmatpush.msra.mxu1 %v7673_v1  ;;  %v7623_v15 = vld [vmem:[%s15606_s4 + $0x850] sm:$0xff]  ;;  %v7621_v1 = vld [vmem:[%s15606_s4 + $0x840] sm:$0xff] }
 0x51a   : > { %v2469_v57 = vsub.f32 0.0, %v2456_v61  ;;  %2642 = vmatmul.f32.gmra.mxu2 %v2579_v37  ;;  %2675 = vmatmul.f32.gmra.mxu0 %v2579_v37  ;;  %v2521_v40 = vmul.f32 %v8938_v6, %v2520_v26  ;;  %v2383_v25 = vadd.f32 %v2382_v45, %v2348_v38  ;;  %v7633_v37 = vld [vmem:[%s15606_s4 + $0x8a0] sm:$0xff]  ;;  %v7671_v26 = vld [vmem:[%s15606_s4 + $0x9d0] sm:$0xff] }
 0x51b   : > { %vm2543_vm14 = vcmp.eq.f32.partialorder %v2542_v21, 8.507059e+37  ;;  %2911 = vmatpush.msrb.mxu0 %v7666_v58  ;;  %2806 = vmatpush.msra.mxu3 %v7633_v37  ;;  %v7619_v61 = vld [vmem:[%s15606_s4 + $0x830] sm:$0xff]  ;;  %v7617_v37 = vld [vmem:[%s15606_s4 + $0x820] sm:$0xff] }
 0x51c   : > { %v8942_v43 = vpop.eup %8941  ;;  %v2480_v41 = vmul.f32 1.442695, %v2469_v57  ;;  %v2522_v44 = vadd.f32 %v8938_v6, %v2521_v40  ;;  %v7630_v57 = vld [vmem:[%s15606_s4 + $0x888] sm:$0xff]  ;;  %v7664_v40 = vld [vmem:[%s15606_s4 + $0x998] sm:$0xff]  ;;  %2838 = vmatpush.msra.mxu1 %v7671_v26  ;;  %v7659_v26 = vld [vmem:[%s15606_s4 + $0x970] sm:$0xff] }
 0x51d   : > { %v11093_v22 = vpop.eup %8943  ;;  %v11095_v9 = vadd.f32 1.0, %v8942_v43  ;;  %v7631_v43 = vld [vmem:[%s15606_s4 + $0x890] sm:$0xff]  ;;  %2912 = vmatpush.msrb.mxu0 %v7664_v40  ;;  %v7656_v40 = vld [vmem:[%s15606_s4 + $0x958] sm:$0xff] }
 0x51e   : > { %8947 = vpow2.f32 %v2480_v41  ;;  %v2526_v48 = vsel %vm11098_vm8, %v8938_v6, %v2522_v44  ;;  %v2534_v59 = vmul.f32 %v11093_v22, %v11065_v62  ;;  %v8946_v4 = vpop.eup %8945  ;;  %vm2539_vm11 = vweird.f32 %v11093_v22  ;;  %v7634_v6 = vld [vmem:[%s15606_s4 + $0x8a8] sm:$0xff]  ;;  %2807 = vmatpush.msra.mxu3 %v7631_v43  ;;  %2839 = vmatpush.msra.mxu1 %v7669_v49  ;;  %v7653_v43 = vld [vmem:[%s15606_s4 + $0x940] sm:$0xff]  ;;  %v7648_v49 = vld [vmem:[%s15606_s4 + $0x918] sm:$0xff] }
 0x51f   : > { %8949 = vrcp.f32 %v11095_v9  ;;  %v2531_v5 = vsel %vm2528_vm10, %v2530_v36, %v2526_v48  ;;  %vm11163_vm13 = vmor %vm2538_vm12, %vm2539_vm11  ;;  %v2545_v62 = vor.u32 1.1754944e-38, %v2544_v8  ;;  %2876 = vmatpush.msra.mxu2 %v7634_v6  ;;  %v2351_v41 = vadd.f32 %v11000_v56, %v11051_v52  ;;  %v7626_v52 = vld [vmem:[%s15606_s4 + $0x868] sm:$0xff]  ;;  %v7660_v36 = vld [vmem:[%s15606_s4 + $0x978] sm:$0xff]  ;;  %2913 = vmatpush.msrb.mxu0 %v7662_v46 }
 0x520   : > { %v2580_v10 = vmul.f32 %v8946_v4, %v2531_v5  ;;  %v2535_v27 = vsub.f32 1.0, %v2534_v59  ;;  %8951 = vtanh.f32 %v2380_v50  ;;  %v2559_v44 = vand.u32 2147483648, %v11095_v9  ;;  %v7627_v48 = vld [vmem:[%s15606_s4 + $0x870] sm:$0xff]  ;;  %v7624_v59 = vld [vmem:[%s15606_s4 + $0x858] sm:$0xff]  ;;  %2808 = vmatpush.msra.mxu3 %v7629_v51  ;;  %v7658_v5 = vld [vmem:[%s15606_s4 + $0x968] sm:$0xff]  ;;  %2840 = vmatpush.msra.mxu1 %v7667_v55 }
 0x521   : > { %2877 = vmatpush.msra.mxu2 %v7632_v54  ;;  %v2557_v56 = vand.u32 2147483647, %v11095_v9  ;;  %vm2553_vm0 = vweird.f32 %v11095_v9  ;;  %2914 = vmatpush.msrb.mxu0 %v7660_v36  ;;  %v7663_v6 = vld [vmem:[%s15606_s4 + $0x990] sm:$0xff]  ;;  %v7649_v46 = vld [vmem:[%s15606_s4 + $0x920] sm:$0xff] }
 0x522   : > { %2644 = vmatmul.f32.gmra.mxu2 %v2580_v10  ;;  %2678 = vmatmul.f32.gmra.mxu0 %v2580_v10  ;;  %v2536_v12 = vmul.f32 %v11093_v22, %v2535_v27  ;;  %v2560_v4 = vor.u32 1.1754944e-38, %v2559_v44  ;;  %v7625_v27 = vld [vmem:[%s15606_s4 + $0x860] sm:$0xff]  ;;  %v7651_v44 = vld [vmem:[%s15606_s4 + $0x930] sm:$0xff] }
 0x523   : > { %2878 = vmatpush.msra.mxu2 %v7630_v57  ;;  %vm2558_vm3 = vcmp.eq.f32.partialorder %v2557_v56, 8.507059e+37  ;;  %2809 = vmatpush.msra.mxu3 %v7627_v48  ;;  %v7657_v57 = vld [vmem:[%s15606_s4 + $0x960] sm:$0xff] }
 0x524   : > { %v8948_v2 = vpop.eup %8947  ;;  %v2537_v20 = vadd.f32 %v11093_v22, %v2536_v12  ;;  %2915 = vmatpush.msrb.mxu0 %v7658_v5  ;;  %v7620_v12 = vld [vmem:[%s15606_s4 + $0x838] sm:$0xff]  ;;  %v7645_v56 = vld [vmem:[%s15606_s4 + $0x900] sm:$0xff] }
 0x525   : > { %v11157_v11 = vpop.eup %8949  ;;  %v11159_v29 = vadd.f32 1.0, %v8948_v2  ;;  %2879 = vmatpush.msra.mxu2 %v7628_v39  ;;  %2810 = vmatpush.msra.mxu3 %v7625_v27  ;;  %v7652_v39 = vld [vmem:[%s15606_s4 + $0x938] sm:$0xff] }
 0x526   : > { %v2541_v33 = vsel %vm11163_vm13, %v11093_v22, %v2537_v20  ;;  %v2549_v34 = vmul.f32 %v11157_v11, %v11095_v9  ;;  %v8952_v3 = vpop.eup %8951  ;;  %v2385_v22 = vpop.f32.mrf.mxu0  ;;  %vm2554_vm15 = vweird.f32 %v11157_v11  ;;  %v7665_v9 = vld [vmem:[%s15606_s4 + $0x9a0] sm:$0xff]  ;;  %2916 = vmatpush.msrb.mxu0 %v7656_v40 }
 0x527   : > { %8953 = vrcp.f32 %v11159_v29  ;;  %v2546_v31 = vsel %vm2543_vm14, %v2545_v62, %v2541_v33  ;;  %v2386_v0 = vadd.f32 %v2385_v22, %v2351_v41  ;;  %vm2555_vm2 = vmor %vm2553_vm0, %vm2554_vm15  ;;  %2880 = vmatpush.msra.mxu2 %v7626_v52  ;;  %2841 = vmatpush.msra.mxu1 %v7665_v9  ;;  %v2574_v21 = vand.u32 2147483648, %v11159_v29  ;;  %v7618_v62 = vld [vmem:[%s15606_s4 + $0x828] sm:$0xff]  ;;  %v7615_v33 = vld [vmem:[%s15606_s4 + $0x810] sm:$0xff] }
 0x528   : > { %v2581_v28 = vmul.f32 %v8952_v3, %v2546_v31  ;;  %v2550_v19 = vsub.f32 1.0, %v2549_v34  ;;  %8955 = vtanh.f32 %v2383_v25  ;;  %v2572_v60 = vand.u32 2147483647, %v11159_v29  ;;  %2811 = vmatpush.msra.mxu3 %v7623_v15  ;;  %v7616_v34 = vld [vmem:[%s15606_s4 + $0x818] sm:$0xff]  ;;  %v7654_v3 = vld [vmem:[%s15606_s4 + $0x948] sm:$0xff]  ;;  %v7613_v31 = vld [vmem:[%s15606_s4 + $0x800] sm:$0xff] }
 0x529   : > { %2881 = vmatpush.msra.mxu2 %v7624_v59  ;;  %8957 = vtanh.f32 %v2386_v0  ;;  %vm2568_vm6 = vweird.f32 %v11159_v29  ;;  %2842 = vmatpush.msra.mxu1 %v7663_v6  ;;  %v2575_v20 = vor.u32 1.1754944e-38, %v2574_v21  ;;  %v7650_v41 = vld [vmem:[%s15606_s4 + $0x928] sm:$0xff]  ;;  %v7647_v22 = vld [vmem:[%s15606_s4 + $0x910] sm:$0xff]  ;;  %v7612_v52 = vld [vmem:[%s15609_s7 + $0x6] sm:$0x3] }
 0x52a   : > { %2646 = vmatmul.f32.gmra.mxu2 %v2581_v28  ;;  %2681 = vmatmul.f32.gmra.mxu0 %v2581_v28  ;;  %v2551_v50 = vmul.f32 %v11157_v11, %v2550_v19  ;;  %vm2573_vm8 = vcmp.eq.f32.partialorder %v2572_v60, 8.507059e+37  ;;  %v7614_v28 = vld [vmem:[%s15606_s4 + $0x808] sm:$0xff]  ;;  %v7655_v19 = vld [vmem:[%s15606_s4 + $0x950] sm:$0xff]  ;;  %v2621_v51 = vperm.slane %v7612_v52, 1  ;;  %v7709_v21 = vld [vmem:[%s15608_s6 + $0x4f8] sm:$0xff] }
 0x52b   : > { %2882 = vmatpush.msra.mxu2 %v7622_v23  ;;  %2812 = vmatpush.msra.mxu3 %v7621_v1  ;;  %v7705_v60 = vld [vmem:[%s15608_s6 + $0x4d8] sm:$0xff] }
 0x52c   : > { %v2552_v13 = vadd.f32 %v11157_v11, %v2551_v50  ;;  %2917 = vmatpush.msrb.mxu0 %v7654_v3  ;;  %v7646_v50 = vld [vmem:[%s15606_s4 + $0x908] sm:$0xff] }
 0x52d   : > { %v8954_v32 = vpop.eup %8953  ;;  %2883 = vmatpush.msra.mxu2 %v7620_v12  ;;  %2813 = vmatpush.msra.mxu3 %v7619_v61 }
 0x52e   : > { %v2556_v45 = vsel %vm2555_vm2, %v11157_v11, %v2552_v13  ;;  %v2564_v10 = vmul.f32 %v8954_v32, %v11159_v29  ;;  %v8956_v18 = vpop.eup %8955  ;;  %vm2569_vm5 = vweird.f32 %v8954_v32  ;;  %v7661_v29 = vld [vmem:[%s15606_s4 + $0x980] sm:$0xff]  ;;  %2918 = vmatpush.msrb.mxu0 %v7652_v39 }
 0x52f   : > { %v2561_v38 = vsel %vm2558_vm3, %v2560_v4, %v2556_v45  ;;  %vm2570_vm7 = vmor %vm2568_vm6, %vm2569_vm5  ;;  %v8958_v58 = vpop.eup %8957  ;;  %2843 = vmatpush.msra.mxu1 %v7661_v29  ;;  %2884 = vmatpush.msra.mxu2 %v7618_v62 }
 0x530   : > { %v2582_v8 = vmul.f32 %v8956_v18, %v2561_v38  ;;  %v2565_v47 = vsub.f32 1.0, %v2564_v10  ;;  %2814 = vmatpush.msra.mxu3 %v7617_v37  ;;  %2919 = vmatpush.msrb.mxu0 %v7650_v41 }
 0x531   : > { %2844 = vmatpush.msra.mxu1 %v7659_v26  ;;  %2885 = vmatpush.msra.mxu2 %v7616_v34 }
 0x532   : > { %2649 = vmatmul.f32.gmra.mxu2 %v2582_v8  ;;  %2684 = vmatmul.f32.gmra.mxu0 %v2582_v8  ;;  %v2566_v17 = vmul.f32 %v8954_v32, %v2565_v47 }
 0x533   : > { %2815 = vmatpush.msra.mxu3 %v7615_v33  ;;  %2845 = vmatpush.msra.mxu1 %v7657_v57 }
 0x534   : > { %v2567_v2 = vadd.f32 %v8954_v32, %v2566_v17  ;;  %2886 = vmatpush.msra.mxu2 %v7614_v28  ;;  %2920 = vmatpush.msrb.mxu0 %v7648_v49  ;;  %v7708_v49 = vld [vmem:[%s15608_s6 + $0x4f0] sm:$0xff] }
 0x535   : > { %2816 = vmatpush.msra.mxu3 %v7613_v31  ;;  %2846 = vmatpush.msra.mxu1 %v7655_v19 }
 0x536   : > { %v2571_v54 = vsel %vm2570_vm7, %v8954_v32, %v2567_v2  ;;  %2921 = vmatpush.msrb.mxu0 %v7646_v50  ;;  %v2620_v2 = vperm.slane %v7612_v52, 0  ;;  %v7704_v50 = vld [vmem:[%s15608_s6 + $0x4d0] sm:$0xff] }
 0x537   : > { %v2576_v11 = vsel %vm2573_vm8, %v2575_v20, %v2571_v54  ;;  %2847 = vmatpush.msra.mxu1 %v7653_v43  ;;  %3107 = vmatpush.msrb.mxu3 %v7708_v49  ;;  %v7700_v52 = vld [vmem:[%s15608_s6 + $0x4b0] sm:$0xff] }
 0x538   : > { %v2583_v25 = vmul.f32 %v8958_v58, %v2576_v11 }
 0x539   : > { %2848 = vmatpush.msra.mxu1 %v7651_v44 }
 0x53a   : > { %2652 = vmatmul.f32.gmra.mxu2 %v2583_v25  ;;  %2687 = vmatmul.f32.gmra.mxu0 %v2583_v25 }
 0x53b   : > { %2849 = vmatpush.msra.mxu1 %v7649_v46  ;;  %v7701_v46 = vld [vmem:[%s15608_s6 + $0x4b8] sm:$0xff] }
 0x53d   : > { %2850 = vmatpush.msra.mxu1 %v7647_v22  ;;  %v7706_v22 = vld [vmem:[%s15608_s6 + $0x4e0] sm:$0xff] }
 0x53e   : > { %3108 = vmatpush.msrb.mxu3 %v7706_v22 }
 0x53f   : > { %2851 = vmatpush.msra.mxu1 %v7645_v56  ;;  %v7702_v56 = vld [vmem:[%s15608_s6 + $0x4c0] sm:$0xff] }
 0x540   : > { %3109 = vmatpush.msrb.mxu3 %v7704_v50 }
 0x541   : > { %3139 = vmatpush.msrb.mxu1 %v7709_v21  ;;  %v7682_v21 = vld [vmem:[%s15608_s6 + $0x420] sm:$0xff] }
 0x542   : > { %3110 = vmatpush.msrb.mxu3 %v7702_v56 }
 0x544   : > { %3111 = vmatpush.msrb.mxu3 %v7700_v52 }
 0x58f   : > { %v2673_v36 = vpop.f32.mrf.mxu0 }
 0x590   : > { %v2674_v55 = vadd.f32 %v2673_v36, %v2621_v51  ;;  %v7698_v36 = vld [vmem:[%s15608_s6 + $0x4a0] sm:$0xff] }
 0x591   : > { %3112 = vmatpush.msrb.mxu3 %v7698_v36 }
 0x592   : > { %v2694_v13 = vadd.f32 %v2674_v55, %v10855_v14  ;;  %v7697_v55 = vld [vmem:[%s15608_s6 + $0x498] sm:$0xff] }
 0x594   : > { %v2700_v48 = vmul.f32 0.999995, %v2694_v13  ;;  %v7696_v13 = vld [vmem:[%s15608_s6 + $0x490] sm:$0xff] }
 0x595   : > { %v2641_v59 = vpop.f32.mrf.mxu2  ;;  %3113 = vmatpush.msrb.mxu3 %v7696_v13 }
 0x596   : > { %2817 = vmatmul.f32.vlgmr.msra.gmra.mxu3 %v2700_v48  ;;  %2887 = vmatmul.f32.vlgmr.msra.gmra.mxu2 %v2700_v48  ;;  %v2712_v45 = vrot.slane %v2700_v48, 1  ;;  %v7695_v48 = vld [vmem:[%s15608_s6 + $0x488] sm:$0xff]  ;;  %v7694_v59 = vld [vmem:[%s15608_s6 + $0x480] sm:$0xff] }
 0x597   : > { %v2676_v32 = vpop.f32.mrf.mxu0  ;;  %3114 = vmatpush.msrb.mxu3 %v7694_v59 }
 0x598   : > { %v2677_v0 = vadd.f32 %v2676_v32, %v2621_v51  ;;  %v7693_v32 = vld [vmem:[%s15608_s6 + $0x478] sm:$0xff] }
 0x59a   : > { %v2695_v4 = vadd.f32 %v2677_v0, %v10886_v35  ;;  %v7692_v0 = vld [vmem:[%s15608_s6 + $0x470] sm:$0xff] }
 0x59b   : > { %3115 = vmatpush.msrb.mxu3 %v7692_v0 }
 0x59c   : > { %v2701_v9 = vmul.f32 0.999995, %v2695_v4  ;;  %v7691_v4 = vld [vmem:[%s15608_s6 + $0x468] sm:$0xff] }
 0x59d   : > { %v2643_v5 = vpop.f32.mrf.mxu2 }
 0x59e   : > { %v2713_v10 = vrot.slane %v2701_v9, 1  ;;  %2820 = vmatmul.f32.gmra.mxu3 %v2701_v9  ;;  %2890 = vmatmul.f32.gmra.mxu2 %v2701_v9  ;;  %v7690_v9 = vld [vmem:[%s15608_s6 + $0x460] sm:$0xff]  ;;  %v7677_v5 = vld [vmem:[%s15607_s5 + $0x8] sm:$0x3] }
 0x59f   : > { %v2679_v27 = vpop.f32.mrf.mxu0  ;;  %3116 = vmatpush.msrb.mxu3 %v7690_v9 }
 0x5a0   : > { %v2680_v23 = vadd.f32 %v2679_v27, %v2621_v51  ;;  %v11326_v18 = vsel %vm554_vm1, %v2712_v45, %v2713_v10  ;;  %v7689_v45 = vld [vmem:[%s15608_s6 + $0x458] sm:$0xff]  ;;  %v11442_v27 = vperm.slane %v7677_v5, 1 }
 0x5a1   : > { %2852 = vmatmul.f32.vlgmr.msra.gmra.mxu1 %v11326_v18  ;;  %2922 = vmatmul.f32.vlgmr.msrb.gmra.mxu0 %v11326_v18 }
 0x5a2   : > { %v2696_v14 = vadd.f32 %v2680_v23, %v10896_v53  ;;  %v7707_v53 = vld [vmem:[%s15608_s6 + $0x4e8] sm:$0xff] }
 0x5a3   : > { %3140 = vmatpush.msrb.mxu1 %v7707_v53 }
 0x5a4   : > { %v2702_v38 = vmul.f32 0.999995, %v2696_v14  ;;  %v7687_v14 = vld [vmem:[%s15608_s6 + $0x448] sm:$0xff] }
 0x5a5   : > { %v2645_v8 = vpop.f32.mrf.mxu2  ;;  %3141 = vmatpush.msrb.mxu1 %v7705_v60  ;;  %v7680_v60 = vld [vmem:[%s15608_s6 + $0x410] sm:$0xff] }
 0x5a6   : > { %2823 = vmatmul.f32.gmra.mxu3 %v2702_v38  ;;  %2893 = vmatmul.f32.gmra.mxu2 %v2702_v38  ;;  %v2715_v35 = vrot.slane %v2702_v38, 1  ;;  %v7686_v38 = vld [vmem:[%s15608_s6 + $0x440] sm:$0xff]  ;;  %v7685_v8 = vld [vmem:[%s15608_s6 + $0x438] sm:$0xff] }
 0x5a7   : > { %v2682_v47 = vpop.f32.mrf.mxu0 }
 0x5a8   : > { %v2683_v15 = vadd.f32 %v2682_v47, %v2621_v51  ;;  %v11332_v12 = vsel %vm554_vm1, %v2713_v10, %v2715_v35  ;;  %v7688_v10 = vld [vmem:[%s15608_s6 + $0x450] sm:$0xff] }
 0x5a9   : > { %2855 = vmatmul.f32.gmra.mxu1 %v11332_v12  ;;  %2925 = vmatmul.f32.gmra.mxu0 %v11332_v12 }
 0x5aa   : > { %v2697_v6 = vadd.f32 %v2683_v15, %v10907_v30  ;;  %3117 = vmatpush.msrb.mxu3 %v7688_v10  ;;  %v7683_v15 = vld [vmem:[%s15608_s6 + $0x428] sm:$0xff] }
 0x5ac   : > { %v2703_v17 = vmul.f32 0.999995, %v2697_v6  ;;  %3118 = vmatpush.msrb.mxu3 %v7686_v38 }
 0x5ad   : > { %v2647_v1 = vpop.f32.mrf.mxu2 }
 0x5ae   : > { %2826 = vmatmul.f32.gmra.mxu3 %v2703_v17  ;;  %2896 = vmatmul.f32.gmra.mxu2 %v2703_v17  ;;  %v2717_v20 = vrot.slane %v2703_v17, 1  ;;  %v2648_v30 = vadd.f32 %v2647_v1, %v2620_v2  ;;  %v7681_v17 = vld [vmem:[%s15608_s6 + $0x418] sm:$0xff] }
 0x5af   : > { %v2685_v54 = vpop.f32.mrf.mxu0 }
 0x5b0   : > { %v2686_v58 = vadd.f32 %v2685_v54, %v2621_v51  ;;  %v11347_v11 = vsel %vm554_vm1, %v2715_v35, %v2717_v20  ;;  %v2691_v62 = vadd.f32 %v2648_v30, %v10898_v24  ;;  %v7684_v35 = vld [vmem:[%s15608_s6 + $0x430] sm:$0xff]  ;;  %v7678_v54 = vld [vmem:[%s15608_s6 + $0x400] sm:$0xff] }
 0x5b1   : > { %2858 = vmatmul.f32.gmra.mxu1 %v11347_v11  ;;  %2928 = vmatmul.f32.gmra.mxu0 %v11347_v11 }
 0x5b2   : > { %v2698_v25 = vadd.f32 %v2686_v58, %v10917_v42  ;;  %v3177_v42 = vrot.slane %v2691_v62, 1  ;;  %3119 = vmatpush.msrb.mxu3 %v7684_v35 }
 0x5b4   : > { %v2704_v61 = vmul.f32 0.999995, %v2698_v25  ;;  %3120 = vmatpush.msrb.mxu3 %v7682_v21 }
 0x5b5   : > { %v2650_v29 = vpop.f32.mrf.mxu2 }
 0x5b6   : > { %v2651_v37 = vadd.f32 %v2650_v29, %v2620_v2  ;;  %2829 = vmatmul.f32.gmra.mxu3 %v2704_v61  ;;  %2899 = vmatmul.f32.gmra.mxu2 %v2704_v61  ;;  %v2719_v26 = vrot.slane %v2704_v61, 1 }
 0x5b7   : > { %v2688_v33 = vpop.f32.mrf.mxu0  ;;  %3121 = vmatpush.msrb.mxu3 %v7680_v60 }
 0x5b8   : > { %v2692_v34 = vadd.f32 %v2651_v37, %v10909_v63  ;;  %v2689_v57 = vadd.f32 %v2688_v33, %v2621_v51  ;;  %v11355_v40 = vsel %vm554_vm1, %v2717_v20, %v2719_v26  ;;  %v7699_v51 = vld [vmem:[%s15608_s6 + $0x4a8] sm:$0xff] }
 0x5b9   : > { %2861 = vmatmul.f32.gmra.mxu1 %v11355_v40  ;;  %2931 = vmatmul.f32.gmra.mxu0 %v11355_v40  ;;  %v7679_v20 = vld [vmem:[%s15608_s6 + $0x408] sm:$0xff] }
 0x5ba   : > { %v3178_v3 = vrot.slane %v2692_v34, 1  ;;  %v2699_v31 = vadd.f32 %v2689_v57, %v10926_v16  ;;  %3122 = vmatpush.msrb.mxu3 %v7678_v54 }
 0x5bc   : > { %v2705_v24 = vmul.f32 0.999995, %v2699_v31  ;;  %v11361_v28 = vsel %vm554_vm1, %v3177_v42, %v3178_v3 }
 0x5bd   : > { %v2653_v19 = vpop.f32.mrf.mxu2 }
 0x5be   : > { %v2654_v39 = vadd.f32 %v2653_v19, %v2620_v2  ;;  %v11363_v43 = vrot.slane %v2705_v24, 1  ;;  %2832 = vmatmul.f32.gmra.mxu3 %v2705_v24  ;;  %2902 = vmatmul.f32.gmra.mxu2 %v2705_v24 }
 0x5c0   : > { %v11366_v63 = vadd.f32 %v2654_v39, %v10919_v7  ;;  %v11370_v41 = vsel %vm554_vm1, %v2719_v26, %v11363_v43  ;;  %v7703_v7 = vld [vmem:[%s15608_s6 + $0x4c8] sm:$0xff] }
 0x5c1   : > { %2864 = vmatmul.f32.gmra.mxu1 %v11370_v41  ;;  %2934 = vmatmul.f32.gmra.mxu0 %v11370_v41 }
 0x5c2   : > { %v3180_v16 = vrot.slane %v11366_v63, 1  ;;  %3142 = vmatpush.msrb.mxu1 %v7703_v7  ;;  %v7801_v63 = vld [vmem:[%s15608_s6 + $0x5c8] sm:$0xff] }
 0x5c4   : > { %v11378_v44 = vsel %vm554_vm1, %v3178_v3, %v3180_v16  ;;  %3143 = vmatpush.msrb.mxu1 %v7701_v46  ;;  %v11477_v3 = vperm.slane %v7677_v5, 0 }
 0x5c6   : > { %3144 = vmatpush.msrb.mxu1 %v7699_v51 }
 0x5c8   : > { %3145 = vmatpush.msrb.mxu1 %v7697_v55 }
 0x5c9   : > { %2867 = vmatmul.f32.gmra.mxu1 %v11363_v43  ;;  %2937 = vmatmul.f32.gmra.mxu0 %v11363_v43 }
 0x5ca   : > { %3146 = vmatpush.msrb.mxu1 %v7695_v48 }
 0x5cc   : > { %3147 = vmatpush.msrb.mxu1 %v7693_v32 }
 0x5ce   : > { %3148 = vmatpush.msrb.mxu1 %v7691_v4 }
 0x5d0   : > { %3149 = vmatpush.msrb.mxu1 %v7689_v45 }
 0x5d2   : > { %3150 = vmatpush.msrb.mxu1 %v7687_v14 }
 0x5d4   : > { %3151 = vmatpush.msrb.mxu1 %v7685_v8 }
 0x5d6   : > { %3152 = vmatpush.msrb.mxu1 %v7683_v15 }
 0x5d8   : > { %3153 = vmatpush.msrb.mxu1 %v7681_v17 }
 0x5da   : > { %3154 = vmatpush.msrb.mxu1 %v7679_v20 }
 0x619   : > { %v2888_v23 = vpop.f32.mrf.mxu2  ;;  %v2818_v30 = vpop.f32.mrf.mxu3 }
 0x61a   : > { %v2889_v47 = vadd.f32 %v2888_v23, %v11442_v27  ;;  %v2819_v49 = vadd.f32 %v2818_v30, %v11477_v3 }
 0x61e   : > { %v2923_v53 = vpop.f32.mrf.mxu0  ;;  %v2853_v29 = vpop.f32.mrf.mxu1 }
 0x61f   : > { %v2924_v6 = vadd.f32 %v2923_v53, %v2889_v47  ;;  %v2854_v52 = vadd.f32 %v2853_v29, %v2819_v49 }
 0x621   : > { %v2947_v1 = vsub.f32 0.0, %v2924_v6  ;;  %v2891_v2 = vpop.f32.mrf.mxu2  ;;  %v2821_v24 = vpop.f32.mrf.mxu3 }
 0x622   : > { %v2892_v25 = vadd.f32 %v2891_v2, %v11442_v27  ;;  %v2822_v10 = vadd.f32 %v2821_v24, %v11477_v3 }
 0x623   : > { %v2953_v58 = vmul.f32 1.442695, %v2947_v1 }
 0x625   : > { %8959 = vpow2.f32 %v2953_v58 }
 0x626   : > { %v2926_v61 = vpop.f32.mrf.mxu0  ;;  %v2856_v39 = vpop.f32.mrf.mxu1 }
 0x627   : > { %v2927_v62 = vadd.f32 %v2926_v61, %v2892_v25  ;;  %v2857_v47 = vadd.f32 %v2856_v39, %v2822_v10 }
 0x629   : > { %v2948_v37 = vsub.f32 0.0, %v2927_v62  ;;  %v2894_v26 = vpop.f32.mrf.mxu2  ;;  %v2824_v9 = vpop.f32.mrf.mxu3 }
 0x62a   : > { %v2895_v42 = vadd.f32 %v2894_v26, %v11442_v27  ;;  %v2825_v62 = vadd.f32 %v2824_v9, %v11477_v3  ;;  %v7772_v9 = vld [vmem:[%s15606_s4 + $0xbe8] sm:$0xff] }
 0x62b   : > { %v8960_v33 = vpop.eup %8959  ;;  %v2955_v34 = vmul.f32 1.442695, %v2948_v37 }
 0x62c   : > { %v2965_v57 = vadd.f32 1.0, %v8960_v33 }
 0x62d   : > { %8961 = vpow2.f32 %v2955_v34 }
 0x62e   : > { %8963 = vrcp.f32 %v2965_v57  ;;  %v2929_v31 = vpop.f32.mrf.mxu0  ;;  %v2982_v32 = vand.u32 2147483648, %v2965_v57  ;;  %v2980_v0 = vand.u32 2147483647, %v2965_v57  ;;  %vm2976_vm11 = vweird.f32 %v2965_v57  ;;  %v2859_v14 = vpop.f32.mrf.mxu1 }
 0x62f   : > { %v2930_v19 = vadd.f32 %v2929_v31, %v2895_v42  ;;  %v2860_v31 = vadd.f32 %v2859_v14, %v2825_v62  ;;  %v7741_v14 = vld [vmem:[%s15606_s4 + $0xaf0] sm:$0xff] }
 0x630   : > { %vm2981_vm13 = vcmp.eq.f32.partialorder %v2980_v0, 8.507059e+37  ;;  %v2983_v21 = vor.u32 1.1754944e-38, %v2982_v32  ;;  %v7740_v32 = vld [vmem:[%s15606_s4 + $0xae8] sm:$0xff]  ;;  %3295 = vmatpush.msrb.mxu2 %v7741_v14 }
 0x631   : > { %v2949_v7 = vsub.f32 0.0, %v2930_v19  ;;  %v2897_v46 = vpop.f32.mrf.mxu2  ;;  %v2827_v33 = vpop.f32.mrf.mxu3  ;;  %v7760_v14 = vld [vmem:[%s15606_s4 + $0xb88] sm:$0xff] }
 0x632   : > { %v2898_v55 = vadd.f32 %v2897_v46, %v11442_v27  ;;  %v2828_v0 = vadd.f32 %v2827_v33, %v11477_v3 }
 0x633   : > { %v8962_v22 = vpop.eup %8961  ;;  %v2957_v50 = vmul.f32 1.442695, %v2949_v7 }
 0x634   : > { %v8964_v56 = vpop.eup %8963  ;;  %v2966_v51 = vadd.f32 1.0, %v8962_v22 }
 0x635   : > { %v2972_v36 = vmul.f32 %v8964_v56, %v2965_v57  ;;  %8965 = vpow2.f32 %v2957_v50  ;;  %vm2977_vm10 = vweird.f32 %v8964_v56 }
 0x636   : > { %8967 = vrcp.f32 %v2966_v51  ;;  %v2932_v13 = vpop.f32.mrf.mxu0  ;;  %vm2978_vm12 = vmor %vm2976_vm11, %vm2977_vm10  ;;  %v2995_v30 = vand.u32 2147483647, %v2966_v51  ;;  %v2997_v25 = vand.u32 2147483648, %v2966_v51  ;;  %vm2991_vm15 = vweird.f32 %v2966_v51  ;;  %v2862_v39 = vpop.f32.mrf.mxu1 }
 0x637   : > { %v2973_v48 = vsub.f32 1.0, %v2972_v36  ;;  %v2933_v59 = vadd.f32 %v2932_v13, %v2898_v55  ;;  %8969 = vtanh.f32 %v2854_v52 }
 0x638   : > { %vm2996_vm2 = vcmp.eq.f32.partialorder %v2995_v30, 8.507059e+37  ;;  %v2998_v19 = vor.u32 1.1754944e-38, %v2997_v25 }
 0x639   : > { %v2974_v4 = vmul.f32 %v8964_v56, %v2973_v48  ;;  %v2950_v5 = vsub.f32 0.0, %v2933_v59  ;;  %v2900_v45 = vpop.f32.mrf.mxu2  ;;  %v7742_v59 = vld [vmem:[%s15606_s4 + $0xaf8] sm:$0xff] }
 0x63a   : > { %v2901_v53 = vadd.f32 %v2900_v45, %v11442_v27  ;;  %3365 = vmatpush.msra.mxu3 %v7742_v59  ;;  %v7762_v59 = vld [vmem:[%s15606_s4 + $0xb98] sm:$0xff] }
 0x63b   : > { %v8966_v23 = vpop.eup %8965  ;;  %v2959_v38 = vmul.f32 1.442695, %v2950_v5  ;;  %v2975_v8 = vadd.f32 %v8964_v56, %v2974_v4  ;;  %v7774_v4 = vld [vmem:[%s15606_s4 + $0xbf8] sm:$0xff] }
 0x63c   : > { %v8968_v35 = vpop.eup %8967  ;;  %v11482_v15 = vadd.f32 1.0, %v8966_v23  ;;  %v7738_v23 = vld [vmem:[%s15606_s4 + $0xad8] sm:$0xff]  ;;  %3400 = vmatpush.msra.mxu1 %v7774_v4  ;;  %3366 = vmatpush.msra.mxu3 %v7740_v32 }
 0x63d   : > { %8971 = vpow2.f32 %v2959_v38  ;;  %v2979_v6 = vsel %vm2978_vm12, %v8964_v56, %v2975_v8  ;;  %v2987_v17 = vmul.f32 %v8968_v35, %v2966_v51  ;;  %v8970_v60 = vpop.eup %8969  ;;  %vm2992_vm14 = vweird.f32 %v8968_v35 }
 0x63e   : > { %8973 = vrcp.f32 %v11482_v15  ;;  %v2935_v1 = vpop.f32.mrf.mxu0  ;;  %v2984_v2 = vsel %vm2981_vm13, %v2983_v21, %v2979_v6  ;;  %vm2993_vm0 = vmor %vm2991_vm15, %vm2992_vm14  ;;  %v3012_v55 = vand.u32 2147483648, %v11482_v15  ;;  %vm3006_vm5 = vweird.f32 %v11482_v15  ;;  %v7770_v21 = vld [vmem:[%s15606_s4 + $0xbd8] sm:$0xff]  ;;  %v2830_v6 = vpop.f32.mrf.mxu3  ;;  %3401 = vmatpush.msra.mxu1 %v7772_v9  ;;  %3367 = vmatpush.msra.mxu3 %v7738_v23 }
 0x63f   : > { %v2936_v20 = vadd.f32 %v2935_v1, %v2901_v53  ;;  %v3061_v54 = vmul.f32 %v8970_v60, %v2984_v2  ;;  %v2988_v58 = vsub.f32 1.0, %v2987_v17  ;;  %8975 = vtanh.f32 %v2857_v47  ;;  %v7739_v53 = vld [vmem:[%s15606_s4 + $0xae0] sm:$0xff]  ;;  %v7736_v1 = vld [vmem:[%s15606_s4 + $0xac8] sm:$0xff]  ;;  %v7737_v2 = vld [vmem:[%s15606_s4 + $0xad0] sm:$0xff] }
 0x640   : > { %v2863_v8 = vadd.f32 %v2862_v39, %v2828_v0  ;;  %3296 = vmatpush.msrb.mxu2 %v7739_v53  ;;  %3402 = vmatpush.msra.mxu1 %v7770_v21  ;;  %v7771_v39 = vld [vmem:[%s15606_s4 + $0xbe0] sm:$0xff]  ;;  %v7724_v21 = vld [vmem:[%s15606_s4 + $0xa68] sm:$0xff] }
 0x641   : > { %v2951_v61 = vsub.f32 0.0, %v2936_v20  ;;  %3123 = vmatmul.f32.vlgmr.msrb.gmra.mxu3 %v3061_v54  ;;  %3155 = vmatmul.f32.vlgmr.msrb.gmra.mxu1 %v3061_v54  ;;  %v2989_v29 = vmul.f32 %v8968_v35, %v2988_v58  ;;  %v2903_v37 = vpop.f32.mrf.mxu2  ;;  %v2865_v58 = vpop.f32.mrf.mxu1  ;;  %v7727_v53 = vld [vmem:[%s15606_s4 + $0xa80] sm:$0xff] }
 0x642   : > { %v2904_v7 = vadd.f32 %v2903_v37, %v11442_v27  ;;  %v3010_v27 = vand.u32 2147483647, %v11482_v15  ;;  %3368 = vmatpush.msra.mxu3 %v7736_v1  ;;  %3297 = vmatpush.msrb.mxu2 %v7737_v2  ;;  %v7735_v37 = vld [vmem:[%s15606_s4 + $0xac0] sm:$0xff]  ;;  %v7725_v2 = vld [vmem:[%s15606_s4 + $0xa70] sm:$0xff] }
 0x643   : > { %v8972_v26 = vpop.eup %8971  ;;  %v2961_v34 = vmul.f32 1.442695, %v2951_v61  ;;  %v2990_v57 = vadd.f32 %v8968_v35, %v2989_v29  ;;  %v7734_v61 = vld [vmem:[%s15606_s4 + $0xab8] sm:$0xff]  ;;  %v7768_v29 = vld [vmem:[%s15606_s4 + $0xbc8] sm:$0xff] }
 0x644   : > { %v8974_v42 = vpop.eup %8973  ;;  %v11487_v24 = vadd.f32 1.0, %v8972_v26  ;;  %vm3011_vm7 = vcmp.eq.f32.partialorder %v3010_v27, 8.507059e+37  ;;  %v7773_v26 = vld [vmem:[%s15606_s4 + $0xbf0] sm:$0xff]  ;;  %3369 = vmatpush.msra.mxu3 %v7734_v61  ;;  %3403 = vmatpush.msra.mxu1 %v7768_v29  ;;  %v7728_v27 = vld [vmem:[%s15606_s4 + $0xa88] sm:$0xff]  ;;  %v7723_v29 = vld [vmem:[%s15606_s4 + $0xa60] sm:$0xff] }
 0x645   : > { %8977 = vpow2.f32 %v2961_v34  ;;  %v2994_v46 = vsel %vm2993_vm0, %v8968_v35, %v2990_v57  ;;  %v3002_v49 = vmul.f32 %v8974_v42, %v11482_v15  ;;  %v8976_v22 = vpop.eup %8975  ;;  %vm3007_vm3 = vweird.f32 %v8974_v42  ;;  %v7732_v57 = vld [vmem:[%s15606_s4 + $0xaa8] sm:$0xff]  ;;  %3298 = vmatpush.msrb.mxu2 %v7735_v37  ;;  %3330 = vmatpush.msra.mxu0 %v7773_v26 }
 0x646   : > { %8979 = vrcp.f32 %v11487_v24  ;;  %v2938_v50 = vpop.f32.mrf.mxu0  ;;  %v2999_v56 = vsel %vm2996_vm2, %v2998_v19, %v2994_v46  ;;  %vm11519_vm6 = vmor %vm3006_vm5, %vm3007_vm3  ;;  %v3013_v15 = vor.u32 1.1754944e-38, %v3012_v55  ;;  %v3027_v62 = vand.u32 2147483648, %v11487_v24  ;;  %v7733_v19 = vld [vmem:[%s15606_s4 + $0xab0] sm:$0xff]  ;;  %3370 = vmatpush.msra.mxu3 %v7732_v57  ;;  %v2833_v4 = vpop.f32.mrf.mxu3 }
 0x647   : > { %v2939_v52 = vadd.f32 %v2938_v50, %v2904_v7  ;;  %v3062_v51 = vmul.f32 %v8976_v22, %v2999_v56  ;;  %v3003_v36 = vsub.f32 1.0, %v3002_v49  ;;  %8981 = vtanh.f32 %v2860_v31  ;;  %v7730_v49 = vld [vmem:[%s15606_s4 + $0xa98] sm:$0xff]  ;;  %v7764_v22 = vld [vmem:[%s15606_s4 + $0xba8] sm:$0xff]  ;;  %v7769_v55 = vld [vmem:[%s15606_s4 + $0xbd0] sm:$0xff]  ;;  %3299 = vmatpush.msrb.mxu2 %v7733_v19  ;;  %3331 = vmatpush.msra.mxu0 %v7771_v39 }
 0x648   : > { %v3025_v34 = vand.u32 2147483647, %v11487_v24  ;;  %v2831_v31 = vadd.f32 %v2830_v6, %v11477_v3  ;;  %vm3021_vm10 = vweird.f32 %v11487_v24  ;;  %3371 = vmatpush.msra.mxu3 %v7730_v49  ;;  %v2834_v6 = vadd.f32 %v2833_v4, %v11477_v3  ;;  %v7722_v3 = vld [vmem:[%s15606_s4 + $0xa58] sm:$0xff]  ;;  %v7721_v57 = vld [vmem:[%s15606_s4 + $0xa50] sm:$0xff]  ;;  %v7752_v4 = vld [vmem:[%s15606_s4 + $0xb48] sm:$0xff] }
 0x649   : > { %v2952_v13 = vsub.f32 0.0, %v2939_v52  ;;  %3125 = vmatmul.f32.gmra.mxu3 %v3062_v51  ;;  %3158 = vmatmul.f32.gmra.mxu1 %v3062_v51  ;;  %v3004_v48 = vmul.f32 %v8974_v42, %v3003_v36  ;;  %v7731_v36 = vld [vmem:[%s15606_s4 + $0xaa0] sm:$0xff]  ;;  %v7761_v19 = vld [vmem:[%s15606_s4 + $0xb90] sm:$0xff] }
 0x64a   : > { %v2866_v56 = vadd.f32 %v2865_v58, %v2831_v31  ;;  %vm3026_vm12 = vcmp.eq.f32.partialorder %v3025_v34, 8.507059e+37  ;;  %3300 = vmatpush.msrb.mxu2 %v7731_v36  ;;  %3332 = vmatpush.msra.mxu0 %v7769_v55  ;;  %v7717_v36 = vld [vmem:[%s15606_s4 + $0xa30] sm:$0xff]  ;;  %v7716_v55 = vld [vmem:[%s15606_s4 + $0xa28] sm:$0xff] }
 0x64b   : > { %v8978_v5 = vpop.eup %8977  ;;  %v2963_v45 = vmul.f32 1.442695, %v2952_v13  ;;  %v3005_v10 = vadd.f32 %v8974_v42, %v3004_v48  ;;  %3372 = vmatpush.msra.mxu3 %v7728_v27  ;;  %v7713_v27 = vld [vmem:[%s15606_s4 + $0xa10] sm:$0xff] }
 0x64c   : > { %v11514_v38 = vpop.eup %8979  ;;  %v11516_v35 = vadd.f32 1.0, %v8978_v5 }
 0x64d   : > { %8983 = vpow2.f32 %v2963_v45  ;;  %v3009_v17 = vsel %vm11519_vm6, %v8974_v42, %v3005_v10  ;;  %v3017_v60 = vmul.f32 %v11514_v38, %v11487_v24  ;;  %v8982_v20 = vpop.eup %8981  ;;  %vm3022_vm8 = vweird.f32 %v11514_v38  ;;  %v7766_v42 = vld [vmem:[%s15606_s4 + $0xbb8] sm:$0xff]  ;;  %v7729_v10 = vld [vmem:[%s15606_s4 + $0xa90] sm:$0xff] }
 0x64e   : > { %8985 = vrcp.f32 %v11516_v35  ;;  %v3014_v54 = vsel %vm3011_vm7, %v3013_v15, %v3009_v17  ;;  %vm11583_vm11 = vmor %vm3021_vm10, %vm3022_vm8  ;;  %v3028_v24 = vor.u32 1.1754944e-38, %v3027_v62  ;;  %3404 = vmatpush.msra.mxu1 %v7766_v42  ;;  %v7726_v45 = vld [vmem:[%s15606_s4 + $0xa78] sm:$0xff]  ;;  %v3042_v23 = vand.u32 2147483648, %v11516_v35  ;;  %3301 = vmatpush.msrb.mxu2 %v7729_v10  ;;  %v7720_v62 = vld [vmem:[%s15606_s4 + $0xa48] sm:$0xff] }
 0x64f   : > { %v3063_v30 = vmul.f32 %v8982_v20, %v3014_v54  ;;  %v3018_v25 = vsub.f32 1.0, %v3017_v60  ;;  %8987 = vtanh.f32 %v2863_v8  ;;  %v2868_v8 = vpop.f32.mrf.mxu1  ;;  %v3040_v15 = vand.u32 2147483647, %v11516_v35  ;;  %3373 = vmatpush.msra.mxu3 %v7726_v45  ;;  %v7758_v17 = vld [vmem:[%s15606_s4 + $0xb78] sm:$0xff]  ;;  %v7765_v60 = vld [vmem:[%s15606_s4 + $0xbb0] sm:$0xff] }
 0x650   : > { %3405 = vmatpush.msra.mxu1 %v7764_v22  ;;  %vm3036_vm14 = vweird.f32 %v11516_v35  ;;  %v2869_v54 = vadd.f32 %v2868_v8, %v2834_v6  ;;  %v3043_v58 = vor.u32 1.1754944e-38, %v3042_v23  ;;  %3302 = vmatpush.msrb.mxu2 %v7727_v53  ;;  %v7718_v42 = vld [vmem:[%s15606_s4 + $0xa38] sm:$0xff]  ;;  %v7753_v45 = vld [vmem:[%s15606_s4 + $0xb50] sm:$0xff]  ;;  %v7751_v23 = vld [vmem:[%s15606_s4 + $0xb40] sm:$0xff] }
 0x651   : > { %3127 = vmatmul.f32.gmra.mxu3 %v3063_v30  ;;  %3161 = vmatmul.f32.gmra.mxu1 %v3063_v30  ;;  %v3019_v33 = vmul.f32 %v11514_v38, %v3018_v25  ;;  %v7756_v30 = vld [vmem:[%s15606_s4 + $0xb68] sm:$0xff]  ;;  %vm3041_vm0 = vcmp.eq.f32.partialorder %v3040_v15, 8.507059e+37  ;;  %v7750_v10 = vld [vmem:[%s15606_s4 + $0xb38] sm:$0xff]  ;;  %v7747_v8 = vld [vmem:[%s15606_s4 + $0xb20] sm:$0xff] }
 0x652   : > { %3406 = vmatpush.msra.mxu1 %v7762_v59  ;;  %3374 = vmatpush.msra.mxu3 %v7724_v21  ;;  %v7714_v59 = vld [vmem:[%s15606_s4 + $0xa18] sm:$0xff]  ;;  %v7745_v15 = vld [vmem:[%s15606_s4 + $0xb10] sm:$0xff]  ;;  %v7744_v21 = vld [vmem:[%s15606_s4 + $0xb08] sm:$0xff] }
 0x653   : > { %v8984_v7 = vpop.eup %8983  ;;  %v3020_v46 = vadd.f32 %v11514_v38, %v3019_v33  ;;  %3303 = vmatpush.msrb.mxu2 %v7725_v2  ;;  %v7743_v53 = vld [vmem:[%s15606_s4 + $0xb00] sm:$0xff]  ;;  %v7710_v6 = vld [vmem:[%s15609_s7 + $0x8] sm:$0x3] }
 0x654   : > { %v11577_v50 = vpop.eup %8985  ;;  %v11579_v52 = vadd.f32 1.0, %v8984_v7  ;;  %3407 = vmatpush.msra.mxu1 %v7760_v14  ;;  %3375 = vmatpush.msra.mxu3 %v7722_v3  ;;  %v7748_v14 = vld [vmem:[%s15606_s4 + $0xb28] sm:$0xff] }
 0x655   : > { %v3024_v13 = vsel %vm11583_vm11, %v11514_v38, %v3020_v46  ;;  %v3032_v48 = vmul.f32 %v11577_v50, %v11516_v35  ;;  %v8988_v32 = vpop.eup %8987  ;;  %v7767_v38 = vld [vmem:[%s15606_s4 + $0xbc0] sm:$0xff]  ;;  %vm3037_vm13 = vweird.f32 %v11577_v50  ;;  %3304 = vmatpush.msrb.mxu2 %v7723_v29 }
 0x656   : > { %8989 = vrcp.f32 %v11579_v52  ;;  %v3029_v0 = vsel %vm3026_vm12, %v3028_v24, %v3024_v13  ;;  %3333 = vmatpush.msra.mxu0 %v7767_v38  ;;  %vm3038_vm15 = vmor %vm3036_vm14, %vm3037_vm13  ;;  %v7763_v35 = vld [vmem:[%s15606_s4 + $0xba0] sm:$0xff]  ;;  %3408 = vmatpush.msra.mxu1 %v7758_v17  ;;  %v3057_v31 = vand.u32 2147483648, %v11579_v52  ;;  %v3055_v7 = vand.u32 2147483647, %v11579_v52  ;;  %v7749_v38 = vld [vmem:[%s15606_s4 + $0xb30] sm:$0xff] }
 0x657   : > { %v3064_v9 = vmul.f32 %v8988_v32, %v3029_v0  ;;  %v3033_v5 = vsub.f32 1.0, %v3032_v48  ;;  %8991 = vtanh.f32 %v2866_v56  ;;  %3376 = vmatpush.msra.mxu3 %v7720_v62  ;;  %v7719_v46 = vld [vmem:[%s15606_s4 + $0xa40] sm:$0xff]  ;;  %3305 = vmatpush.msrb.mxu2 %v7721_v57  ;;  %vm3051_vm3 = vweird.f32 %v11579_v52  ;;  %v7757_v48 = vld [vmem:[%s15606_s4 + $0xb70] sm:$0xff]  ;;  %v7754_v0 = vld [vmem:[%s15606_s4 + $0xb58] sm:$0xff] }
 0x658   : > { %3334 = vmatpush.msra.mxu0 %v7765_v60  ;;  %3409 = vmatpush.msra.mxu1 %v7756_v30  ;;  %8993 = vtanh.f32 %v2869_v54  ;;  %v3058_v22 = vor.u32 1.1754944e-38, %v3057_v31  ;;  %vm3056_vm6 = vcmp.eq.f32.partialorder %v3055_v7, 8.507059e+37  ;;  %v7715_v13 = vld [vmem:[%s15606_s4 + $0xa20] sm:$0xff]  ;;  %v3104_v17 = vperm.slane %v7710_v6, 1 }
 0x659   : > { %3129 = vmatmul.f32.gmra.mxu3 %v3064_v9  ;;  %3164 = vmatmul.f32.gmra.mxu1 %v3064_v9  ;;  %v3034_v47 = vmul.f32 %v11577_v50, %v3033_v5  ;;  %v7755_v32 = vld [vmem:[%s15606_s4 + $0xb60] sm:$0xff]  ;;  %v7712_v5 = vld [vmem:[%s15606_s4 + $0xa08] sm:$0xff] }
 0x65a   : > { %3335 = vmatpush.msra.mxu0 %v7763_v35  ;;  %3377 = vmatpush.msra.mxu3 %v7718_v42  ;;  %v7711_v9 = vld [vmem:[%s15606_s4 + $0xa00] sm:$0xff] }
 0x65b   : > { %v3035_v1 = vadd.f32 %v11577_v50, %v3034_v47  ;;  %3306 = vmatpush.msrb.mxu2 %v7719_v46  ;;  %3410 = vmatpush.msra.mxu1 %v7754_v0  ;;  %v7746_v47 = vld [vmem:[%s15606_s4 + $0xb18] sm:$0xff] }
 0x65c   : > { %v8990_v20 = vpop.eup %8989  ;;  %3336 = vmatpush.msra.mxu0 %v7761_v19  ;;  %3378 = vmatpush.msra.mxu3 %v7716_v55  ;;  %v7807_v19 = vld [vmem:[%s15608_s6 + $0x5f8] sm:$0xff] }
 0x65d   : > { %v3039_v25 = vsel %vm3038_vm15, %v11577_v50, %v3035_v1  ;;  %v3047_v61 = vmul.f32 %v8990_v20, %v11579_v52  ;;  %v8992_v37 = vpop.eup %8991  ;;  %vm3052_vm2 = vweird.f32 %v8990_v20  ;;  %3307 = vmatpush.msrb.mxu2 %v7717_v36  ;;  %v7759_v52 = vld [vmem:[%s15606_s4 + $0xb80] sm:$0xff]  ;;  %3411 = vmatpush.msra.mxu1 %v7752_v4  ;;  %v7803_v46 = vld [vmem:[%s15608_s6 + $0x5d8] sm:$0xff] }
 0x65e   : > { %v3044_v26 = vsel %vm3041_vm0, %v3043_v58, %v3039_v25  ;;  %vm3053_vm5 = vmor %vm3051_vm3, %vm3052_vm2  ;;  %v8994_v56 = vpop.eup %8993  ;;  %3337 = vmatpush.msra.mxu0 %v7759_v52  ;;  %3379 = vmatpush.msra.mxu3 %v7714_v59 }
 0x65f   : > { %v3065_v33 = vmul.f32 %v8992_v37, %v3044_v26  ;;  %v3048_v34 = vsub.f32 1.0, %v3047_v61  ;;  %3308 = vmatpush.msrb.mxu2 %v7715_v13  ;;  %3412 = vmatpush.msra.mxu1 %v7750_v10 }
 0x660   : > { %3338 = vmatpush.msra.mxu0 %v7757_v48  ;;  %3380 = vmatpush.msra.mxu3 %v7712_v5 }
 0x661   : > { %3132 = vmatmul.f32.gmra.mxu3 %v3065_v33  ;;  %3167 = vmatmul.f32.gmra.mxu1 %v3065_v33  ;;  %v3049_v39 = vmul.f32 %v8990_v20, %v3048_v34 }
 0x662   : > { %3309 = vmatpush.msrb.mxu2 %v7713_v27  ;;  %3339 = vmatpush.msra.mxu0 %v7755_v32 }
 0x663   : > { %v3050_v49 = vadd.f32 %v8990_v20, %v3049_v39  ;;  %3413 = vmatpush.msra.mxu1 %v7748_v14 }
 0x664   : > { %3310 = vmatpush.msrb.mxu2 %v7711_v9  ;;  %3340 = vmatpush.msra.mxu0 %v7753_v45 }
 0x665   : > { %v3054_v50 = vsel %vm3053_vm5, %v8990_v20, %v3050_v49  ;;  %3414 = vmatpush.msra.mxu1 %v7746_v47  ;;  %v7806_v47 = vld [vmem:[%s15608_s6 + $0x5f0] sm:$0xff] }
 0x666   : > { %v3059_v51 = vsel %vm3056_vm6, %v3058_v22, %v3054_v50  ;;  %3341 = vmatpush.msra.mxu0 %v7751_v23  ;;  %v3103_v22 = vperm.slane %v7710_v6, 0  ;;  %3601 = vmatpush.msra.mxu2 %v7806_v47  ;;  %v7798_v6 = vld [vmem:[%s15608_s6 + $0x5b0] sm:$0xff] }
 0x667   : > { %v3066_v24 = vmul.f32 %v8994_v56, %v3059_v51  ;;  %3415 = vmatpush.msra.mxu1 %v7744_v21  ;;  %v7802_v21 = vld [vmem:[%s15608_s6 + $0x5d0] sm:$0xff] }
 0x668   : > { %3342 = vmatpush.msra.mxu0 %v7749_v38 }
 0x669   : > { %3135 = vmatmul.f32.gmra.mxu3 %v3066_v24  ;;  %3170 = vmatmul.f32.gmra.mxu1 %v3066_v24 }
 0x66a   : > { %3343 = vmatpush.msra.mxu0 %v7747_v8 }
 0x66c   : > { %3344 = vmatpush.msra.mxu0 %v7745_v15  ;;  %v7804_v15 = vld [vmem:[%s15608_s6 + $0x5e0] sm:$0xff] }
 0x66d   : > { %3602 = vmatpush.msra.mxu2 %v7804_v15 }
 0x66e   : > { %3345 = vmatpush.msra.mxu0 %v7743_v53  ;;  %v7800_v53 = vld [vmem:[%s15608_s6 + $0x5c0] sm:$0xff] }
 0x66f   : > { %3603 = vmatpush.msra.mxu2 %v7802_v21 }
 0x670   : > { %3633 = vmatpush.msrb.mxu0 %v7807_v19  ;;  %v7780_v19 = vld [vmem:[%s15608_s6 + $0x520] sm:$0xff] }
 0x671   : > { %3604 = vmatpush.msra.mxu2 %v7800_v53 }
 0x673   : > { %3605 = vmatpush.msra.mxu2 %v7798_v6 }
 0x6be   : > { %v3156_v60 = vpop.f32.mrf.mxu1 }
 0x6bf   : > { %v3157_v1 = vadd.f32 %v3156_v60, %v3104_v17  ;;  %v7796_v60 = vld [vmem:[%s15608_s6 + $0x5a0] sm:$0xff] }
 0x6c0   : > { %3606 = vmatpush.msra.mxu2 %v7796_v60 }
 0x6c1   : > { %v3188_v2 = vadd.f32 %v3157_v1, %v11326_v18  ;;  %v7795_v1 = vld [vmem:[%s15608_s6 + $0x598] sm:$0xff] }
 0x6c3   : > { %v3194_v3 = vmul.f32 0.999995, %v3188_v2  ;;  %v7794_v2 = vld [vmem:[%s15608_s6 + $0x590] sm:$0xff] }
 0x6c4   : > { %v3124_v20 = vpop.f32.mrf.mxu3  ;;  %3607 = vmatpush.msra.mxu2 %v7794_v2 }
 0x6c5   : > { %3311 = vmatmul.f32.vlgmr.msrb.gmra.mxu2 %v3194_v3  ;;  %3381 = vmatmul.f32.vlgmr.msra.gmra.mxu3 %v3194_v3  ;;  %v3206_v61 = vrot.slane %v3194_v3, 2  ;;  %v7793_v3 = vld [vmem:[%s15608_s6 + $0x588] sm:$0xff]  ;;  %v7792_v20 = vld [vmem:[%s15608_s6 + $0x580] sm:$0xff] }
 0x6c6   : > { %v3159_v54 = vpop.f32.mrf.mxu1  ;;  %3608 = vmatpush.msra.mxu2 %v7792_v20 }
 0x6c7   : > { %v3160_v58 = vadd.f32 %v3159_v54, %v3104_v17  ;;  %v7791_v54 = vld [vmem:[%s15608_s6 + $0x578] sm:$0xff] }
 0x6c9   : > { %v3189_v35 = vadd.f32 %v3160_v58, %v11332_v12  ;;  %v7790_v58 = vld [vmem:[%s15608_s6 + $0x570] sm:$0xff] }
 0x6ca   : > { %3609 = vmatpush.msra.mxu2 %v7790_v58 }
 0x6cb   : > { %v3195_v30 = vmul.f32 0.999995, %v3189_v35  ;;  %v7789_v35 = vld [vmem:[%s15608_s6 + $0x568] sm:$0xff] }
 0x6cc   : > { %v3126_v25 = vpop.f32.mrf.mxu3 }
 0x6cd   : > { %v3207_v29 = vrot.slane %v3195_v30, 2  ;;  %3314 = vmatmul.f32.gmra.mxu2 %v3195_v30  ;;  %3384 = vmatmul.f32.gmra.mxu3 %v3195_v30  ;;  %v7788_v30 = vld [vmem:[%s15608_s6 + $0x560] sm:$0xff]  ;;  %v7775_v25 = vld [vmem:[%s15607_s5 + $0xa] sm:$0x3] }
 0x6ce   : > { %v3162_v62 = vpop.f32.mrf.mxu1  ;;  %3610 = vmatpush.msra.mxu2 %v7788_v30 }
 0x6cf   : > { %v3163_v37 = vadd.f32 %v3162_v62, %v3104_v17  ;;  %v11745_v26 = vsel %vm1120_vm4, %v3206_v61, %v3207_v29  ;;  %v7787_v61 = vld [vmem:[%s15608_s6 + $0x558] sm:$0xff]  ;;  %v11862_v62 = vperm.slane %v7775_v25, 1 }
 0x6d0   : > { %3346 = vmatmul.f32.vlgmr.msra.gmra.mxu0 %v11745_v26  ;;  %3416 = vmatmul.f32.vlgmr.msra.gmra.mxu1 %v11745_v26 }
 0x6d1   : > { %v3190_v18 = vadd.f32 %v3163_v37, %v11347_v11  ;;  %v7805_v11 = vld [vmem:[%s15608_s6 + $0x5e8] sm:$0xff] }
 0x6d2   : > { %3634 = vmatpush.msrb.mxu0 %v7805_v11 }
 0x6d3   : > { %v3196_v33 = vmul.f32 0.999995, %v3190_v18  ;;  %v7785_v18 = vld [vmem:[%s15608_s6 + $0x548] sm:$0xff] }
 0x6d4   : > { %v3128_v34 = vpop.f32.mrf.mxu3  ;;  %3635 = vmatpush.msrb.mxu0 %v7803_v46  ;;  %v7778_v46 = vld [vmem:[%s15608_s6 + $0x510] sm:$0xff] }
 0x6d5   : > { %3317 = vmatmul.f32.gmra.mxu2 %v3196_v33  ;;  %3387 = vmatmul.f32.gmra.mxu3 %v3196_v33  ;;  %v3209_v12 = vrot.slane %v3196_v33, 2  ;;  %v7784_v33 = vld [vmem:[%s15608_s6 + $0x540] sm:$0xff]  ;;  %v7783_v34 = vld [vmem:[%s15608_s6 + $0x538] sm:$0xff] }
 0x6d6   : > { %v3165_v57 = vpop.f32.mrf.mxu1  ;;  %3636 = vmatpush.msrb.mxu0 %v7801_v63 }
 0x6d7   : > { %v3166_v42 = vadd.f32 %v3165_v57, %v3104_v17  ;;  %v11751_v31 = vsel %vm1120_vm4, %v3207_v29, %v3209_v12  ;;  %v7786_v29 = vld [vmem:[%s15608_s6 + $0x550] sm:$0xff] }
 0x6d8   : > { %3349 = vmatmul.f32.gmra.mxu0 %v11751_v31  ;;  %3419 = vmatmul.f32.gmra.mxu1 %v11751_v31 }
 0x6d9   : > { %v3191_v39 = vadd.f32 %v3166_v42, %v11355_v40  ;;  %3611 = vmatpush.msra.mxu2 %v7786_v29  ;;  %v7781_v42 = vld [vmem:[%s15608_s6 + $0x528] sm:$0xff] }
 0x6db   : > { %v3197_v7 = vmul.f32 0.999995, %v3191_v39  ;;  %3612 = vmatpush.msra.mxu2 %v7784_v33 }
 0x6dc   : > { %v3130_v49 = vpop.f32.mrf.mxu3 }
 0x6dd   : > { %3320 = vmatmul.f32.gmra.mxu2 %v3197_v7  ;;  %3390 = vmatmul.f32.gmra.mxu3 %v3197_v7  ;;  %v3211_v50 = vrot.slane %v3197_v7, 2  ;;  %v3131_v40 = vadd.f32 %v3130_v49, %v3103_v22  ;;  %v7779_v7 = vld [vmem:[%s15608_s6 + $0x518] sm:$0xff] }
 0x6de   : > { %v3168_v56 = vpop.f32.mrf.mxu1 }
 0x6df   : > { %v3169_v51 = vadd.f32 %v3168_v56, %v3104_v17  ;;  %v11766_v24 = vsel %vm1120_vm4, %v3209_v12, %v3211_v50  ;;  %v3185_v13 = vadd.f32 %v11361_v28, %v3131_v40  ;;  %v7782_v12 = vld [vmem:[%s15608_s6 + $0x530] sm:$0xff]  ;;  %v7776_v56 = vld [vmem:[%s15608_s6 + $0x500] sm:$0xff] }
 0x6e0   : > { %3352 = vmatmul.f32.gmra.mxu0 %v11766_v24  ;;  %3422 = vmatmul.f32.gmra.mxu1 %v11766_v24 }
 0x6e1   : > { %v3192_v36 = vadd.f32 %v3169_v51, %v11370_v41  ;;  %v3671_v41 = vrot.slane %v3185_v13, 2  ;;  %3613 = vmatpush.msra.mxu2 %v7782_v12 }
 0x6e3   : > { %v3198_v52 = vmul.f32 0.999995, %v3192_v36  ;;  %3614 = vmatpush.msra.mxu2 %v7780_v19 }
 0x6e4   : > { %v3133_v55 = vpop.f32.mrf.mxu3 }
 0x6e5   : > { %v3134_v48 = vadd.f32 %v3133_v55, %v3103_v22  ;;  %3323 = vmatmul.f32.gmra.mxu2 %v3198_v52  ;;  %3393 = vmatmul.f32.gmra.mxu3 %v3198_v52  ;;  %v3213_v27 = vrot.slane %v3198_v52, 2 }
 0x6e6   : > { %v3171_v59 = vpop.f32.mrf.mxu1  ;;  %3615 = vmatpush.msra.mxu2 %v7778_v46 }
 0x6e7   : > { %v3186_v32 = vadd.f32 %v11378_v44, %v3134_v48  ;;  %v3172_v0 = vadd.f32 %v3171_v59, %v3104_v17  ;;  %v11774_v4 = vsel %vm1120_vm4, %v3211_v50, %v3213_v27  ;;  %v7797_v17 = vld [vmem:[%s15608_s6 + $0x5a8] sm:$0xff] }
 0x6e8   : > { %3355 = vmatmul.f32.gmra.mxu0 %v11774_v4  ;;  %3425 = vmatmul.f32.gmra.mxu1 %v11774_v4  ;;  %v7777_v50 = vld [vmem:[%s15608_s6 + $0x508] sm:$0xff] }
 0x6e9   : > { %v3672_v9 = vrot.slane %v3186_v32, 2  ;;  %v3193_v5 = vadd.f32 %v3172_v0, %v11363_v43  ;;  %3616 = vmatpush.msra.mxu2 %v7776_v56 }
 0x6eb   : > { %v3199_v28 = vmul.f32 0.999995, %v3193_v5  ;;  %v11780_v45 = vsel %vm1120_vm4, %v3671_v41, %v3672_v9 }
 0x6ec   : > { %v3136_v10 = vpop.f32.mrf.mxu3 }
 0x6ed   : > { %v3137_v23 = vadd.f32 %v3136_v10, %v3103_v22  ;;  %v11782_v14 = vrot.slane %v3199_v28, 2  ;;  %3326 = vmatmul.f32.gmra.mxu2 %v3199_v28  ;;  %3396 = vmatmul.f32.gmra.mxu3 %v3199_v28 }
 0x6ef   : > { %v11786_v44 = vadd.f32 %v3180_v16, %v3137_v23  ;;  %v11790_v38 = vsel %vm1120_vm4, %v3213_v27, %v11782_v14  ;;  %v7799_v16 = vld [vmem:[%s15608_s6 + $0x5b8] sm:$0xff] }
 0x6f0   : > { %3358 = vmatmul.f32.gmra.mxu0 %v11790_v38  ;;  %3428 = vmatmul.f32.gmra.mxu1 %v11790_v38 }
 0x6f1   : > { %v3674_v43 = vrot.slane %v11786_v44, 2  ;;  %3637 = vmatpush.msrb.mxu0 %v7799_v16  ;;  %v7905_v44 = vld [vmem:[%s15608_s6 + $0x6f8] sm:$0xff] }
 0x6f3   : > { %v11798_v8 = vsel %vm1120_vm4, %v3672_v9, %v3674_v43  ;;  %3638 = vmatpush.msrb.mxu0 %v7797_v17  ;;  %v11897_v9 = vperm.slane %v7775_v25, 0 }
 0x6f5   : > { %3639 = vmatpush.msrb.mxu0 %v7795_v1 }
 0x6f7   : > { %3640 = vmatpush.msrb.mxu0 %v7793_v3 }
 0x6f8   : > { %3361 = vmatmul.f32.gmra.mxu0 %v11782_v14  ;;  %3431 = vmatmul.f32.gmra.mxu1 %v11782_v14 }
 0x6f9   : > { %3641 = vmatpush.msrb.mxu0 %v7791_v54 }
 0x6fb   : > { %3642 = vmatpush.msrb.mxu0 %v7789_v35 }
 0x6fd   : > { %3643 = vmatpush.msrb.mxu0 %v7787_v61 }
 0x6ff   : > { %3644 = vmatpush.msrb.mxu0 %v7785_v18 }
 0x701   : > { %3645 = vmatpush.msrb.mxu0 %v7783_v34 }
 0x703   : > { %3646 = vmatpush.msrb.mxu0 %v7781_v42 }
 0x705   : > { %3647 = vmatpush.msrb.mxu0 %v7779_v7 }
 0x707   : > { %3648 = vmatpush.msrb.mxu0 %v7777_v50 }
 0x748   : > { %v3382_v37 = vpop.f32.mrf.mxu3  ;;  %v3312_v40 = vpop.f32.mrf.mxu2 }
 0x749   : > { %v3383_v57 = vadd.f32 %v3382_v37, %v11862_v62  ;;  %v3313_v47 = vadd.f32 %v3312_v40, %v11897_v9 }
 0x74d   : > { %v3417_v11 = vpop.f32.mrf.mxu1  ;;  %v3347_v55 = vpop.f32.mrf.mxu0 }
 0x74e   : > { %v3418_v39 = vadd.f32 %v3417_v11, %v3383_v57  ;;  %v3348_v6 = vadd.f32 %v3347_v55, %v3313_v47 }
 0x750   : > { %v3441_v49 = vsub.f32 0.0, %v3418_v39  ;;  %v3385_v22 = vpop.f32.mrf.mxu3  ;;  %v3315_v28 = vpop.f32.mrf.mxu2 }
 0x751   : > { %v3386_v36 = vadd.f32 %v3385_v22, %v11862_v62  ;;  %v3316_v29 = vadd.f32 %v3315_v28, %v11897_v9 }
 0x752   : > { %v3447_v51 = vmul.f32 1.442695, %v3441_v49 }
 0x754   : > { %8995 = vpow2.f32 %v3447_v51 }
 0x755   : > { %v3420_v52 = vpop.f32.mrf.mxu1  ;;  %v3350_v23 = vpop.f32.mrf.mxu0 }
 0x756   : > { %v3421_v13 = vadd.f32 %v3420_v52, %v3386_v36  ;;  %v3351_v57 = vadd.f32 %v3350_v23, %v3316_v29  ;;  %v7840_v29 = vld [vmem:[%s15606_s4 + $0xcf8] sm:$0xff] }
 0x757   : > { %3852 = vmatpush.msrb.mxu2 %v7840_v29  ;;  %v7824_v29 = vld [vmem:[%s15606_s4 + $0xc78] sm:$0xff] }
 0x758   : > { %v3442_v48 = vsub.f32 0.0, %v3421_v13  ;;  %v3388_v27 = vpop.f32.mrf.mxu3  ;;  %v3318_v30 = vpop.f32.mrf.mxu2 }
 0x759   : > { %v3389_v41 = vadd.f32 %v3388_v27, %v11862_v62  ;;  %v3319_v13 = vadd.f32 %v3318_v30, %v11897_v9 }
 0x75a   : > { %v8996_v59 = vpop.eup %8995  ;;  %v3449_v32 = vmul.f32 1.442695, %v3442_v48 }
 0x75b   : > { %v3459_v0 = vadd.f32 1.0, %v8996_v59 }
 0x75c   : > { %8997 = vpow2.f32 %v3449_v32 }
 0x75d   : > { %8999 = vrcp.f32 %v3459_v0  ;;  %v3423_v5 = vpop.f32.mrf.mxu1  ;;  %v3476_v54 = vand.u32 2147483648, %v3459_v0  ;;  %v3474_v58 = vand.u32 2147483647, %v3459_v0  ;;  %vm3470_vm8 = vweird.f32 %v3459_v0  ;;  %v3353_v18 = vpop.f32.mrf.mxu0 }
 0x75e   : > { %v3424_v10 = vadd.f32 %v3423_v5, %v3389_v41  ;;  %v3354_v5 = vadd.f32 %v3353_v18, %v3319_v13 }
 0x75f   : > { %vm3475_vm11 = vcmp.eq.f32.partialorder %v3474_v58, 8.507059e+37  ;;  %v3477_v19 = vor.u32 1.1754944e-38, %v3476_v54  ;;  %v7837_v54 = vld [vmem:[%s15606_s4 + $0xce0] sm:$0xff] }
 0x760   : > { %v3443_v63 = vsub.f32 0.0, %v3424_v10  ;;  %v3391_v16 = vpop.f32.mrf.mxu3  ;;  %v3321_v59 = vpop.f32.mrf.mxu2 }
 0x761   : > { %v3392_v1 = vadd.f32 %v3391_v16, %v11862_v62  ;;  %v3322_v58 = vadd.f32 %v3321_v59, %v11897_v9 }
 0x762   : > { %v8998_v15 = vpop.eup %8997  ;;  %v3451_v21 = vmul.f32 1.442695, %v3443_v63 }
 0x763   : > { %v9000_v53 = vpop.eup %8999  ;;  %v3460_v17 = vadd.f32 1.0, %v8998_v15 }
 0x764   : > { %v3466_v60 = vmul.f32 %v9000_v53, %v3459_v0  ;;  %9001 = vpow2.f32 %v3451_v21  ;;  %vm3471_vm7 = vweird.f32 %v9000_v53 }
 0x765   : > { %9003 = vrcp.f32 %v3460_v17  ;;  %v3426_v2 = vpop.f32.mrf.mxu1  ;;  %vm3472_vm10 = vmor %vm3470_vm8, %vm3471_vm7  ;;  %v3489_v40 = vand.u32 2147483647, %v3460_v17  ;;  %v3491_v36 = vand.u32 2147483648, %v3460_v17  ;;  %vm3485_vm13 = vweird.f32 %v3460_v17  ;;  %v3356_v23 = vpop.f32.mrf.mxu0 }
 0x766   : > { %v3467_v3 = vsub.f32 1.0, %v3466_v60  ;;  %v3427_v20 = vadd.f32 %v3426_v2, %v3392_v1  ;;  %9005 = vtanh.f32 %v3348_v6 }
 0x767   : > { %vm3490_vm15 = vcmp.eq.f32.partialorder %v3489_v40, 8.507059e+37  ;;  %v3492_v10 = vor.u32 1.1754944e-38, %v3491_v36  ;;  %v7834_v40 = vld [vmem:[%s15606_s4 + $0xcc8] sm:$0xff] }
 0x768   : > { %v3468_v35 = vmul.f32 %v9000_v53, %v3467_v3  ;;  %v3444_v25 = vsub.f32 0.0, %v3427_v20  ;;  %v3394_v61 = vpop.f32.mrf.mxu3  ;;  %v7839_v20 = vld [vmem:[%s15606_s4 + $0xcf0] sm:$0xff] }
 0x769   : > { %v3395_v11 = vadd.f32 %v3394_v61, %v11862_v62  ;;  %3788 = vmatpush.msrb.mxu3 %v7839_v20  ;;  %v7835_v61 = vld [vmem:[%s15606_s4 + $0xcd0] sm:$0xff]  ;;  %v7826_v20 = vld [vmem:[%s15606_s4 + $0xc88] sm:$0xff] }
 0x76a   : > { %v9002_v37 = vpop.eup %9001  ;;  %v3453_v33 = vmul.f32 1.442695, %v3444_v25  ;;  %v3469_v34 = vadd.f32 %v9000_v53, %v3468_v35 }
 0x76b   : > { %v9004_v12 = vpop.eup %9003  ;;  %v11902_v42 = vadd.f32 1.0, %v9002_v37  ;;  %v7838_v37 = vld [vmem:[%s15606_s4 + $0xce8] sm:$0xff]  ;;  %3789 = vmatpush.msrb.mxu3 %v7837_v54 }
 0x76c   : > { %9007 = vpow2.f32 %v3453_v33  ;;  %v3473_v39 = vsel %vm3472_vm10, %v9000_v53, %v3469_v34  ;;  %v3481_v7 = vmul.f32 %v9004_v12, %v3460_v17  ;;  %v9006_v46 = vpop.eup %9005  ;;  %vm3486_vm12 = vweird.f32 %v9004_v12  ;;  %3853 = vmatpush.msrb.mxu2 %v7838_v37 }
 0x76d   : > { %9009 = vrcp.f32 %v11902_v42  ;;  %v3429_v49 = vpop.f32.mrf.mxu1  ;;  %v3478_v22 = vsel %vm3475_vm11, %v3477_v19, %v3473_v39  ;;  %vm3487_vm14 = vmor %vm3485_vm13, %vm3486_vm12  ;;  %v3506_v1 = vand.u32 2147483648, %v11902_v42  ;;  %vm3500_vm2 = vweird.f32 %v11902_v42  ;;  %v7836_v39 = vld [vmem:[%s15606_s4 + $0xcd8] sm:$0xff]  ;;  %3790 = vmatpush.msrb.mxu3 %v7835_v61  ;;  %v7821_v61 = vld [vmem:[%s15606_s4 + $0xc60] sm:$0xff] }
 0x76e   : > { %v3430_v50 = vadd.f32 %v3429_v49, %v3395_v11  ;;  %v3555_v56 = vmul.f32 %v9006_v46, %v3478_v22  ;;  %v3482_v51 = vsub.f32 1.0, %v3481_v7  ;;  %9011 = vtanh.f32 %v3351_v57  ;;  %v3324_v57 = vpop.f32.mrf.mxu2  ;;  %v7833_v11 = vld [vmem:[%s15606_s4 + $0xcc0] sm:$0xff]  ;;  %v7871_v49 = vld [vmem:[%s15606_s4 + $0xdf0] sm:$0xff]  ;;  %v3359_v22 = vpop.f32.mrf.mxu0  ;;  %3854 = vmatpush.msrb.mxu2 %v7836_v39 }
 0x76f   : > { %v3357_v33 = vadd.f32 %v3356_v23, %v3322_v58  ;;  %3820 = vmatpush.msrb.mxu1 %v7871_v49  ;;  %3791 = vmatpush.msrb.mxu3 %v7833_v11  ;;  %v3325_v59 = vadd.f32 %v3324_v57, %v11897_v9  ;;  %v7863_v58 = vld [vmem:[%s15606_s4 + $0xdb0] sm:$0xff]  ;;  %v7822_v57 = vld [vmem:[%s15606_s4 + $0xc68] sm:$0xff] }
 0x770   : > { %v3445_v52 = vsub.f32 0.0, %v3430_v50  ;;  %3617 = vmatmul.f32.vlgmr.msra.gmra.mxu2 %v3555_v56  ;;  %3649 = vmatmul.f32.vlgmr.msrb.gmra.mxu0 %v3555_v56  ;;  %v3483_v55 = vmul.f32 %v9004_v12, %v3482_v51  ;;  %v3397_v48 = vpop.f32.mrf.mxu3  ;;  %v7831_v51 = vld [vmem:[%s15606_s4 + $0xcb0] sm:$0xff] }
 0x771   : > { %v3398_v63 = vadd.f32 %v3397_v48, %v11862_v62  ;;  %v3504_v62 = vand.u32 2147483647, %v11902_v42  ;;  %v7829_v48 = vld [vmem:[%s15606_s4 + $0xca0] sm:$0xff]  ;;  %3792 = vmatpush.msrb.mxu3 %v7831_v51  ;;  %3855 = vmatpush.msrb.mxu2 %v7834_v40  ;;  %v7815_v51 = vld [vmem:[%s15606_s4 + $0xc30] sm:$0xff]  ;;  %v7818_v40 = vld [vmem:[%s15606_s4 + $0xc48] sm:$0xff] }
 0x772   : > { %v9008_v27 = vpop.eup %9007  ;;  %v3455_v32 = vmul.f32 1.442695, %v3445_v52  ;;  %v3484_v0 = vadd.f32 %v9004_v12, %v3483_v55  ;;  %v7869_v52 = vld [vmem:[%s15606_s4 + $0xde0] sm:$0xff] }
 0x773   : > { %v9010_v41 = vpop.eup %9009  ;;  %v11907_v28 = vadd.f32 1.0, %v9008_v27  ;;  %vm3505_vm5 = vcmp.eq.f32.partialorder %v3504_v62, 8.507059e+37  ;;  %v7832_v27 = vld [vmem:[%s15606_s4 + $0xcb8] sm:$0xff]  ;;  %3821 = vmatpush.msrb.mxu1 %v7869_v52  ;;  %3793 = vmatpush.msrb.mxu3 %v7829_v48  ;;  %v7823_v62 = vld [vmem:[%s15606_s4 + $0xc70] sm:$0xff] }
 0x774   : > { %9013 = vpow2.f32 %v3455_v32  ;;  %v3488_v16 = vsel %vm3487_vm14, %v9004_v12, %v3484_v0  ;;  %v3496_v47 = vmul.f32 %v9010_v41, %v11902_v42  ;;  %v9012_v15 = vpop.eup %9011  ;;  %vm3501_vm0 = vweird.f32 %v9010_v41  ;;  %v7867_v32 = vld [vmem:[%s15606_s4 + $0xdd0] sm:$0xff]  ;;  %3856 = vmatpush.msrb.mxu2 %v7832_v27 }
 0x775   : > { %9015 = vrcp.f32 %v11907_v28  ;;  %v3432_v21 = vpop.f32.mrf.mxu1  ;;  %v3493_v53 = vsel %vm3490_vm15, %v3492_v10, %v3488_v16  ;;  %vm3502_vm3 = vmor %vm3500_vm2, %vm3501_vm0  ;;  %v3507_v12 = vor.u32 1.1754944e-38, %v3506_v1  ;;  %v3521_v36 = vand.u32 2147483648, %v11907_v28  ;;  %v7830_v10 = vld [vmem:[%s15606_s4 + $0xca8] sm:$0xff]  ;;  %3822 = vmatpush.msrb.mxu1 %v7867_v32 }
 0x776   : > { %v3433_v6 = vadd.f32 %v3432_v21, %v3398_v63  ;;  %v3556_v17 = vmul.f32 %v9012_v15, %v3493_v53  ;;  %v3497_v60 = vsub.f32 1.0, %v3496_v47  ;;  %9017 = vtanh.f32 %v3354_v5  ;;  %v7827_v5 = vld [vmem:[%s15606_s4 + $0xc90] sm:$0xff]  ;;  %v7825_v53 = vld [vmem:[%s15606_s4 + $0xc80] sm:$0xff]  ;;  %3857 = vmatpush.msrb.mxu2 %v7830_v10  ;;  %v3327_v1 = vpop.f32.mrf.mxu2 }
 0x777   : > { %v3519_v13 = vand.u32 2147483647, %v11907_v28  ;;  %vm3515_vm7 = vweird.f32 %v11907_v28  ;;  %v3360_v63 = vadd.f32 %v3359_v22, %v3325_v59  ;;  %v3522_v47 = vor.u32 1.1754944e-38, %v3521_v36  ;;  %3794 = vmatpush.msrb.mxu3 %v7827_v5  ;;  %v7816_v5 = vld [vmem:[%s15606_s4 + $0xc38] sm:$0xff]  ;;  %v7857_v10 = vld [vmem:[%s15606_s4 + $0xd80] sm:$0xff] }
 0x778   : > { %v3446_v2 = vsub.f32 0.0, %v3433_v6  ;;  %3619 = vmatmul.f32.gmra.mxu2 %v3556_v17  ;;  %3652 = vmatmul.f32.gmra.mxu0 %v3556_v17  ;;  %v3498_v3 = vmul.f32 %v9010_v41, %v3497_v60  ;;  %v7828_v6 = vld [vmem:[%s15606_s4 + $0xc98] sm:$0xff]  ;;  %v3328_v37 = vadd.f32 %v3327_v1, %v11897_v9  ;;  %v7847_v1 = vld [vmem:[%s15606_s4 + $0xd30] sm:$0xff] }
 0x779   : > { %vm3520_vm10 = vcmp.eq.f32.partialorder %v3519_v13, 8.507059e+37  ;;  %3795 = vmatpush.msrb.mxu3 %v7825_v53  ;;  %3858 = vmatpush.msrb.mxu2 %v7828_v6  ;;  %v7813_v13 = vld [vmem:[%s15606_s4 + $0xc20] sm:$0xff]  ;;  %v7851_v53 = vld [vmem:[%s15606_s4 + $0xd50] sm:$0xff]  ;;  %v7872_v6 = vld [vmem:[%s15606_s4 + $0xdf8] sm:$0xff] }
 0x77a   : > { %v9014_v35 = vpop.eup %9013  ;;  %v3457_v30 = vmul.f32 1.442695, %v3446_v2  ;;  %v3499_v25 = vadd.f32 %v9010_v41, %v3498_v3 }
 0x77b   : > { %v11931_v18 = vpop.eup %9015  ;;  %v11933_v34 = vadd.f32 1.0, %v9014_v35  ;;  %v3362_v35 = vpop.f32.mrf.mxu0  ;;  %3796 = vmatpush.msrb.mxu3 %v7823_v62  ;;  %3859 = vmatpush.msrb.mxu2 %v7826_v20  ;;  %v7843_v62 = vld [vmem:[%s15606_s4 + $0xd10] sm:$0xff]  ;;  %v7866_v20 = vld [vmem:[%s15606_s4 + $0xdc8] sm:$0xff] }
 0x77c   : > { %9019 = vpow2.f32 %v3457_v30  ;;  %v3503_v42 = vsel %vm3502_vm3, %v9010_v41, %v3499_v25  ;;  %v3511_v19 = vmul.f32 %v11931_v18, %v11907_v28  ;;  %v9018_v7 = vpop.eup %9017  ;;  %vm3516_vm6 = vweird.f32 %v11931_v18  ;;  %v7865_v28 = vld [vmem:[%s15606_s4 + $0xdc0] sm:$0xff] }
 0x77d   : > { %9021 = vrcp.f32 %v11933_v34  ;;  %v3508_v46 = vsel %vm3505_vm5, %v3507_v12, %v3503_v42  ;;  %vm3517_vm8 = vmor %vm3515_vm7, %vm3516_vm6  ;;  %3823 = vmatpush.msrb.mxu1 %v7865_v28  ;;  %v3536_v54 = vand.u32 2147483648, %v11933_v34  ;;  %v3534_v25 = vand.u32 2147483647, %v11933_v34  ;;  %v7819_v12 = vld [vmem:[%s15606_s4 + $0xc50] sm:$0xff]  ;;  %3797 = vmatpush.msrb.mxu3 %v7821_v61  ;;  %v7853_v28 = vld [vmem:[%s15606_s4 + $0xd60] sm:$0xff] }
 0x77e   : > { %v3557_v50 = vmul.f32 %v9018_v7, %v3508_v46  ;;  %v3512_v56 = vsub.f32 1.0, %v3511_v19  ;;  %9023 = vtanh.f32 %v3357_v33  ;;  %vm3530_vm12 = vweird.f32 %v11933_v34  ;;  %3860 = vmatpush.msrb.mxu2 %v7824_v29  ;;  %v7817_v7 = vld [vmem:[%s15606_s4 + $0xc40] sm:$0xff]  ;;  %v7820_v46 = vld [vmem:[%s15606_s4 + $0xc58] sm:$0xff]  ;;  %v7858_v61 = vld [vmem:[%s15606_s4 + $0xd88] sm:$0xff] }
 0x77f   : > { %3824 = vmatpush.msrb.mxu1 %v7863_v58  ;;  %v3363_v42 = vadd.f32 %v3362_v35, %v3328_v37  ;;  %v3537_v19 = vor.u32 1.1754944e-38, %v3536_v54  ;;  %vm3535_vm14 = vcmp.eq.f32.partialorder %v3534_v25, 8.507059e+37  ;;  %3798 = vmatpush.msrb.mxu3 %v7819_v12  ;;  %v7841_v54 = vld [vmem:[%s15606_s4 + $0xd00] sm:$0xff]  ;;  %v7864_v58 = vld [vmem:[%s15606_s4 + $0xdb8] sm:$0xff]  ;;  %v7862_v35 = vld [vmem:[%s15606_s4 + $0xda8] sm:$0xff] }
 0x780   : > { %3621 = vmatmul.f32.gmra.mxu2 %v3557_v50  ;;  %3655 = vmatmul.f32.gmra.mxu0 %v3557_v50  ;;  %v3513_v55 = vmul.f32 %v11931_v18, %v3512_v56  ;;  %v7808_v25 = vld [vmem:[%s15609_s7 + $0xa] sm:$0x3]  ;;  %v7856_v29 = vld [vmem:[%s15606_s4 + $0xd78] sm:$0xff] }
 0x781   : > { %3861 = vmatpush.msrb.mxu2 %v7822_v57  ;;  %3799 = vmatpush.msrb.mxu3 %v7817_v7  ;;  %v12129_v37 = vperm.slane %v7808_v25, 1  ;;  %v7854_v57 = vld [vmem:[%s15606_s4 + $0xd68] sm:$0xff] }
 0x782   : > { %v9020_v0 = vpop.eup %9019  ;;  %v3514_v41 = vadd.f32 %v11931_v18, %v3513_v55 }
 0x783   : > { %v11979_v23 = vpop.eup %9021  ;;  %v11981_v16 = vadd.f32 1.0, %v9020_v0  ;;  %3862 = vmatpush.msrb.mxu2 %v7820_v46  ;;  %3800 = vmatpush.msrb.mxu3 %v7815_v51  ;;  %v7846_v46 = vld [vmem:[%s15606_s4 + $0xd28] sm:$0xff] }
 0x784   : > { %v3518_v15 = vsel %vm3517_vm8, %v11931_v18, %v3514_v41  ;;  %v3526_v21 = vmul.f32 %v11979_v23, %v11933_v34  ;;  %v9024_v17 = vpop.eup %9023  ;;  %vm3531_vm11 = vweird.f32 %v11979_v23  ;;  %v7861_v18 = vld [vmem:[%s15606_s4 + $0xda0] sm:$0xff]  ;;  %v7859_v34 = vld [vmem:[%s15606_s4 + $0xd90] sm:$0xff] }
 0x785   : > { %9025 = vrcp.f32 %v11981_v16  ;;  %v3523_v60 = vsel %vm3520_vm10, %v3522_v47, %v3518_v15  ;;  %vm3532_vm13 = vmor %vm3530_vm12, %vm3531_vm11  ;;  %3825 = vmatpush.msrb.mxu1 %v7861_v18  ;;  %v3551_v36 = vand.u32 2147483648, %v11981_v16  ;;  %v3549_v55 = vand.u32 2147483647, %v11981_v16  ;;  %3863 = vmatpush.msrb.mxu2 %v7818_v40  ;;  %v7812_v47 = vld [vmem:[%s15606_s4 + $0xc18] sm:$0xff]  ;;  %v7809_v15 = vld [vmem:[%s15606_s4 + $0xc00] sm:$0xff] }
 0x786   : > { %v3558_v2 = vmul.f32 %v9024_v17, %v3523_v60  ;;  %v3527_v3 = vsub.f32 1.0, %v3526_v21  ;;  %9027 = vtanh.f32 %v3360_v63  ;;  %vm3545_vm0 = vweird.f32 %v11981_v16  ;;  %3801 = vmatpush.msrb.mxu3 %v7813_v13  ;;  %v7855_v63 = vld [vmem:[%s15606_s4 + $0xd70] sm:$0xff]  ;;  %v7810_v21 = vld [vmem:[%s15606_s4 + $0xc08] sm:$0xff]  ;;  %v7849_v17 = vld [vmem:[%s15606_s4 + $0xd40] sm:$0xff] }
 0x787   : > { %3826 = vmatpush.msrb.mxu1 %v7859_v34  ;;  %9029 = vtanh.f32 %v3363_v42  ;;  %v3552_v27 = vor.u32 1.1754944e-38, %v3551_v36  ;;  %vm3550_vm3 = vcmp.eq.f32.partialorder %v3549_v55, 8.507059e+37  ;;  %3864 = vmatpush.msrb.mxu2 %v7816_v5  ;;  %v7870_v60 = vld [vmem:[%s15606_s4 + $0xde8] sm:$0xff] }
 0x788   : > { %3623 = vmatmul.f32.gmra.mxu2 %v3558_v2  ;;  %3658 = vmatmul.f32.gmra.mxu0 %v3558_v2  ;;  %v3528_v30 = vmul.f32 %v11979_v23, %v3527_v3  ;;  %v7868_v2 = vld [vmem:[%s15606_s4 + $0xdd8] sm:$0xff]  ;;  %v7845_v3 = vld [vmem:[%s15606_s4 + $0xd20] sm:$0xff] }
 0x789   : > { %3827 = vmatpush.msrb.mxu1 %v7857_v10 }
 0x78a   : > { %v3529_v33 = vadd.f32 %v11979_v23, %v3528_v30  ;;  %v7860_v30 = vld [vmem:[%s15606_s4 + $0xd98] sm:$0xff] }
 0x78b   : > { %v9026_v9 = vpop.eup %9025  ;;  %3828 = vmatpush.msrb.mxu1 %v7855_v63 }
 0x78c   : > { %v3533_v11 = vsel %vm3532_vm13, %v11979_v23, %v3529_v33  ;;  %v3541_v39 = vmul.f32 %v9026_v9, %v11981_v16  ;;  %v9028_v49 = vpop.eup %9027  ;;  %vm3546_vm15 = vweird.f32 %v9026_v9  ;;  %v7814_v23 = vld [vmem:[%s15606_s4 + $0xc28] sm:$0xff]  ;;  %v7811_v16 = vld [vmem:[%s15606_s4 + $0xc10] sm:$0xff] }
 0x78d   : > { %v3538_v22 = vsel %vm3535_vm14, %v3537_v19, %v3533_v11  ;;  %vm3547_vm2 = vmor %vm3545_vm0, %vm3546_vm15  ;;  %v9030_v32 = vpop.eup %9029  ;;  %3865 = vmatpush.msrb.mxu2 %v7814_v23  ;;  %3802 = vmatpush.msrb.mxu3 %v7811_v16  ;;  %v7850_v19 = vld [vmem:[%s15606_s4 + $0xd48] sm:$0xff]  ;;  %v3597_v23 = vperm.slane %v7808_v25, 0 }
 0x78e   : > { %v3559_v50 = vmul.f32 %v9028_v49, %v3538_v22  ;;  %v3542_v56 = vsub.f32 1.0, %v3541_v39  ;;  %3829 = vmatpush.msrb.mxu1 %v7853_v28  ;;  %v7844_v22 = vld [vmem:[%s15606_s4 + $0xd18] sm:$0xff] }
 0x78f   : > { %3866 = vmatpush.msrb.mxu2 %v7812_v47  ;;  %3803 = vmatpush.msrb.mxu3 %v7809_v15 }
 0x790   : > { %3626 = vmatmul.f32.gmra.mxu2 %v3559_v50  ;;  %3661 = vmatmul.f32.gmra.mxu0 %v3559_v50  ;;  %v3543_v52 = vmul.f32 %v9026_v9, %v3542_v56 }
 0x791   : > { %3867 = vmatpush.msrb.mxu2 %v7810_v21  ;;  %3830 = vmatpush.msrb.mxu1 %v7851_v53 }
 0x792   : > { %v3544_v48 = vadd.f32 %v9026_v9, %v3543_v52  ;;  %3884 = vmatpush.msra.mxu3 %v7872_v6 }
 0x793   : > { %3831 = vmatpush.msrb.mxu1 %v7849_v17 }
 0x794   : > { %v3548_v59 = vsel %vm3547_vm2, %v9026_v9, %v3544_v48  ;;  %3885 = vmatpush.msra.mxu3 %v7870_v60  ;;  %v7852_v9 = vld [vmem:[%s15606_s4 + $0xd58] sm:$0xff] }
 0x795   : > { %v3553_v0 = vsel %vm3550_vm3, %v3552_v27, %v3548_v59  ;;  %3832 = vmatpush.msrb.mxu1 %v7847_v1 }
 0x796   : > { %v3560_v41 = vmul.f32 %v9030_v32, %v3553_v0  ;;  %3886 = vmatpush.msra.mxu3 %v7868_v2 }
 0x797   : > { %3833 = vmatpush.msrb.mxu1 %v7845_v3 }
 0x798   : > { %3629 = vmatmul.f32.gmra.mxu2 %v3560_v41  ;;  %3664 = vmatmul.f32.gmra.mxu0 %v3560_v41 }
 0x799   : > { %3887 = vmatpush.msra.mxu3 %v7866_v20  ;;  %3834 = vmatpush.msrb.mxu1 %v7843_v62 }
 0x79b   : > { %3835 = vmatpush.msrb.mxu1 %v7841_v54  ;;  %3888 = vmatpush.msra.mxu3 %v7864_v58 }
 0x79d   : > { %3889 = vmatpush.msra.mxu3 %v7862_v35  ;;  %4090 = vmatpush.msra.mxu1 %v7905_v44 }
 0x79f   : > { %3890 = vmatpush.msra.mxu3 %v7860_v30 }
 0x7a1   : > { %3891 = vmatpush.msra.mxu3 %v7858_v61 }
 0x7a3   : > { %3892 = vmatpush.msra.mxu3 %v7856_v29 }
 0x7a5   : > { %3893 = vmatpush.msra.mxu3 %v7854_v57  ;;  %v7901_v57 = vld [vmem:[%s15608_s6 + $0x6d8] sm:$0xff] }
 0x7a7   : > { %3894 = vmatpush.msra.mxu3 %v7852_v9  ;;  %v7900_v9 = vld [vmem:[%s15608_s6 + $0x6d0] sm:$0xff] }
 0x7a9   : > { %3895 = vmatpush.msra.mxu3 %v7850_v19  ;;  %v7898_v19 = vld [vmem:[%s15608_s6 + $0x6c0] sm:$0xff] }
 0x7ed   : > { %v3650_v18 = vpop.f32.mrf.mxu0 }
 0x7ee   : > { %v3651_v33 = vadd.f32 %v3650_v18, %v12129_v37  ;;  %v7904_v18 = vld [vmem:[%s15608_s6 + $0x6f0] sm:$0xff] }
 0x7ef   : > { %4061 = vmatpush.msra.mxu0 %v7904_v18 }
 0x7f0   : > { %v3682_v12 = vadd.f32 %v3651_v33, %v11745_v26  ;;  %v7848_v26 = vld [vmem:[%s15606_s4 + $0xd38] sm:$0xff]  ;;  %v7902_v33 = vld [vmem:[%s15608_s6 + $0x6e0] sm:$0xff] }
 0x7f1   : > { %3896 = vmatpush.msra.mxu3 %v7848_v26  ;;  %4062 = vmatpush.msra.mxu0 %v7902_v33  ;;  %v7896_v26 = vld [vmem:[%s15608_s6 + $0x6b0] sm:$0xff] }
 0x7f2   : > { %v3688_v42 = vmul.f32 0.999995, %v3682_v12 }
 0x7f3   : > { %v3618_v34 = vpop.f32.mrf.mxu2  ;;  %3897 = vmatpush.msra.mxu3 %v7846_v46  ;;  %4063 = vmatpush.msra.mxu0 %v7900_v9  ;;  %v7893_v46 = vld [vmem:[%s15608_s6 + $0x698] sm:$0xff] }
 0x7f4   : > { %3804 = vmatmul.f32.vlgmr.msrb.gmra.mxu3 %v3688_v42  ;;  %3868 = vmatmul.f32.vlgmr.msrb.gmra.mxu2 %v3688_v42  ;;  %v3700_v56 = vrot.slane %v3688_v42, 4  ;;  %v7899_v42 = vld [vmem:[%s15608_s6 + $0x6c8] sm:$0xff]  ;;  %v7897_v34 = vld [vmem:[%s15608_s6 + $0x6b8] sm:$0xff] }
 0x7f5   : > { %v3653_v11 = vpop.f32.mrf.mxu0  ;;  %3898 = vmatpush.msra.mxu3 %v7844_v22  ;;  %4064 = vmatpush.msra.mxu0 %v7898_v19 }
 0x7f6   : > { %v3654_v39 = vadd.f32 %v3653_v11, %v12129_v37  ;;  %v7895_v11 = vld [vmem:[%s15608_s6 + $0x6a8] sm:$0xff] }
 0x7f7   : > { %4065 = vmatpush.msra.mxu0 %v7896_v26 }
 0x7f8   : > { %v3683_v7 = vadd.f32 %v3654_v39, %v11751_v31  ;;  %v7842_v31 = vld [vmem:[%s15606_s4 + $0xd08] sm:$0xff]  ;;  %v7894_v39 = vld [vmem:[%s15608_s6 + $0x6a0] sm:$0xff] }
 0x7f9   : > { %3899 = vmatpush.msra.mxu3 %v7842_v31  ;;  %4066 = vmatpush.msra.mxu0 %v7894_v39  ;;  %v7888_v31 = vld [vmem:[%s15608_s6 + $0x670] sm:$0xff] }
 0x7fa   : > { %v3689_v49 = vmul.f32 0.999995, %v3683_v7 }
 0x7fb   : > { %v3620_v50 = vpop.f32.mrf.mxu2 }
 0x7fc   : > { %v3701_v51 = vrot.slane %v3689_v49, 4  ;;  %3807 = vmatmul.f32.gmra.mxu3 %v3689_v49  ;;  %3871 = vmatmul.f32.gmra.mxu2 %v3689_v49  ;;  %v7892_v49 = vld [vmem:[%s15608_s6 + $0x690] sm:$0xff]  ;;  %v7891_v50 = vld [vmem:[%s15608_s6 + $0x688] sm:$0xff] }
 0x7fd   : > { %v3656_v40 = vpop.f32.mrf.mxu0  ;;  %4067 = vmatpush.msra.mxu0 %v7892_v49 }
 0x7fe   : > { %v3657_v36 = vadd.f32 %v3656_v40, %v12129_v37  ;;  %v12158_v52 = vsel %vm1709_vm9, %v3700_v56, %v3701_v51  ;;  %v7890_v56 = vld [vmem:[%s15608_s6 + $0x680] sm:$0xff]  ;;  %v7887_v40 = vld [vmem:[%s15608_s6 + $0x668] sm:$0xff] }
 0x7ff   : > { %3836 = vmatmul.f32.vlgmr.msrb.gmra.mxu1 %v12158_v52  ;;  %4068 = vmatpush.msra.mxu0 %v7890_v56 }
 0x800   : > { %v3684_v55 = vadd.f32 %v3657_v36, %v11766_v24  ;;  %v7886_v36 = vld [vmem:[%s15608_s6 + $0x660] sm:$0xff] }
 0x801   : > { %4069 = vmatpush.msra.mxu0 %v7888_v31 }
 0x802   : > { %v3690_v13 = vmul.f32 0.999995, %v3684_v55  ;;  %v7873_v55 = vld [vmem:[%s15607_s5 + $0xc] sm:$0x3] }
 0x803   : > { %v3622_v48 = vpop.f32.mrf.mxu2  ;;  %4070 = vmatpush.msra.mxu0 %v7886_v36 }
 0x804   : > { %3810 = vmatmul.f32.gmra.mxu3 %v3690_v13  ;;  %3874 = vmatmul.f32.gmra.mxu2 %v3690_v13  ;;  %v3703_v27 = vrot.slane %v3690_v13, 4  ;;  %v7885_v48 = vld [vmem:[%s15608_s6 + $0x658] sm:$0xff] }
 0x805   : > { %v3659_v59 = vpop.f32.mrf.mxu0 }
 0x806   : > { %v3660_v32 = vadd.f32 %v3659_v59, %v12129_v37  ;;  %v12164_v0 = vsel %vm1709_vm9, %v3701_v51, %v3703_v27  ;;  %v7889_v51 = vld [vmem:[%s15608_s6 + $0x678] sm:$0xff]  ;;  %v12278_v59 = vperm.slane %v7873_v55, 1 }
 0x807   : > { %3839 = vmatmul.f32.gmra.mxu1 %v12164_v0 }
 0x808   : > { %v3685_v41 = vadd.f32 %v3660_v32, %v11774_v4  ;;  %v7883_v32 = vld [vmem:[%s15608_s6 + $0x648] sm:$0xff] }
 0x80a   : > { %v3691_v5 = vmul.f32 0.999995, %v3685_v41  ;;  %v7882_v41 = vld [vmem:[%s15608_s6 + $0x640] sm:$0xff] }
 0x80b   : > { %v3624_v10 = vpop.f32.mrf.mxu2 }
 0x80c   : > { %3813 = vmatmul.f32.gmra.mxu3 %v3691_v5  ;;  %3877 = vmatmul.f32.gmra.mxu2 %v3691_v5  ;;  %v3705_v24 = vrot.slane %v3691_v5, 4  ;;  %v3625_v28 = vadd.f32 %v3624_v10, %v3597_v23  ;;  %v7881_v10 = vld [vmem:[%s15608_s6 + $0x638] sm:$0xff] }
 0x80d   : > { %v3662_v63 = vpop.f32.mrf.mxu0 }
 0x80e   : > { %v3663_v16 = vadd.f32 %v3662_v63, %v12129_v37  ;;  %v12170_v47 = vsel %vm1709_vm9, %v3703_v27, %v3705_v24  ;;  %v3679_v4 = vadd.f32 %v11780_v45, %v3625_v28  ;;  %v7884_v27 = vld [vmem:[%s15608_s6 + $0x650] sm:$0xff]  ;;  %v7879_v63 = vld [vmem:[%s15608_s6 + $0x628] sm:$0xff] }
 0x80f   : > { %3842 = vmatmul.f32.gmra.mxu1 %v12170_v47  ;;  %4071 = vmatpush.msra.mxu0 %v7884_v27 }
 0x810   : > { %v3686_v15 = vadd.f32 %v3663_v16, %v11790_v38  ;;  %v4125_v62 = vrot.slane %v3679_v4, 4  ;;  %v7878_v16 = vld [vmem:[%s15608_s6 + $0x620] sm:$0xff] }
 0x811   : > { %4072 = vmatpush.msra.mxu0 %v7882_v41 }
 0x812   : > { %v3692_v21 = vmul.f32 0.999995, %v3686_v15 }
 0x813   : > { %v3627_v53 = vpop.f32.mrf.mxu2 }
 0x814   : > { %v3628_v6 = vadd.f32 %v3627_v53, %v3597_v23  ;;  %3816 = vmatmul.f32.gmra.mxu3 %v3692_v21  ;;  %3880 = vmatmul.f32.gmra.mxu2 %v3692_v21  ;;  %v3707_v17 = vrot.slane %v3692_v21, 4  ;;  %v7877_v21 = vld [vmem:[%s15608_s6 + $0x618] sm:$0xff]  ;;  %v7876_v53 = vld [vmem:[%s15608_s6 + $0x610] sm:$0xff] }
 0x815   : > { %v3665_v60 = vpop.f32.mrf.mxu0 }
 0x816   : > { %v3680_v1 = vadd.f32 %v11798_v8, %v3628_v6  ;;  %v3666_v2 = vadd.f32 %v3665_v60, %v12129_v37  ;;  %v12178_v3 = vsel %vm1709_vm9, %v3705_v24, %v3707_v17  ;;  %v7903_v37 = vld [vmem:[%s15608_s6 + $0x6e8] sm:$0xff] }
 0x817   : > { %3845 = vmatmul.f32.gmra.mxu1 %v12178_v3  ;;  %v7875_v6 = vld [vmem:[%s15608_s6 + $0x608] sm:$0xff] }
 0x818   : > { %v4126_v38 = vrot.slane %v3680_v1, 4  ;;  %v3687_v20 = vadd.f32 %v3666_v2, %v11782_v14  ;;  %4091 = vmatpush.msra.mxu1 %v7903_v37 }
 0x81a   : > { %v3693_v54 = vmul.f32 0.999995, %v3687_v20  ;;  %v12183_v45 = vsel %vm1709_vm9, %v4125_v62, %v4126_v38  ;;  %4092 = vmatpush.msra.mxu1 %v7901_v57 }
 0x81b   : > { %v3630_v58 = vpop.f32.mrf.mxu2 }
 0x81c   : > { %v3709_v35 = vrot.slane %v3693_v54, 4  ;;  %v3631_v30 = vadd.f32 %v3630_v58, %v3597_v23  ;;  %3900 = vmatmul.f32.vlgmr.msra.gmra.mxu3 %v12158_v52  ;;  %4093 = vmatpush.msra.mxu1 %v7899_v42  ;;  %v7880_v23 = vld [vmem:[%s15608_s6 + $0x630] sm:$0xff] }
 0x81d   : > { %4073 = vmatpush.msra.mxu0 %v7880_v23 }
 0x81e   : > { %v3681_v8 = vadd.f32 %v3674_v43, %v3631_v30  ;;  %v12189_v25 = vsel %vm1709_vm9, %v3707_v17, %v3709_v35  ;;  %4094 = vmatpush.msra.mxu1 %v7897_v34  ;;  %v7874_v17 = vld [vmem:[%s15608_s6 + $0x600] sm:$0xff] }
 0x81f   : > { %3848 = vmatmul.f32.gmra.mxu1 %v12189_v25  ;;  %4074 = vmatpush.msra.mxu0 %v7878_v16 }
 0x820   : > { %v4128_v61 = vrot.slane %v3681_v8, 4  ;;  %4095 = vmatpush.msra.mxu1 %v7895_v11 }
 0x821   : > { %4075 = vmatpush.msra.mxu0 %v7876_v53 }
 0x822   : > { %v12193_v14 = vsel %vm1709_vm9, %v4126_v38, %v4128_v61  ;;  %4096 = vmatpush.msra.mxu1 %v7893_v46  ;;  %v12313_v61 = vperm.slane %v7873_v55, 0 }
 0x823   : > { %4076 = vmatpush.msra.mxu0 %v7874_v17 }
 0x824   : > { %3903 = vmatmul.f32.gmra.mxu3 %v12164_v0  ;;  %4097 = vmatpush.msra.mxu1 %v7891_v50 }
 0x826   : > { %4098 = vmatpush.msra.mxu1 %v7889_v51 }
 0x828   : > { %4099 = vmatpush.msra.mxu1 %v7887_v40 }
 0x82a   : > { %4100 = vmatpush.msra.mxu1 %v7885_v48 }
 0x82c   : > { %3906 = vmatmul.f32.gmra.mxu3 %v12170_v47  ;;  %4101 = vmatpush.msra.mxu1 %v7883_v32 }
 0x82e   : > { %4102 = vmatpush.msra.mxu1 %v7881_v10 }
 0x830   : > { %4103 = vmatpush.msra.mxu1 %v7879_v63 }
 0x832   : > { %4104 = vmatpush.msra.mxu1 %v7877_v21 }
 0x834   : > { %3909 = vmatmul.f32.gmra.mxu3 %v12178_v3  ;;  %4105 = vmatpush.msra.mxu1 %v7875_v6 }
 0x83c   : > { %3912 = vmatmul.f32.gmra.mxu3 %v12189_v25 }
 0x877   : > { %v12199_v29 = vpop.f32.mrf.mxu3  ;;  %v3869_v22 = vpop.f32.mrf.mxu2 }
 0x878   : > { %v3870_v24 = vadd.f32 %v3869_v22, %v12278_v59  ;;  %v3806_v57 = vadd.f32 %v12199_v29, %v12313_v61 }
 0x87c   : > { %v3837_v20 = vpop.f32.mrf.mxu1 }
 0x87d   : > { %v3838_v26 = vadd.f32 %v3837_v20, %v3806_v57  ;;  %v7970_v57 = vld [vmem:[%s15606_s4 + $0xff8] sm:$0xff] }
 0x87e   : > { %4303 = vmatpush.msrb.mxu0 %v7970_v57  ;;  %v7915_v57 = vld [vmem:[%s15606_s4 + $0xe40] sm:$0xff] }
 0x87f   : > { %v12204_v43 = vpop.f32.mrf.mxu3  ;;  %v3872_v5 = vpop.f32.mrf.mxu2 }
 0x880   : > { %v3873_v1 = vadd.f32 %v3872_v5, %v12278_v59  ;;  %v3809_v36 = vadd.f32 %v12204_v43, %v12313_v61 }
 0x884   : > { %v3840_v42 = vpop.f32.mrf.mxu1 }
 0x885   : > { %v3841_v41 = vadd.f32 %v3840_v42, %v3809_v36  ;;  %v7930_v36 = vld [vmem:[%s15606_s4 + $0xeb8] sm:$0xff] }
 0x887   : > { %v12215_v12 = vpop.f32.mrf.mxu3  ;;  %v3875_v2 = vpop.f32.mrf.mxu2 }
 0x888   : > { %v3876_v8 = vadd.f32 %v3875_v2, %v12278_v59  ;;  %v7935_v2 = vld [vmem:[%s15606_s4 + $0xee0] sm:$0xff] }
 0x88f   : > { %v12241_v7 = vpop.f32.mrf.mxu3  ;;  %v3878_v37 = vpop.f32.mrf.mxu2 }
 0x890   : > { %v3879_v39 = vadd.f32 %v3878_v37, %v12278_v59 }
 0x897   : > { %v12270_v13 = vpop.f32.mrf.mxu3  ;;  %v3881_v51 = vpop.f32.mrf.mxu2 }
 0x898   : > { %v3882_v5 = vadd.f32 %v3881_v51, %v12278_v59  ;;  %v7966_v51 = vld [vmem:[%s15606_s4 + $0xfd8] sm:$0xff] }
 0x89f   : > { %v3901_v28 = vpop.f32.mrf.mxu3 }
 0x8a0   : > { %v3902_v15 = vadd.f32 %v3901_v28, %v3870_v24  ;;  %v3843_v24 = vpop.f32.mrf.mxu1 }
 0x8a2   : > { %v3921_v4 = vsub.f32 0.0, %v3902_v15 }
 0x8a4   : > { %v3926_v60 = vmul.f32 1.442695, %v3921_v4 }
 0x8a6   : > { %9031 = vpow2.f32 %v3926_v60 }
 0x8a7   : > { %v3904_v62 = vpop.f32.mrf.mxu3 }
 0x8a8   : > { %v3905_v38 = vadd.f32 %v3904_v62, %v3873_v1  ;;  %v7937_v1 = vld [vmem:[%s15606_s4 + $0xef0] sm:$0xff]  ;;  %v3812_v62 = vadd.f32 %v12215_v12, %v12313_v61 }
 0x8a9   : > { %4216 = vmatpush.msra.mxu2 %v7937_v1  ;;  %v7960_v1 = vld [vmem:[%s15606_s4 + $0xfa8] sm:$0xff] }
 0x8aa   : > { %v3922_v54 = vsub.f32 0.0, %v3905_v38  ;;  %v7938_v38 = vld [vmem:[%s15606_s4 + $0xef8] sm:$0xff] }
 0x8ab   : > { %4274 = vmatpush.msrb.mxu3 %v7938_v38  ;;  %4217 = vmatpush.msra.mxu2 %v7935_v2 }
 0x8ac   : > { %v9032_v58 = vpop.eup %9031  ;;  %v3928_v35 = vmul.f32 1.442695, %v3922_v54 }
 0x8ad   : > { %v3936_v30 = vadd.f32 1.0, %v9032_v58 }
 0x8ae   : > { %9033 = vpow2.f32 %v3928_v35  ;;  %v7933_v35 = vld [vmem:[%s15606_s4 + $0xed0] sm:$0xff] }
 0x8af   : > { %9035 = vrcp.f32 %v3936_v30  ;;  %v3907_v44 = vpop.f32.mrf.mxu3  ;;  %v3952_v56 = vand.u32 2147483648, %v3936_v30  ;;  %v3950_v40 = vand.u32 2147483647, %v3936_v30  ;;  %vm3946_vm6 = vweird.f32 %v3936_v30  ;;  %4218 = vmatpush.msra.mxu2 %v7933_v35  ;;  %v7958_v35 = vld [vmem:[%s15606_s4 + $0xf98] sm:$0xff] }
 0x8b0   : > { %v3908_v18 = vadd.f32 %v3907_v44, %v3876_v8  ;;  %v3844_v8 = vadd.f32 %v3843_v24, %v3812_v62 }
 0x8b1   : > { %v3953_v23 = vor.u32 1.1754944e-38, %v3952_v56  ;;  %vm3951_vm8 = vcmp.eq.f32.partialorder %v3950_v40, 8.507059e+37  ;;  %v7927_v40 = vld [vmem:[%s15606_s4 + $0xea0] sm:$0xff] }
 0x8b2   : > { %v3923_v33 = vsub.f32 0.0, %v3908_v18 }
 0x8b4   : > { %v9034_v9 = vpop.eup %9033  ;;  %v3930_v19 = vmul.f32 1.442695, %v3923_v33  ;;  %v7934_v33 = vld [vmem:[%s15606_s4 + $0xed8] sm:$0xff] }
 0x8b5   : > { %v9036_v34 = vpop.eup %9035  ;;  %v12317_v11 = vadd.f32 1.0, %v9034_v9 }
 0x8b6   : > { %v3942_v46 = vmul.f32 %v9036_v34, %v3936_v30  ;;  %9037 = vpow2.f32 %v3930_v19  ;;  %vm3947_vm5 = vweird.f32 %v9036_v34  ;;  %v7936_v30 = vld [vmem:[%s15606_s4 + $0xee8] sm:$0xff]  ;;  %v7931_v19 = vld [vmem:[%s15606_s4 + $0xec0] sm:$0xff] }
 0x8b7   : > { %9039 = vrcp.f32 %v12317_v11  ;;  %v3910_v49 = vpop.f32.mrf.mxu3  ;;  %vm3948_vm7 = vmor %vm3946_vm6, %vm3947_vm5  ;;  %v3967_v59 = vand.u32 2147483648, %v12317_v11  ;;  %v3965_v60 = vand.u32 2147483647, %v12317_v11  ;;  %vm3961_vm11 = vweird.f32 %v12317_v11  ;;  %4275 = vmatpush.msrb.mxu3 %v7936_v30  ;;  %4219 = vmatpush.msra.mxu2 %v7931_v19 }
 0x8b8   : > { %v3943_v22 = vsub.f32 1.0, %v3942_v46  ;;  %v3911_v50 = vadd.f32 %v3910_v49, %v3879_v39  ;;  %9041 = vtanh.f32 %v3838_v26  ;;  %v3846_v39 = vpop.f32.mrf.mxu1 }
 0x8b9   : > { %v3968_v18 = vor.u32 1.1754944e-38, %v3967_v59  ;;  %vm3966_vm13 = vcmp.eq.f32.partialorder %v3965_v60, 8.507059e+37  ;;  %4276 = vmatpush.msrb.mxu3 %v7934_v33 }
 0x8ba   : > { %v3944_v29 = vmul.f32 %v9036_v34, %v3943_v22  ;;  %v3924_v31 = vsub.f32 0.0, %v3911_v50  ;;  %v7929_v22 = vld [vmem:[%s15606_s4 + $0xeb0] sm:$0xff]  ;;  %v7932_v50 = vld [vmem:[%s15606_s4 + $0xec8] sm:$0xff] }
 0x8bb   : > { %4220 = vmatpush.msra.mxu2 %v7929_v22  ;;  %4277 = vmatpush.msrb.mxu3 %v7932_v50 }
 0x8bc   : > { %v9038_v55 = vpop.eup %9037  ;;  %v3932_v48 = vmul.f32 1.442695, %v3924_v31  ;;  %v3945_v27 = vadd.f32 %v9036_v34, %v3944_v29 }
 0x8bd   : > { %v9040_v32 = vpop.eup %9039  ;;  %v12324_v10 = vadd.f32 1.0, %v9038_v55  ;;  %v3815_v55 = vadd.f32 %v12241_v7, %v12313_v61  ;;  %4221 = vmatpush.msra.mxu2 %v7927_v40  ;;  %4278 = vmatpush.msrb.mxu3 %v7930_v36  ;;  %v7914_v36 = vld [vmem:[%s15606_s4 + $0xe38] sm:$0xff] }
 0x8be   : > { %9043 = vpow2.f32 %v3932_v48  ;;  %v3949_v63 = vsel %vm3948_vm7, %v9036_v34, %v3945_v27  ;;  %v3957_v16 = vmul.f32 %v9040_v32, %v12317_v11  ;;  %v9042_v28 = vpop.eup %9041  ;;  %vm3962_vm10 = vweird.f32 %v9040_v32  ;;  %v7968_v34 = vld [vmem:[%s15606_s4 + $0xfe8] sm:$0xff] }
 0x8bf   : > { %9045 = vrcp.f32 %v12324_v10  ;;  %v3913_v43 = vpop.f32.mrf.mxu3  ;;  %v3954_v15 = vsel %vm3951_vm8, %v3953_v23, %v3949_v63  ;;  %vm12353_vm12 = vmor %vm3961_vm11, %vm3962_vm10  ;;  %4304 = vmatpush.msrb.mxu0 %v7968_v34  ;;  %v3982_v56 = vand.u32 2147483648, %v12324_v10  ;;  %v3980_v31 = vand.u32 2147483647, %v12324_v10  ;;  %v7964_v48 = vld [vmem:[%s15606_s4 + $0xfc8] sm:$0xff] }
 0x8c0   : > { %v3914_v21 = vadd.f32 %v3913_v43, %v3882_v5  ;;  %v4016_v53 = vmul.f32 %v9042_v28, %v3954_v15  ;;  %v3958_v4 = vsub.f32 1.0, %v3957_v16  ;;  %9047 = vtanh.f32 %v3841_v41  ;;  %v7925_v41 = vld [vmem:[%s15606_s4 + $0xe90] sm:$0xff]  ;;  %v7928_v5 = vld [vmem:[%s15606_s4 + $0xea8] sm:$0xff]  ;;  %v7923_v43 = vld [vmem:[%s15606_s4 + $0xe80] sm:$0xff]  ;;  %v3849_v2 = vpop.f32.mrf.mxu1 }
 0x8c1   : > { %vm3976_vm15 = vweird.f32 %v12324_v10  ;;  %4305 = vmatpush.msrb.mxu0 %v7966_v51  ;;  %v3847_v23 = vadd.f32 %v3846_v39, %v3815_v55  ;;  %v3983_v63 = vor.u32 1.1754944e-38, %v3982_v56  ;;  %vm3981_vm2 = vcmp.eq.f32.partialorder %v3980_v31, 8.507059e+37  ;;  %v7926_v15 = vld [vmem:[%s15606_s4 + $0xe98] sm:$0xff]  ;;  %4222 = vmatpush.msra.mxu2 %v7925_v41  ;;  %v7916_v39 = vld [vmem:[%s15606_s4 + $0xe48] sm:$0xff]  ;;  %v7909_v41 = vld [vmem:[%s15606_s4 + $0xe10] sm:$0xff] }
 0x8c2   : > { %v3925_v6 = vsub.f32 0.0, %v3914_v21  ;;  %4077 = vmatmul.f32.vlgmr.msra.gmra.mxu0 %v4016_v53  ;;  %4106 = vmatmul.f32.vlgmr.msra.gmra.mxu1 %v4016_v53  ;;  %v3959_v17 = vmul.f32 %v9040_v32, %v3958_v4  ;;  %v7954_v55 = vld [vmem:[%s15606_s4 + $0xf78] sm:$0xff] }
 0x8c3   : > { %4306 = vmatpush.msrb.mxu0 %v7964_v48  ;;  %4279 = vmatpush.msrb.mxu3 %v7928_v5  ;;  %v7911_v48 = vld [vmem:[%s15606_s4 + $0xe20] sm:$0xff]  ;;  %v7910_v5 = vld [vmem:[%s15606_s4 + $0xe18] sm:$0xff] }
 0x8c4   : > { %v9044_v20 = vpop.eup %9043  ;;  %v3934_v54 = vmul.f32 1.442695, %v3925_v6  ;;  %v3960_v58 = vadd.f32 %v9040_v32, %v3959_v17  ;;  %v7921_v6 = vld [vmem:[%s15606_s4 + $0xe70] sm:$0xff]  ;;  %v7924_v17 = vld [vmem:[%s15606_s4 + $0xe88] sm:$0xff]  ;;  %4223 = vmatpush.msra.mxu2 %v7923_v43 }
 0x8c5   : > { %v12348_v12 = vpop.eup %9045  ;;  %v12350_v44 = vadd.f32 1.0, %v9044_v20  ;;  %4280 = vmatpush.msrb.mxu3 %v7926_v15  ;;  %v7919_v20 = vld [vmem:[%s15606_s4 + $0xe60] sm:$0xff]  ;;  %v7944_v43 = vld [vmem:[%s15606_s4 + $0xf28] sm:$0xff]  ;;  %v7965_v15 = vld [vmem:[%s15606_s4 + $0xfd0] sm:$0xff] }
 0x8c6   : > { %9049 = vpow2.f32 %v3934_v54  ;;  %v3964_v9 = vsel %vm12353_vm12, %v9040_v32, %v3960_v58  ;;  %v3972_v42 = vmul.f32 %v12348_v12, %v12324_v10  ;;  %v9048_v26 = vpop.eup %9047  ;;  %vm3977_vm14 = vweird.f32 %v12348_v12  ;;  %v7962_v10 = vld [vmem:[%s15606_s4 + $0xfb8] sm:$0xff]  ;;  %4224 = vmatpush.msra.mxu2 %v7921_v6  ;;  %v7959_v6 = vld [vmem:[%s15606_s4 + $0xfa0] sm:$0xff] }
 0x8c7   : > { %9051 = vrcp.f32 %v12350_v44  ;;  %v3969_v11 = vsel %vm3966_vm13, %v3968_v18, %v3964_v9  ;;  %vm3978_vm0 = vmor %vm3976_vm15, %vm3977_vm14  ;;  %4307 = vmatpush.msrb.mxu0 %v7962_v10  ;;  %v3997_v60 = vand.u32 2147483648, %v12350_v44  ;;  %v3995_v38 = vand.u32 2147483647, %v12350_v44  ;;  %v7922_v54 = vld [vmem:[%s15606_s4 + $0xe78] sm:$0xff]  ;;  %4281 = vmatpush.msrb.mxu3 %v7924_v17  ;;  %v7969_v10 = vld [vmem:[%s15606_s4 + $0xff0] sm:$0xff] }
 0x8c8   : > { %v4017_v46 = vmul.f32 %v9048_v26, %v3969_v11  ;;  %v3973_v49 = vsub.f32 1.0, %v3972_v42  ;;  %9053 = vtanh.f32 %v3844_v8  ;;  %v3818_v58 = vadd.f32 %v12270_v13, %v12313_v61  ;;  %v7920_v8 = vld [vmem:[%s15606_s4 + $0xe68] sm:$0xff]  ;;  %4225 = vmatpush.msra.mxu2 %v7919_v20  ;;  %v7918_v9 = vld [vmem:[%s15606_s4 + $0xe58] sm:$0xff]  ;;  %v7913_v11 = vld [vmem:[%s15606_s4 + $0xe30] sm:$0xff] }
 0x8c9   : > { %vm3991_vm5 = vweird.f32 %v12350_v44  ;;  %4308 = vmatpush.msrb.mxu0 %v7960_v1  ;;  %v3998_v61 = vor.u32 1.1754944e-38, %v3997_v60  ;;  %4282 = vmatpush.msrb.mxu3 %v7922_v54  ;;  %vm3996_vm7 = vcmp.eq.f32.partialorder %v3995_v38, 8.507059e+37  ;;  %v7957_v17 = vld [vmem:[%s15606_s4 + $0xf90] sm:$0xff]  ;;  %v7955_v60 = vld [vmem:[%s15606_s4 + $0xf80] sm:$0xff] }
 0x8ca   : > { %4079 = vmatmul.f32.gmra.mxu0 %v4017_v46  ;;  %4109 = vmatmul.f32.gmra.mxu1 %v4017_v46  ;;  %v3974_v29 = vmul.f32 %v12348_v12, %v3973_v49  ;;  %v3850_v13 = vadd.f32 %v3849_v2, %v3818_v58  ;;  %v7953_v1 = vld [vmem:[%s15606_s4 + $0xf70] sm:$0xff]  ;;  %v7906_v2 = vld [vmem:[%s15609_s7 + $0xc] sm:$0x3]  ;;  %v7947_v54 = vld [vmem:[%s15606_s4 + $0xf40] sm:$0xff] }
 0x8cb   : > { %4309 = vmatpush.msrb.mxu0 %v7958_v35  ;;  %4283 = vmatpush.msrb.mxu3 %v7920_v8  ;;  %v4058_v38 = vperm.slane %v7906_v2, 1  ;;  %v7949_v20 = vld [vmem:[%s15606_s4 + $0xf50] sm:$0xff] }
 0x8cc   : > { %v9050_v27 = vpop.eup %9049  ;;  %v3975_v32 = vadd.f32 %v12348_v12, %v3974_v29  ;;  %v7945_v58 = vld [vmem:[%s15606_s4 + $0xf30] sm:$0xff] }
 0x8cd   : > { %v9052_v7 = vpop.eup %9051  ;;  %v12406_v24 = vadd.f32 1.0, %v9050_v27  ;;  %4284 = vmatpush.msrb.mxu3 %v7918_v9  ;;  %v7912_v27 = vld [vmem:[%s15606_s4 + $0xe28] sm:$0xff] }
 0x8ce   : > { %v3979_v16 = vsel %vm3978_vm0, %v12348_v12, %v3975_v32  ;;  %v3987_v28 = vmul.f32 %v9052_v7, %v12350_v44  ;;  %v9054_v21 = vpop.eup %9053  ;;  %vm3992_vm3 = vweird.f32 %v9052_v7  ;;  %v7917_v12 = vld [vmem:[%s15606_s4 + $0xe50] sm:$0xff]  ;;  %v7956_v44 = vld [vmem:[%s15606_s4 + $0xf88] sm:$0xff] }
 0x8cf   : > { %9055 = vrcp.f32 %v12406_v24  ;;  %v3984_v53 = vsel %vm3981_vm2, %v3983_v63, %v3979_v16  ;;  %vm3993_vm6 = vmor %vm3991_vm5, %vm3992_vm3  ;;  %4226 = vmatpush.msra.mxu2 %v7917_v12  ;;  %4310 = vmatpush.msrb.mxu0 %v7956_v44  ;;  %v4012_v46 = vand.u32 2147483648, %v12406_v24  ;;  %v4010_v22 = vand.u32 2147483647, %v12406_v24  ;;  %v7952_v32 = vld [vmem:[%s15606_s4 + $0xf68] sm:$0xff]  ;;  %v7946_v16 = vld [vmem:[%s15606_s4 + $0xf38] sm:$0xff] }
 0x8d0   : > { %v4018_v4 = vmul.f32 %v9054_v21, %v3984_v53  ;;  %v3988_v59 = vsub.f32 1.0, %v3987_v28  ;;  %9057 = vtanh.f32 %v3847_v23  ;;  %4285 = vmatpush.msrb.mxu3 %v7916_v39  ;;  %vm4006_vm10 = vweird.f32 %v12406_v24  ;;  %v7907_v23 = vld [vmem:[%s15606_s4 + $0xe00] sm:$0xff]  ;;  %v7948_v63 = vld [vmem:[%s15606_s4 + $0xf48] sm:$0xff]  ;;  %v7942_v21 = vld [vmem:[%s15606_s4 + $0xf18] sm:$0xff] }
 0x8d1   : > { %9059 = vtanh.f32 %v3850_v13  ;;  %4227 = vmatpush.msra.mxu2 %v7915_v57  ;;  %v4013_v56 = vor.u32 1.1754944e-38, %v4012_v46  ;;  %vm4011_vm12 = vcmp.eq.f32.partialorder %v4010_v22, 8.507059e+37  ;;  %4311 = vmatpush.msrb.mxu0 %v7954_v55  ;;  %v7967_v28 = vld [vmem:[%s15606_s4 + $0xfe0] sm:$0xff]  ;;  %v7941_v13 = vld [vmem:[%s15606_s4 + $0xf10] sm:$0xff]  ;;  %v4057_v39 = vperm.slane %v7906_v2, 0  ;;  %v7983_v2 = vld [vmem:[%s15608_s6 + $0x758] sm:$0xff] }
 0x8d2   : > { %4081 = vmatmul.f32.gmra.mxu0 %v4018_v4  ;;  %4112 = vmatmul.f32.gmra.mxu1 %v4018_v4  ;;  %v3989_v62 = vmul.f32 %v9052_v7, %v3988_v59  ;;  %v7963_v53 = vld [vmem:[%s15606_s4 + $0xfc0] sm:$0xff]  ;;  %v7940_v4 = vld [vmem:[%s15606_s4 + $0xf08] sm:$0xff]  ;;  %v7961_v59 = vld [vmem:[%s15606_s4 + $0xfb0] sm:$0xff] }
 0x8d3   : > { %4228 = vmatpush.msra.mxu2 %v7913_v11  ;;  %4286 = vmatpush.msrb.mxu3 %v7914_v36  ;;  %v7939_v44 = vld [vmem:[%s15606_s4 + $0xf00] sm:$0xff] }
 0x8d4   : > { %v3990_v30 = vadd.f32 %v9052_v7, %v3989_v62  ;;  %4312 = vmatpush.msrb.mxu0 %v7952_v32  ;;  %v7951_v62 = vld [vmem:[%s15606_s4 + $0xf60] sm:$0xff]  ;;  %v7998_v32 = vld [vmem:[%s15608_s6 + $0x7d0] sm:$0xff] }
 0x8d5   : > { %v9056_v37 = vpop.eup %9055  ;;  %4229 = vmatpush.msra.mxu2 %v7911_v48  ;;  %4287 = vmatpush.msrb.mxu3 %v7912_v27  ;;  %v8000_v48 = vld [vmem:[%s15608_s6 + $0x7e0] sm:$0xff]  ;;  %v7999_v27 = vld [vmem:[%s15608_s6 + $0x7d8] sm:$0xff] }
 0x8d6   : > { %v3994_v18 = vsel %vm3993_vm6, %v9052_v7, %v3990_v30  ;;  %v4002_v33 = vmul.f32 %v9056_v37, %v12406_v24  ;;  %v9058_v42 = vpop.eup %9057  ;;  %vm4007_vm8 = vweird.f32 %v9056_v37  ;;  %v7950_v7 = vld [vmem:[%s15606_s4 + $0xf58] sm:$0xff]  ;;  %v7908_v24 = vld [vmem:[%s15606_s4 + $0xe08] sm:$0xff] }
 0x8d7   : > { %v3999_v19 = vsel %vm3996_vm7, %v3998_v61, %v3994_v18  ;;  %vm4008_vm11 = vmor %vm4006_vm10, %vm4007_vm8  ;;  %v9060_v29 = vpop.eup %9059  ;;  %4230 = vmatpush.msra.mxu2 %v7909_v41  ;;  %4288 = vmatpush.msrb.mxu3 %v7910_v5  ;;  %v7997_v41 = vld [vmem:[%s15608_s6 + $0x7c8] sm:$0xff]  ;;  %v7996_v5 = vld [vmem:[%s15608_s6 + $0x7c0] sm:$0xff] }
 0x8d8   : > { %v4019_v34 = vmul.f32 %v9058_v42, %v3999_v19  ;;  %v4003_v26 = vsub.f32 1.0, %v4002_v33  ;;  %4313 = vmatpush.msrb.mxu0 %v7950_v7  ;;  %v7995_v7 = vld [vmem:[%s15608_s6 + $0x7b8] sm:$0xff] }
 0x8d9   : > { %4231 = vmatpush.msra.mxu2 %v7907_v23  ;;  %4289 = vmatpush.msrb.mxu3 %v7908_v24  ;;  %v7994_v23 = vld [vmem:[%s15608_s6 + $0x7b0] sm:$0xff]  ;;  %v7993_v24 = vld [vmem:[%s15608_s6 + $0x7a8] sm:$0xff] }
 0x8da   : > { %4083 = vmatmul.f32.gmra.mxu0 %v4019_v34  ;;  %4115 = vmatmul.f32.gmra.mxu1 %v4019_v34  ;;  %v4004_v49 = vmul.f32 %v9056_v37, %v4003_v26 }
 0x8db   : > { %4314 = vmatpush.msrb.mxu0 %v7948_v63  ;;  %4245 = vmatpush.msrb.mxu2 %v7969_v10  ;;  %v7992_v63 = vld [vmem:[%s15608_s6 + $0x7a0] sm:$0xff]  ;;  %v12639_v10 = vld [vmem:[%s15607_s5 + $0xe] sm:$0x3] }
 0x8dc   : > { %v4005_v50 = vadd.f32 %v9056_v37, %v4004_v49 }
 0x8dd   : > { %4315 = vmatpush.msrb.mxu0 %v7946_v16  ;;  %4246 = vmatpush.msrb.mxu2 %v7967_v28  ;;  %v7991_v16 = vld [vmem:[%s15608_s6 + $0x798] sm:$0xff]  ;;  %v7990_v28 = vld [vmem:[%s15608_s6 + $0x790] sm:$0xff] }
 0x8de   : > { %v4009_v51 = vsel %vm4008_vm11, %v9056_v37, %v4005_v50  ;;  %v7943_v37 = vld [vmem:[%s15606_s4 + $0xf20] sm:$0xff] }
 0x8df   : > { %v4014_v31 = vsel %vm4011_vm12, %v4013_v56, %v4009_v51  ;;  %4316 = vmatpush.msrb.mxu0 %v7944_v43  ;;  %4247 = vmatpush.msrb.mxu2 %v7965_v15  ;;  %v7989_v43 = vld [vmem:[%s15608_s6 + $0x788] sm:$0xff]  ;;  %v7988_v15 = vld [vmem:[%s15608_s6 + $0x780] sm:$0xff] }
 0x8e0   : > { %v4020_v40 = vmul.f32 %v9060_v29, %v4014_v31 }
 0x8e1   : > { %4317 = vmatpush.msrb.mxu0 %v7942_v21  ;;  %4248 = vmatpush.msrb.mxu2 %v7963_v53  ;;  %v12654_v21 = vperm.slane %v12639_v10, 1  ;;  %v7987_v53 = vld [vmem:[%s15608_s6 + $0x778] sm:$0xff] }
 0x8e2   : > { %4086 = vmatmul.f32.gmra.mxu0 %v4020_v40  ;;  %4118 = vmatmul.f32.gmra.mxu1 %v4020_v40 }
 0x8e3   : > { %4318 = vmatpush.msrb.mxu0 %v7940_v4  ;;  %4249 = vmatpush.msrb.mxu2 %v7961_v59  ;;  %v7986_v4 = vld [vmem:[%s15608_s6 + $0x770] sm:$0xff] }
 0x8e5   : > { %4250 = vmatpush.msrb.mxu2 %v7959_v6 }
 0x8e7   : > { %4251 = vmatpush.msrb.mxu2 %v7957_v17  ;;  %v7985_v17 = vld [vmem:[%s15608_s6 + $0x768] sm:$0xff] }
 0x8e9   : > { %4252 = vmatpush.msrb.mxu2 %v7955_v60  ;;  %v7984_v60 = vld [vmem:[%s15608_s6 + $0x760] sm:$0xff] }
 0x8eb   : > { %4253 = vmatpush.msrb.mxu2 %v7953_v1 }
 0x8ed   : > { %4254 = vmatpush.msrb.mxu2 %v7951_v62  ;;  %v7982_v62 = vld [vmem:[%s15608_s6 + $0x750] sm:$0xff] }
 0x8ef   : > { %4255 = vmatpush.msrb.mxu2 %v7949_v20 }
 0x8f1   : > { %4256 = vmatpush.msrb.mxu2 %v7947_v54  ;;  %v7981_v54 = vld [vmem:[%s15608_s6 + $0x748] sm:$0xff] }
 0x8f3   : > { %4257 = vmatpush.msrb.mxu2 %v7945_v58  ;;  %v7980_v58 = vld [vmem:[%s15608_s6 + $0x740] sm:$0xff] }
 0x8f5   : > { %4258 = vmatpush.msrb.mxu2 %v7943_v37 }
 0x8f7   : > { %4259 = vmatpush.msrb.mxu2 %v7941_v13 }
 0x8f9   : > { %4260 = vmatpush.msrb.mxu2 %v7939_v44  ;;  %v7976_v44 = vld [vmem:[%s15608_s6 + $0x720] sm:$0xff] }
 0x93f   : > { %v4078_v35 = vpop.f32.mrf.mxu0  ;;  %v4107_v30 = vpop.f32.mrf.mxu1 }
 0x940   : > { %v4108_v12 = vadd.f32 %v4107_v30, %v4058_v38  ;;  %v7979_v30 = vld [vmem:[%s15608_s6 + $0x738] sm:$0xff] }
 0x942   : > { %v4134_v8 = vadd.f32 %v4108_v12, %v12158_v52  ;;  %v7978_v12 = vld [vmem:[%s15608_s6 + $0x730] sm:$0xff] }
 0x944   : > { %v4139_v61 = vmul.f32 0.999995, %v4134_v8 }
 0x946   : > { %4232 = vmatmul.f32.vlgmr.msra.gmra.mxu2 %v4139_v61  ;;  %4290 = vmatmul.f32.vlgmr.msrb.gmra.mxu3 %v4139_v61  ;;  %v7977_v61 = vld [vmem:[%s15608_s6 + $0x728] sm:$0xff] }
 0x947   : > { %v4080_v18 = vpop.f32.mrf.mxu0  ;;  %v4110_v33 = vpop.f32.mrf.mxu1 }
 0x948   : > { %v4111_v52 = vadd.f32 %v4110_v33, %v4058_v38  ;;  %v7975_v33 = vld [vmem:[%s15608_s6 + $0x718] sm:$0xff] }
 0x94a   : > { %v4135_v57 = vadd.f32 %v4111_v52, %v12164_v0  ;;  %v7974_v52 = vld [vmem:[%s15608_s6 + $0x710] sm:$0xff] }
 0x94c   : > { %v12569_v9 = vmul.f32 0.999995, %v4135_v57 }
 0x94e   : > { %4235 = vmatmul.f32.gmra.mxu2 %v12569_v9  ;;  %4293 = vmatmul.f32.gmra.mxu3 %v12569_v9 }
 0x94f   : > { %4319 = vmatmul.f32.vlgmr.msrb.gmra.mxu0 %v12569_v9  ;;  %v4082_v42 = vpop.f32.mrf.mxu0  ;;  %v4113_v19 = vpop.f32.mrf.mxu1 }
 0x950   : > { %v4114_v34 = vadd.f32 %v4113_v19, %v4058_v38  ;;  %v7973_v19 = vld [vmem:[%s15608_s6 + $0x708] sm:$0xff] }
 0x952   : > { %v4136_v26 = vadd.f32 %v4114_v34, %v12170_v47  ;;  %v7972_v34 = vld [vmem:[%s15608_s6 + $0x700] sm:$0xff] }
 0x954   : > { %v12575_v11 = vmul.f32 0.999995, %v4136_v26 }
 0x956   : > { %4238 = vmatmul.f32.gmra.mxu2 %v12575_v11  ;;  %4296 = vmatmul.f32.gmra.mxu3 %v12575_v11 }
 0x957   : > { %4322 = vmatmul.f32.gmra.mxu0 %v12575_v11  ;;  %v4084_v0 = vpop.f32.mrf.mxu0  ;;  %v4116_v46 = vpop.f32.mrf.mxu1 }
 0x958   : > { %v4085_v49 = vadd.f32 %v4084_v0, %v4057_v39  ;;  %v4117_v22 = vadd.f32 %v4116_v46, %v4058_v38 }
 0x95a   : > { %v12581_v50 = vadd.f32 %v12183_v45, %v4085_v49  ;;  %v4137_v56 = vadd.f32 %v4117_v22, %v12178_v3  ;;  %v8003_v3 = vld [vmem:[%s15608_s6 + $0x7f8] sm:$0xff] }
 0x95b   : > { %4483 = vmatpush.msra.mxu2 %v8003_v3 }
 0x95c   : > { %v12584_v51 = vmul.f32 0.999995, %v4137_v56 }
 0x95e   : > { %4241 = vmatmul.f32.gmra.mxu2 %v12584_v51  ;;  %4299 = vmatmul.f32.gmra.mxu3 %v12584_v51 }
 0x95f   : > { %4325 = vmatmul.f32.gmra.mxu0 %v12584_v51  ;;  %v4087_v47 = vpop.f32.mrf.mxu0  ;;  %v4119_v29 = vpop.f32.mrf.mxu1 }
 0x960   : > { %v4088_v31 = vadd.f32 %v4087_v47, %v4057_v39  ;;  %v4120_v40 = vadd.f32 %v4119_v29, %v4058_v38 }
 0x962   : > { %v12590_v36 = vadd.f32 %v12193_v14, %v4088_v31  ;;  %v4138_v45 = vadd.f32 %v4120_v40, %v12189_v25  ;;  %v8002_v25 = vld [vmem:[%s15608_s6 + $0x7f0] sm:$0xff]  ;;  %v8001_v14 = vld [vmem:[%s15608_s6 + $0x7e8] sm:$0xff] }
 0x963   : > { %4456 = vmatpush.msrb.mxu1 %v8002_v25  ;;  %4484 = vmatpush.msra.mxu2 %v8001_v14 }
 0x964   : > { %v12593_v55 = vmul.f32 0.999995, %v4138_v45 }
 0x965   : > { %4457 = vmatpush.msrb.mxu1 %v8000_v48  ;;  %4485 = vmatpush.msra.mxu2 %v7999_v27 }
 0x966   : > { %4261 = vmatmul.f32.vlgmr.msrb.gmra.mxu2 %v12569_v9 }
 0x967   : > { %4328 = vmatmul.f32.gmra.mxu0 %v12593_v55  ;;  %4458 = vmatpush.msrb.mxu1 %v7998_v32 }
 0x968   : > { %4486 = vmatpush.msra.mxu2 %v7997_v41  ;;  %v12719_v41 = vperm.slane %v12639_v10, 0 }
 0x969   : > { %4459 = vmatpush.msrb.mxu1 %v7996_v5 }
 0x96a   : > { %4487 = vmatpush.msra.mxu2 %v7995_v7 }
 0x96b   : > { %4460 = vmatpush.msrb.mxu1 %v7994_v23 }
 0x96c   : > { %4488 = vmatpush.msra.mxu2 %v7993_v24 }
 0x96d   : > { %4461 = vmatpush.msrb.mxu1 %v7992_v63 }
 0x96e   : > { %4264 = vmatmul.f32.gmra.mxu2 %v12575_v11 }
 0x96f   : > { %4489 = vmatpush.msra.mxu2 %v7991_v16  ;;  %4462 = vmatpush.msrb.mxu1 %v7990_v28 }
 0x971   : > { %4490 = vmatpush.msra.mxu2 %v7989_v43  ;;  %4463 = vmatpush.msrb.mxu1 %v7988_v15 }
 0x973   : > { %4491 = vmatpush.msra.mxu2 %v7987_v53  ;;  %4464 = vmatpush.msrb.mxu1 %v7986_v4 }
 0x975   : > { %4492 = vmatpush.msra.mxu2 %v7985_v17  ;;  %4465 = vmatpush.msrb.mxu1 %v7984_v60 }
 0x976   : > { %4267 = vmatmul.f32.gmra.mxu2 %v12584_v51 }
 0x977   : > { %4493 = vmatpush.msra.mxu2 %v7983_v2  ;;  %4466 = vmatpush.msrb.mxu1 %v7982_v62  ;;  %v8036_v2 = vld [vmem:[%s15606_s4 + $0x10f8] sm:$0xff]  ;;  %v8033_v62 = vld [vmem:[%s15606_s4 + $0x10e0] sm:$0xff] }
 0x979   : > { %4494 = vmatpush.msra.mxu2 %v7981_v54  ;;  %4467 = vmatpush.msrb.mxu1 %v7980_v58 }
 0x97b   : > { %4495 = vmatpush.msra.mxu2 %v7979_v30  ;;  %4468 = vmatpush.msrb.mxu1 %v7978_v12  ;;  %v8031_v30 = vld [vmem:[%s15606_s4 + $0x10d0] sm:$0xff]  ;;  %v8032_v12 = vld [vmem:[%s15606_s4 + $0x10d8] sm:$0xff] }
 0x97d   : > { %4496 = vmatpush.msra.mxu2 %v7977_v61  ;;  %4469 = vmatpush.msrb.mxu1 %v7976_v44 }
 0x97e   : > { %4270 = vmatmul.f32.gmra.mxu2 %v12593_v55 }
 0x97f   : > { %4497 = vmatpush.msra.mxu2 %v7975_v33  ;;  %4470 = vmatpush.msrb.mxu1 %v7974_v52  ;;  %v8030_v52 = vld [vmem:[%s15606_s4 + $0x10c8] sm:$0xff] }
 0x981   : > { %4498 = vmatpush.msra.mxu2 %v7973_v19  ;;  %4471 = vmatpush.msrb.mxu1 %v7972_v34 }
 0x983   : > { %4667 = vmatpush.msra.mxu1 %v8036_v2  ;;  %v8019_v2 = vld [vmem:[%s15606_s4 + $0x1070] sm:$0xff] }
 0x9c9   : > { %v12662_v59 = vpop.f32.mrf.mxu2  ;;  %v4291_v6 = vpop.f32.mrf.mxu3 }
 0x9ca   : > { %v4292_v1 = vadd.f32 %v4291_v6, %v12654_v21  ;;  %v4234_v63 = vadd.f32 %v12662_v59, %v12719_v41 }
 0x9cc   : > { %v4320_v38 = vpop.f32.mrf.mxu0 }
 0x9cd   : > { %v4321_v20 = vadd.f32 %v4320_v38, %v4292_v1  ;;  %v8035_v1 = vld [vmem:[%s15606_s4 + $0x10f0] sm:$0xff] }
 0x9ce   : > { %4609 = vmatpush.msra.mxu3 %v8035_v1 }
 0x9cf   : > { %v4336_v35 = vsub.f32 0.0, %v4321_v20  ;;  %v8034_v20 = vld [vmem:[%s15606_s4 + $0x10e8] sm:$0xff] }
 0x9d0   : > { %4610 = vmatpush.msra.mxu3 %v8033_v62  ;;  %4668 = vmatpush.msra.mxu1 %v8034_v20  ;;  %v8020_v62 = vld [vmem:[%s15606_s4 + $0x1078] sm:$0xff] }
 0x9d1   : > { %v4340_v8 = vmul.f32 1.442695, %v4336_v35  ;;  %v12689_v37 = vpop.f32.mrf.mxu2  ;;  %v4294_v13 = vpop.f32.mrf.mxu3 }
 0x9d2   : > { %v4295_v18 = vadd.f32 %v4294_v13, %v12654_v21  ;;  %v4237_v54 = vadd.f32 %v12689_v37, %v12719_v41  ;;  %v8029_v37 = vld [vmem:[%s15606_s4 + $0x10c0] sm:$0xff]  ;;  %4611 = vmatpush.msra.mxu3 %v8031_v30  ;;  %4669 = vmatpush.msra.mxu1 %v8032_v12 }
 0x9d3   : > { %9061 = vpow2.f32 %v4340_v8 }
 0x9d4   : > { %v4323_v57 = vpop.f32.mrf.mxu0  ;;  %4612 = vmatpush.msra.mxu3 %v8029_v37  ;;  %4670 = vmatpush.msra.mxu1 %v8030_v52 }
 0x9d5   : > { %v4324_v42 = vadd.f32 %v4323_v57, %v4295_v18  ;;  %v8068_v57 = vld [vmem:[%s15606_s4 + $0x11f8] sm:$0xff] }
 0x9d6   : > { %4696 = vmatpush.msrb.mxu2 %v8068_v57 }
 0x9d7   : > { %v4337_v26 = vsub.f32 0.0, %v4324_v42  ;;  %v8067_v42 = vld [vmem:[%s15606_s4 + $0x11f0] sm:$0xff] }
 0x9d8   : > { %4638 = vmatpush.msra.mxu0 %v8067_v42 }
 0x9d9   : > { %v9062_v39 = vpop.eup %9061  ;;  %v4342_v0 = vmul.f32 1.442695, %v4337_v26  ;;  %v12710_v46 = vpop.f32.mrf.mxu2 }
 0x9da   : > { %v4297_v49 = vpop.f32.mrf.mxu3  ;;  %v4348_v22 = vadd.f32 1.0, %v9062_v39 }
 0x9db   : > { %v4298_v56 = vadd.f32 %v4297_v49, %v12654_v21  ;;  %9063 = vpow2.f32 %v4342_v0  ;;  %v8027_v49 = vld [vmem:[%s15606_s4 + $0x10b0] sm:$0xff] }
 0x9dc   : > { %9065 = vrcp.f32 %v4348_v22  ;;  %v4326_v47 = vpop.f32.mrf.mxu0  ;;  %v4363_v17 = vand.u32 2147483648, %v4348_v22  ;;  %vm4357_vm14 = vweird.f32 %v4348_v22  ;;  %v4361_v60 = vand.u32 2147483647, %v4348_v22  ;;  %4613 = vmatpush.msra.mxu3 %v8027_v49  ;;  %v8058_v49 = vld [vmem:[%s15606_s4 + $0x11a8] sm:$0xff] }
 0x9dd   : > { %v4327_v29 = vadd.f32 %v4326_v47, %v4298_v56 }
 0x9de   : > { %v4364_v13 = vor.u32 1.1754944e-38, %v4363_v17  ;;  %vm4362_vm0 = vcmp.eq.f32.partialorder %v4361_v60, 8.507059e+37 }
 0x9df   : > { %v4338_v31 = vsub.f32 0.0, %v4327_v29  ;;  %v8066_v29 = vld [vmem:[%s15606_s4 + $0x11e8] sm:$0xff] }
 0x9e0   : > { %4697 = vmatpush.msrb.mxu2 %v8066_v29  ;;  %v8056_v29 = vld [vmem:[%s15606_s4 + $0x1198] sm:$0xff] }
 0x9e1   : > { %v9064_v40 = vpop.eup %9063  ;;  %v4344_v45 = vmul.f32 1.442695, %v4338_v31  ;;  %v12713_v3 = vpop.f32.mrf.mxu2  ;;  %v8065_v31 = vld [vmem:[%s15606_s4 + $0x11e0] sm:$0xff] }
 0x9e2   : > { %v4300_v25 = vpop.f32.mrf.mxu3  ;;  %v9066_v14 = vpop.eup %9065  ;;  %v12715_v48 = vadd.f32 1.0, %v9064_v40  ;;  %4639 = vmatpush.msra.mxu0 %v8065_v31  ;;  %v8055_v31 = vld [vmem:[%s15606_s4 + $0x1190] sm:$0xff] }
 0x9e3   : > { %v4301_v27 = vadd.f32 %v4300_v25, %v12654_v21  ;;  %v4353_v32 = vmul.f32 %v9066_v14, %v4348_v22  ;;  %9067 = vpow2.f32 %v4344_v45  ;;  %vm4358_vm13 = vweird.f32 %v9066_v14  ;;  %v8028_v22 = vld [vmem:[%s15606_s4 + $0x10b8] sm:$0xff]  ;;  %v8025_v45 = vld [vmem:[%s15606_s4 + $0x10a0] sm:$0xff]  ;;  %v8026_v25 = vld [vmem:[%s15606_s4 + $0x10a8] sm:$0xff] }
 0x9e4   : > { %9069 = vrcp.f32 %v12715_v48  ;;  %v4329_v5 = vpop.f32.mrf.mxu0  ;;  %vm12740_vm15 = vmor %vm4357_vm14, %vm4358_vm13  ;;  %v4378_v56 = vand.u32 2147483648, %v12715_v48  ;;  %vm4372_vm3 = vweird.f32 %v12715_v48  ;;  %v4376_v40 = vand.u32 2147483647, %v12715_v48  ;;  %4671 = vmatpush.msra.mxu1 %v8028_v22  ;;  %4614 = vmatpush.msra.mxu3 %v8025_v45  ;;  %v8057_v22 = vld [vmem:[%s15606_s4 + $0x11a0] sm:$0xff]  ;;  %v8012_v45 = vld [vmem:[%s15606_s4 + $0x1038] sm:$0xff] }
 0x9e5   : > { %v4354_v7 = vsub.f32 1.0, %v4353_v32  ;;  %v4330_v23 = vadd.f32 %v4329_v5, %v4301_v27  ;;  %v8063_v32 = vld [vmem:[%s15606_s4 + $0x11d0] sm:$0xff]  ;;  %v4240_v5 = vadd.f32 %v12710_v46, %v12719_v41  ;;  %v8062_v46 = vld [vmem:[%s15606_s4 + $0x11c8] sm:$0xff] }
 0x9e6   : > { %4672 = vmatpush.msra.mxu1 %v8026_v25  ;;  %vm4377_vm6 = vcmp.eq.f32.partialorder %v4376_v40, 8.507059e+37  ;;  %4640 = vmatpush.msra.mxu0 %v8063_v32  ;;  %v8011_v40 = vld [vmem:[%s15606_s4 + $0x1030] sm:$0xff]  ;;  %v8054_v25 = vld [vmem:[%s15606_s4 + $0x1188] sm:$0xff]  ;;  %v8052_v32 = vld [vmem:[%s15606_s4 + $0x1178] sm:$0xff] }
 0x9e7   : > { %v4339_v24 = vsub.f32 0.0, %v4330_v23  ;;  %v4355_v16 = vmul.f32 %v9066_v14, %v4354_v7  ;;  %v8023_v23 = vld [vmem:[%s15606_s4 + $0x1090] sm:$0xff] }
 0x9e8   : > { %4615 = vmatpush.msra.mxu3 %v8023_v23  ;;  %v8008_v23 = vld [vmem:[%s15606_s4 + $0x1018] sm:$0xff] }
 0x9e9   : > { %v9068_v28 = vpop.eup %9067  ;;  %v4346_v43 = vmul.f32 1.442695, %v4339_v24  ;;  %v4262_v15 = vpop.f32.mrf.mxu2  ;;  %v4356_v6 = vadd.f32 %v9066_v14, %v4355_v16  ;;  %v8024_v24 = vld [vmem:[%s15606_s4 + $0x1098] sm:$0xff]  ;;  %v4379_v16 = vor.u32 1.1754944e-38, %v4378_v56  ;;  %v8013_v56 = vld [vmem:[%s15606_s4 + $0x1040] sm:$0xff] }
 0x9ea   : > { %v12724_v53 = vpop.eup %9069  ;;  %v12726_v21 = vadd.f32 1.0, %v9068_v28  ;;  %v4263_v4 = vadd.f32 %v4262_v15, %v4234_v63  ;;  %v8061_v28 = vld [vmem:[%s15606_s4 + $0x11c0] sm:$0xff]  ;;  %4673 = vmatpush.msra.mxu1 %v8024_v24  ;;  %v8050_v24 = vld [vmem:[%s15606_s4 + $0x1168] sm:$0xff] }
 0x9eb   : > { %9071 = vpow2.f32 %v4346_v43  ;;  %v4368_v10 = vmul.f32 %v12724_v53, %v12715_v48  ;;  %v4360_v58 = vsel %vm12740_vm15, %v9066_v14, %v4356_v6  ;;  %vm4373_vm2 = vweird.f32 %v12724_v53  ;;  %v8064_v48 = vld [vmem:[%s15606_s4 + $0x11d8] sm:$0xff]  ;;  %4641 = vmatpush.msra.mxu0 %v8061_v28  ;;  %v8053_v14 = vld [vmem:[%s15606_s4 + $0x1180] sm:$0xff] }
 0x9ec   : > { %9073 = vrcp.f32 %v12726_v21  ;;  %v4365_v34 = vsel %vm4362_vm0, %v4364_v13, %v4360_v58  ;;  %vm12802_vm5 = vmor %vm4372_vm3, %vm4373_vm2  ;;  %4698 = vmatpush.msrb.mxu2 %v8064_v48  ;;  %v4393_v1 = vand.u32 2147483648, %v12726_v21  ;;  %vm4387_vm8 = vweird.f32 %v12726_v21  ;;  %v8010_v48 = vld [vmem:[%s15606_s4 + $0x1028] sm:$0xff]  ;;  %v8048_v28 = vld [vmem:[%s15606_s4 + $0x1158] sm:$0xff] }
 0x9ed   : > { %9075 = vtanh.f32 %v4263_v4  ;;  %v4369_v59 = vsub.f32 1.0, %v4368_v10  ;;  %v8022_v4 = vld [vmem:[%s15606_s4 + $0x1088] sm:$0xff]  ;;  %v4391_v38 = vand.u32 2147483647, %v12726_v21 }
 0x9ee   : > { %4699 = vmatpush.msrb.mxu2 %v8062_v46  ;;  %4674 = vmatpush.msra.mxu1 %v8022_v4  ;;  %v4394_v30 = vor.u32 1.1754944e-38, %v4393_v1  ;;  %v8006_v46 = vld [vmem:[%s15606_s4 + $0x1008] sm:$0xff]  ;;  %v8044_v4 = vld [vmem:[%s15606_s4 + $0x1138] sm:$0xff] }
 0x9ef   : > { %v4370_v35 = vmul.f32 %v12724_v53, %v4369_v59  ;;  %vm4392_vm11 = vcmp.eq.f32.partialorder %v4391_v38, 8.507059e+37  ;;  %v8038_v1 = vld [vmem:[%s15606_s4 + $0x1108] sm:$0xff] }
 0x9f0   : > { %4675 = vmatpush.msra.mxu1 %v8020_v62  ;;  %v8004_v38 = vld [vmem:[%s15609_s7 + $0xe] sm:$0x3] }
 0x9f1   : > { %v9072_v8 = vpop.eup %9071  ;;  %v4265_v61 = vpop.f32.mrf.mxu2  ;;  %v4371_v0 = vadd.f32 %v12724_v53, %v4370_v35  ;;  %v4243_v35 = vadd.f32 %v12713_v3, %v12719_v41 }
 0x9f2   : > { %v12761_v44 = vpop.eup %9073  ;;  %v12763_v18 = vadd.f32 1.0, %v9072_v8  ;;  %v4266_v33 = vadd.f32 %v4265_v61, %v4237_v54 }
 0x9f3   : > { %v9076_v19 = vpop.eup %9075  ;;  %v4383_v26 = vmul.f32 %v12761_v44, %v12726_v21  ;;  %v4375_v7 = vsel %vm12802_vm5, %v12724_v53, %v4371_v0  ;;  %v8021_v53 = vld [vmem:[%s15606_s4 + $0x1080] sm:$0xff]  ;;  %vm4388_vm7 = vweird.f32 %v12761_v44  ;;  %v8016_v0 = vld [vmem:[%s15606_s4 + $0x1058] sm:$0xff] }
 0x9f4   : > { %9077 = vrcp.f32 %v12763_v18  ;;  %v4412_v39 = vmul.f32 %v9076_v19, %v4365_v34  ;;  %v4380_v6 = vsel %vm4377_vm6, %v4379_v16, %v4375_v7  ;;  %4616 = vmatpush.msra.mxu3 %v8021_v53  ;;  %vm4389_vm10 = vmor %vm4387_vm8, %vm4388_vm7  ;;  %vm4402_vm13 = vweird.f32 %v12763_v18  ;;  %v8017_v19 = vld [vmem:[%s15606_s4 + $0x1060] sm:$0xff]  ;;  %v8018_v34 = vld [vmem:[%s15606_s4 + $0x1068] sm:$0xff] }
 0x9f5   : > { %9079 = vtanh.f32 %v4266_v33  ;;  %v4384_v47 = vsub.f32 1.0, %v4383_v26  ;;  %v4408_v33 = vand.u32 2147483648, %v12763_v18  ;;  %4676 = vmatpush.msra.mxu1 %v8018_v34  ;;  %v8059_v26 = vld [vmem:[%s15606_s4 + $0x11b0] sm:$0xff]  ;;  %v8005_v16 = vld [vmem:[%s15606_s4 + $0x1000] sm:$0xff] }
 0x9f6   : > { %4472 = vmatmul.f32.vlgmr.msrb.gmra.mxu1 %v4412_v39  ;;  %4499 = vmatmul.f32.vlgmr.msra.gmra.mxu2 %v4412_v39  ;;  %v8015_v39 = vld [vmem:[%s15606_s4 + $0x1050] sm:$0xff]  ;;  %v8045_v53 = vld [vmem:[%s15606_s4 + $0x1140] sm:$0xff] }
 0x9f7   : > { %v4385_v27 = vmul.f32 %v12761_v44, %v4384_v47  ;;  %4617 = vmatpush.msra.mxu3 %v8019_v2  ;;  %v4409_v41 = vor.u32 1.1754944e-38, %v4408_v33  ;;  %4642 = vmatpush.msra.mxu0 %v8059_v26  ;;  %v8014_v47 = vld [vmem:[%s15606_s4 + $0x1048] sm:$0xff]  ;;  %v8007_v7 = vld [vmem:[%s15606_s4 + $0x1010] sm:$0xff]  ;;  %v8037_v2 = vld [vmem:[%s15606_s4 + $0x1100] sm:$0xff] }
 0x9f8   : > { %4677 = vmatpush.msra.mxu1 %v8016_v0 }
 0x9f9   : > { %v4268_v63 = vpop.f32.mrf.mxu2  ;;  %v4386_v17 = vadd.f32 %v12761_v44, %v4385_v27  ;;  %4618 = vmatpush.msra.mxu3 %v8017_v19  ;;  %4643 = vmatpush.msra.mxu0 %v8057_v22  ;;  %v8009_v27 = vld [vmem:[%s15606_s4 + $0x1020] sm:$0xff] }
 0x9fa   : > { %v9078_v43 = vpop.eup %9077  ;;  %v4269_v15 = vadd.f32 %v4268_v63, %v4240_v5  ;;  %4678 = vmatpush.msra.mxu1 %v8014_v47  ;;  %v8051_v5 = vld [vmem:[%s15606_s4 + $0x1170] sm:$0xff]  ;;  %v8049_v63 = vld [vmem:[%s15606_s4 + $0x1160] sm:$0xff] }
 0x9fb   : > { %v9080_v10 = vpop.eup %9079  ;;  %v4398_v59 = vmul.f32 %v9078_v43, %v12763_v18  ;;  %v4390_v54 = vsel %vm4389_vm10, %v12761_v44, %v4386_v17  ;;  %vm4403_vm12 = vweird.f32 %v9078_v43  ;;  %v4406_v44 = vand.u32 2147483647, %v12763_v18  ;;  %v8060_v18 = vld [vmem:[%s15606_s4 + $0x11b8] sm:$0xff]  ;;  %4619 = vmatpush.msra.mxu3 %v8015_v39  ;;  %4644 = vmatpush.msra.mxu0 %v8055_v31  ;;  %v8041_v17 = vld [vmem:[%s15606_s4 + $0x1120] sm:$0xff] }
 0x9fc   : > { %9081 = vtanh.f32 %v4269_v15  ;;  %v4413_v60 = vmul.f32 %v9080_v10, %v4380_v6  ;;  %v4395_v13 = vsel %vm4392_vm11, %v4394_v30, %v4390_v54  ;;  %vm4404_vm14 = vmor %vm4402_vm13, %vm4403_vm12  ;;  %4700 = vmatpush.msrb.mxu2 %v8060_v18  ;;  %4679 = vmatpush.msra.mxu1 %v8012_v45  ;;  %v8046_v15 = vld [vmem:[%s15606_s4 + $0x1148] sm:$0xff]  ;;  %v8043_v10 = vld [vmem:[%s15606_s4 + $0x1130] sm:$0xff] }
 0x9fd   : > { %v4399_v20 = vsub.f32 1.0, %v4398_v59  ;;  %vm4407_vm15 = vcmp.eq.f32.partialorder %v4406_v44, 8.507059e+37  ;;  %4620 = vmatpush.msra.mxu3 %v8013_v56  ;;  %4645 = vmatpush.msra.mxu0 %v8053_v14  ;;  %v8042_v6 = vld [vmem:[%s15606_s4 + $0x1128] sm:$0xff]  ;;  %v8040_v59 = vld [vmem:[%s15606_s4 + $0x1118] sm:$0xff] }
 0x9fe   : > { %4474 = vmatmul.f32.gmra.mxu1 %v4413_v60  ;;  %4502 = vmatmul.f32.gmra.mxu2 %v4413_v60  ;;  %v8039_v60 = vld [vmem:[%s15606_s4 + $0x1110] sm:$0xff]  ;;  %v8099_v45 = vld [vmem:[%s15608_s6 + $0x8e8] sm:$0xff]  ;;  %v8097_v14 = vld [vmem:[%s15608_s6 + $0x8d8] sm:$0xff] }
 0x9ff   : > { %v4400_v58 = vmul.f32 %v9078_v43, %v4399_v20  ;;  %4701 = vmatpush.msrb.mxu2 %v8058_v49  ;;  %4621 = vmatpush.msra.mxu3 %v8011_v40  ;;  %v4453_v20 = vperm.slane %v8004_v38, 1  ;;  %v8100_v40 = vld [vmem:[%s15608_s6 + $0x8f0] sm:$0xff] }
 0xa00   : > { %4680 = vmatpush.msra.mxu1 %v8010_v48  ;;  %4646 = vmatpush.msra.mxu0 %v8051_v5  ;;  %v8095_v48 = vld [vmem:[%s15608_s6 + $0x8c8] sm:$0xff]  ;;  %v8093_v5 = vld [vmem:[%s15608_s6 + $0x8b8] sm:$0xff] }
 0xa01   : > { %v4271_v12 = vpop.f32.mrf.mxu2  ;;  %v4401_v37 = vadd.f32 %v9078_v43, %v4400_v58  ;;  %4702 = vmatpush.msrb.mxu2 %v8056_v29  ;;  %4622 = vmatpush.msra.mxu3 %v8009_v27  ;;  %v8096_v27 = vld [vmem:[%s15608_s6 + $0x8d0] sm:$0xff] }
 0xa02   : > { %v9082_v21 = vpop.eup %9081  ;;  %v4272_v8 = vadd.f32 %v4271_v12, %v4243_v35  ;;  %4681 = vmatpush.msra.mxu1 %v8008_v23  ;;  %4647 = vmatpush.msra.mxu0 %v8049_v63  ;;  %v8091_v23 = vld [vmem:[%s15608_s6 + $0x8a8] sm:$0xff]  ;;  %v8089_v63 = vld [vmem:[%s15608_s6 + $0x898] sm:$0xff] }
 0xa03   : > { %v4414_v61 = vmul.f32 %v9082_v21, %v4395_v13  ;;  %v4405_v3 = vsel %vm4404_vm14, %v9078_v43, %v4401_v37  ;;  %4703 = vmatpush.msrb.mxu2 %v8054_v25  ;;  %4623 = vmatpush.msra.mxu3 %v8007_v7  ;;  %v8047_v43 = vld [vmem:[%s15606_s4 + $0x1150] sm:$0xff]  ;;  %v4452_v21 = vperm.slane %v8004_v38, 0  ;;  %v8098_v25 = vld [vmem:[%s15608_s6 + $0x8e0] sm:$0xff] }
 0xa04   : > { %9083 = vtanh.f32 %v4272_v8  ;;  %v4410_v57 = vsel %vm4407_vm15, %v4409_v41, %v4405_v3  ;;  %4682 = vmatpush.msra.mxu1 %v8006_v46  ;;  %4648 = vmatpush.msra.mxu0 %v8047_v43  ;;  %v8092_v7 = vld [vmem:[%s15608_s6 + $0x8b0] sm:$0xff]  ;;  %v8087_v46 = vld [vmem:[%s15608_s6 + $0x888] sm:$0xff]  ;;  %v8085_v43 = vld [vmem:[%s15608_s6 + $0x878] sm:$0xff] }
 0xa05   : > { %4704 = vmatpush.msrb.mxu2 %v8052_v32  ;;  %4624 = vmatpush.msra.mxu3 %v8005_v16  ;;  %v8094_v32 = vld [vmem:[%s15608_s6 + $0x8c0] sm:$0xff]  ;;  %v8088_v16 = vld [vmem:[%s15608_s6 + $0x890] sm:$0xff] }
 0xa06   : > { %4476 = vmatmul.f32.gmra.mxu1 %v4414_v61  ;;  %4505 = vmatmul.f32.gmra.mxu2 %v4414_v61  ;;  %v8076_v38 = vld [vmem:[%s15608_s6 + $0x830] sm:$0xff] }
 0xa07   : > { %4705 = vmatpush.msrb.mxu2 %v8050_v24  ;;  %4649 = vmatpush.msra.mxu0 %v8045_v53  ;;  %v8090_v24 = vld [vmem:[%s15608_s6 + $0x8a0] sm:$0xff] }
 0xa08   : > { %4849 = vmatpush.msrb.mxu3 %v8100_v40 }
 0xa09   : > { %4706 = vmatpush.msrb.mxu2 %v8048_v28  ;;  %4650 = vmatpush.msra.mxu0 %v8043_v10  ;;  %v8086_v28 = vld [vmem:[%s15608_s6 + $0x880] sm:$0xff] }
 0xa0a   : > { %v9084_v52 = vpop.eup %9083  ;;  %4850 = vmatpush.msrb.mxu3 %v8098_v25  ;;  %v8082_v10 = vld [vmem:[%s15608_s6 + $0x860] sm:$0xff] }
 0xa0b   : > { %v4415_v42 = vmul.f32 %v9084_v52, %v4410_v57  ;;  %4707 = vmatpush.msrb.mxu2 %v8046_v15  ;;  %4651 = vmatpush.msra.mxu0 %v8041_v17  ;;  %v8084_v15 = vld [vmem:[%s15608_s6 + $0x870] sm:$0xff]  ;;  %v8081_v17 = vld [vmem:[%s15608_s6 + $0x858] sm:$0xff] }
 0xa0c   : > { %4851 = vmatpush.msrb.mxu3 %v8096_v27 }
 0xa0d   : > { %4708 = vmatpush.msrb.mxu2 %v8044_v4  ;;  %4652 = vmatpush.msra.mxu0 %v8039_v60  ;;  %v8083_v4 = vld [vmem:[%s15608_s6 + $0x868] sm:$0xff] }
 0xa0e   : > { %4479 = vmatmul.f32.gmra.mxu1 %v4415_v42  ;;  %4508 = vmatmul.f32.gmra.mxu2 %v4415_v42  ;;  %v8079_v60 = vld [vmem:[%s15608_s6 + $0x848] sm:$0xff] }
 0xa0f   : > { %4709 = vmatpush.msrb.mxu2 %v8042_v6  ;;  %4653 = vmatpush.msra.mxu0 %v8037_v2  ;;  %v8069_v6 = vld [vmem:[%s15607_s5 + $0x10] sm:$0x3] }
 0xa10   : > { %4852 = vmatpush.msrb.mxu3 %v8094_v32  ;;  %v4606_v2 = vperm.slane %v8069_v6, 1 }
 0xa11   : > { %4710 = vmatpush.msrb.mxu2 %v8040_v59  ;;  %v8080_v59 = vld [vmem:[%s15608_s6 + $0x850] sm:$0xff] }
 0xa12   : > { %4853 = vmatpush.msrb.mxu3 %v8092_v7 }
 0xa13   : > { %4711 = vmatpush.msrb.mxu2 %v8038_v1  ;;  %v8078_v1 = vld [vmem:[%s15608_s6 + $0x840] sm:$0xff] }
 0xa14   : > { %4854 = vmatpush.msrb.mxu3 %v8090_v24 }
 0xa16   : > { %4855 = vmatpush.msrb.mxu3 %v8088_v16 }
 0xa18   : > { %4856 = vmatpush.msrb.mxu3 %v8086_v28 }
 0xa1a   : > { %4857 = vmatpush.msrb.mxu3 %v8084_v15  ;;  %v8133_v15 = vld [vmem:[%s15606_s4 + $0x12f0] sm:$0xff] }
 0xa1b   : > { %5009 = vmatpush.msrb.mxu1 %v8133_v15 }
 0xa1c   : > { %4858 = vmatpush.msrb.mxu3 %v8082_v10 }
 0xa1e   : > { %4859 = vmatpush.msrb.mxu3 %v8080_v59 }
 0xa20   : > { %4860 = vmatpush.msrb.mxu3 %v8078_v1  ;;  %v8129_v1 = vld [vmem:[%s15606_s4 + $0x12d0] sm:$0xff] }
 0xa22   : > { %4861 = vmatpush.msrb.mxu3 %v8076_v38 }
 0xa73   : > { %v4473_v62 = vpop.f32.mrf.mxu1 }
 0xa74   : > { %v8077_v62 = vld [vmem:[%s15608_s6 + $0x838] sm:$0xff] }
 0xa79   : > { %v4500_v54 = vpop.f32.mrf.mxu2 }
 0xa7a   : > { %v4501_v58 = vadd.f32 %v4500_v54, %v4453_v20  ;;  %v8074_v54 = vld [vmem:[%s15608_s6 + $0x820] sm:$0xff] }
 0xa7b   : > { %v4475_v35 = vpop.f32.mrf.mxu1  ;;  %4862 = vmatpush.msrb.mxu3 %v8074_v54  ;;  %v8116_v54 = vld [vmem:[%s15606_s4 + $0x1268] sm:$0xff] }
 0xa7c   : > { %v4514_v30 = vadd.f32 %v4501_v58, %v12569_v9 }
 0xa7e   : > { %v4518_v12 = vmul.f32 0.999995, %v4514_v30 }
 0xa80   : > { %4625 = vmatmul.f32.vlgmr.msra.gmra.mxu3 %v4518_v12  ;;  %4683 = vmatmul.f32.vlgmr.msra.gmra.mxu1 %v4518_v12  ;;  %v4526_v41 = vrot.slane %v4518_v12, 1  ;;  %v8073_v12 = vld [vmem:[%s15608_s6 + $0x818] sm:$0xff] }
 0xa81   : > { %v4503_v8 = vpop.f32.mrf.mxu2 }
 0xa82   : > { %v4504_v13 = vadd.f32 %v4503_v8, %v4453_v20 }
 0xa83   : > { %v4477_v61 = vpop.f32.mrf.mxu1 }
 0xa84   : > { %v4515_v37 = vadd.f32 %v4504_v13, %v12575_v11  ;;  %v4478_v33 = vadd.f32 %v4477_v61, %v4452_v21  ;;  %v8071_v13 = vld [vmem:[%s15608_s6 + $0x808] sm:$0xff]  ;;  %v8070_v61 = vld [vmem:[%s15608_s6 + $0x800] sm:$0xff] }
 0xa86   : > { %v4512_v44 = vadd.f32 %v4478_v33, %v12581_v50  ;;  %v4519_v3 = vmul.f32 0.999995, %v4515_v37 }
 0xa88   : > { %v4527_v52 = vrot.slane %v4519_v3, 1  ;;  %4628 = vmatmul.f32.gmra.mxu3 %v4519_v3  ;;  %4686 = vmatmul.f32.gmra.mxu1 %v4519_v3  ;;  %v4907_v26 = vrot.slane %v4512_v44, 1 }
 0xa89   : > { %v4506_v57 = vpop.f32.mrf.mxu2 }
 0xa8a   : > { %v4507_v42 = vadd.f32 %v4506_v57, %v4453_v20  ;;  %v12977_v9 = vsel %vm554_vm1, %v4526_v41, %v4527_v52 }
 0xa8b   : > { %v4480_v19 = vpop.f32.mrf.mxu1  ;;  %4654 = vmatmul.f32.vlgmr.msra.gmra.mxu0 %v12977_v9  ;;  %4712 = vmatmul.f32.vlgmr.msrb.gmra.mxu2 %v12977_v9 }
 0xa8c   : > { %v4516_v11 = vadd.f32 %v4507_v42, %v12584_v51  ;;  %v4481_v34 = vadd.f32 %v4480_v19, %v4452_v21  ;;  %v8072_v21 = vld [vmem:[%s15608_s6 + $0x810] sm:$0xff] }
 0xa8d   : > { %4863 = vmatpush.msrb.mxu3 %v8072_v21 }
 0xa8e   : > { %v12983_v50 = vadd.f32 %v4481_v34, %v12590_v36  ;;  %v4520_v18 = vmul.f32 0.999995, %v4516_v11 }
 0xa8f   : > { %4864 = vmatpush.msrb.mxu3 %v8070_v61  ;;  %v8165_v61 = vld [vmem:[%s15606_s4 + $0x13f0] sm:$0xff] }
 0xa90   : > { %v4908_v39 = vrot.slane %v12983_v50, 1  ;;  %4631 = vmatmul.f32.gmra.mxu3 %v4520_v18  ;;  %4689 = vmatmul.f32.gmra.mxu1 %v4520_v18  ;;  %v4529_v0 = vrot.slane %v4520_v18, 1  ;;  %v8199_v50 = vld [vmem:[%s15608_s6 + $0x9f8] sm:$0xff] }
 0xa91   : > { %v4509_v49 = vpop.f32.mrf.mxu2  ;;  %5038 = vmatpush.msra.mxu2 %v8165_v61 }
 0xa92   : > { %v4510_v22 = vadd.f32 %v4509_v49, %v4453_v20  ;;  %v12987_v56 = vsel %vm554_vm1, %v4527_v52, %v4529_v0  ;;  %v12992_v51 = vsel %vm554_vm1, %v4907_v26, %v4908_v39  ;;  %v8075_v20 = vld [vmem:[%s15608_s6 + $0x828] sm:$0xff] }
 0xa93   : > { %4657 = vmatmul.f32.gmra.mxu0 %v12987_v56  ;;  %4715 = vmatmul.f32.gmra.mxu2 %v12987_v56 }
 0xa94   : > { %v4517_v36 = vadd.f32 %v4510_v22, %v12593_v55  ;;  %v8101_v55 = vld [vmem:[%s15608_s6 + $0x8f8] sm:$0xff] }
 0xa95   : > { %4876 = vmatpush.msrb.mxu0 %v8101_v55 }
 0xa96   : > { %v4521_v47 = vmul.f32 0.999995, %v4517_v36 }
 0xa97   : > { %4877 = vmatpush.msrb.mxu0 %v8099_v45 }
 0xa98   : > { %v12997_v29 = vrot.slane %v4521_v47, 1  ;;  %4634 = vmatmul.f32.gmra.mxu3 %v4521_v47  ;;  %4692 = vmatmul.f32.gmra.mxu1 %v4521_v47 }
 0xa99   : > { %4878 = vmatpush.msrb.mxu0 %v8097_v14 }
 0xa9a   : > { %v13001_v31 = vsel %vm554_vm1, %v4529_v0, %v12997_v29  ;;  %v13106_v0 = vperm.slane %v8069_v6, 0  ;;  %v8132_v6 = vld [vmem:[%s15606_s4 + $0x12e8] sm:$0xff] }
 0xa9b   : > { %4660 = vmatmul.f32.gmra.mxu0 %v13001_v31  ;;  %4718 = vmatmul.f32.gmra.mxu2 %v13001_v31 }
 0xa9c   : > { %4879 = vmatpush.msrb.mxu0 %v8095_v48 }
 0xa9e   : > { %4880 = vmatpush.msrb.mxu0 %v8093_v5 }
 0xaa0   : > { %4881 = vmatpush.msrb.mxu0 %v8091_v23 }
 0xaa2   : > { %4882 = vmatpush.msrb.mxu0 %v8089_v63 }
 0xaa3   : > { %4663 = vmatmul.f32.gmra.mxu0 %v12997_v29  ;;  %4721 = vmatmul.f32.gmra.mxu2 %v12997_v29 }
 0xaa4   : > { %4883 = vmatpush.msrb.mxu0 %v8087_v46 }
 0xaa6   : > { %4884 = vmatpush.msrb.mxu0 %v8085_v43 }
 0xaa8   : > { %4885 = vmatpush.msrb.mxu0 %v8083_v4  ;;  %v8131_v4 = vld [vmem:[%s15606_s4 + $0x12e0] sm:$0xff] }
 0xaa9   : > { %5010 = vmatpush.msrb.mxu1 %v8131_v4 }
 0xaaa   : > { %4886 = vmatpush.msrb.mxu0 %v8081_v17 }
 0xaab   : > { %5011 = vmatpush.msrb.mxu1 %v8129_v1 }
 0xaac   : > { %4887 = vmatpush.msrb.mxu0 %v8079_v60 }
 0xaae   : > { %4888 = vmatpush.msrb.mxu0 %v8077_v62 }
 0xab0   : > { %4889 = vmatpush.msrb.mxu0 %v8075_v20 }
 0xab2   : > { %4890 = vmatpush.msrb.mxu0 %v8073_v12 }
 0xab4   : > { %4891 = vmatpush.msrb.mxu0 %v8071_v13  ;;  %v8166_v13 = vld [vmem:[%s15606_s4 + $0x13f8] sm:$0xff] }
 0xab6   : > { %5096 = vmatpush.msra.mxu0 %v8166_v13 }
 0xafd   : > { %v4684_v53 = vpop.f32.mrf.mxu1 }
 0xafe   : > { %v4685_v58 = vadd.f32 %v4684_v53, %v4606_v2  ;;  %v8134_v53 = vld [vmem:[%s15606_s4 + $0x12f8] sm:$0xff] }
 0xaff   : > { %5067 = vmatpush.msra.mxu3 %v8134_v53 }
 0xb01   : > { %5068 = vmatpush.msra.mxu3 %v8132_v6  ;;  %v8118_v6 = vld [vmem:[%s15606_s4 + $0x1278] sm:$0xff] }
 0xb03   : > { %v4626_v57 = vpop.f32.mrf.mxu3 }
 0xb04   : > { %v4627_v47 = vadd.f32 %v4626_v57, %v13106_v0  ;;  %v8126_v57 = vld [vmem:[%s15606_s4 + $0x12b8] sm:$0xff] }
 0xb05   : > { %v4687_v35 = vpop.f32.mrf.mxu1 }
 0xb06   : > { %v4688_v44 = vadd.f32 %v4687_v35, %v4606_v2  ;;  %v8127_v35 = vld [vmem:[%s15606_s4 + $0x12c0] sm:$0xff] }
 0xb07   : > { %5012 = vmatpush.msrb.mxu1 %v8127_v35  ;;  %v8156_v35 = vld [vmem:[%s15606_s4 + $0x13a8] sm:$0xff] }
 0xb08   : > { %v4655_v11 = vpop.f32.mrf.mxu0 }
 0xb09   : > { %v4656_v27 = vadd.f32 %v4655_v11, %v4627_v47  ;;  %v8163_v11 = vld [vmem:[%s15606_s4 + $0x13e0] sm:$0xff]  ;;  %v8161_v47 = vld [vmem:[%s15606_s4 + $0x13d0] sm:$0xff] }
 0xb0a   : > { %5039 = vmatpush.msra.mxu2 %v8163_v11 }
 0xb0b   : > { %v4629_v45 = vpop.f32.mrf.mxu3 }
 0xb0c   : > { %v4630_v10 = vadd.f32 %v4629_v45, %v13106_v0  ;;  %v8121_v45 = vld [vmem:[%s15606_s4 + $0x1290] sm:$0xff]  ;;  %5040 = vmatpush.msra.mxu2 %v8161_v47 }
 0xb0d   : > { %v4690_v52 = vpop.f32.mrf.mxu1 }
 0xb0e   : > { %v4713_v30 = vpop.f32.mrf.mxu2  ;;  %v4691_v26 = vadd.f32 %v4690_v52, %v4606_v2  ;;  %v8125_v52 = vld [vmem:[%s15606_s4 + $0x12b0] sm:$0xff] }
 0xb0f   : > { %v4714_v8 = vadd.f32 %v4713_v30, %v4685_v58  ;;  %5013 = vmatpush.msrb.mxu1 %v8125_v52 }
 0xb10   : > { %v4658_v5 = vpop.f32.mrf.mxu0 }
 0xb11   : > { %v4729_v37 = vsub.f32 0.0, %v4714_v8  ;;  %v4659_v38 = vadd.f32 %v4658_v5, %v4630_v10  ;;  %v8128_v8 = vld [vmem:[%s15606_s4 + $0x12c8] sm:$0xff]  ;;  %v8117_v10 = vld [vmem:[%s15606_s4 + $0x1270] sm:$0xff]  ;;  %v8150_v5 = vld [vmem:[%s15606_s4 + $0x1378] sm:$0xff] }
 0xb13   : > { %v4733_v33 = vmul.f32 1.442695, %v4729_v37  ;;  %v4632_v30 = vpop.f32.mrf.mxu3 }
 0xb15   : > { %9085 = vpow2.f32 %v4733_v33  ;;  %v4693_v55 = vpop.f32.mrf.mxu1 }
 0xb16   : > { %v4716_v3 = vpop.f32.mrf.mxu2  ;;  %v4694_v7 = vadd.f32 %v4693_v55, %v4606_v2  ;;  %v8130_v2 = vld [vmem:[%s15606_s4 + $0x12d8] sm:$0xff] }
 0xb17   : > { %v4717_v41 = vadd.f32 %v4716_v3, %v4688_v44  ;;  %5069 = vmatpush.msra.mxu3 %v8130_v2 }
 0xb18   : > { %v4661_v44 = vpop.f32.mrf.mxu0 }
 0xb19   : > { %v4730_v42 = vsub.f32 0.0, %v4717_v41  ;;  %5070 = vmatpush.msra.mxu3 %v8128_v8 }
 0xb1b   : > { %v9086_v19 = vpop.eup %9085  ;;  %v4735_v34 = vmul.f32 1.442695, %v4730_v42  ;;  %5071 = vmatpush.msra.mxu3 %v8126_v57  ;;  %v4635_v15 = vpop.f32.mrf.mxu3 }
 0xb1c   : > { %v4741_v18 = vadd.f32 1.0, %v9086_v19  ;;  %v8164_v19 = vld [vmem:[%s15606_s4 + $0x13e8] sm:$0xff] }
 0xb1d   : > { %9087 = vpow2.f32 %v4735_v34  ;;  %5097 = vmatpush.msra.mxu0 %v8164_v19 }
 0xb1e   : > { %9089 = vrcp.f32 %v4741_v18  ;;  %v4719_v49 = vpop.f32.mrf.mxu2  ;;  %v4756_v16 = vand.u32 2147483648, %v4741_v18  ;;  %v4754_v43 = vand.u32 2147483647, %v4741_v18  ;;  %vm4750_vm2 = vweird.f32 %v4741_v18 }
 0xb1f   : > { %v4720_v22 = vadd.f32 %v4719_v49, %v4691_v26  ;;  %v8123_v26 = vld [vmem:[%s15606_s4 + $0x12a0] sm:$0xff]  ;;  %v8124_v49 = vld [vmem:[%s15606_s4 + $0x12a8] sm:$0xff] }
 0xb20   : > { %v4757_v58 = vor.u32 1.1754944e-38, %v4756_v16  ;;  %vm4755_vm5 = vcmp.eq.f32.partialorder %v4754_v43, 8.507059e+37  ;;  %5014 = vmatpush.msrb.mxu1 %v8123_v26  ;;  %5072 = vmatpush.msra.mxu3 %v8124_v49  ;;  %v8119_v16 = vld [vmem:[%s15606_s4 + $0x1280] sm:$0xff]  ;;  %v4664_v1 = vpop.f32.mrf.mxu0 }
 0xb21   : > { %v4731_v36 = vsub.f32 0.0, %v4720_v22  ;;  %v4633_v22 = vadd.f32 %v4632_v30, %v13106_v0  ;;  %v8155_v30 = vld [vmem:[%s15606_s4 + $0x13a0] sm:$0xff] }
 0xb22   : > { %5015 = vmatpush.msrb.mxu1 %v8121_v45  ;;  %v8110_v45 = vld [vmem:[%s15606_s4 + $0x1238] sm:$0xff] }
 0xb23   : > { %v9088_v40 = vpop.eup %9087  ;;  %v4737_v25 = vmul.f32 1.442695, %v4731_v36  ;;  %v8162_v36 = vld [vmem:[%s15606_s4 + $0x13d8] sm:$0xff] }
 0xb24   : > { %v9090_v14 = vpop.eup %9089  ;;  %v13109_v48 = vadd.f32 1.0, %v9088_v40  ;;  %5098 = vmatpush.msra.mxu0 %v8162_v36  ;;  %5016 = vmatpush.msrb.mxu1 %v8119_v16  ;;  %v8103_v16 = vld [vmem:[%s15606_s4 + $0x1200] sm:$0xff] }
 0xb25   : > { %v4746_v32 = vmul.f32 %v9090_v14, %v4741_v18  ;;  %9091 = vpow2.f32 %v4737_v25  ;;  %vm4751_vm0 = vweird.f32 %v9090_v14  ;;  %v8122_v25 = vld [vmem:[%s15606_s4 + $0x1298] sm:$0xff] }
 0xb26   : > { %9093 = vrcp.f32 %v13109_v48  ;;  %v4722_v23 = vpop.f32.mrf.mxu2  ;;  %vm13136_vm3 = vmor %vm4750_vm2, %vm4751_vm0  ;;  %v4771_v42 = vand.u32 2147483648, %v13109_v48  ;;  %v4769_v18 = vand.u32 2147483647, %v13109_v48  ;;  %vm4765_vm7 = vweird.f32 %v13109_v48  ;;  %5073 = vmatpush.msra.mxu3 %v8122_v25  ;;  %5017 = vmatpush.msrb.mxu1 %v8117_v10  ;;  %v8152_v25 = vld [vmem:[%s15606_s4 + $0x1388] sm:$0xff]  ;;  %v8141_v10 = vld [vmem:[%s15606_s4 + $0x1330] sm:$0xff] }
 0xb27   : > { %v4747_v24 = vsub.f32 1.0, %v4746_v32  ;;  %v4723_v63 = vadd.f32 %v4722_v23, %v4694_v7  ;;  %9095 = vtanh.f32 %v4656_v27  ;;  %v4662_v27 = vadd.f32 %v4661_v44, %v4633_v22  ;;  %v8160_v7 = vld [vmem:[%s15606_s4 + $0x13c8] sm:$0xff]  ;;  %v8159_v23 = vld [vmem:[%s15606_s4 + $0x13c0] sm:$0xff] }
 0xb28   : > { %vm4770_vm10 = vcmp.eq.f32.partialorder %v4769_v18, 8.507059e+37  ;;  %5099 = vmatpush.msra.mxu0 %v8160_v7  ;;  %5041 = vmatpush.msra.mxu2 %v8159_v23  ;;  %v8105_v7 = vld [vmem:[%s15606_s4 + $0x1210] sm:$0xff]  ;;  %v8106_v23 = vld [vmem:[%s15606_s4 + $0x1218] sm:$0xff] }
 0xb29   : > { %v4748_v46 = vmul.f32 %v9090_v14, %v4747_v24  ;;  %v4732_v28 = vsub.f32 0.0, %v4723_v63 }
 0xb2b   : > { %v9092_v17 = vpop.eup %9091  ;;  %v4739_v59 = vmul.f32 1.442695, %v4732_v28  ;;  %v4749_v60 = vadd.f32 %v9090_v14, %v4748_v46  ;;  %v8120_v46 = vld [vmem:[%s15606_s4 + $0x1288] sm:$0xff] }
 0xb2c   : > { %v13131_v62 = vpop.eup %9093  ;;  %v13133_v20 = vadd.f32 1.0, %v9092_v17  ;;  %5074 = vmatpush.msra.mxu3 %v8120_v46  ;;  %v8104_v46 = vld [vmem:[%s15606_s4 + $0x1208] sm:$0xff] }
 0xb2d   : > { %9097 = vpow2.f32 %v4739_v59  ;;  %v4753_v12 = vsel %vm13136_vm3, %v9090_v14, %v4749_v60  ;;  %v4761_v21 = vmul.f32 %v13131_v62, %v13109_v48  ;;  %v9096_v37 = vpop.eup %9095  ;;  %vm4766_vm6 = vweird.f32 %v13131_v62  ;;  %v8158_v59 = vld [vmem:[%s15606_s4 + $0x13b8] sm:$0xff]  ;;  %v8157_v60 = vld [vmem:[%s15606_s4 + $0x13b0] sm:$0xff] }
 0xb2e   : > { %9099 = vrcp.f32 %v13133_v20  ;;  %v4758_v33 = vsel %vm4755_vm5, %v4757_v58, %v4753_v12  ;;  %vm13200_vm8 = vmor %vm4765_vm7, %vm4766_vm6  ;;  %v4772_v48 = vor.u32 1.1754944e-38, %v4771_v42  ;;  %v4786_v17 = vand.u32 2147483648, %v13133_v20  ;;  %5075 = vmatpush.msra.mxu3 %v8118_v6  ;;  %5100 = vmatpush.msra.mxu0 %v8158_v59  ;;  %v8140_v6 = vld [vmem:[%s15606_s4 + $0x1328] sm:$0xff]  ;;  %v8138_v59 = vld [vmem:[%s15606_s4 + $0x1318] sm:$0xff] }
 0xb2f   : > { %v4805_v3 = vmul.f32 %v9096_v37, %v4758_v33  ;;  %v4762_v41 = vsub.f32 1.0, %v4761_v21  ;;  %9101 = vtanh.f32 %v4659_v38  ;;  %v8115_v38 = vld [vmem:[%s15606_s4 + $0x1260] sm:$0xff]  ;;  %v4636_v58 = vadd.f32 %v4635_v15, %v13106_v0  ;;  %5042 = vmatpush.msra.mxu2 %v8157_v60  ;;  %v8113_v0 = vld [vmem:[%s15606_s4 + $0x1250] sm:$0xff]  ;;  %v8114_v21 = vld [vmem:[%s15606_s4 + $0x1258] sm:$0xff] }
 0xb30   : > { %vm4780_vm12 = vweird.f32 %v13133_v20  ;;  %v4787_v61 = vor.u32 1.1754944e-38, %v4786_v17  ;;  %5018 = vmatpush.msrb.mxu1 %v8115_v38  ;;  %5076 = vmatpush.msra.mxu3 %v8116_v54  ;;  %v8153_v37 = vld [vmem:[%s15606_s4 + $0x1390] sm:$0xff]  ;;  %v8144_v15 = vld [vmem:[%s15606_s4 + $0x1348] sm:$0xff]  ;;  %v8139_v17 = vld [vmem:[%s15606_s4 + $0x1320] sm:$0xff] }
 0xb31   : > { %4865 = vmatmul.f32.vlgmr.msrb.gmra.mxu3 %v4805_v3  ;;  %4892 = vmatmul.f32.vlgmr.msrb.gmra.mxu0 %v4805_v3  ;;  %v4763_v34 = vmul.f32 %v13131_v62, %v4762_v41  ;;  %v4665_v13 = vadd.f32 %v4664_v1, %v4636_v58  ;;  %v8111_v3 = vld [vmem:[%s15606_s4 + $0x1240] sm:$0xff]  ;;  %v8112_v41 = vld [vmem:[%s15606_s4 + $0x1248] sm:$0xff]  ;;  %v8137_v60 = vld [vmem:[%s15606_s4 + $0x1310] sm:$0xff] }
 0xb32   : > { %5101 = vmatpush.msra.mxu0 %v8156_v35  ;;  %5043 = vmatpush.msra.mxu2 %v8155_v30  ;;  %v8136_v1 = vld [vmem:[%s15606_s4 + $0x1308] sm:$0xff] }
 0xb33   : > { %v9098_v55 = vpop.eup %9097  ;;  %v4764_v40 = vadd.f32 %v13131_v62, %v4763_v34  ;;  %5019 = vmatpush.msrb.mxu1 %v8113_v0  ;;  %5077 = vmatpush.msra.mxu3 %v8114_v21 }
 0xb34   : > { %v13194_v14 = vpop.eup %9099  ;;  %v13196_v32 = vadd.f32 1.0, %v9098_v55  ;;  %5044 = vmatpush.msra.mxu2 %v8153_v37 }
 0xb35   : > { %v4768_v24 = vsel %vm13200_vm8, %v13131_v62, %v4764_v40  ;;  %v4776_v63 = vmul.f32 %v13194_v14, %v13133_v20  ;;  %v9102_v28 = vpop.eup %9101  ;;  %vm4781_vm11 = vweird.f32 %v13194_v14  ;;  %v4784_v62 = vand.u32 2147483647, %v13133_v20  ;;  %v8154_v20 = vld [vmem:[%s15606_s4 + $0x1398] sm:$0xff]  ;;  %5020 = vmatpush.msrb.mxu1 %v8111_v3  ;;  %5078 = vmatpush.msra.mxu3 %v8112_v41  ;;  %v8109_v40 = vld [vmem:[%s15606_s4 + $0x1230] sm:$0xff] }
 0xb36   : > { %9103 = vrcp.f32 %v13196_v32  ;;  %v4773_v43 = vsel %vm4770_vm10, %v4772_v48, %v4768_v24  ;;  %vm4782_vm13 = vmor %vm4780_vm12, %vm4781_vm11  ;;  %5102 = vmatpush.msra.mxu0 %v8154_v20  ;;  %v4801_v11 = vand.u32 2147483648, %v13196_v32  ;;  %v4799_v18 = vand.u32 2147483647, %v13196_v32  ;;  %v8149_v48 = vld [vmem:[%s15606_s4 + $0x1370] sm:$0xff]  ;;  %v8148_v24 = vld [vmem:[%s15606_s4 + $0x1368] sm:$0xff] }
 0xb37   : > { %v4806_v53 = vmul.f32 %v9102_v28, %v4773_v43  ;;  %v4777_v4 = vsub.f32 1.0, %v4776_v63  ;;  %9105 = vtanh.f32 %v4662_v27  ;;  %vm4785_vm14 = vcmp.eq.f32.partialorder %v4784_v62, 8.507059e+37  ;;  %5021 = vmatpush.msrb.mxu1 %v8109_v40  ;;  %5079 = vmatpush.msra.mxu3 %v8110_v45  ;;  %v8107_v27 = vld [vmem:[%s15606_s4 + $0x1220] sm:$0xff]  ;;  %v8146_v28 = vld [vmem:[%s15606_s4 + $0x1358] sm:$0xff]  ;;  %v8145_v43 = vld [vmem:[%s15606_s4 + $0x1350] sm:$0xff] }
 0xb38   : > { %9107 = vtanh.f32 %v4665_v13  ;;  %vm4795_vm0 = vweird.f32 %v13196_v32  ;;  %v4802_v49 = vor.u32 1.1754944e-38, %v4801_v11  ;;  %vm4800_vm3 = vcmp.eq.f32.partialorder %v4799_v18, 8.507059e+37  ;;  %5103 = vmatpush.msra.mxu0 %v8152_v25  ;;  %v8147_v63 = vld [vmem:[%s15606_s4 + $0x1360] sm:$0xff]  ;;  %v8102_v62 = vld [vmem:[%s15609_s7 + $0x10] sm:$0x3]  ;;  %v8197_v45 = vld [vmem:[%s15608_s6 + $0x9e8] sm:$0xff] }
 0xb39   : > { %4867 = vmatmul.f32.gmra.mxu3 %v4806_v53  ;;  %4895 = vmatmul.f32.gmra.mxu0 %v4806_v53  ;;  %v4778_v2 = vmul.f32 %v13194_v14, %v4777_v4  ;;  %v8143_v53 = vld [vmem:[%s15606_s4 + $0x1340] sm:$0xff]  ;;  %v8142_v4 = vld [vmem:[%s15606_s4 + $0x1338] sm:$0xff]  ;;  %v4846_v38 = vperm.slane %v8102_v62, 1 }
 0xb3a   : > { %5022 = vmatpush.msrb.mxu1 %v8107_v27  ;;  %5104 = vmatpush.msra.mxu0 %v8150_v5  ;;  %v8196_v25 = vld [vmem:[%s15608_s6 + $0x9e0] sm:$0xff]  ;;  %v8194_v27 = vld [vmem:[%s15608_s6 + $0x9d0] sm:$0xff] }
 0xb3b   : > { %v4779_v12 = vadd.f32 %v13194_v14, %v4778_v2  ;;  %v8135_v2 = vld [vmem:[%s15606_s4 + $0x1300] sm:$0xff] }
 0xb3c   : > { %v9104_v8 = vpop.eup %9103  ;;  %5023 = vmatpush.msrb.mxu1 %v8105_v7  ;;  %5105 = vmatpush.msra.mxu0 %v8148_v24  ;;  %v8192_v5 = vld [vmem:[%s15608_s6 + $0x9c0] sm:$0xff]  ;;  %v8190_v7 = vld [vmem:[%s15608_s6 + $0x9b0] sm:$0xff] }
 0xb3d   : > { %v4783_v33 = vsel %vm4782_vm13, %v13194_v14, %v4779_v12  ;;  %v4791_v44 = vmul.f32 %v9104_v8, %v13196_v32  ;;  %v9106_v52 = vpop.eup %9105  ;;  %vm4796_vm15 = vweird.f32 %v9104_v8  ;;  %v8151_v14 = vld [vmem:[%s15606_s4 + $0x1380] sm:$0xff]  ;;  %v8108_v32 = vld [vmem:[%s15606_s4 + $0x1228] sm:$0xff] }
 0xb3e   : > { %v4788_v57 = vsel %vm4785_vm14, %v4787_v61, %v4783_v33  ;;  %vm4797_vm2 = vmor %vm4795_vm0, %vm4796_vm15  ;;  %v9108_v36 = vpop.eup %9107  ;;  %5045 = vmatpush.msra.mxu2 %v8151_v14  ;;  %5080 = vmatpush.msra.mxu3 %v8108_v32  ;;  %v8195_v14 = vld [vmem:[%s15608_s6 + $0x9d8] sm:$0xff]  ;;  %v8193_v32 = vld [vmem:[%s15608_s6 + $0x9c8] sm:$0xff] }
 0xb3f   : > { %v4807_v42 = vmul.f32 %v9106_v52, %v4788_v57  ;;  %v4792_v19 = vsub.f32 1.0, %v4791_v44  ;;  %5024 = vmatpush.msrb.mxu1 %v8103_v16  ;;  %5106 = vmatpush.msra.mxu0 %v8146_v28  ;;  %v8188_v24 = vld [vmem:[%s15608_s6 + $0x9a0] sm:$0xff]  ;;  %v8186_v16 = vld [vmem:[%s15608_s6 + $0x990] sm:$0xff] }
 0xb40   : > { %5046 = vmatpush.msra.mxu2 %v8149_v48  ;;  %5081 = vmatpush.msra.mxu3 %v8106_v23  ;;  %v8191_v48 = vld [vmem:[%s15608_s6 + $0x9b8] sm:$0xff]  ;;  %v8189_v23 = vld [vmem:[%s15608_s6 + $0x9a8] sm:$0xff]  ;;  %v8184_v28 = vld [vmem:[%s15608_s6 + $0x980] sm:$0xff] }
 0xb41   : > { %4869 = vmatmul.f32.gmra.mxu3 %v4807_v42  ;;  %4898 = vmatmul.f32.gmra.mxu0 %v4807_v42  ;;  %v4793_v34 = vmul.f32 %v9104_v8, %v4792_v19 }
 0xb42   : > { %5047 = vmatpush.msra.mxu2 %v8147_v63  ;;  %5082 = vmatpush.msra.mxu3 %v8104_v46  ;;  %v8187_v63 = vld [vmem:[%s15608_s6 + $0x998] sm:$0xff]  ;;  %v8185_v46 = vld [vmem:[%s15608_s6 + $0x988] sm:$0xff] }
 0xb43   : > { %v4794_v26 = vadd.f32 %v9104_v8, %v4793_v34  ;;  %5107 = vmatpush.msra.mxu0 %v8144_v15  ;;  %v8182_v15 = vld [vmem:[%s15608_s6 + $0x970] sm:$0xff] }
 0xb44   : > { %5048 = vmatpush.msra.mxu2 %v8145_v43  ;;  %v8183_v43 = vld [vmem:[%s15608_s6 + $0x978] sm:$0xff] }
 0xb45   : > { %v4798_v22 = vsel %vm4797_vm2, %v9104_v8, %v4794_v26  ;;  %5108 = vmatpush.msra.mxu0 %v8142_v4  ;;  %v8180_v4 = vld [vmem:[%s15608_s6 + $0x960] sm:$0xff] }
 0xb46   : > { %v4803_v47 = vsel %vm4800_vm3, %v4802_v49, %v4798_v22  ;;  %5049 = vmatpush.msra.mxu2 %v8143_v53  ;;  %v8181_v53 = vld [vmem:[%s15608_s6 + $0x968] sm:$0xff] }
 0xb47   : > { %v4808_v55 = vmul.f32 %v9108_v36, %v4803_v47  ;;  %5109 = vmatpush.msra.mxu0 %v8140_v6  ;;  %v8178_v6 = vld [vmem:[%s15608_s6 + $0x950] sm:$0xff] }
 0xb48   : > { %5050 = vmatpush.msra.mxu2 %v8141_v10  ;;  %v8179_v10 = vld [vmem:[%s15608_s6 + $0x958] sm:$0xff] }
 0xb49   : > { %4872 = vmatmul.f32.gmra.mxu3 %v4808_v55  ;;  %4901 = vmatmul.f32.gmra.mxu0 %v4808_v55 }
 0xb4a   : > { %5051 = vmatpush.msra.mxu2 %v8139_v17  ;;  %5110 = vmatpush.msra.mxu0 %v8138_v59  ;;  %v8167_v17 = vld [vmem:[%s15607_s5 + $0x12] sm:$0x3]  ;;  %v8177_v59 = vld [vmem:[%s15608_s6 + $0x948] sm:$0xff] }
 0xb4c   : > { %5052 = vmatpush.msra.mxu2 %v8137_v60  ;;  %5111 = vmatpush.msra.mxu0 %v8136_v1  ;;  %v8176_v60 = vld [vmem:[%s15608_s6 + $0x940] sm:$0xff]  ;;  %v5006_v1 = vperm.slane %v8167_v17, 1 }
 0xb4e   : > { %5053 = vmatpush.msra.mxu2 %v8135_v2 }
 0xb50   : > { %5276 = vmatpush.msrb.mxu2 %v8199_v50 }
 0xb52   : > { %5277 = vmatpush.msrb.mxu2 %v8197_v45 }
 0xb54   : > { %5278 = vmatpush.msrb.mxu2 %v8195_v14 }
 0xb56   : > { %5279 = vmatpush.msrb.mxu2 %v8193_v32 }
 0xb58   : > { %5280 = vmatpush.msrb.mxu2 %v8191_v48 }
 0xb5a   : > { %5281 = vmatpush.msrb.mxu2 %v8189_v23 }
 0xb5c   : > { %5282 = vmatpush.msrb.mxu2 %v8187_v63 }
 0xb5e   : > { %5283 = vmatpush.msrb.mxu2 %v8185_v46 }
 0xb60   : > { %5284 = vmatpush.msrb.mxu2 %v8183_v43 }
 0xb62   : > { %5285 = vmatpush.msrb.mxu2 %v8181_v53  ;;  %v8232_v53 = vld [vmem:[%s15606_s4 + $0x14f8] sm:$0xff] }
 0xb64   : > { %5286 = vmatpush.msrb.mxu2 %v8179_v10 }
 0xb66   : > { %5287 = vmatpush.msrb.mxu2 %v8177_v59 }
 0xbae   : > { %v4893_v54 = vpop.f32.mrf.mxu0 }
 0xbaf   : > { %v4894_v58 = vadd.f32 %v4893_v54, %v4846_v38  ;;  %v8173_v54 = vld [vmem:[%s15608_s6 + $0x928] sm:$0xff] }
 0xbb1   : > { %v4914_v35 = vadd.f32 %v4894_v58, %v12977_v9  ;;  %v8172_v58 = vld [vmem:[%s15608_s6 + $0x920] sm:$0xff] }
 0xbb3   : > { %v4918_v30 = vmul.f32 0.999995, %v4914_v35 }
 0xbb4   : > { %v4866_v12 = vpop.f32.mrf.mxu3 }
 0xbb5   : > { %5025 = vmatmul.f32.vlgmr.msrb.gmra.mxu1 %v4918_v30  ;;  %5083 = vmatmul.f32.vlgmr.msra.gmra.mxu3 %v4918_v30  ;;  %v4926_v20 = vrot.slane %v4918_v30, 2  ;;  %v8171_v12 = vld [vmem:[%s15608_s6 + $0x918] sm:$0xff] }
 0xbb6   : > { %v4896_v0 = vpop.f32.mrf.mxu0 }
 0xbb7   : > { %v4897_v21 = vadd.f32 %v4896_v0, %v4846_v38  ;;  %v8170_v0 = vld [vmem:[%s15608_s6 + $0x910] sm:$0xff] }
 0xbb9   : > { %v4915_v8 = vadd.f32 %v4897_v21, %v12987_v56  ;;  %v4845_v56 = vperm.slane %v8102_v62, 0  ;;  %v8175_v62 = vld [vmem:[%s15608_s6 + $0x938] sm:$0xff] }
 0xbba   : > { %5288 = vmatpush.msrb.mxu2 %v8175_v62 }
 0xbbb   : > { %v4919_v13 = vmul.f32 0.999995, %v4915_v8  ;;  %v8169_v8 = vld [vmem:[%s15608_s6 + $0x908] sm:$0xff] }
 0xbbc   : > { %v4868_v61 = vpop.f32.mrf.mxu3  ;;  %5289 = vmatpush.msrb.mxu2 %v8173_v54 }
 0xbbd   : > { %v4927_v37 = vrot.slane %v4919_v13, 2  ;;  %5028 = vmatmul.f32.gmra.mxu1 %v4919_v13  ;;  %5086 = vmatmul.f32.gmra.mxu3 %v4919_v13  ;;  %v8168_v13 = vld [vmem:[%s15608_s6 + $0x900] sm:$0xff] }
 0xbbe   : > { %v4899_v33 = vpop.f32.mrf.mxu0  ;;  %5290 = vmatpush.msrb.mxu2 %v8171_v12 }
 0xbbf   : > { %v4900_v44 = vadd.f32 %v4899_v33, %v4846_v38  ;;  %v13362_v3 = vsel %vm1120_vm4, %v4926_v20, %v4927_v37 }
 0xbc0   : > { %5054 = vmatmul.f32.vlgmr.msra.gmra.mxu2 %v13362_v3  ;;  %5112 = vmatmul.f32.vlgmr.msra.gmra.mxu0 %v13362_v3 }
 0xbc1   : > { %v4916_v9 = vadd.f32 %v4900_v44, %v13001_v31  ;;  %5291 = vmatpush.msrb.mxu2 %v8169_v8  ;;  %v8226_v8 = vld [vmem:[%s15606_s4 + $0x14c8] sm:$0xff] }
 0xbc3   : > { %v4920_v41 = vmul.f32 0.999995, %v4916_v9 }
 0xbc4   : > { %v4870_v52 = vpop.f32.mrf.mxu3 }
 0xbc5   : > { %5031 = vmatmul.f32.gmra.mxu1 %v4920_v41  ;;  %5089 = vmatmul.f32.gmra.mxu3 %v4920_v41  ;;  %v4929_v57 = vrot.slane %v4920_v41, 2  ;;  %v4871_v34 = vadd.f32 %v4870_v52, %v4845_v56 }
 0xbc6   : > { %v4902_v42 = vpop.f32.mrf.mxu0 }
 0xbc7   : > { %v4903_v19 = vadd.f32 %v4902_v42, %v4846_v38  ;;  %v13368_v11 = vsel %vm1120_vm4, %v4927_v37, %v4929_v57  ;;  %v4912_v49 = vadd.f32 %v12992_v51, %v4871_v34  ;;  %v8174_v38 = vld [vmem:[%s15608_s6 + $0x930] sm:$0xff] }
 0xbc8   : > { %5057 = vmatmul.f32.gmra.mxu2 %v13368_v11  ;;  %5115 = vmatmul.f32.gmra.mxu0 %v13368_v11 }
 0xbc9   : > { %v4917_v18 = vadd.f32 %v4903_v19, %v12997_v29  ;;  %v5307_v29 = vrot.slane %v4912_v49, 2 }
 0xbcb   : > { %v4921_v26 = vmul.f32 0.999995, %v4917_v18 }
 0xbcc   : > { %v4873_v31 = vpop.f32.mrf.mxu3 }
 0xbcd   : > { %v13374_v22 = vrot.slane %v4921_v26, 2  ;;  %v4874_v36 = vadd.f32 %v4873_v31, %v4845_v56  ;;  %5034 = vmatmul.f32.gmra.mxu1 %v4921_v26  ;;  %5092 = vmatmul.f32.gmra.mxu3 %v4921_v26  ;;  %v13493_v26 = vperm.slane %v8167_v17, 0 }
 0xbcf   : > { %v13378_v47 = vadd.f32 %v4908_v39, %v4874_v36  ;;  %v13382_v55 = vsel %vm1120_vm4, %v4929_v57, %v13374_v22  ;;  %v8198_v39 = vld [vmem:[%s15608_s6 + $0x9f0] sm:$0xff] }
 0xbd0   : > { %5060 = vmatmul.f32.gmra.mxu2 %v13382_v55  ;;  %5118 = vmatmul.f32.gmra.mxu0 %v13382_v55 }
 0xbd1   : > { %v5308_v51 = vrot.slane %v13378_v47, 2  ;;  %5249 = vmatpush.msra.mxu1 %v8198_v39 }
 0xbd3   : > { %v13390_v40 = vsel %vm1120_vm4, %v5307_v29, %v5308_v51  ;;  %5250 = vmatpush.msra.mxu1 %v8196_v25 }
 0xbd5   : > { %5251 = vmatpush.msra.mxu1 %v8194_v27 }
 0xbd7   : > { %5252 = vmatpush.msra.mxu1 %v8192_v5 }
 0xbd8   : > { %5063 = vmatmul.f32.gmra.mxu2 %v13374_v22  ;;  %5121 = vmatmul.f32.gmra.mxu0 %v13374_v22 }
 0xbd9   : > { %5253 = vmatpush.msra.mxu1 %v8190_v7 }
 0xbdb   : > { %5254 = vmatpush.msra.mxu1 %v8188_v24 }
 0xbdd   : > { %5255 = vmatpush.msra.mxu1 %v8186_v16 }
 0xbdf   : > { %5256 = vmatpush.msra.mxu1 %v8184_v28 }
 0xbe1   : > { %5257 = vmatpush.msra.mxu1 %v8182_v15  ;;  %v8231_v15 = vld [vmem:[%s15606_s4 + $0x14f0] sm:$0xff] }
 0xbe2   : > { %5408 = vmatpush.msrb.mxu3 %v8231_v15 }
 0xbe3   : > { %5258 = vmatpush.msra.mxu1 %v8180_v4  ;;  %v8229_v4 = vld [vmem:[%s15606_s4 + $0x14e0] sm:$0xff] }
 0xbe4   : > { %5409 = vmatpush.msrb.mxu3 %v8229_v4 }
 0xbe5   : > { %5259 = vmatpush.msra.mxu1 %v8178_v6  ;;  %v8230_v6 = vld [vmem:[%s15606_s4 + $0x14e8] sm:$0xff] }
 0xbe7   : > { %5260 = vmatpush.msra.mxu1 %v8176_v60 }
 0xbe9   : > { %5261 = vmatpush.msra.mxu1 %v8174_v38 }
 0xbeb   : > { %5262 = vmatpush.msra.mxu1 %v8172_v58 }
 0xbed   : > { %5263 = vmatpush.msra.mxu1 %v8170_v0 }
 0xbef   : > { %5264 = vmatpush.msra.mxu1 %v8168_v13  ;;  %v8264_v13 = vld [vmem:[%s15606_s4 + $0x15f8] sm:$0xff] }
 0xbf0   : > { %5486 = vmatpush.msra.mxu2 %v8264_v13 }
 0xbf1   : > { %5460 = vmatpush.msrb.mxu1 %v8232_v53 }
 0xbf3   : > { %5461 = vmatpush.msrb.mxu1 %v8230_v6  ;;  %v8216_v6 = vld [vmem:[%s15606_s4 + $0x1478] sm:$0xff] }
 0xc32   : > { %v5026_v41 = vpop.f32.mrf.mxu1 }
 0xc33   : > { %v5027_v29 = vadd.f32 %v5026_v41, %v13493_v26  ;;  %v8223_v41 = vld [vmem:[%s15606_s4 + $0x14b0] sm:$0xff] }
 0xc38   : > { %v5084_v2 = vpop.f32.mrf.mxu3 }
 0xc39   : > { %v5085_v35 = vadd.f32 %v5084_v2, %v5006_v1  ;;  %v8228_v2 = vld [vmem:[%s15606_s4 + $0x14d8] sm:$0xff] }
 0xc3a   : > { %v5029_v45 = vpop.f32.mrf.mxu1  ;;  %5462 = vmatpush.msrb.mxu1 %v8228_v2 }
 0xc3b   : > { %v5030_v10 = vadd.f32 %v5029_v45, %v13493_v26  ;;  %v8219_v45 = vld [vmem:[%s15606_s4 + $0x1490] sm:$0xff] }
 0xc3c   : > { %5463 = vmatpush.msrb.mxu1 %v8226_v8 }
 0xc3d   : > { %v5113_v30 = vpop.f32.mrf.mxu0 }
 0xc3e   : > { %v5114_v21 = vadd.f32 %v5113_v30, %v5085_v35  ;;  %v8225_v30 = vld [vmem:[%s15606_s4 + $0x14c0] sm:$0xff] }
 0xc40   : > { %v5129_v61 = vsub.f32 0.0, %v5114_v21  ;;  %v5087_v20 = vpop.f32.mrf.mxu3 }
 0xc41   : > { %v5088_v33 = vadd.f32 %v5087_v20, %v5006_v1 }
 0xc42   : > { %v5133_v37 = vmul.f32 1.442695, %v5129_v61  ;;  %v5032_v12 = vpop.f32.mrf.mxu1  ;;  %v8263_v61 = vld [vmem:[%s15606_s4 + $0x15f0] sm:$0xff] }
 0xc43   : > { %v5055_v42 = vpop.f32.mrf.mxu2  ;;  %5434 = vmatpush.msrb.mxu0 %v8263_v61 }
 0xc44   : > { %9109 = vpow2.f32 %v5133_v37  ;;  %v5056_v27 = vadd.f32 %v5055_v42, %v5027_v29  ;;  %v8261_v42 = vld [vmem:[%s15606_s4 + $0x15e0] sm:$0xff]  ;;  %v8259_v29 = vld [vmem:[%s15606_s4 + $0x15d0] sm:$0xff] }
 0xc45   : > { %v5116_v44 = vpop.f32.mrf.mxu0  ;;  %5435 = vmatpush.msrb.mxu0 %v8261_v42  ;;  %v8255_v42 = vld [vmem:[%s15606_s4 + $0x15b0] sm:$0xff] }
 0xc46   : > { %v5117_v9 = vadd.f32 %v5116_v44, %v5088_v33 }
 0xc47   : > { %5436 = vmatpush.msrb.mxu0 %v8259_v29  ;;  %v8252_v29 = vld [vmem:[%s15606_s4 + $0x1598] sm:$0xff] }
 0xc48   : > { %v5130_v52 = vsub.f32 0.0, %v5117_v9  ;;  %v5090_v56 = vpop.f32.mrf.mxu3 }
 0xc49   : > { %v5091_v18 = vadd.f32 %v5090_v56, %v5006_v1 }
 0xc4a   : > { %v9110_v57 = vpop.eup %9109  ;;  %v5135_v19 = vmul.f32 1.442695, %v5130_v52  ;;  %v8224_v52 = vld [vmem:[%s15606_s4 + $0x14b8] sm:$0xff]  ;;  %v5035_v15 = vpop.f32.mrf.mxu1 }
 0xc4b   : > { %v5141_v34 = vadd.f32 1.0, %v9110_v57  ;;  %v5058_v48 = vpop.f32.mrf.mxu2  ;;  %v8262_v57 = vld [vmem:[%s15606_s4 + $0x15e8] sm:$0xff]  ;;  %5464 = vmatpush.msrb.mxu1 %v8224_v52  ;;  %v5036_v2 = vadd.f32 %v5035_v15, %v13493_v26  ;;  %v8213_v52 = vld [vmem:[%s15606_s4 + $0x1460] sm:$0xff] }
 0xc4c   : > { %9111 = vpow2.f32 %v5135_v19  ;;  %v5059_v58 = vadd.f32 %v5058_v48, %v5030_v10  ;;  %5487 = vmatpush.msra.mxu2 %v8262_v57  ;;  %v8215_v10 = vld [vmem:[%s15606_s4 + $0x1470] sm:$0xff]  ;;  %v8256_v57 = vld [vmem:[%s15606_s4 + $0x15b8] sm:$0xff]  ;;  %v8242_v15 = vld [vmem:[%s15606_s4 + $0x1548] sm:$0xff] }
 0xc4d   : > { %9113 = vrcp.f32 %v5141_v34  ;;  %v5119_v31 = vpop.f32.mrf.mxu0  ;;  %v5156_v16 = vand.u32 2147483648, %v5141_v34  ;;  %v5154_v28 = vand.u32 2147483647, %v5141_v34  ;;  %vm5150_vm6 = vweird.f32 %v5141_v34  ;;  %v8248_v48 = vld [vmem:[%s15606_s4 + $0x1578] sm:$0xff] }
 0xc4e   : > { %v5120_v49 = vadd.f32 %v5119_v31, %v5091_v18  ;;  %v8221_v18 = vld [vmem:[%s15606_s4 + $0x14a0] sm:$0xff]  ;;  %v8222_v31 = vld [vmem:[%s15606_s4 + $0x14a8] sm:$0xff] }
 0xc4f   : > { %v5157_v54 = vor.u32 1.1754944e-38, %v5156_v16  ;;  %vm5155_vm8 = vcmp.eq.f32.partialorder %v5154_v28, 8.507059e+37  ;;  %5465 = vmatpush.msrb.mxu1 %v8222_v31  ;;  %v8217_v16 = vld [vmem:[%s15606_s4 + $0x1480] sm:$0xff] }
 0xc50   : > { %v5131_v36 = vsub.f32 0.0, %v5120_v49  ;;  %v5093_v50 = vpop.f32.mrf.mxu3  ;;  %v5033_v49 = vadd.f32 %v5032_v12, %v13493_v26  ;;  %v8253_v31 = vld [vmem:[%s15606_s4 + $0x15a0] sm:$0xff] }
 0xc51   : > { %v5094_v7 = vadd.f32 %v5093_v50, %v5006_v1  ;;  %v8227_v1 = vld [vmem:[%s15606_s4 + $0x14d0] sm:$0xff] }
 0xc52   : > { %v9112_v39 = vpop.eup %9111  ;;  %v5137_v25 = vmul.f32 1.442695, %v5131_v36  ;;  %5410 = vmatpush.msrb.mxu3 %v8227_v1  ;;  %v8260_v36 = vld [vmem:[%s15606_s4 + $0x15d8] sm:$0xff] }
 0xc53   : > { %v9114_v14 = vpop.eup %9113  ;;  %v13496_v32 = vadd.f32 1.0, %v9112_v39  ;;  %v5061_v44 = vpop.f32.mrf.mxu2  ;;  %5488 = vmatpush.msra.mxu2 %v8260_v36  ;;  %v8210_v36 = vld [vmem:[%s15606_s4 + $0x1448] sm:$0xff] }
 0xc54   : > { %v5146_v5 = vmul.f32 %v9114_v14, %v5141_v34  ;;  %9115 = vpow2.f32 %v5137_v25  ;;  %vm5151_vm5 = vweird.f32 %v9114_v14  ;;  %5411 = vmatpush.msrb.mxu3 %v8225_v30  ;;  %v8220_v25 = vld [vmem:[%s15606_s4 + $0x1498] sm:$0xff] }
 0xc55   : > { %9117 = vrcp.f32 %v13496_v32  ;;  %v5122_v23 = vpop.f32.mrf.mxu0  ;;  %vm13521_vm7 = vmor %vm5150_vm6, %vm5151_vm5  ;;  %v5171_v56 = vand.u32 2147483648, %v13496_v32  ;;  %v5169_v34 = vand.u32 2147483647, %v13496_v32  ;;  %vm5165_vm11 = vweird.f32 %v13496_v32  ;;  %5466 = vmatpush.msrb.mxu1 %v8220_v25  ;;  %v8250_v25 = vld [vmem:[%s15606_s4 + $0x1588] sm:$0xff] }
 0xc56   : > { %v5147_v24 = vsub.f32 1.0, %v5146_v5  ;;  %v5123_v63 = vadd.f32 %v5122_v23, %v5094_v7  ;;  %9119 = vtanh.f32 %v5056_v27  ;;  %5412 = vmatpush.msrb.mxu3 %v8223_v41  ;;  %v5062_v27 = vadd.f32 %v5061_v44, %v5033_v49  ;;  %v8258_v7 = vld [vmem:[%s15606_s4 + $0x15c8] sm:$0xff]  ;;  %v8257_v23 = vld [vmem:[%s15606_s4 + $0x15c0] sm:$0xff] }
 0xc57   : > { %vm5170_vm13 = vcmp.eq.f32.partialorder %v5169_v34, 8.507059e+37  ;;  %5489 = vmatpush.msra.mxu2 %v8258_v7  ;;  %5437 = vmatpush.msrb.mxu0 %v8257_v23  ;;  %v8212_v34 = vld [vmem:[%s15606_s4 + $0x1458] sm:$0xff]  ;;  %v8209_v49 = vld [vmem:[%s15606_s4 + $0x1440] sm:$0xff]  ;;  %v8203_v7 = vld [vmem:[%s15606_s4 + $0x1410] sm:$0xff] }
 0xc58   : > { %v5148_v46 = vmul.f32 %v9114_v14, %v5147_v24  ;;  %v5132_v43 = vsub.f32 0.0, %v5123_v63  ;;  %5413 = vmatpush.msrb.mxu3 %v8221_v18  ;;  %v8254_v18 = vld [vmem:[%s15606_s4 + $0x15a8] sm:$0xff]  ;;  %v8204_v23 = vld [vmem:[%s15606_s4 + $0x1418] sm:$0xff] }
 0xc59   : > { %5490 = vmatpush.msra.mxu2 %v8256_v57  ;;  %5438 = vmatpush.msrb.mxu0 %v8255_v42 }
 0xc5a   : > { %v9116_v17 = vpop.eup %9115  ;;  %v5149_v59 = vadd.f32 %v9114_v14, %v5148_v46  ;;  %v5139_v60 = vmul.f32 1.442695, %v5132_v43  ;;  %v8218_v46 = vld [vmem:[%s15606_s4 + $0x1488] sm:$0xff]  ;;  %5414 = vmatpush.msrb.mxu3 %v8219_v45  ;;  %v8208_v45 = vld [vmem:[%s15606_s4 + $0x1438] sm:$0xff] }
 0xc5b   : > { %v13518_v62 = vpop.eup %9117  ;;  %v13525_v35 = vadd.f32 1.0, %v9116_v17  ;;  %5467 = vmatpush.msrb.mxu1 %v8218_v46  ;;  %5491 = vmatpush.msra.mxu2 %v8254_v18  ;;  %v8202_v46 = vld [vmem:[%s15606_s4 + $0x1408] sm:$0xff] }
 0xc5c   : > { %v5153_v0 = vsel %vm13521_vm7, %v9114_v14, %v5149_v59  ;;  %9121 = vpow2.f32 %v5139_v60  ;;  %v5161_v21 = vmul.f32 %v13518_v62, %v13496_v32  ;;  %v9120_v20 = vpop.eup %9119  ;;  %vm5166_vm10 = vweird.f32 %v13518_v62  ;;  %5415 = vmatpush.msrb.mxu3 %v8217_v16  ;;  %v5064_v59 = vpop.f32.mrf.mxu2  ;;  %5439 = vmatpush.msrb.mxu0 %v8253_v31  ;;  %v8201_v16 = vld [vmem:[%s15606_s4 + $0x1400] sm:$0xff] }
 0xc5d   : > { %v5158_v37 = vsel %vm5155_vm8, %v5157_v54, %v5153_v0  ;;  %9123 = vrcp.f32 %v13525_v35  ;;  %vm13585_vm12 = vmor %vm5165_vm11, %vm5166_vm10  ;;  %v5172_v32 = vor.u32 1.1754944e-38, %v5171_v56  ;;  %v5186_v17 = vand.u32 2147483648, %v13525_v35  ;;  %5468 = vmatpush.msrb.mxu1 %v8216_v6  ;;  %v8214_v56 = vld [vmem:[%s15606_s4 + $0x1468] sm:$0xff]  ;;  %5492 = vmatpush.msra.mxu2 %v8252_v29 }
 0xc5e   : > { %v5205_v33 = vmul.f32 %v9120_v20, %v5158_v37  ;;  %v5162_v9 = vsub.f32 1.0, %v5161_v21  ;;  %9125 = vtanh.f32 %v5059_v58  ;;  %v5184_v1 = vand.u32 2147483647, %v13525_v35  ;;  %5416 = vmatpush.msrb.mxu3 %v8215_v10  ;;  %v8239_v10 = vld [vmem:[%s15606_s4 + $0x1530] sm:$0xff]  ;;  %v8238_v6 = vld [vmem:[%s15606_s4 + $0x1528] sm:$0xff] }
 0xc5f   : > { %vm5180_vm15 = vweird.f32 %v13525_v35  ;;  %v5065_v54 = vadd.f32 %v5064_v59, %v5036_v2  ;;  %v5187_v58 = vor.u32 1.1754944e-38, %v5186_v17  ;;  %5469 = vmatpush.msrb.mxu1 %v8214_v56  ;;  %5493 = vmatpush.msra.mxu2 %v8250_v25  ;;  %v8237_v17 = vld [vmem:[%s15606_s4 + $0x1520] sm:$0xff]  ;;  %v8236_v59 = vld [vmem:[%s15606_s4 + $0x1518] sm:$0xff]  ;;  %v8295_v25 = vld [vmem:[%s15608_s6 + $0xae8] sm:$0xff] }
 0xc60   : > { %5265 = vmatmul.f32.vlgmr.msra.gmra.mxu1 %v5205_v33  ;;  %5292 = vmatmul.f32.vlgmr.msrb.gmra.mxu2 %v5205_v33  ;;  %v5163_v19 = vmul.f32 %v13518_v62, %v5162_v9  ;;  %vm5185_vm2 = vcmp.eq.f32.partialorder %v5184_v1, 8.507059e+37  ;;  %v8234_v1 = vld [vmem:[%s15606_s4 + $0x1508] sm:$0xff]  ;;  %v8233_v2 = vld [vmem:[%s15606_s4 + $0x1500] sm:$0xff] }
 0xc61   : > { %5417 = vmatpush.msrb.mxu3 %v8213_v52  ;;  %5470 = vmatpush.msrb.mxu1 %v8212_v34 }
 0xc62   : > { %v9122_v50 = vpop.eup %9121  ;;  %v5164_v39 = vadd.f32 %v13518_v62, %v5163_v19  ;;  %v8211_v19 = vld [vmem:[%s15606_s4 + $0x1450] sm:$0xff]  ;;  %5494 = vmatpush.msra.mxu2 %v8248_v48  ;;  %v8291_v48 = vld [vmem:[%s15608_s6 + $0xac8] sm:$0xff] }
 0xc63   : > { %v9124_v14 = vpop.eup %9123  ;;  %v13581_v5 = vadd.f32 1.0, %v9122_v50  ;;  %5418 = vmatpush.msrb.mxu3 %v8211_v19  ;;  %v8251_v50 = vld [vmem:[%s15606_s4 + $0x1590] sm:$0xff]  ;;  %5471 = vmatpush.msrb.mxu1 %v8210_v36 }
 0xc64   : > { %v5168_v24 = vsel %vm13585_vm12, %v13518_v62, %v5164_v39  ;;  %v5176_v63 = vmul.f32 %v9124_v14, %v13525_v35  ;;  %v9126_v28 = vpop.eup %9125  ;;  %vm5181_vm14 = vweird.f32 %v9124_v14  ;;  %5440 = vmatpush.msrb.mxu0 %v8251_v50  ;;  %v8207_v39 = vld [vmem:[%s15606_s4 + $0x1430] sm:$0xff] }
 0xc65   : > { %9127 = vrcp.f32 %v13581_v5  ;;  %v5173_v43 = vsel %vm5170_vm13, %v5172_v32, %v5168_v24  ;;  %vm5182_vm0 = vmor %vm5180_vm15, %vm5181_vm14  ;;  %v5201_v26 = vand.u32 2147483648, %v13581_v5  ;;  %v5199_v35 = vand.u32 2147483647, %v13581_v5  ;;  %5419 = vmatpush.msrb.mxu3 %v8209_v49  ;;  %5472 = vmatpush.msrb.mxu1 %v8208_v45  ;;  %v8247_v32 = vld [vmem:[%s15606_s4 + $0x1570] sm:$0xff]  ;;  %v8246_v24 = vld [vmem:[%s15606_s4 + $0x1568] sm:$0xff] }
 0xc66   : > { %v5206_v53 = vmul.f32 %v9126_v28, %v5173_v43  ;;  %v5177_v4 = vsub.f32 1.0, %v5176_v63  ;;  %9129 = vtanh.f32 %v5062_v27  ;;  %vm5195_vm5 = vweird.f32 %v13581_v5  ;;  %v8205_v27 = vld [vmem:[%s15606_s4 + $0x1420] sm:$0xff]  ;;  %5495 = vmatpush.msra.mxu2 %v8246_v24  ;;  %v8244_v28 = vld [vmem:[%s15606_s4 + $0x1558] sm:$0xff]  ;;  %v8243_v43 = vld [vmem:[%s15606_s4 + $0x1550] sm:$0xff] }
 0xc67   : > { %9131 = vtanh.f32 %v5065_v54  ;;  %v5202_v37 = vor.u32 1.1754944e-38, %v5201_v26  ;;  %vm5200_vm7 = vcmp.eq.f32.partialorder %v5199_v35, 8.507059e+37  ;;  %5420 = vmatpush.msrb.mxu3 %v8207_v39  ;;  %v8245_v63 = vld [vmem:[%s15606_s4 + $0x1560] sm:$0xff]  ;;  %v8296_v39 = vld [vmem:[%s15608_s6 + $0xaf0] sm:$0xff]  ;;  %v8297_v45 = vld [vmem:[%s15608_s6 + $0xaf8] sm:$0xff] }
 0xc68   : > { %5267 = vmatmul.f32.gmra.mxu1 %v5206_v53  ;;  %5295 = vmatmul.f32.gmra.mxu2 %v5206_v53  ;;  %v5178_v60 = vmul.f32 %v9124_v14, %v5177_v4  ;;  %v8241_v53 = vld [vmem:[%s15606_s4 + $0x1540] sm:$0xff]  ;;  %v8240_v4 = vld [vmem:[%s15606_s4 + $0x1538] sm:$0xff]  ;;  %v8287_v24 = vld [vmem:[%s15608_s6 + $0xaa8] sm:$0xff] }
 0xc69   : > { %5421 = vmatpush.msrb.mxu3 %v8205_v27  ;;  %5496 = vmatpush.msra.mxu2 %v8244_v28  ;;  %v8293_v27 = vld [vmem:[%s15608_s6 + $0xad8] sm:$0xff]  ;;  %v8283_v28 = vld [vmem:[%s15608_s6 + $0xa88] sm:$0xff] }
 0xc6a   : > { %v5179_v62 = vadd.f32 %v9124_v14, %v5178_v60  ;;  %v8235_v60 = vld [vmem:[%s15606_s4 + $0x1510] sm:$0xff] }
 0xc6b   : > { %v9128_v38 = vpop.eup %9127  ;;  %5422 = vmatpush.msrb.mxu3 %v8203_v7  ;;  %5497 = vmatpush.msra.mxu2 %v8242_v15  ;;  %v8289_v7 = vld [vmem:[%s15608_s6 + $0xab8] sm:$0xff] }
 0xc6c   : > { %v5183_v30 = vsel %vm5182_vm0, %v9124_v14, %v5179_v62  ;;  %v5191_v12 = vmul.f32 %v9128_v38, %v13581_v5  ;;  %v9130_v0 = vpop.eup %9129  ;;  %vm5196_vm3 = vweird.f32 %v9128_v38  ;;  %v8249_v14 = vld [vmem:[%s15606_s4 + $0x1580] sm:$0xff]  ;;  %v8206_v5 = vld [vmem:[%s15606_s4 + $0x1428] sm:$0xff]  ;;  %v8281_v15 = vld [vmem:[%s15608_s6 + $0xa78] sm:$0xff] }
 0xc6d   : > { %v5188_v21 = vsel %vm5185_vm2, %v5187_v58, %v5183_v30  ;;  %vm5197_vm6 = vmor %vm5195_vm5, %vm5196_vm3  ;;  %v9132_v44 = vpop.eup %9131  ;;  %5441 = vmatpush.msrb.mxu0 %v8249_v14  ;;  %5473 = vmatpush.msrb.mxu1 %v8206_v5  ;;  %v8292_v14 = vld [vmem:[%s15608_s6 + $0xad0] sm:$0xff]  ;;  %v8290_v5 = vld [vmem:[%s15608_s6 + $0xac0] sm:$0xff] }
 0xc6e   : > { %v5207_v8 = vmul.f32 %v9130_v0, %v5188_v21  ;;  %v5192_v13 = vsub.f32 1.0, %v5191_v12  ;;  %5423 = vmatpush.msrb.mxu3 %v8201_v16  ;;  %5498 = vmatpush.msra.mxu2 %v8240_v4  ;;  %v8285_v16 = vld [vmem:[%s15608_s6 + $0xa98] sm:$0xff]  ;;  %v8279_v4 = vld [vmem:[%s15608_s6 + $0xa68] sm:$0xff] }
 0xc6f   : > { %5442 = vmatpush.msrb.mxu0 %v8247_v32  ;;  %5474 = vmatpush.msrb.mxu1 %v8204_v23  ;;  %v8288_v32 = vld [vmem:[%s15608_s6 + $0xab0] sm:$0xff]  ;;  %v8286_v23 = vld [vmem:[%s15608_s6 + $0xaa0] sm:$0xff] }
 0xc70   : > { %5269 = vmatmul.f32.gmra.mxu1 %v5207_v8  ;;  %5298 = vmatmul.f32.gmra.mxu2 %v5207_v8  ;;  %v5193_v61 = vmul.f32 %v9128_v38, %v5192_v13 }
 0xc71   : > { %5443 = vmatpush.msrb.mxu0 %v8245_v63  ;;  %5475 = vmatpush.msrb.mxu1 %v8202_v46  ;;  %v8284_v63 = vld [vmem:[%s15608_s6 + $0xa90] sm:$0xff]  ;;  %v8282_v46 = vld [vmem:[%s15608_s6 + $0xa80] sm:$0xff] }
 0xc72   : > { %v5194_v20 = vadd.f32 %v9128_v38, %v5193_v61  ;;  %5499 = vmatpush.msra.mxu2 %v8238_v6  ;;  %5615 = vmatpush.msra.mxu3 %v8296_v39  ;;  %v8328_v39 = vld [vmem:[%s15606_s4 + $0x16e8] sm:$0xff] }
 0xc73   : > { %5444 = vmatpush.msrb.mxu0 %v8243_v43  ;;  %v8280_v43 = vld [vmem:[%s15608_s6 + $0xa70] sm:$0xff] }
 0xc74   : > { %v5198_v33 = vsel %vm5197_vm6, %v9128_v38, %v5194_v20  ;;  %5500 = vmatpush.msra.mxu2 %v8236_v59  ;;  %v8200_v38 = vld [vmem:[%s15609_s7 + $0x12] sm:$0x3]  ;;  %v8277_v59 = vld [vmem:[%s15608_s6 + $0xa58] sm:$0xff] }
 0xc75   : > { %v5203_v9 = vsel %vm5200_vm7, %v5202_v37, %v5198_v33  ;;  %5445 = vmatpush.msrb.mxu0 %v8241_v53  ;;  %v5246_v54 = vperm.slane %v8200_v38, 1  ;;  %v5245_v8 = vperm.slane %v8200_v38, 0  ;;  %v8278_v53 = vld [vmem:[%s15608_s6 + $0xa60] sm:$0xff]  ;;  %v8273_v38 = vld [vmem:[%s15608_s6 + $0xa38] sm:$0xff] }
 0xc76   : > { %v5208_v41 = vmul.f32 %v9132_v44, %v5203_v9  ;;  %5501 = vmatpush.msra.mxu2 %v8234_v1  ;;  %v8274_v1 = vld [vmem:[%s15608_s6 + $0xa40] sm:$0xff] }
 0xc77   : > { %5446 = vmatpush.msrb.mxu0 %v8239_v10  ;;  %v8265_v10 = vld [vmem:[%s15607_s5 + $0x14] sm:$0x3] }
 0xc78   : > { %5272 = vmatmul.f32.gmra.mxu1 %v5208_v41  ;;  %5301 = vmatmul.f32.gmra.mxu2 %v5208_v41 }
 0xc79   : > { %5447 = vmatpush.msrb.mxu0 %v8237_v17  ;;  %v8276_v17 = vld [vmem:[%s15608_s6 + $0xa50] sm:$0xff] }
 0xc7b   : > { %5448 = vmatpush.msrb.mxu0 %v8235_v60  ;;  %v5405_v60 = vperm.slane %v8265_v10, 1 }
 0xc7d   : > { %5449 = vmatpush.msrb.mxu0 %v8233_v2  ;;  %v8275_v2 = vld [vmem:[%s15608_s6 + $0xa48] sm:$0xff] }
 0xc7f   : > { %5639 = vmatpush.msra.mxu0 %v8297_v45 }
 0xc81   : > { %5640 = vmatpush.msra.mxu0 %v8295_v25  ;;  %v8325_v25 = vld [vmem:[%s15606_s4 + $0x16d0] sm:$0xff] }
 0xc83   : > { %5641 = vmatpush.msra.mxu0 %v8293_v27 }
 0xc85   : > { %5642 = vmatpush.msra.mxu0 %v8291_v48 }
 0xc87   : > { %5643 = vmatpush.msra.mxu0 %v8289_v7  ;;  %v8362_v7 = vld [vmem:[%s15606_s4 + $0x17f8] sm:$0xff] }
 0xc89   : > { %5644 = vmatpush.msra.mxu0 %v8287_v24 }
 0xc8b   : > { %5645 = vmatpush.msra.mxu0 %v8285_v16  ;;  %v8324_v16 = vld [vmem:[%s15606_s4 + $0x16c8] sm:$0xff] }
 0xc8d   : > { %5646 = vmatpush.msra.mxu0 %v8283_v28  ;;  %v8321_v28 = vld [vmem:[%s15606_s4 + $0x16b0] sm:$0xff] }
 0xc8f   : > { %5647 = vmatpush.msra.mxu0 %v8281_v15 }
 0xc91   : > { %5648 = vmatpush.msra.mxu0 %v8279_v4  ;;  %v8322_v4 = vld [vmem:[%s15606_s4 + $0x16b8] sm:$0xff] }
 0xc93   : > { %5649 = vmatpush.msra.mxu0 %v8277_v59  ;;  %v8355_v59 = vld [vmem:[%s15606_s4 + $0x17c0] sm:$0xff] }
 0xc95   : > { %5650 = vmatpush.msra.mxu0 %v8275_v2  ;;  %v8319_v2 = vld [vmem:[%s15606_s4 + $0x16a0] sm:$0xff] }
 0xc97   : > { %5651 = vmatpush.msra.mxu0 %v8273_v38  ;;  %v8356_v38 = vld [vmem:[%s15606_s4 + $0x17c8] sm:$0xff] }
 0xcdd   : > { %v5266_v62 = vpop.f32.mrf.mxu1 }
 0xcde   : > { %v8272_v62 = vld [vmem:[%s15608_s6 + $0xa30] sm:$0xff] }
 0xce3   : > { %v5293_v58 = vpop.f32.mrf.mxu2 }
 0xce4   : > { %v5294_v30 = vadd.f32 %v5293_v58, %v5246_v54  ;;  %v8270_v58 = vld [vmem:[%s15608_s6 + $0xa20] sm:$0xff] }
 0xce5   : > { %v5268_v12 = vpop.f32.mrf.mxu1 }
 0xce6   : > { %v5314_v0 = vadd.f32 %v5294_v30, %v13362_v3  ;;  %v8271_v30 = vld [vmem:[%s15608_s6 + $0xa28] sm:$0xff] }
 0xce7   : > { %5652 = vmatpush.msra.mxu0 %v8271_v30  ;;  %v8354_v30 = vld [vmem:[%s15606_s4 + $0x17b8] sm:$0xff] }
 0xce8   : > { %v5318_v21 = vmul.f32 0.999995, %v5314_v0  ;;  %v8268_v0 = vld [vmem:[%s15608_s6 + $0xa10] sm:$0xff] }
 0xcea   : > { %5424 = vmatmul.f32.vlgmr.msrb.gmra.mxu3 %v5318_v21  ;;  %5476 = vmatmul.f32.vlgmr.msrb.gmra.mxu1 %v5318_v21  ;;  %v5326_v44 = vrot.slane %v5318_v21, 4  ;;  %v8269_v21 = vld [vmem:[%s15608_s6 + $0xa18] sm:$0xff] }
 0xceb   : > { %v5296_v13 = vpop.f32.mrf.mxu2  ;;  %5653 = vmatpush.msra.mxu0 %v8269_v21  ;;  %v8317_v21 = vld [vmem:[%s15606_s4 + $0x1690] sm:$0xff] }
 0xcec   : > { %v5297_v26 = vadd.f32 %v5296_v13, %v5246_v54  ;;  %v8266_v13 = vld [vmem:[%s15608_s6 + $0xa00] sm:$0xff] }
 0xced   : > { %v5270_v61 = vpop.f32.mrf.mxu1 }
 0xcee   : > { %v5315_v35 = vadd.f32 %v5297_v26, %v13368_v11  ;;  %v5271_v20 = vadd.f32 %v5270_v61, %v5245_v8  ;;  %v8267_v26 = vld [vmem:[%s15608_s6 + $0xa08] sm:$0xff] }
 0xcef   : > { %5654 = vmatpush.msra.mxu0 %v8267_v26  ;;  %v8341_v26 = vld [vmem:[%s15606_s4 + $0x1750] sm:$0xff] }
 0xcf0   : > { %v5319_v37 = vmul.f32 0.999995, %v5315_v35  ;;  %v5312_v33 = vadd.f32 %v13390_v40, %v5271_v20 }
 0xcf2   : > { %v5327_v9 = vrot.slane %v5319_v37, 4  ;;  %5427 = vmatmul.f32.gmra.mxu3 %v5319_v37  ;;  %5479 = vmatmul.f32.gmra.mxu1 %v5319_v37  ;;  %v5667_v19 = vrot.slane %v5312_v33, 4 }
 0xcf3   : > { %v5299_v41 = vpop.f32.mrf.mxu2 }
 0xcf4   : > { %v5300_v52 = vadd.f32 %v5299_v41, %v5246_v54  ;;  %v13741_v3 = vsel %vm1709_vm9, %v5326_v44, %v5327_v9 }
 0xcf5   : > { %v5273_v56 = vpop.f32.mrf.mxu1  ;;  %5450 = vmatmul.f32.vlgmr.msrb.gmra.mxu0 %v13741_v3  ;;  %5502 = vmatmul.f32.vlgmr.msra.gmra.mxu2 %v13741_v3 }
 0xcf6   : > { %v5316_v11 = vadd.f32 %v5300_v52, %v13382_v55  ;;  %v5274_v57 = vadd.f32 %v5273_v56, %v5245_v8  ;;  %5819 = vmatpush.msrb.mxu0 %v8362_v7 }
 0xcf8   : > { %v5320_v42 = vmul.f32 0.999995, %v5316_v11  ;;  %v5313_v40 = vadd.f32 %v5308_v51, %v5274_v57 }
 0xcfa   : > { %v5668_v34 = vrot.slane %v5313_v40, 4  ;;  %5430 = vmatmul.f32.gmra.mxu3 %v5320_v42  ;;  %5482 = vmatmul.f32.gmra.mxu1 %v5320_v42  ;;  %v5329_v18 = vrot.slane %v5320_v42, 4 }
 0xcfb   : > { %v5302_v31 = vpop.f32.mrf.mxu2 }
 0xcfc   : > { %v5303_v49 = vadd.f32 %v5302_v31, %v5246_v54  ;;  %v13749_v36 = vsel %vm1709_vm9, %v5327_v9, %v5329_v18  ;;  %v13752_v29 = vsel %vm1709_vm9, %v5667_v19, %v5668_v34  ;;  %v13863_v19 = vperm.slane %v8265_v10, 0  ;;  %v8357_v10 = vld [vmem:[%s15606_s4 + $0x17d0] sm:$0xff] }
 0xcfd   : > { %5453 = vmatmul.f32.gmra.mxu0 %v13749_v36  ;;  %5505 = vmatmul.f32.gmra.mxu2 %v13749_v36 }
 0xcfe   : > { %v5317_v47 = vadd.f32 %v5303_v49, %v13374_v22  ;;  %v8294_v22 = vld [vmem:[%s15608_s6 + $0xae0] sm:$0xff]  ;;  %v8329_v49 = vld [vmem:[%s15606_s4 + $0x16f0] sm:$0xff] }
 0xcff   : > { %5616 = vmatpush.msra.mxu3 %v8294_v22  ;;  %5750 = vmatpush.msra.mxu1 %v8329_v49  ;;  %v8349_v49 = vld [vmem:[%s15606_s4 + $0x1790] sm:$0xff] }
 0xd00   : > { %v5321_v55 = vmul.f32 0.999995, %v5317_v47  ;;  %v8330_v47 = vld [vmem:[%s15606_s4 + $0x16f8] sm:$0xff] }
 0xd01   : > { %5617 = vmatpush.msra.mxu3 %v8292_v14  ;;  %v8326_v14 = vld [vmem:[%s15606_s4 + $0x16d8] sm:$0xff] }
 0xd02   : > { %v5331_v51 = vrot.slane %v5321_v55, 4  ;;  %v8327_v55 = vld [vmem:[%s15606_s4 + $0x16e0] sm:$0xff] }
 0xd03   : > { %5618 = vmatpush.msra.mxu3 %v8290_v5  ;;  %5751 = vmatpush.msra.mxu1 %v8327_v55 }
 0xd04   : > { %v13758_v50 = vsel %vm1709_vm9, %v5329_v18, %v5331_v51 }
 0xd05   : > { %5456 = vmatmul.f32.gmra.mxu0 %v13758_v50  ;;  %5508 = vmatmul.f32.gmra.mxu2 %v13758_v50 }
 0xd06   : > { %5619 = vmatpush.msra.mxu3 %v8288_v32  ;;  %v8361_v32 = vld [vmem:[%s15606_s4 + $0x17f0] sm:$0xff]  ;;  %5752 = vmatpush.msra.mxu1 %v8325_v25 }
 0xd07   : > { %5773 = vmatpush.msrb.mxu2 %v8361_v32  ;;  %v8309_v32 = vld [vmem:[%s15606_s4 + $0x1650] sm:$0xff] }
 0xd08   : > { %5620 = vmatpush.msra.mxu3 %v8286_v23 }
 0xd0a   : > { %5621 = vmatpush.msra.mxu3 %v8284_v63  ;;  %v8323_v63 = vld [vmem:[%s15606_s4 + $0x16c0] sm:$0xff] }
 0xd0b   : > { %5753 = vmatpush.msra.mxu1 %v8323_v63 }
 0xd0c   : > { %5622 = vmatpush.msra.mxu3 %v8282_v46  ;;  %v8359_v46 = vld [vmem:[%s15606_s4 + $0x17e0] sm:$0xff] }
 0xd0d   : > { %5774 = vmatpush.msrb.mxu2 %v8359_v46  ;;  %5754 = vmatpush.msra.mxu1 %v8321_v28  ;;  %v8308_v46 = vld [vmem:[%s15606_s4 + $0x1648] sm:$0xff] }
 0xd0e   : > { %5623 = vmatpush.msra.mxu3 %v8280_v43  ;;  %v8360_v43 = vld [vmem:[%s15606_s4 + $0x17e8] sm:$0xff] }
 0xd0f   : > { %5820 = vmatpush.msrb.mxu0 %v8360_v43  ;;  %5775 = vmatpush.msrb.mxu2 %v8357_v10 }
 0xd10   : > { %5624 = vmatpush.msra.mxu3 %v8278_v53  ;;  %5755 = vmatpush.msra.mxu1 %v8319_v2 }
 0xd11   : > { %5776 = vmatpush.msrb.mxu2 %v8355_v59 }
 0xd12   : > { %5625 = vmatpush.msra.mxu3 %v8276_v17  ;;  %5756 = vmatpush.msra.mxu1 %v8317_v21  ;;  %v8304_v21 = vld [vmem:[%s15606_s4 + $0x1628] sm:$0xff] }
 0xd14   : > { %5626 = vmatpush.msra.mxu3 %v8274_v1 }
 0xd16   : > { %5627 = vmatpush.msra.mxu3 %v8272_v62  ;;  %v8320_v62 = vld [vmem:[%s15606_s4 + $0x16a8] sm:$0xff] }
 0xd18   : > { %5628 = vmatpush.msra.mxu3 %v8270_v58  ;;  %v8353_v58 = vld [vmem:[%s15606_s4 + $0x17b0] sm:$0xff] }
 0xd19   : > { %5777 = vmatpush.msrb.mxu2 %v8353_v58  ;;  %v8306_v58 = vld [vmem:[%s15606_s4 + $0x1638] sm:$0xff] }
 0xd1a   : > { %5629 = vmatpush.msra.mxu3 %v8268_v0 }
 0xd1c   : > { %5630 = vmatpush.msra.mxu3 %v8266_v13 }
 0xd1e   : > { %5796 = vmatpush.msrb.mxu3 %v8330_v47  ;;  %v8350_v47 = vld [vmem:[%s15606_s4 + $0x1798] sm:$0xff] }
 0xd20   : > { %5797 = vmatpush.msrb.mxu3 %v8328_v39 }
 0xd22   : > { %5798 = vmatpush.msrb.mxu3 %v8326_v14  ;;  %v8347_v14 = vld [vmem:[%s15606_s4 + $0x1780] sm:$0xff] }
 0xd24   : > { %5799 = vmatpush.msrb.mxu3 %v8324_v16  ;;  %v8307_v16 = vld [vmem:[%s15606_s4 + $0x1640] sm:$0xff] }
 0xd26   : > { %5800 = vmatpush.msrb.mxu3 %v8322_v4 }
 0xd28   : > { %5801 = vmatpush.msrb.mxu3 %v8320_v62 }
 0xd67   : > { %v5477_v6 = vpop.f32.mrf.mxu1 }
 0xd68   : > { %v5478_v54 = vadd.f32 %v5477_v6, %v5405_v60  ;;  %v8358_v6 = vld [vmem:[%s15606_s4 + $0x17d8] sm:$0xff] }
 0xd69   : > { %5821 = vmatpush.msrb.mxu0 %v8358_v6 }
 0xd6b   : > { %5822 = vmatpush.msrb.mxu0 %v8356_v38  ;;  %v8305_v38 = vld [vmem:[%s15606_s4 + $0x1630] sm:$0xff] }
 0xd6d   : > { %v5425_v56 = vpop.f32.mrf.mxu3  ;;  %5823 = vmatpush.msrb.mxu0 %v8354_v30  ;;  %v8346_v30 = vld [vmem:[%s15606_s4 + $0x1778] sm:$0xff] }
 0xd6e   : > { %v5426_v51 = vadd.f32 %v5425_v56, %v13863_v19 }
 0xd6f   : > { %v5480_v61 = vpop.f32.mrf.mxu1 }
 0xd70   : > { %v5481_v37 = vadd.f32 %v5480_v61, %v5405_v60 }
 0xd72   : > { %v5451_v42 = vpop.f32.mrf.mxu0 }
 0xd73   : > { %v5452_v5 = vadd.f32 %v5451_v42, %v5426_v51 }
 0xd75   : > { %v5428_v23 = vpop.f32.mrf.mxu3 }
 0xd77   : > { %v5483_v41 = vpop.f32.mrf.mxu1 }
 0xd78   : > { %v5503_v12 = vpop.f32.mrf.mxu2  ;;  %v5484_v40 = vadd.f32 %v5483_v41, %v5405_v60  ;;  %v8315_v41 = vld [vmem:[%s15606_s4 + $0x1680] sm:$0xff] }
 0xd79   : > { %v5504_v8 = vadd.f32 %v5503_v12, %v5478_v54  ;;  %v5429_v54 = vadd.f32 %v5428_v23, %v13863_v19  ;;  %5757 = vmatpush.msra.mxu1 %v8315_v41  ;;  %v8338_v41 = vld [vmem:[%s15606_s4 + $0x1738] sm:$0xff] }
 0xd7a   : > { %v5454_v53 = vpop.f32.mrf.mxu0 }
 0xd7b   : > { %v5515_v35 = vsub.f32 0.0, %v5504_v8  ;;  %v8318_v8 = vld [vmem:[%s15606_s4 + $0x1698] sm:$0xff] }
 0xd7c   : > { %5802 = vmatpush.msrb.mxu3 %v8318_v8  ;;  %v8344_v8 = vld [vmem:[%s15606_s4 + $0x1768] sm:$0xff] }
 0xd7d   : > { %v5518_v20 = vmul.f32 1.442695, %v5515_v35  ;;  %v5455_v35 = vadd.f32 %v5454_v53, %v5429_v54  ;;  %v8345_v54 = vld [vmem:[%s15606_s4 + $0x1770] sm:$0xff] }
 0xd7f   : > { %9133 = vpow2.f32 %v5518_v20 }
 0xd80   : > { %v5506_v33 = vpop.f32.mrf.mxu2 }
 0xd81   : > { %v5507_v44 = vadd.f32 %v5506_v33, %v5481_v37  ;;  %v8351_v37 = vld [vmem:[%s15606_s4 + $0x17a0] sm:$0xff]  ;;  %v8352_v33 = vld [vmem:[%s15606_s4 + $0x17a8] sm:$0xff] }
 0xd82   : > { %5778 = vmatpush.msrb.mxu2 %v8351_v37  ;;  %5824 = vmatpush.msrb.mxu0 %v8352_v33  ;;  %v5457_v55 = vpop.f32.mrf.mxu0  ;;  %v8339_v37 = vld [vmem:[%s15606_s4 + $0x1740] sm:$0xff]  ;;  %v8300_v33 = vld [vmem:[%s15606_s4 + $0x1608] sm:$0xff] }
 0xd83   : > { %v5516_v9 = vsub.f32 0.0, %v5507_v44 }
 0xd84   : > { %5779 = vmatpush.msrb.mxu2 %v8349_v49  ;;  %5825 = vmatpush.msrb.mxu0 %v8350_v47 }
 0xd85   : > { %v9134_v52 = vpop.eup %9133  ;;  %v5520_v11 = vmul.f32 1.442695, %v5516_v9 }
 0xd86   : > { %v13861_v57 = vadd.f32 1.0, %v9134_v52  ;;  %v8316_v52 = vld [vmem:[%s15606_s4 + $0x1688] sm:$0xff]  ;;  %5780 = vmatpush.msrb.mxu2 %v8347_v14 }
 0xd87   : > { %9135 = vpow2.f32 %v5520_v11  ;;  %5803 = vmatpush.msrb.mxu3 %v8316_v52  ;;  %v8335_v52 = vld [vmem:[%s15606_s4 + $0x1720] sm:$0xff] }
 0xd88   : > { %9137 = vrcp.f32 %v13861_v57  ;;  %v5509_v34 = vpop.f32.mrf.mxu2  ;;  %v5538_v17 = vand.u32 2147483648, %v13861_v57  ;;  %v5536_v1 = vand.u32 2147483647, %v13861_v57  ;;  %vm5532_vm10 = vweird.f32 %v13861_v57  ;;  %5781 = vmatpush.msrb.mxu2 %v8345_v54 }
 0xd89   : > { %v5510_v18 = vadd.f32 %v5509_v34, %v5484_v40  ;;  %v8313_v34 = vld [vmem:[%s15606_s4 + $0x1670] sm:$0xff] }
 0xd8a   : > { %v5539_v61 = vor.u32 1.1754944e-38, %v5538_v17  ;;  %vm5537_vm12 = vcmp.eq.f32.partialorder %v5536_v1, 8.507059e+37  ;;  %5758 = vmatpush.msra.mxu1 %v8313_v34  ;;  %v14106_v34 = vld [vmem:[%s15609_s7 + $0x14] sm:$0x3] }
 0xd8b   : > { %v5517_v31 = vsub.f32 0.0, %v5510_v18  ;;  %v8314_v18 = vld [vmem:[%s15606_s4 + $0x1678] sm:$0xff] }
 0xd8c   : > { %5804 = vmatpush.msrb.mxu3 %v8314_v18  ;;  %v5612_v18 = vperm.slane %v14106_v34, 1 }
 0xd8d   : > { %v9136_v45 = vpop.eup %9135  ;;  %v5522_v22 = vmul.f32 1.442695, %v5517_v31 }
 0xd8e   : > { %v13885_v27 = vpop.eup %9137  ;;  %v13887_v48 = vadd.f32 1.0, %v9136_v45  ;;  %v8311_v45 = vld [vmem:[%s15606_s4 + $0x1660] sm:$0xff] }
 0xd8f   : > { %v5528_v24 = vmul.f32 %v13885_v27, %v13861_v57  ;;  %9139 = vpow2.f32 %v5522_v22  ;;  %vm5533_vm8 = vweird.f32 %v13885_v27  ;;  %v5431_v57 = vpop.f32.mrf.mxu3  ;;  %v8312_v22 = vld [vmem:[%s15606_s4 + $0x1668] sm:$0xff]  ;;  %5759 = vmatpush.msra.mxu1 %v8311_v45 }
 0xd90   : > { %9141 = vrcp.f32 %v13887_v48  ;;  %vm13957_vm11 = vmor %vm5532_vm10, %vm5533_vm8  ;;  %v5553_v31 = vand.u32 2147483648, %v13887_v48  ;;  %v5551_v39 = vand.u32 2147483647, %v13887_v48  ;;  %v5432_v25 = vadd.f32 %v5431_v57, %v13863_v19  ;;  %v8310_v19 = vld [vmem:[%s15606_s4 + $0x1658] sm:$0xff]  ;;  %5805 = vmatpush.msrb.mxu3 %v8312_v22 }
 0xd91   : > { %v5529_v15 = vsub.f32 1.0, %v5528_v24  ;;  %9143 = vtanh.f32 %v5452_v5  ;;  %vm5547_vm14 = vweird.f32 %v13887_v48  ;;  %5760 = vmatpush.msra.mxu1 %v8309_v32  ;;  %v8334_v57 = vld [vmem:[%s15606_s4 + $0x1718] sm:$0xff] }
 0xd92   : > { %v5458_v23 = vadd.f32 %v5457_v55, %v5432_v25  ;;  %v5554_v24 = vor.u32 1.1754944e-38, %v5553_v31  ;;  %vm5552_vm0 = vcmp.eq.f32.partialorder %v5551_v39, 8.507059e+37  ;;  %5806 = vmatpush.msrb.mxu3 %v8310_v19  ;;  %v8395_v19 = vld [vmem:[%s15608_s6 + $0xbf8] sm:$0xff] }
 0xd93   : > { %v5530_v60 = vmul.f32 %v13885_v27, %v5529_v15  ;;  %5761 = vmatpush.msra.mxu1 %v8307_v16  ;;  %v8386_v16 = vld [vmem:[%s15608_s6 + $0xbb0] sm:$0xff] }
 0xd94   : > { %5807 = vmatpush.msrb.mxu3 %v8308_v46  ;;  %v8387_v46 = vld [vmem:[%s15608_s6 + $0xbb8] sm:$0xff] }
 0xd95   : > { %v9140_v12 = vpop.eup %9139  ;;  %v5531_v0 = vadd.f32 %v13885_v27, %v5530_v60  ;;  %5762 = vmatpush.msra.mxu1 %v8305_v38  ;;  %v14193_v38 = vld [vmem:[%s15607_s5 + $0x16] sm:$0x3] }
 0xd96   : > { %v13953_v13 = vpop.eup %9141  ;;  %v13961_v20 = vadd.f32 1.0, %v9140_v12  ;;  %5808 = vmatpush.msrb.mxu3 %v8306_v58  ;;  %v8303_v12 = vld [vmem:[%s15606_s4 + $0x1620] sm:$0xff]  ;;  %v5747_v54 = vperm.slane %v14193_v38, 1 }
 0xd97   : > { %v5535_v44 = vsel %vm13957_vm11, %v13885_v27, %v5531_v0  ;;  %v5543_v9 = vmul.f32 %v13953_v13, %v13887_v48  ;;  %v9144_v56 = vpop.eup %9143  ;;  %vm5548_vm13 = vweird.f32 %v13953_v13  ;;  %v8348_v27 = vld [vmem:[%s15606_s4 + $0x1788] sm:$0xff]  ;;  %v8343_v0 = vld [vmem:[%s15606_s4 + $0x1760] sm:$0xff]  ;;  %5763 = vmatpush.msra.mxu1 %v8303_v12  ;;  %v8370_v12 = vld [vmem:[%s15608_s6 + $0xb30] sm:$0xff] }
 0xd98   : > { %9145 = vrcp.f32 %v13961_v20  ;;  %v5540_v11 = vsel %vm5537_vm12, %v5539_v61, %v5535_v44  ;;  %vm5549_vm15 = vmor %vm5547_vm14, %vm5548_vm13  ;;  %5826 = vmatpush.msrb.mxu0 %v8348_v27  ;;  %v5568_v4 = vand.u32 2147483648, %v13961_v20  ;;  %v5566_v6 = vand.u32 2147483647, %v13961_v20  ;;  %5782 = vmatpush.msrb.mxu2 %v8343_v0  ;;  %v8302_v61 = vld [vmem:[%s15606_s4 + $0x1618] sm:$0xff]  ;;  %v8340_v44 = vld [vmem:[%s15606_s4 + $0x1748] sm:$0xff] }
 0xd99   : > { %v5572_v42 = vmul.f32 %v9144_v56, %v5540_v11  ;;  %v5544_v40 = vsub.f32 1.0, %v5543_v9  ;;  %9147 = vtanh.f32 %v5455_v35  ;;  %vm5562_vm3 = vweird.f32 %v13961_v20  ;;  %5809 = vmatpush.msrb.mxu3 %v8304_v21  ;;  %v8342_v35 = vld [vmem:[%s15606_s4 + $0x1758] sm:$0xff]  ;;  %v8337_v9 = vld [vmem:[%s15606_s4 + $0x1730] sm:$0xff]  ;;  %v8336_v56 = vld [vmem:[%s15606_s4 + $0x1728] sm:$0xff] }
 0xd9a   : > { %9149 = vtanh.f32 %v5458_v23  ;;  %v5569_v59 = vor.u32 1.1754944e-38, %v5568_v4  ;;  %vm5567_vm6 = vcmp.eq.f32.partialorder %v5566_v6, 8.507059e+37  ;;  %5827 = vmatpush.msrb.mxu0 %v8346_v30  ;;  %5783 = vmatpush.msrb.mxu2 %v8341_v26  ;;  %v8333_v11 = vld [vmem:[%s15606_s4 + $0x1710] sm:$0xff]  ;;  %v8380_v4 = vld [vmem:[%s15608_s6 + $0xb80] sm:$0xff]  ;;  %v8373_v30 = vld [vmem:[%s15608_s6 + $0xb48] sm:$0xff] }
 0xd9b   : > { %5631 = vmatmul.f32.vlgmr.msra.gmra.mxu3 %v5572_v42  ;;  %5655 = vmatmul.f32.vlgmr.msra.gmra.mxu0 %v5572_v42  ;;  %v5545_v51 = vmul.f32 %v13953_v13, %v5544_v40  ;;  %v8331_v42 = vld [vmem:[%s15606_s4 + $0x1700] sm:$0xff]  ;;  %v8332_v40 = vld [vmem:[%s15606_s4 + $0x1708] sm:$0xff]  ;;  %v8390_v23 = vld [vmem:[%s15608_s6 + $0xbd0] sm:$0xff] }
 0xd9c   : > { %5828 = vmatpush.msrb.mxu0 %v8344_v8  ;;  %5810 = vmatpush.msrb.mxu3 %v8302_v61  ;;  %v8378_v6 = vld [vmem:[%s15608_s6 + $0xb70] sm:$0xff]  ;;  %v8372_v58 = vld [vmem:[%s15608_s6 + $0xb40] sm:$0xff]  ;;  %v8371_v0 = vld [vmem:[%s15608_s6 + $0xb38] sm:$0xff] }
 0xd9d   : > { %v5546_v5 = vadd.f32 %v13953_v13, %v5545_v51  ;;  %5784 = vmatpush.msrb.mxu2 %v8339_v37  ;;  %v8369_v26 = vld [vmem:[%s15608_s6 + $0xb28] sm:$0xff] }
 0xd9e   : > { %v9146_v7 = vpop.eup %9145  ;;  %5829 = vmatpush.msrb.mxu0 %v8342_v35  ;;  %5811 = vmatpush.msrb.mxu3 %v8300_v33  ;;  %v8366_v35 = vld [vmem:[%s15608_s6 + $0xb10] sm:$0xff]  ;;  %v8364_v33 = vld [vmem:[%s15608_s6 + $0xb00] sm:$0xff] }
 0xd9f   : > { %v5550_v48 = vsel %vm5549_vm15, %v13953_v13, %v5546_v5  ;;  %v5558_v63 = vmul.f32 %v9146_v7, %v13961_v20  ;;  %v9148_v28 = vpop.eup %9147  ;;  %vm5563_vm2 = vweird.f32 %v9146_v7  ;;  %v8301_v13 = vld [vmem:[%s15606_s4 + $0x1610] sm:$0xff]  ;;  %v8299_v20 = vld [vmem:[%s15606_s4 + $0x1600] sm:$0xff]  ;;  %5785 = vmatpush.msrb.mxu2 %v8337_v9 }
 0xda0   : > { %v5555_v43 = vsel %vm5552_vm0, %v5554_v24, %v5550_v48  ;;  %vm5564_vm5 = vmor %vm5562_vm3, %vm5563_vm2  ;;  %v9150_v1 = vpop.eup %9149  ;;  %5764 = vmatpush.msra.mxu1 %v8301_v13  ;;  %5830 = vmatpush.msrb.mxu0 %v8340_v44  ;;  %v8391_v24 = vld [vmem:[%s15608_s6 + $0xbd8] sm:$0xff]  ;;  %v8388_v48 = vld [vmem:[%s15608_s6 + $0xbc0] sm:$0xff] }
 0xda1   : > { %v5573_v15 = vmul.f32 %v9148_v28, %v5555_v43  ;;  %v5559_v53 = vsub.f32 1.0, %v5558_v63  ;;  %5786 = vmatpush.msrb.mxu2 %v8335_v52  ;;  %v8389_v63 = vld [vmem:[%s15608_s6 + $0xbc8] sm:$0xff]  ;;  %v8384_v28 = vld [vmem:[%s15608_s6 + $0xba0] sm:$0xff] }
 0xda2   : > { %5765 = vmatpush.msra.mxu1 %v8299_v20  ;;  %5831 = vmatpush.msrb.mxu0 %v8338_v41  ;;  %v8385_v43 = vld [vmem:[%s15608_s6 + $0xba8] sm:$0xff]  ;;  %v8368_v13 = vld [vmem:[%s15608_s6 + $0xb20] sm:$0xff]  ;;  %v8367_v20 = vld [vmem:[%s15608_s6 + $0xb18] sm:$0xff] }
 0xda3   : > { %5633 = vmatmul.f32.gmra.mxu3 %v5573_v15  ;;  %5658 = vmatmul.f32.gmra.mxu0 %v5573_v15  ;;  %v5560_v10 = vmul.f32 %v9146_v7, %v5559_v53  ;;  %v8382_v15 = vld [vmem:[%s15608_s6 + $0xb90] sm:$0xff]  ;;  %v8383_v53 = vld [vmem:[%s15608_s6 + $0xb98] sm:$0xff]  ;;  %v8365_v44 = vld [vmem:[%s15608_s6 + $0xb08] sm:$0xff] }
 0xda4   : > { %5832 = vmatpush.msrb.mxu0 %v8336_v56  ;;  %5787 = vmatpush.msrb.mxu2 %v8333_v11 }
 0xda5   : > { %v5561_v17 = vadd.f32 %v9146_v7, %v5560_v10  ;;  %v8381_v10 = vld [vmem:[%s15608_s6 + $0xb88] sm:$0xff] }
 0xda6   : > { %5833 = vmatpush.msrb.mxu0 %v8334_v57  ;;  %5788 = vmatpush.msrb.mxu2 %v8331_v42 }
 0xda7   : > { %v5565_v60 = vsel %vm5564_vm5, %v9146_v7, %v5561_v17  ;;  %v8393_v7 = vld [vmem:[%s15608_s6 + $0xbe8] sm:$0xff]  ;;  %v8379_v17 = vld [vmem:[%s15608_s6 + $0xb78] sm:$0xff] }
 0xda8   : > { %v5570_v2 = vsel %vm5567_vm6, %v5569_v59, %v5565_v60  ;;  %5834 = vmatpush.msrb.mxu0 %v8332_v40  ;;  %5946 = vmatpush.msra.mxu2 %v8395_v19  ;;  %v8376_v60 = vld [vmem:[%s15608_s6 + $0xb60] sm:$0xff]  ;;  %v8427_v40 = vld [vmem:[%s15606_s4 + $0x18f0] sm:$0xff] }
 0xda9   : > { %v5574_v62 = vmul.f32 %v9150_v1, %v5570_v2  ;;  %v8377_v1 = vld [vmem:[%s15608_s6 + $0xb68] sm:$0xff]  ;;  %v8374_v2 = vld [vmem:[%s15608_s6 + $0xb50] sm:$0xff]  ;;  %6053 = vmatpush.msra.mxu3 %v8427_v40  ;;  %v8457_v19 = vld [vmem:[%s15606_s4 + $0x19e0] sm:$0xff] }
 0xdaa   : > { %5947 = vmatpush.msra.mxu2 %v8393_v7 }
 0xdab   : > { %5635 = vmatmul.f32.gmra.mxu3 %v5574_v62  ;;  %5661 = vmatmul.f32.gmra.mxu0 %v5574_v62  ;;  %v8375_v62 = vld [vmem:[%s15608_s6 + $0xb58] sm:$0xff] }
 0xdac   : > { %5948 = vmatpush.msra.mxu2 %v8391_v24  ;;  %v8420_v24 = vld [vmem:[%s15606_s4 + $0x18b8] sm:$0xff] }
 0xdae   : > { %5949 = vmatpush.msra.mxu2 %v8389_v63  ;;  %v8456_v63 = vld [vmem:[%s15606_s4 + $0x19d8] sm:$0xff] }
 0xdb0   : > { %5950 = vmatpush.msra.mxu2 %v8387_v46  ;;  %v8418_v46 = vld [vmem:[%s15606_s4 + $0x18a8] sm:$0xff] }
 0xdb2   : > { %5951 = vmatpush.msra.mxu2 %v8385_v43  ;;  %v8453_v43 = vld [vmem:[%s15606_s4 + $0x19c0] sm:$0xff] }
 0xdb4   : > { %5952 = vmatpush.msra.mxu2 %v8383_v53 }
 0xdb6   : > { %5953 = vmatpush.msra.mxu2 %v8381_v10  ;;  %v8416_v10 = vld [vmem:[%s15606_s4 + $0x1898] sm:$0xff] }
 0xdb8   : > { %5954 = vmatpush.msra.mxu2 %v8379_v17 }
 0xdba   : > { %5955 = vmatpush.msra.mxu2 %v8377_v1 }
 0xdbc   : > { %5956 = vmatpush.msra.mxu2 %v8375_v62  ;;  %v8414_v62 = vld [vmem:[%s15606_s4 + $0x1888] sm:$0xff] }
 0xdbe   : > { %5957 = vmatpush.msra.mxu2 %v8373_v30  ;;  %v8412_v30 = vld [vmem:[%s15606_s4 + $0x1878] sm:$0xff] }
 0xdc0   : > { %5958 = vmatpush.msra.mxu2 %v8371_v0 }
 0xdc2   : > { %5959 = vmatpush.msra.mxu2 %v8369_v26 }
 0xdc4   : > { %5960 = vmatpush.msra.mxu2 %v8367_v20 }
 0xdc6   : > { %5961 = vmatpush.msra.mxu2 %v8365_v44 }
 0xe18   : > { %v5656_v31 = vpop.f32.mrf.mxu0 }
 0xe19   : > { %v5657_v49 = vadd.f32 %v5656_v31, %v5612_v18  ;;  %v8425_v31 = vld [vmem:[%s15606_s4 + $0x18e0] sm:$0xff] }
 0xe1a   : > { %6054 = vmatpush.msra.mxu3 %v8425_v31 }
 0xe1b   : > { %v5672_v47 = vadd.f32 %v5657_v49, %v13741_v3  ;;  %v8426_v49 = vld [vmem:[%s15606_s4 + $0x18e8] sm:$0xff] }
 0xe1d   : > { %v5675_v55 = vmul.f32 0.999995, %v5672_v47 }
 0xe1e   : > { %v5632_v51 = vpop.f32.mrf.mxu3 }
 0xe1f   : > { %5766 = vmatmul.f32.vlgmr.msra.gmra.mxu1 %v5675_v55  ;;  %5812 = vmatmul.f32.vlgmr.msrb.gmra.mxu3 %v5675_v55  ;;  %v8423_v51 = vld [vmem:[%s15606_s4 + $0x18d0] sm:$0xff] }
 0xe20   : > { %v5659_v39 = vpop.f32.mrf.mxu0  ;;  %6055 = vmatpush.msra.mxu3 %v8423_v51  ;;  %v8410_v51 = vld [vmem:[%s15606_s4 + $0x1868] sm:$0xff] }
 0xe21   : > { %v5660_v45 = vadd.f32 %v5659_v39, %v5612_v18  ;;  %v8424_v39 = vld [vmem:[%s15606_s4 + $0x18d8] sm:$0xff] }
 0xe23   : > { %v5673_v22 = vadd.f32 %v5660_v45, %v13749_v36  ;;  %v8394_v36 = vld [vmem:[%s15608_s6 + $0xbf0] sm:$0xff] }
 0xe24   : > { %5924 = vmatpush.msrb.mxu1 %v8394_v36  ;;  %v5746_v36 = vperm.slane %v14193_v38, 0 }
 0xe25   : > { %v14111_v25 = vmul.f32 0.999995, %v5673_v22  ;;  %v8421_v22 = vld [vmem:[%s15606_s4 + $0x18c0] sm:$0xff] }
 0xe26   : > { %v5634_v14 = vpop.f32.mrf.mxu3  ;;  %6056 = vmatpush.msra.mxu3 %v8421_v22  ;;  %v8407_v22 = vld [vmem:[%s15606_s4 + $0x1850] sm:$0xff] }
 0xe27   : > { %5769 = vmatmul.f32.gmra.mxu1 %v14111_v25  ;;  %5789 = vmatmul.f32.vlgmr.msrb.gmra.mxu2 %v14111_v25 }
 0xe28   : > { %5815 = vmatmul.f32.gmra.mxu3 %v14111_v25  ;;  %5835 = vmatmul.f32.vlgmr.msrb.gmra.mxu0 %v14111_v25  ;;  %v5662_v3 = vpop.f32.mrf.mxu0 }
 0xe29   : > { %v5663_v27 = vadd.f32 %v5662_v3, %v5612_v18  ;;  %v8428_v18 = vld [vmem:[%s15606_s4 + $0x18f8] sm:$0xff]  ;;  %v8422_v3 = vld [vmem:[%s15606_s4 + $0x18c8] sm:$0xff] }
 0xe2b   : > { %v5674_v5 = vadd.f32 %v5663_v27, %v13758_v50  ;;  %v8392_v50 = vld [vmem:[%s15608_s6 + $0xbe0] sm:$0xff]  ;;  %v8459_v27 = vld [vmem:[%s15606_s4 + $0x19f0] sm:$0xff] }
 0xe2c   : > { %5925 = vmatpush.msrb.mxu1 %v8392_v50  ;;  %v8458_v50 = vld [vmem:[%s15606_s4 + $0x19e8] sm:$0xff]  ;;  %6076 = vmatpush.msra.mxu0 %v8459_v27 }
 0xe2d   : > { %v14118_v32 = vmul.f32 0.999995, %v5674_v5  ;;  %v8460_v5 = vld [vmem:[%s15606_s4 + $0x19f8] sm:$0xff]  ;;  %v8450_v27 = vld [vmem:[%s15606_s4 + $0x19a8] sm:$0xff] }
 0xe2e   : > { %5926 = vmatpush.msrb.mxu1 %v8390_v23  ;;  %v14176_v59 = vpop.f32.mrf.mxu3  ;;  %v8419_v23 = vld [vmem:[%s15606_s4 + $0x18b0] sm:$0xff]  ;;  %6122 = vmatpush.msrb.mxu2 %v8460_v5  ;;  %v8405_v5 = vld [vmem:[%s15606_s4 + $0x1840] sm:$0xff] }
 0xe2f   : > { %5792 = vmatmul.f32.gmra.mxu2 %v14118_v32  ;;  %6077 = vmatpush.msra.mxu0 %v8457_v19  ;;  %v8447_v19 = vld [vmem:[%s15606_s4 + $0x1990] sm:$0xff] }
 0xe30   : > { %5838 = vmatmul.f32.gmra.mxu0 %v14118_v32  ;;  %5927 = vmatpush.msrb.mxu1 %v8388_v48  ;;  %v8455_v48 = vld [vmem:[%s15606_s4 + $0x19d0] sm:$0xff] }
 0xe31   : > { %6123 = vmatpush.msrb.mxu2 %v8458_v50  ;;  %6057 = vmatpush.msra.mxu3 %v8419_v23  ;;  %v8448_v50 = vld [vmem:[%s15606_s4 + $0x1998] sm:$0xff] }
 0xe32   : > { %5928 = vmatpush.msrb.mxu1 %v8386_v16  ;;  %v8417_v16 = vld [vmem:[%s15606_s4 + $0x18a0] sm:$0xff]  ;;  %6078 = vmatpush.msra.mxu0 %v8455_v48  ;;  %v8404_v23 = vld [vmem:[%s15606_s4 + $0x1838] sm:$0xff]  ;;  %v8446_v48 = vld [vmem:[%s15606_s4 + $0x1988] sm:$0xff] }
 0xe33   : > { %6124 = vmatpush.msrb.mxu2 %v8456_v63  ;;  %6058 = vmatpush.msra.mxu3 %v8417_v16  ;;  %v8401_v63 = vld [vmem:[%s15606_s4 + $0x1820] sm:$0xff]  ;;  %v8402_v16 = vld [vmem:[%s15606_s4 + $0x1828] sm:$0xff] }
 0xe34   : > { %5929 = vmatpush.msrb.mxu1 %v8384_v28  ;;  %6079 = vmatpush.msra.mxu0 %v8453_v43  ;;  %v8399_v43 = vld [vmem:[%s15606_s4 + $0x1810] sm:$0xff] }
 0xe36   : > { %5930 = vmatpush.msrb.mxu1 %v8382_v15  ;;  %v8454_v15 = vld [vmem:[%s15606_s4 + $0x19c8] sm:$0xff] }
 0xe37   : > { %6125 = vmatpush.msrb.mxu2 %v8454_v15  ;;  %v8400_v15 = vld [vmem:[%s15606_s4 + $0x1818] sm:$0xff] }
 0xe38   : > { %5931 = vmatpush.msrb.mxu1 %v8380_v4  ;;  %v8415_v4 = vld [vmem:[%s15606_s4 + $0x1890] sm:$0xff] }
 0xe39   : > { %6059 = vmatpush.msra.mxu3 %v8415_v4  ;;  %v8442_v4 = vld [vmem:[%s15606_s4 + $0x1968] sm:$0xff] }
 0xe3a   : > { %5932 = vmatpush.msrb.mxu1 %v8378_v6 }
 0xe3c   : > { %5933 = vmatpush.msrb.mxu1 %v8376_v60 }
 0xe3e   : > { %5934 = vmatpush.msrb.mxu1 %v8374_v2  ;;  %v8413_v2 = vld [vmem:[%s15606_s4 + $0x1880] sm:$0xff] }
 0xe3f   : > { %6060 = vmatpush.msra.mxu3 %v8413_v2  ;;  %v8438_v2 = vld [vmem:[%s15606_s4 + $0x1948] sm:$0xff] }
 0xe40   : > { %5935 = vmatpush.msrb.mxu1 %v8372_v58  ;;  %v8411_v58 = vld [vmem:[%s15606_s4 + $0x1870] sm:$0xff] }
 0xe41   : > { %6061 = vmatpush.msra.mxu3 %v8411_v58  ;;  %v8434_v58 = vld [vmem:[%s15606_s4 + $0x1928] sm:$0xff] }
 0xe42   : > { %5936 = vmatpush.msrb.mxu1 %v8370_v12 }
 0xe44   : > { %5937 = vmatpush.msrb.mxu1 %v8368_v13 }
 0xe46   : > { %5938 = vmatpush.msrb.mxu1 %v8366_v35 }
 0xe48   : > { %5939 = vmatpush.msrb.mxu1 %v8364_v33 }
 0xe4a   : > { %6099 = vmatpush.msra.mxu1 %v8428_v18 }
 0xe4c   : > { %6100 = vmatpush.msra.mxu1 %v8426_v49 }
 0xe4e   : > { %6101 = vmatpush.msra.mxu1 %v8424_v39  ;;  %v8451_v39 = vld [vmem:[%s15606_s4 + $0x19b0] sm:$0xff] }
 0xe4f   : > { %6080 = vmatpush.msra.mxu0 %v8451_v39  ;;  %v8487_v39 = vld [vmem:[%s15608_s6 + $0xcc8] sm:$0xff] }
 0xe50   : > { %6102 = vmatpush.msra.mxu1 %v8422_v3  ;;  %v8449_v3 = vld [vmem:[%s15606_s4 + $0x19a0] sm:$0xff] }
 0xe51   : > { %6081 = vmatpush.msra.mxu0 %v8449_v3  ;;  %v8483_v3 = vld [vmem:[%s15608_s6 + $0xca8] sm:$0xff] }
 0xe52   : > { %6103 = vmatpush.msra.mxu1 %v8420_v24  ;;  %v8445_v24 = vld [vmem:[%s15606_s4 + $0x1980] sm:$0xff] }
 0xe53   : > { %6082 = vmatpush.msra.mxu0 %v8447_v19  ;;  %v8479_v19 = vld [vmem:[%s15608_s6 + $0xc88] sm:$0xff] }
 0xe54   : > { %6104 = vmatpush.msra.mxu1 %v8418_v46  ;;  %v8443_v46 = vld [vmem:[%s15606_s4 + $0x1970] sm:$0xff] }
 0xe55   : > { %6083 = vmatpush.msra.mxu0 %v8445_v24  ;;  %v8475_v24 = vld [vmem:[%s15608_s6 + $0xc68] sm:$0xff] }
 0xe56   : > { %6105 = vmatpush.msra.mxu1 %v8416_v10  ;;  %v8397_v10 = vld [vmem:[%s15606_s4 + $0x1800] sm:$0xff] }
 0xe57   : > { %6084 = vmatpush.msra.mxu0 %v8443_v46 }
 0xe58   : > { %6106 = vmatpush.msra.mxu1 %v8414_v62  ;;  %v8435_v62 = vld [vmem:[%s15606_s4 + $0x1930] sm:$0xff] }
 0xe5a   : > { %6107 = vmatpush.msra.mxu1 %v8412_v30  ;;  %v8431_v30 = vld [vmem:[%s15606_s4 + $0x1910] sm:$0xff] }
 0xe5c   : > { %6108 = vmatpush.msra.mxu1 %v8410_v51  ;;  %v8486_v51 = vld [vmem:[%s15608_s6 + $0xcc0] sm:$0xff] }
 0xe9c   : > { %v5767_v14 = vpop.f32.mrf.mxu1 }
 0xe9d   : > { %v5768_v28 = vadd.f32 %v5767_v14, %v5746_v36  ;;  %v8408_v14 = vld [vmem:[%s15606_s4 + $0x1858] sm:$0xff] }
 0xe9e   : > { %6109 = vmatpush.msra.mxu1 %v8408_v14  ;;  %v8482_v14 = vld [vmem:[%s15608_s6 + $0xca0] sm:$0xff] }
 0xea2   : > { %v5813_v21 = vpop.f32.mrf.mxu3 }
 0xea3   : > { %v5814_v8 = vadd.f32 %v5813_v21, %v5747_v54 }
 0xea4   : > { %v5770_v38 = vpop.f32.mrf.mxu1 }
 0xea5   : > { %v5836_v61 = vpop.f32.mrf.mxu0  ;;  %v5771_v13 = vadd.f32 %v5770_v38, %v5746_v36  ;;  %v8406_v36 = vld [vmem:[%s15606_s4 + $0x1848] sm:$0xff]  ;;  %v8436_v38 = vld [vmem:[%s15606_s4 + $0x1938] sm:$0xff] }
 0xea6   : > { %v5837_v37 = vadd.f32 %v5836_v61, %v5814_v8  ;;  %6110 = vmatpush.msra.mxu1 %v8406_v36  ;;  %v8478_v36 = vld [vmem:[%s15608_s6 + $0xc80] sm:$0xff] }
 0xea8   : > { %v5844_v9 = vsub.f32 0.0, %v5837_v37  ;;  %6111 = vmatpush.msra.mxu1 %v8404_v23  ;;  %v8474_v23 = vld [vmem:[%s15608_s6 + $0xc60] sm:$0xff] }
 0xeaa   : > { %v5846_v41 = vmul.f32 1.442695, %v5844_v9  ;;  %v5790_v7 = vpop.f32.mrf.mxu2  ;;  %6112 = vmatpush.msra.mxu1 %v8402_v16  ;;  %v8473_v16 = vld [vmem:[%s15608_s6 + $0xc58] sm:$0xff] }
 0xeab   : > { %v5816_v52 = vpop.f32.mrf.mxu3  ;;  %v5791_v17 = vadd.f32 %v5790_v7, %v5768_v28  ;;  %v8403_v7 = vld [vmem:[%s15606_s4 + $0x1830] sm:$0xff]  ;;  %v8444_v28 = vld [vmem:[%s15606_s4 + $0x1978] sm:$0xff] }
 0xeac   : > { %9151 = vpow2.f32 %v5846_v41  ;;  %v5817_v56 = vadd.f32 %v5816_v52, %v5747_v54  ;;  %6113 = vmatpush.msra.mxu1 %v8400_v15 }
 0xead   : > { %v5839_v11 = vpop.f32.mrf.mxu0 }
 0xeae   : > { %v5840_v57 = vadd.f32 %v5839_v11, %v5817_v56 }
 0xeb0   : > { %v5845_v42 = vsub.f32 0.0, %v5840_v57 }
 0xeb2   : > { %v9152_v47 = vpop.eup %9151  ;;  %v5848_v55 = vmul.f32 1.442695, %v5845_v42  ;;  %v5793_v8 = vpop.f32.mrf.mxu2 }
 0xeb3   : > { %v14244_v45 = vadd.f32 1.0, %v9152_v47  ;;  %v5794_v20 = vadd.f32 %v5793_v8, %v5771_v13  ;;  %v8396_v13 = vld [vmem:[%s15609_s7 + $0x16] sm:$0x3] }
 0xeb4   : > { %9153 = vpow2.f32 %v5848_v55  ;;  %v8409_v55 = vld [vmem:[%s15606_s4 + $0x1860] sm:$0xff] }
 0xeb5   : > { %9155 = vrcp.f32 %v14244_v45  ;;  %v5863_v12 = vand.u32 2147483648, %v14244_v45  ;;  %v5861_v21 = vand.u32 2147483647, %v14244_v45  ;;  %vm5857_vm8 = vweird.f32 %v14244_v45  ;;  %6062 = vmatpush.msra.mxu3 %v8409_v55  ;;  %v8489_v55 = vld [vmem:[%s15608_s6 + $0xcd8] sm:$0xff] }
 0xeb7   : > { %v5864_v35 = vor.u32 1.1754944e-38, %v5863_v12  ;;  %vm5862_vm11 = vcmp.eq.f32.partialorder %v5861_v21, 8.507059e+37  ;;  %6063 = vmatpush.msra.mxu3 %v8407_v22  ;;  %v8432_v12 = vld [vmem:[%s15606_s4 + $0x1918] sm:$0xff]  ;;  %v8430_v21 = vld [vmem:[%s15606_s4 + $0x1908] sm:$0xff] }
 0xeb8   : > { %v8485_v22 = vld [vmem:[%s15608_s6 + $0xcb8] sm:$0xff] }
 0xeb9   : > { %6064 = vmatpush.msra.mxu3 %v8405_v5  ;;  %v8481_v5 = vld [vmem:[%s15608_s6 + $0xc98] sm:$0xff] }
 0xeba   : > { %v9154_v53 = vpop.eup %9153 }
 0xebb   : > { %v9156_v6 = vpop.eup %9155  ;;  %v5851_v60 = vadd.f32 1.0, %v9154_v53  ;;  %6065 = vmatpush.msra.mxu3 %v8403_v7  ;;  %v8441_v53 = vld [vmem:[%s15606_s4 + $0x1960] sm:$0xff]  ;;  %v8477_v7 = vld [vmem:[%s15608_s6 + $0xc78] sm:$0xff] }
 0xebc   : > { %v5853_v1 = vmul.f32 %v9156_v6, %v14244_v45  ;;  %vm5858_vm7 = vweird.f32 %v9156_v6  ;;  %v8452_v45 = vld [vmem:[%s15606_s4 + $0x19b8] sm:$0xff]  ;;  %6085 = vmatpush.msra.mxu0 %v8441_v53  ;;  %v8468_v53 = vld [vmem:[%s15608_s6 + $0xc30] sm:$0xff] }
 0xebd   : > { %9157 = vrcp.f32 %v5851_v60  ;;  %vm5859_vm10 = vmor %vm5857_vm8, %vm5858_vm7  ;;  %v5878_v56 = vand.u32 2147483648, %v5851_v60  ;;  %v5876_v57 = vand.u32 2147483647, %v5851_v60  ;;  %vm5872_vm13 = vweird.f32 %v5851_v60  ;;  %6126 = vmatpush.msrb.mxu2 %v8452_v45  ;;  %6066 = vmatpush.msra.mxu3 %v8401_v63  ;;  %v8484_v45 = vld [vmem:[%s15608_s6 + $0xcb0] sm:$0xff] }
 0xebe   : > { %v5854_v54 = vsub.f32 1.0, %v5853_v1  ;;  %9159 = vtanh.f32 %v5791_v17  ;;  %v8439_v17 = vld [vmem:[%s15606_s4 + $0x1950] sm:$0xff]  ;;  %v8437_v1 = vld [vmem:[%s15606_s4 + $0x1940] sm:$0xff] }
 0xebf   : > { %9161 = vtanh.f32 %v5794_v20  ;;  %v5879_v40 = vor.u32 1.1754944e-38, %v5878_v56  ;;  %vm5877_vm15 = vcmp.eq.f32.partialorder %v5876_v57, 8.507059e+37  ;;  %6127 = vmatpush.msrb.mxu2 %v8450_v27  ;;  %6067 = vmatpush.msra.mxu3 %v8399_v43  ;;  %v5920_v20 = vperm.slane %v8396_v13, 0  ;;  %v8480_v27 = vld [vmem:[%s15608_s6 + $0xc90] sm:$0xff]  ;;  %v8471_v43 = vld [vmem:[%s15608_s6 + $0xc48] sm:$0xff] }
 0xec0   : > { %v5855_v0 = vmul.f32 %v9156_v6, %v5854_v54  ;;  %6086 = vmatpush.msra.mxu0 %v8439_v17  ;;  %v8433_v54 = vld [vmem:[%s15606_s4 + $0x1920] sm:$0xff]  ;;  %v8472_v63 = vld [vmem:[%s15608_s6 + $0xc50] sm:$0xff] }
 0xec1   : > { %6128 = vmatpush.msrb.mxu2 %v8448_v50  ;;  %6068 = vmatpush.msra.mxu3 %v8397_v10  ;;  %v8476_v50 = vld [vmem:[%s15608_s6 + $0xc70] sm:$0xff]  ;;  %v8466_v10 = vld [vmem:[%s15608_s6 + $0xc20] sm:$0xff] }
 0xec2   : > { %v5856_v26 = vadd.f32 %v9156_v6, %v5855_v0  ;;  %6087 = vmatpush.msra.mxu0 %v8437_v1  ;;  %v8429_v0 = vld [vmem:[%s15606_s4 + $0x1900] sm:$0xff]  ;;  %v8464_v17 = vld [vmem:[%s15608_s6 + $0xc10] sm:$0xff] }
 0xec3   : > { %v9158_v61 = vpop.eup %9157  ;;  %6129 = vmatpush.msrb.mxu2 %v8446_v48  ;;  %v14509_v48 = vld [vmem:[%s15607_s5 + $0x18] sm:$0x3] }
 0xec4   : > { %v5860_v37 = vsel %vm5859_vm10, %v9156_v6, %v5856_v26  ;;  %v5868_v33 = vmul.f32 %v9158_v61, %v5851_v60  ;;  %v9160_v44 = vpop.eup %9159  ;;  %vm5873_vm12 = vweird.f32 %v9158_v61  ;;  %v8398_v6 = vld [vmem:[%s15606_s4 + $0x1808] sm:$0xff]  ;;  %v8440_v60 = vld [vmem:[%s15606_s4 + $0x1958] sm:$0xff]  ;;  %6088 = vmatpush.msra.mxu0 %v8435_v62  ;;  %v5611_v26 = vperm.slane %v14106_v34, 0  ;;  %v8462_v62 = vld [vmem:[%s15608_s6 + $0xc00] sm:$0xff] }
 0xec5   : > { %v5865_v9 = vsel %vm5862_vm11, %v5864_v35, %v5860_v37  ;;  %vm5874_vm14 = vmor %vm5872_vm13, %vm5873_vm12  ;;  %v9162_v31 = vpop.eup %9161  ;;  %6130 = vmatpush.msrb.mxu2 %v8444_v28  ;;  %6114 = vmatpush.msra.mxu1 %v8398_v6  ;;  %v8470_v28 = vld [vmem:[%s15608_s6 + $0xc40] sm:$0xff]  ;;  %v6050_v15 = vperm.slane %v14509_v48, 1  ;;  %v8467_v6 = vld [vmem:[%s15608_s6 + $0xc28] sm:$0xff] }
 0xec6   : > { %v5882_v41 = vmul.f32 %v9160_v44, %v5865_v9  ;;  %v5869_v52 = vsub.f32 1.0, %v5868_v33  ;;  %6089 = vmatpush.msra.mxu0 %v8433_v54  ;;  %v5637_v35 = vadd.f32 %v14176_v59, %v5611_v26  ;;  %v8525_v26 = vld [vmem:[%s15606_s4 + $0x1af0] sm:$0xff] }
 0xec7   : > { %6131 = vmatpush.msrb.mxu2 %v8442_v4  ;;  %v8469_v4 = vld [vmem:[%s15608_s6 + $0xc38] sm:$0xff] }
 0xec8   : > { %5940 = vmatmul.f32.vlgmr.msrb.gmra.mxu1 %v5882_v41  ;;  %5962 = vmatmul.f32.vlgmr.msra.gmra.mxu2 %v5882_v41  ;;  %v5870_v11 = vmul.f32 %v9158_v61, %v5869_v52  ;;  %v5671_v9 = vadd.f32 %v13752_v29, %v5637_v35  ;;  %v8523_v35 = vld [vmem:[%s15606_s4 + $0x1ae0] sm:$0xff] }
 0xec9   : > { %6132 = vmatpush.msrb.mxu2 %v8440_v60  ;;  %6090 = vmatpush.msra.mxu0 %v8431_v30  ;;  %v8465_v60 = vld [vmem:[%s15608_s6 + $0xc18] sm:$0xff] }
 0xeca   : > { %v5871_v42 = vadd.f32 %v9158_v61, %v5870_v11  ;;  %6359 = vmatpush.msrb.mxu1 %v8525_v26  ;;  %v8503_v26 = vld [vmem:[%s15606_s4 + $0x1a40] sm:$0xff] }
 0xecb   : > { %6133 = vmatpush.msrb.mxu2 %v8438_v2  ;;  %6091 = vmatpush.msra.mxu0 %v8429_v0 }
 0xecc   : > { %v5875_v18 = vsel %vm5874_vm14, %v9158_v61, %v5871_v42  ;;  %v5921_v61 = vperm.slane %v8396_v13, 1  ;;  %6360 = vmatpush.msrb.mxu1 %v8523_v35 }
 0xecd   : > { %v5880_v49 = vsel %vm5877_vm15, %v5879_v40, %v5875_v18  ;;  %6134 = vmatpush.msrb.mxu2 %v8436_v38  ;;  %v8463_v38 = vld [vmem:[%s15608_s6 + $0xc08] sm:$0xff] }
 0xece   : > { %v5883_v47 = vmul.f32 %v9162_v31, %v5880_v49  ;;  %v8490_v31 = vld [vmem:[%s15608_s6 + $0xce0] sm:$0xff]  ;;  %v8491_v49 = vld [vmem:[%s15608_s6 + $0xce8] sm:$0xff] }
 0xecf   : > { %6135 = vmatpush.msrb.mxu2 %v8434_v58 }
 0xed0   : > { %5942 = vmatmul.f32.gmra.mxu1 %v5883_v47  ;;  %5965 = vmatmul.f32.gmra.mxu2 %v5883_v47  ;;  %v8488_v47 = vld [vmem:[%s15608_s6 + $0xcd0] sm:$0xff] }
 0xed1   : > { %6136 = vmatpush.msrb.mxu2 %v8432_v12 }
 0xed3   : > { %6137 = vmatpush.msrb.mxu2 %v8430_v21 }
 0xf45   : > { %v5941_v8 = vpop.f32.mrf.mxu1 }
 0xf4b   : > { %v5963_v37 = vpop.f32.mrf.mxu2 }
 0xf4c   : > { %v5964_v33 = vadd.f32 %v5963_v37, %v5921_v61 }
 0xf4d   : > { %v5943_v44 = vpop.f32.mrf.mxu1 }
 0xf4e   : > { %v5970_v41 = vadd.f32 %v5964_v33, %v14111_v25  ;;  %v5944_v52 = vadd.f32 %v5943_v44, %v5920_v20  ;;  %v8492_v25 = vld [vmem:[%s15608_s6 + $0xcf0] sm:$0xff]  ;;  %v8524_v20 = vld [vmem:[%s15606_s4 + $0x1ae8] sm:$0xff] }
 0xf4f   : > { %6227 = vmatpush.msrb.mxu3 %v8492_v25  ;;  %v8521_v44 = vld [vmem:[%s15606_s4 + $0x1ad0] sm:$0xff]  ;;  %v8556_v25 = vld [vmem:[%s15606_s4 + $0x1be8] sm:$0xff] }
 0xf50   : > { %v5972_v56 = vmul.f32 0.999995, %v5970_v41  ;;  %v14433_v11 = vadd.f32 %v5944_v52, %v5671_v9  ;;  %v8522_v9 = vld [vmem:[%s15606_s4 + $0x1ad8] sm:$0xff]  ;;  %v8519_v52 = vld [vmem:[%s15606_s4 + $0x1ac0] sm:$0xff]  ;;  %6361 = vmatpush.msrb.mxu1 %v8521_v44 }
 0xf51   : > { %6228 = vmatpush.msrb.mxu3 %v8490_v31  ;;  %v8517_v31 = vld [vmem:[%s15606_s4 + $0x1ab0] sm:$0xff] }
 0xf52   : > { %6069 = vmatmul.f32.vlgmr.msra.gmra.mxu3 %v5972_v56  ;;  %6115 = vmatmul.f32.vlgmr.msra.gmra.mxu1 %v5972_v56  ;;  %v5976_v59 = vrot.slane %v5972_v56, 1 }
 0xf53   : > { %v5966_v57 = vpop.f32.mrf.mxu2  ;;  %6229 = vmatpush.msrb.mxu3 %v8488_v47  ;;  %6362 = vmatpush.msrb.mxu1 %v8519_v52  ;;  %v8553_v47 = vld [vmem:[%s15606_s4 + $0x1bd0] sm:$0xff] }
 0xf54   : > { %v5967_v42 = vadd.f32 %v5966_v57, %v5921_v61  ;;  %v8526_v61 = vld [vmem:[%s15606_s4 + $0x1af8] sm:$0xff]  ;;  %v8520_v57 = vld [vmem:[%s15606_s4 + $0x1ac8] sm:$0xff] }
 0xf55   : > { %6230 = vmatpush.msrb.mxu3 %v8486_v51  ;;  %v8515_v51 = vld [vmem:[%s15606_s4 + $0x1aa0] sm:$0xff]  ;;  %6363 = vmatpush.msrb.mxu1 %v8517_v31  ;;  %v8544_v31 = vld [vmem:[%s15606_s4 + $0x1b88] sm:$0xff] }
 0xf56   : > { %v5971_v34 = vadd.f32 %v5967_v42, %v14118_v32  ;;  %v8493_v32 = vld [vmem:[%s15608_s6 + $0xcf8] sm:$0xff]  ;;  %v8557_v42 = vld [vmem:[%s15606_s4 + $0x1bf0] sm:$0xff] }
 0xf57   : > { %6249 = vmatpush.msrb.mxu0 %v8493_v32  ;;  %6231 = vmatpush.msrb.mxu3 %v8484_v45 }
 0xf58   : > { %v5973_v40 = vmul.f32 0.999995, %v5971_v34  ;;  %v8558_v34 = vld [vmem:[%s15606_s4 + $0x1bf8] sm:$0xff]  ;;  %6382 = vmatpush.msra.mxu2 %v8557_v42  ;;  %6364 = vmatpush.msrb.mxu1 %v8515_v51 }
 0xf59   : > { %6250 = vmatpush.msrb.mxu0 %v8491_v49  ;;  %6232 = vmatpush.msrb.mxu3 %v8482_v14  ;;  %v8518_v49 = vld [vmem:[%s15606_s4 + $0x1ab8] sm:$0xff]  ;;  %v8552_v14 = vld [vmem:[%s15606_s4 + $0x1bc8] sm:$0xff] }
 0xf5a   : > { %v14436_v18 = vrot.slane %v5973_v40, 1  ;;  %6072 = vmatmul.f32.gmra.mxu3 %v5973_v40  ;;  %6118 = vmatmul.f32.gmra.mxu1 %v5973_v40  ;;  %v6049_v40 = vperm.slane %v14509_v48, 0  ;;  %v8542_v51 = vld [vmem:[%s15606_s4 + $0x1b78] sm:$0xff] }
 0xf5b   : > { %6251 = vmatpush.msrb.mxu0 %v8489_v55  ;;  %6233 = vmatpush.msrb.mxu3 %v8480_v27  ;;  %v8554_v55 = vld [vmem:[%s15606_s4 + $0x1bd8] sm:$0xff]  ;;  %v8513_v27 = vld [vmem:[%s15606_s4 + $0x1a90] sm:$0xff] }
 0xf5c   : > { %v14440_v29 = vsel %vm554_vm1, %v5976_v59, %v14436_v18  ;;  %v8555_v59 = vld [vmem:[%s15606_s4 + $0x1be0] sm:$0xff]  ;;  %6365 = vmatpush.msrb.mxu1 %v8513_v27  ;;  %v8496_v27 = vld [vmem:[%s15606_s4 + $0x1a08] sm:$0xff] }
 0xf5d   : > { %6092 = vmatmul.f32.vlgmr.msra.gmra.mxu0 %v14440_v29  ;;  %6138 = vmatmul.f32.vlgmr.msrb.gmra.mxu2 %v14440_v29 }
 0xf5e   : > { %6252 = vmatpush.msrb.mxu0 %v8487_v39  ;;  %6234 = vmatpush.msrb.mxu3 %v8478_v36  ;;  %v8516_v39 = vld [vmem:[%s15606_s4 + $0x1aa8] sm:$0xff] }
 0xf5f   : > { %6383 = vmatpush.msra.mxu2 %v8555_v59  ;;  %v8501_v59 = vld [vmem:[%s15606_s4 + $0x1a30] sm:$0xff] }
 0xf60   : > { %6253 = vmatpush.msrb.mxu0 %v8485_v22  ;;  %6235 = vmatpush.msrb.mxu3 %v8476_v50  ;;  %v8551_v22 = vld [vmem:[%s15606_s4 + $0x1bc0] sm:$0xff] }
 0xf61   : > { %6384 = vmatpush.msra.mxu2 %v8553_v47  ;;  %v8500_v47 = vld [vmem:[%s15606_s4 + $0x1a28] sm:$0xff] }
 0xf62   : > { %6254 = vmatpush.msrb.mxu0 %v8483_v3  ;;  %6236 = vmatpush.msrb.mxu3 %v8474_v23  ;;  %v8550_v23 = vld [vmem:[%s15606_s4 + $0x1bb8] sm:$0xff] }
 0xf63   : > { %6385 = vmatpush.msra.mxu2 %v8551_v22  ;;  %v8539_v22 = vld [vmem:[%s15606_s4 + $0x1b60] sm:$0xff] }
 0xf64   : > { %6255 = vmatpush.msrb.mxu0 %v8481_v5  ;;  %6237 = vmatpush.msrb.mxu3 %v8472_v63  ;;  %v8514_v5 = vld [vmem:[%s15606_s4 + $0x1a98] sm:$0xff]  ;;  %v8511_v63 = vld [vmem:[%s15606_s4 + $0x1a80] sm:$0xff] }
 0xf65   : > { %6095 = vmatmul.f32.gmra.mxu0 %v14436_v18  ;;  %6141 = vmatmul.f32.gmra.mxu2 %v14436_v18 }
 0xf66   : > { %6256 = vmatpush.msrb.mxu0 %v8479_v19  ;;  %6238 = vmatpush.msrb.mxu3 %v8470_v28  ;;  %v8548_v28 = vld [vmem:[%s15606_s4 + $0x1ba8] sm:$0xff] }
 0xf67   : > { %6366 = vmatpush.msrb.mxu1 %v8511_v63  ;;  %v8532_v63 = vld [vmem:[%s15606_s4 + $0x1b28] sm:$0xff] }
 0xf68   : > { %6257 = vmatpush.msrb.mxu0 %v8477_v7  ;;  %6239 = vmatpush.msrb.mxu3 %v8468_v53  ;;  %v8549_v7 = vld [vmem:[%s15606_s4 + $0x1bb0] sm:$0xff] }
 0xf69   : > { %v8509_v53 = vld [vmem:[%s15606_s4 + $0x1a70] sm:$0xff]  ;;  %6386 = vmatpush.msra.mxu2 %v8549_v7 }
 0xf6a   : > { %6258 = vmatpush.msrb.mxu0 %v8475_v24  ;;  %6240 = vmatpush.msrb.mxu3 %v8466_v10  ;;  %v8533_v7 = vld [vmem:[%s15606_s4 + $0x1b30] sm:$0xff] }
 0xf6b   : > { %6367 = vmatpush.msrb.mxu1 %v8509_v53 }
 0xf6c   : > { %6259 = vmatpush.msrb.mxu0 %v8473_v16  ;;  %6241 = vmatpush.msrb.mxu3 %v8464_v17  ;;  %v8512_v16 = vld [vmem:[%s15606_s4 + $0x1a88] sm:$0xff]  ;;  %v8546_v17 = vld [vmem:[%s15606_s4 + $0x1b98] sm:$0xff] }
 0xf6e   : > { %6260 = vmatpush.msrb.mxu0 %v8471_v43  ;;  %6242 = vmatpush.msrb.mxu3 %v8462_v62  ;;  %v8507_v62 = vld [vmem:[%s15606_s4 + $0x1a60] sm:$0xff] }
 0xf6f   : > { %6368 = vmatpush.msrb.mxu1 %v8507_v62 }
 0xf70   : > { %6261 = vmatpush.msrb.mxu0 %v8469_v4  ;;  %6405 = vmatpush.msra.mxu3 %v8526_v61  ;;  %v8510_v4 = vld [vmem:[%s15606_s4 + $0x1a78] sm:$0xff]  ;;  %v8504_v61 = vld [vmem:[%s15606_s4 + $0x1a48] sm:$0xff] }
 0xf72   : > { %6262 = vmatpush.msrb.mxu0 %v8467_v6  ;;  %6406 = vmatpush.msra.mxu3 %v8524_v20  ;;  %v8545_v6 = vld [vmem:[%s15606_s4 + $0x1b90] sm:$0xff] }
 0xf74   : > { %6263 = vmatpush.msrb.mxu0 %v8465_v60  ;;  %6407 = vmatpush.msra.mxu3 %v8522_v9 }
 0xf76   : > { %6264 = vmatpush.msrb.mxu0 %v8463_v38  ;;  %6408 = vmatpush.msra.mxu3 %v8520_v57  ;;  %v8508_v38 = vld [vmem:[%s15606_s4 + $0x1a68] sm:$0xff] }
 0xf78   : > { %6428 = vmatpush.msra.mxu0 %v8558_v34  ;;  %6409 = vmatpush.msra.mxu3 %v8518_v49  ;;  %v8499_v49 = vld [vmem:[%s15606_s4 + $0x1a20] sm:$0xff] }
 0xf7a   : > { %6429 = vmatpush.msra.mxu0 %v8556_v25  ;;  %6410 = vmatpush.msra.mxu3 %v8516_v39  ;;  %v8502_v25 = vld [vmem:[%s15606_s4 + $0x1a38] sm:$0xff]  ;;  %v8497_v39 = vld [vmem:[%s15606_s4 + $0x1a10] sm:$0xff] }
 0xf7c   : > { %6430 = vmatpush.msra.mxu0 %v8554_v55  ;;  %6411 = vmatpush.msra.mxu3 %v8514_v5  ;;  %v8541_v55 = vld [vmem:[%s15606_s4 + $0x1b70] sm:$0xff] }
 0xf7d   : > { %v8537_v5 = vld [vmem:[%s15606_s4 + $0x1b50] sm:$0xff] }
 0xf7e   : > { %6431 = vmatpush.msra.mxu0 %v8552_v14  ;;  %6412 = vmatpush.msra.mxu3 %v8512_v16  ;;  %v8540_v14 = vld [vmem:[%s15606_s4 + $0x1b68] sm:$0xff]  ;;  %v8529_v16 = vld [vmem:[%s15606_s4 + $0x1b10] sm:$0xff] }
 0xf80   : > { %6432 = vmatpush.msra.mxu0 %v8550_v23  ;;  %6413 = vmatpush.msra.mxu3 %v8510_v4  ;;  %v8534_v23 = vld [vmem:[%s15606_s4 + $0x1b38] sm:$0xff] }
 0xf82   : > { %6433 = vmatpush.msra.mxu0 %v8548_v28  ;;  %6414 = vmatpush.msra.mxu3 %v8508_v38  ;;  %v8527_v28 = vld [vmem:[%s15606_s4 + $0x1b00] sm:$0xff] }
 0xf84   : > { %6434 = vmatpush.msra.mxu0 %v8546_v17 }
 0xf86   : > { %6435 = vmatpush.msra.mxu0 %v8544_v31 }
 0xf88   : > { %6436 = vmatpush.msra.mxu0 %v8542_v51  ;;  %v8564_v51 = vld [vmem:[%s15608_s6 + $0xd20] sm:$0xff] }
 0xf8a   : > { %6437 = vmatpush.msra.mxu0 %v8540_v14  ;;  %v8562_v14 = vld [vmem:[%s15608_s6 + $0xd10] sm:$0xff] }
 0xfcf   : > { %v6116_v46 = vpop.f32.mrf.mxu1 }
 0xfd0   : > { %v6117_v1 = vadd.f32 %v6116_v46, %v6050_v15  ;;  %v8547_v46 = vld [vmem:[%s15606_s4 + $0x1ba0] sm:$0xff] }
 0xfd1   : > { %6387 = vmatpush.msra.mxu2 %v8547_v46  ;;  %v8530_v46 = vld [vmem:[%s15606_s4 + $0x1b18] sm:$0xff] }
 0xfd3   : > { %6388 = vmatpush.msra.mxu2 %v8545_v6 }
 0xfd5   : > { %v6070_v56 = vpop.f32.mrf.mxu3 }
 0xfd6   : > { %v6071_v45 = vadd.f32 %v6070_v56, %v6049_v40 }
 0xfd7   : > { %v6119_v30 = vpop.f32.mrf.mxu1 }
 0xfd8   : > { %v6120_v0 = vadd.f32 %v6119_v30, %v6050_v15  ;;  %v8505_v30 = vld [vmem:[%s15606_s4 + $0x1a50] sm:$0xff] }
 0xfd9   : > { %6369 = vmatpush.msrb.mxu1 %v8505_v30 }
 0xfda   : > { %v6093_v32 = vpop.f32.mrf.mxu0 }
 0xfdb   : > { %v6094_v19 = vadd.f32 %v6093_v32, %v6071_v45  ;;  %6370 = vmatpush.msrb.mxu1 %v8503_v26  ;;  %v8543_v32 = vld [vmem:[%s15606_s4 + $0x1b80] sm:$0xff]  ;;  %v8498_v45 = vld [vmem:[%s15606_s4 + $0x1a18] sm:$0xff]  ;;  %v8582_v26 = vld [vmem:[%s15608_s6 + $0xdb0] sm:$0xff] }
 0xfdc   : > { %6389 = vmatpush.msra.mxu2 %v8543_v32  ;;  %v8569_v32 = vld [vmem:[%s15608_s6 + $0xd48] sm:$0xff] }
 0xfdd   : > { %v6073_v43 = vpop.f32.mrf.mxu3  ;;  %6371 = vmatpush.msrb.mxu1 %v8501_v59  ;;  %v14849_v59 = vld [vmem:[%s15607_s5 + $0x1a] sm:$0x3] }
 0xfde   : > { %6390 = vmatpush.msra.mxu2 %v8541_v55  ;;  %v6356_v31 = vperm.slane %v14849_v59, 1  ;;  %v8567_v55 = vld [vmem:[%s15608_s6 + $0xd38] sm:$0xff] }
 0xfdf   : > { %6372 = vmatpush.msrb.mxu1 %v8499_v49 }
 0xfe0   : > { %v6139_v2 = vpop.f32.mrf.mxu2  ;;  %6391 = vmatpush.msra.mxu2 %v8539_v22 }
 0xfe1   : > { %v6140_v54 = vadd.f32 %v6139_v2, %v6117_v1  ;;  %6373 = vmatpush.msrb.mxu1 %v8497_v39  ;;  %v8565_v39 = vld [vmem:[%s15608_s6 + $0xd28] sm:$0xff] }
 0xfe2   : > { %v6096_v1 = vpop.f32.mrf.mxu0  ;;  %6392 = vmatpush.msra.mxu2 %v8537_v5  ;;  %v8560_v5 = vld [vmem:[%s15608_s6 + $0xd00] sm:$0xff] }
 0xfe3   : > { %v6147_v58 = vsub.f32 0.0, %v6140_v54  ;;  %v6074_v54 = vadd.f32 %v6073_v43, %v6049_v40  ;;  %v8528_v43 = vld [vmem:[%s15606_s4 + $0x1b08] sm:$0xff] }
 0xfe5   : > { %v6149_v12 = vmul.f32 1.442695, %v6147_v58 }
 0xfe7   : > { %9163 = vpow2.f32 %v6149_v12  ;;  %v8506_v12 = vld [vmem:[%s15606_s4 + $0x1a58] sm:$0xff] }
 0xfe8   : > { %v6142_v21 = vpop.f32.mrf.mxu2  ;;  %6415 = vmatpush.msra.mxu3 %v8506_v12  ;;  %v8588_v12 = vld [vmem:[%s15608_s6 + $0xde0] sm:$0xff] }
 0xfe9   : > { %v6143_v8 = vadd.f32 %v6142_v21, %v6120_v0  ;;  %v6097_v21 = vadd.f32 %v6096_v1, %v6074_v54 }
 0xfea   : > { %6416 = vmatpush.msra.mxu3 %v8504_v61  ;;  %v8583_v61 = vld [vmem:[%s15608_s6 + $0xdb8] sm:$0xff] }
 0xfeb   : > { %v6148_v13 = vsub.f32 0.0, %v6143_v8 }
 0xfec   : > { %6417 = vmatpush.msra.mxu3 %v8502_v25  ;;  %v8568_v25 = vld [vmem:[%s15608_s6 + $0xd40] sm:$0xff] }
 0xfed   : > { %v9164_v37 = vpop.eup %9163  ;;  %v6151_v33 = vmul.f32 1.442695, %v6148_v13 }
 0xfee   : > { %v14566_v41 = vadd.f32 1.0, %v9164_v37  ;;  %6418 = vmatpush.msra.mxu3 %v8500_v47  ;;  %v8566_v47 = vld [vmem:[%s15608_s6 + $0xd30] sm:$0xff] }
 0xfef   : > { %9165 = vpow2.f32 %v6151_v33 }
 0xff0   : > { %9167 = vrcp.f32 %v14566_v41  ;;  %v6166_v10 = vand.u32 2147483648, %v14566_v41  ;;  %v6164_v2 = vand.u32 2147483647, %v14566_v41  ;;  %vm6160_vm0 = vweird.f32 %v14566_v41  ;;  %6419 = vmatpush.msra.mxu3 %v8498_v45 }
 0xff2   : > { %v6167_v48 = vor.u32 1.1754944e-38, %v6166_v10  ;;  %vm6165_vm3 = vcmp.eq.f32.partialorder %v6164_v2, 8.507059e+37  ;;  %6420 = vmatpush.msra.mxu3 %v8496_v27 }
 0xff5   : > { %v9166_v3 = vpop.eup %9165 }
 0xff6   : > { %v9168_v36 = vpop.eup %9167  ;;  %v14620_v50 = vadd.f32 1.0, %v9166_v3  ;;  %v8495_v3 = vld [vmem:[%s15606_s4 + $0x1a00] sm:$0xff] }
 0xff7   : > { %v6156_v24 = vmul.f32 %v9168_v36, %v14566_v41  ;;  %vm6161_vm1 = vweird.f32 %v9168_v36  ;;  %6374 = vmatpush.msrb.mxu1 %v8495_v3  ;;  %v8563_v3 = vld [vmem:[%s15608_s6 + $0xd18] sm:$0xff] }
 0xff8   : > { %9169 = vrcp.f32 %v14620_v50  ;;  %vm6162_vm2 = vmor %vm6160_vm0, %vm6161_vm1  ;;  %v6181_v44 = vand.u32 2147483648, %v14620_v50  ;;  %v6179_v41 = vand.u32 2147483647, %v14620_v50  ;;  %vm6175_vm6 = vweird.f32 %v14620_v50 }
 0xff9   : > { %v6157_v15 = vsub.f32 1.0, %v6156_v24  ;;  %9171 = vtanh.f32 %v6094_v19  ;;  %v8535_v19 = vld [vmem:[%s15606_s4 + $0x1b40] sm:$0xff] }
 0xffa   : > { %9173 = vtanh.f32 %v6097_v21  ;;  %v6182_v56 = vor.u32 1.1754944e-38, %v6181_v44  ;;  %vm6180_vm8 = vcmp.eq.f32.partialorder %v6179_v41, 8.507059e+37  ;;  %6393 = vmatpush.msra.mxu2 %v8535_v19  ;;  %v8531_v24 = vld [vmem:[%s15606_s4 + $0x1b20] sm:$0xff]  ;;  %v8587_v21 = vld [vmem:[%s15608_s6 + $0xdd8] sm:$0xff] }
 0xffb   : > { %v6158_v60 = vmul.f32 %v9168_v36, %v6157_v15  ;;  %v14763_v15 = vld [vmem:[%s15609_s7 + $0x18] sm:$0x3]  ;;  %v8576_v44 = vld [vmem:[%s15608_s6 + $0xd80] sm:$0xff] }
 0xffc   : > { %6394 = vmatpush.msra.mxu2 %v8533_v7  ;;  %v6224_v53 = vperm.slane %v14763_v15, 1 }
 0xffd   : > { %v6159_v58 = vadd.f32 %v9168_v36, %v6158_v60 }
 0xffe   : > { %v9170_v0 = vpop.eup %9169  ;;  %6395 = vmatpush.msra.mxu2 %v8531_v24 }
 0xfff   : > { %v6163_v8 = vsel %vm6162_vm2, %v9168_v36, %v6159_v58  ;;  %v6171_v13 = vmul.f32 %v9170_v0, %v14620_v50  ;;  %v9172_v35 = vpop.eup %9171  ;;  %vm6176_vm5 = vweird.f32 %v9170_v0  ;;  %v8538_v36 = vld [vmem:[%s15606_s4 + $0x1b58] sm:$0xff]  ;;  %v8536_v50 = vld [vmem:[%s15606_s4 + $0x1b48] sm:$0xff] }
0x1000   : > { %v6168_v20 = vsel %vm6165_vm3, %v6167_v48, %v6163_v8  ;;  %vm6177_vm7 = vmor %vm6175_vm6, %vm6176_vm5  ;;  %v9174_v42 = vpop.eup %9173  ;;  %6438 = vmatpush.msra.mxu0 %v8538_v36  ;;  %6396 = vmatpush.msra.mxu2 %v8529_v16  ;;  %v8586_v48 = vld [vmem:[%s15608_s6 + $0xdd0] sm:$0xff]  ;;  %v8584_v8 = vld [vmem:[%s15608_s6 + $0xdc0] sm:$0xff] }
0x1001   : > { %v6185_v37 = vmul.f32 %v9172_v35, %v6168_v20  ;;  %v6172_v33 = vsub.f32 1.0, %v6171_v13  ;;  %v8585_v13 = vld [vmem:[%s15608_s6 + $0xdc8] sm:$0xff]  ;;  %v8580_v35 = vld [vmem:[%s15608_s6 + $0xda0] sm:$0xff] }
0x1002   : > { %6439 = vmatpush.msra.mxu0 %v8536_v50  ;;  %6397 = vmatpush.msra.mxu2 %v8527_v28  ;;  %v8581_v20 = vld [vmem:[%s15608_s6 + $0xda8] sm:$0xff]  ;;  %v8624_v28 = vld [vmem:[%s15606_s4 + $0x1cf8] sm:$0xff] }
0x1003   : > { %6243 = vmatmul.f32.vlgmr.msrb.gmra.mxu3 %v6185_v37  ;;  %6265 = vmatmul.f32.vlgmr.msrb.gmra.mxu0 %v6185_v37  ;;  %v6173_v9 = vmul.f32 %v9170_v0, %v6172_v33  ;;  %v8578_v37 = vld [vmem:[%s15608_s6 + $0xd90] sm:$0xff]  ;;  %v8579_v33 = vld [vmem:[%s15608_s6 + $0xd98] sm:$0xff]  ;;  %v8561_v36 = vld [vmem:[%s15608_s6 + $0xd08] sm:$0xff] }
0x1004   : > { %6440 = vmatpush.msra.mxu0 %v8534_v23 }
0x1005   : > { %v6174_v52 = vadd.f32 %v9170_v0, %v6173_v9  ;;  %v8577_v9 = vld [vmem:[%s15608_s6 + $0xd88] sm:$0xff] }
0x1006   : > { %6441 = vmatpush.msra.mxu0 %v8532_v63 }
0x1007   : > { %v6178_v57 = vsel %vm6177_vm7, %v9170_v0, %v6174_v52  ;;  %v8589_v0 = vld [vmem:[%s15608_s6 + $0xde8] sm:$0xff]  ;;  %v8574_v52 = vld [vmem:[%s15608_s6 + $0xd70] sm:$0xff] }
0x1008   : > { %v6183_v34 = vsel %vm6180_vm8, %v6182_v56, %v6178_v57  ;;  %6442 = vmatpush.msra.mxu0 %v8530_v46  ;;  %v8575_v56 = vld [vmem:[%s15608_s6 + $0xd78] sm:$0xff]  ;;  %v8572_v57 = vld [vmem:[%s15608_s6 + $0xd60] sm:$0xff]  ;;  %v8623_v46 = vld [vmem:[%s15606_s4 + $0x1cf0] sm:$0xff] }
0x1009   : > { %v6186_v40 = vmul.f32 %v9174_v42, %v6183_v34  ;;  %v8573_v42 = vld [vmem:[%s15608_s6 + $0xd68] sm:$0xff]  ;;  %v8570_v34 = vld [vmem:[%s15608_s6 + $0xd50] sm:$0xff]  ;;  %6665 = vmatpush.msrb.mxu3 %v8623_v46 }
0x100a   : > { %6443 = vmatpush.msra.mxu0 %v8528_v43  ;;  %v8621_v43 = vld [vmem:[%s15606_s4 + $0x1ce0] sm:$0xff] }
0x100b   : > { %6245 = vmatmul.f32.gmra.mxu3 %v6186_v40  ;;  %6268 = vmatmul.f32.gmra.mxu0 %v6186_v40  ;;  %v8571_v40 = vld [vmem:[%s15608_s6 + $0xd58] sm:$0xff] }
0x100c   : > { %6666 = vmatpush.msrb.mxu3 %v8621_v43 }
0x1080   : > { %v6266_v4 = vpop.f32.mrf.mxu0 }
0x1081   : > { %v6267_v10 = vadd.f32 %v6266_v4, %v6224_v53 }
0x1083   : > { %v6276_v6 = vadd.f32 %v6267_v10, %v14440_v29  ;;  %v8591_v29 = vld [vmem:[%s15608_s6 + $0xdf8] sm:$0xff] }
0x1084   : > { %6555 = vmatpush.msrb.mxu2 %v8591_v29  ;;  %v8653_v29 = vld [vmem:[%s15606_s4 + $0x1de0] sm:$0xff] }
0x1085   : > { %v6278_v17 = vmul.f32 0.999995, %v6276_v6  ;;  %v8619_v6 = vld [vmem:[%s15606_s4 + $0x1cd0] sm:$0xff] }
0x1086   : > { %v6244_v60 = vpop.f32.mrf.mxu3  ;;  %6556 = vmatpush.msrb.mxu2 %v8589_v0  ;;  %6667 = vmatpush.msrb.mxu3 %v8619_v6  ;;  %v8606_v6 = vld [vmem:[%s15606_s4 + $0x1c68] sm:$0xff] }
0x1087   : > { %6375 = vmatmul.f32.vlgmr.msrb.gmra.mxu1 %v6278_v17  ;;  %6421 = vmatmul.f32.vlgmr.msra.gmra.mxu3 %v6278_v17  ;;  %v6282_v54 = vrot.slane %v6278_v17, 2  ;;  %v8620_v17 = vld [vmem:[%s15606_s4 + $0x1cd8] sm:$0xff] }
0x1088   : > { %v6269_v1 = vpop.f32.mrf.mxu0  ;;  %6557 = vmatpush.msrb.mxu2 %v8587_v21  ;;  %v8616_v21 = vld [vmem:[%s15606_s4 + $0x1cb8] sm:$0xff] }
0x1089   : > { %v6270_v2 = vadd.f32 %v6269_v1, %v6224_v53  ;;  %v8622_v53 = vld [vmem:[%s15606_s4 + $0x1ce8] sm:$0xff]  ;;  %v8617_v1 = vld [vmem:[%s15606_s4 + $0x1cc0] sm:$0xff] }
0x108a   : > { %6558 = vmatpush.msrb.mxu2 %v8585_v13  ;;  %6668 = vmatpush.msrb.mxu3 %v8617_v1  ;;  %v8652_v13 = vld [vmem:[%s15606_s4 + $0x1dd8] sm:$0xff]  ;;  %v8603_v1 = vld [vmem:[%s15606_s4 + $0x1c50] sm:$0xff] }
0x108b   : > { %v6277_v62 = vadd.f32 %v6270_v2, %v14436_v18  ;;  %v8590_v18 = vld [vmem:[%s15608_s6 + $0xdf0] sm:$0xff] }
0x108c   : > { %6533 = vmatpush.msra.mxu1 %v8590_v18  ;;  %6559 = vmatpush.msrb.mxu2 %v8583_v61  ;;  %v6355_v18 = vperm.slane %v14849_v59, 0  ;;  %v8614_v61 = vld [vmem:[%s15606_s4 + $0x1ca8] sm:$0xff] }
0x108d   : > { %v6279_v38 = vmul.f32 0.999995, %v6277_v62  ;;  %v8618_v62 = vld [vmem:[%s15606_s4 + $0x1cc8] sm:$0xff] }
0x108e   : > { %6534 = vmatpush.msra.mxu1 %v8588_v12  ;;  %6560 = vmatpush.msrb.mxu2 %v8581_v20  ;;  %v14826_v41 = vpop.f32.mrf.mxu3  ;;  %v8654_v12 = vld [vmem:[%s15606_s4 + $0x1de8] sm:$0xff]  ;;  %v8649_v20 = vld [vmem:[%s15606_s4 + $0x1dc0] sm:$0xff] }
0x108f   : > { %v14768_v58 = vrot.slane %v6279_v38, 2  ;;  %6378 = vmatmul.f32.gmra.mxu1 %v6279_v38  ;;  %6424 = vmatmul.f32.gmra.mxu3 %v6279_v38  ;;  %v8655_v38 = vld [vmem:[%s15606_s4 + $0x1df0] sm:$0xff] }
0x1090   : > { %6535 = vmatpush.msra.mxu1 %v8586_v48  ;;  %6561 = vmatpush.msrb.mxu2 %v8579_v33  ;;  %v8615_v48 = vld [vmem:[%s15606_s4 + $0x1cb0] sm:$0xff] }
0x1091   : > { %v14772_v30 = vsel %vm1120_vm4, %v6282_v54, %v14768_v58  ;;  %v8656_v54 = vld [vmem:[%s15606_s4 + $0x1df8] sm:$0xff]  ;;  %6688 = vmatpush.msrb.mxu0 %v8655_v38  ;;  %6669 = vmatpush.msrb.mxu3 %v8615_v48  ;;  %v8646_v38 = vld [vmem:[%s15606_s4 + $0x1da8] sm:$0xff] }
0x1092   : > { %6398 = vmatmul.f32.vlgmr.msra.gmra.mxu2 %v14772_v30  ;;  %6444 = vmatmul.f32.vlgmr.msra.gmra.mxu0 %v14772_v30  ;;  %v8600_v48 = vld [vmem:[%s15606_s4 + $0x1c38] sm:$0xff] }
0x1093   : > { %6536 = vmatpush.msra.mxu1 %v8584_v8  ;;  %6562 = vmatpush.msrb.mxu2 %v8577_v9  ;;  %v8651_v8 = vld [vmem:[%s15606_s4 + $0x1dd0] sm:$0xff]  ;;  %v8612_v9 = vld [vmem:[%s15606_s4 + $0x1c98] sm:$0xff] }
0x1094   : > { %6689 = vmatpush.msrb.mxu0 %v8653_v29  ;;  %v8643_v29 = vld [vmem:[%s15606_s4 + $0x1d90] sm:$0xff] }
0x1095   : > { %6537 = vmatpush.msra.mxu1 %v8582_v26  ;;  %6563 = vmatpush.msrb.mxu2 %v8575_v56  ;;  %v8613_v26 = vld [vmem:[%s15606_s4 + $0x1ca0] sm:$0xff] }
0x1096   : > { %6690 = vmatpush.msrb.mxu0 %v8651_v8  ;;  %6670 = vmatpush.msrb.mxu3 %v8613_v26  ;;  %v8642_v8 = vld [vmem:[%s15606_s4 + $0x1d88] sm:$0xff] }
0x1097   : > { %6538 = vmatpush.msra.mxu1 %v8580_v35  ;;  %6564 = vmatpush.msrb.mxu2 %v8573_v42  ;;  %v8598_v26 = vld [vmem:[%s15606_s4 + $0x1c28] sm:$0xff] }
0x1098   : > { %6691 = vmatpush.msrb.mxu0 %v8649_v20  ;;  %v8595_v20 = vld [vmem:[%s15606_s4 + $0x1c10] sm:$0xff] }
0x1099   : > { %6539 = vmatpush.msra.mxu1 %v8578_v37  ;;  %6565 = vmatpush.msrb.mxu2 %v8571_v40  ;;  %v8650_v37 = vld [vmem:[%s15606_s4 + $0x1dc8] sm:$0xff] }
0x109a   : > { %6401 = vmatmul.f32.gmra.mxu2 %v14768_v58  ;;  %6447 = vmatmul.f32.gmra.mxu0 %v14768_v58  ;;  %v8610_v40 = vld [vmem:[%s15606_s4 + $0x1c88] sm:$0xff] }
0x109b   : > { %6540 = vmatpush.msra.mxu1 %v8576_v44  ;;  %6566 = vmatpush.msrb.mxu2 %v8569_v32  ;;  %v8611_v44 = vld [vmem:[%s15606_s4 + $0x1c90] sm:$0xff] }
0x109c   : > { %6671 = vmatpush.msrb.mxu3 %v8611_v44  ;;  %v8607_v32 = vld [vmem:[%s15606_s4 + $0x1c70] sm:$0xff]  ;;  %v8638_v44 = vld [vmem:[%s15606_s4 + $0x1d68] sm:$0xff] }
0x109d   : > { %6541 = vmatpush.msra.mxu1 %v8574_v52  ;;  %6567 = vmatpush.msrb.mxu2 %v8567_v55 }
0x109f   : > { %6542 = vmatpush.msra.mxu1 %v8572_v57  ;;  %6568 = vmatpush.msrb.mxu2 %v8565_v39 }
0x10a1   : > { %6543 = vmatpush.msra.mxu1 %v8570_v34  ;;  %6569 = vmatpush.msrb.mxu2 %v8563_v3  ;;  %v8609_v34 = vld [vmem:[%s15606_s4 + $0x1c80] sm:$0xff] }
0x10a2   : > { %6672 = vmatpush.msrb.mxu3 %v8609_v34  ;;  %v8634_v34 = vld [vmem:[%s15606_s4 + $0x1d48] sm:$0xff] }
0x10a3   : > { %6544 = vmatpush.msra.mxu1 %v8568_v25  ;;  %6570 = vmatpush.msrb.mxu2 %v8561_v36 }
0x10a4   : > { %6673 = vmatpush.msrb.mxu3 %v8607_v32  ;;  %v8630_v32 = vld [vmem:[%s15606_s4 + $0x1d28] sm:$0xff] }
0x10a5   : > { %6545 = vmatpush.msra.mxu1 %v8566_v47  ;;  %6734 = vmatpush.msra.mxu2 %v8656_v54  ;;  %v8601_v54 = vld [vmem:[%s15606_s4 + $0x1c40] sm:$0xff] }
0x10a7   : > { %6546 = vmatpush.msra.mxu1 %v8564_v51  ;;  %6735 = vmatpush.msra.mxu2 %v8654_v12  ;;  %v8644_v12 = vld [vmem:[%s15606_s4 + $0x1d98] sm:$0xff] }
0x10a9   : > { %6547 = vmatpush.msra.mxu1 %v8562_v14  ;;  %6736 = vmatpush.msra.mxu2 %v8652_v13  ;;  %v8597_v13 = vld [vmem:[%s15606_s4 + $0x1c20] sm:$0xff] }
0x10ab   : > { %6548 = vmatpush.msra.mxu1 %v8560_v5  ;;  %6737 = vmatpush.msra.mxu2 %v8650_v37  ;;  %v8596_v37 = vld [vmem:[%s15606_s4 + $0x1c18] sm:$0xff] }
0x10ad   : > { %6711 = vmatpush.msrb.mxu1 %v8624_v28 }
0x10af   : > { %6712 = vmatpush.msrb.mxu1 %v8622_v53 }
0x10b1   : > { %6713 = vmatpush.msrb.mxu1 %v8620_v17  ;;  %v8647_v17 = vld [vmem:[%s15606_s4 + $0x1db0] sm:$0xff] }
0x10b2   : > { %6692 = vmatpush.msrb.mxu0 %v8647_v17  ;;  %v8685_v17 = vld [vmem:[%s15608_s6 + $0xed8] sm:$0xff] }
0x10b3   : > { %6714 = vmatpush.msrb.mxu1 %v8618_v62  ;;  %v8645_v62 = vld [vmem:[%s15606_s4 + $0x1da0] sm:$0xff] }
0x10b4   : > { %6693 = vmatpush.msrb.mxu0 %v8645_v62  ;;  %v8681_v62 = vld [vmem:[%s15608_s6 + $0xeb8] sm:$0xff] }
0x10b5   : > { %6715 = vmatpush.msrb.mxu1 %v8616_v21  ;;  %v8641_v21 = vld [vmem:[%s15606_s4 + $0x1d80] sm:$0xff] }
0x10b6   : > { %6694 = vmatpush.msrb.mxu0 %v8643_v29  ;;  %v8677_v29 = vld [vmem:[%s15608_s6 + $0xe98] sm:$0xff] }
0x10b7   : > { %6716 = vmatpush.msrb.mxu1 %v8614_v61  ;;  %v8639_v61 = vld [vmem:[%s15606_s4 + $0x1d70] sm:$0xff] }
0x10b8   : > { %6695 = vmatpush.msrb.mxu0 %v8641_v21  ;;  %v8673_v21 = vld [vmem:[%s15608_s6 + $0xe78] sm:$0xff] }
0x10b9   : > { %6717 = vmatpush.msrb.mxu1 %v8612_v9  ;;  %v8593_v9 = vld [vmem:[%s15606_s4 + $0x1c00] sm:$0xff] }
0x10ba   : > { %6696 = vmatpush.msrb.mxu0 %v8639_v61  ;;  %v8668_v61 = vld [vmem:[%s15608_s6 + $0xe50] sm:$0xff] }
0x10bb   : > { %6718 = vmatpush.msrb.mxu1 %v8610_v40  ;;  %v8631_v40 = vld [vmem:[%s15606_s4 + $0x1d30] sm:$0xff] }
0x1104   : > { %v6376_v2 = vpop.f32.mrf.mxu1 }
0x1105   : > { %v6377_v35 = vadd.f32 %v6376_v2, %v6355_v18  ;;  %v8604_v2 = vld [vmem:[%s15606_s4 + $0x1c58] sm:$0xff] }
0x110a   : > { %v6422_v49 = vpop.f32.mrf.mxu3 }
0x110b   : > { %v6423_v45 = vadd.f32 %v6422_v49, %v6356_v31 }
0x110c   : > { %v6379_v59 = vpop.f32.mrf.mxu1 }
0x110d   : > { %v6380_v39 = vadd.f32 %v6379_v59, %v6355_v18  ;;  %v8602_v18 = vld [vmem:[%s15606_s4 + $0x1c48] sm:$0xff]  ;;  %v8632_v59 = vld [vmem:[%s15606_s4 + $0x1d38] sm:$0xff] }
0x110f   : > { %v6445_v22 = vpop.f32.mrf.mxu0 }
0x1110   : > { %v6446_v27 = vadd.f32 %v6445_v22, %v6423_v45 }
0x1112   : > { %v6453_v19 = vsub.f32 0.0, %v6446_v27  ;;  %v6425_v50 = vpop.f32.mrf.mxu3 }
0x1113   : > { %v6426_v23 = vadd.f32 %v6425_v50, %v6356_v31  ;;  %v8608_v31 = vld [vmem:[%s15606_s4 + $0x1c78] sm:$0xff] }
0x1114   : > { %v6455_v7 = vmul.f32 1.442695, %v6453_v19  ;;  %6719 = vmatpush.msrb.mxu1 %v8608_v31  ;;  %v8627_v31 = vld [vmem:[%s15606_s4 + $0x1d10] sm:$0xff] }
0x1115   : > { %v6399_v0 = vpop.f32.mrf.mxu2 }
0x1116   : > { %9175 = vpow2.f32 %v6455_v7  ;;  %v6400_v56 = vadd.f32 %v6399_v0, %v6377_v35  ;;  %6720 = vmatpush.msrb.mxu1 %v8606_v6  ;;  %v8599_v0 = vld [vmem:[%s15606_s4 + $0x1c30] sm:$0xff]  ;;  %v8640_v35 = vld [vmem:[%s15606_s4 + $0x1d78] sm:$0xff] }
0x1117   : > { %v6448_v24 = vpop.f32.mrf.mxu0  ;;  %v8684_v6 = vld [vmem:[%s15608_s6 + $0xed0] sm:$0xff] }
0x1118   : > { %v6449_v63 = vadd.f32 %v6448_v24, %v6426_v23  ;;  %6721 = vmatpush.msrb.mxu1 %v8604_v2  ;;  %v8680_v2 = vld [vmem:[%s15608_s6 + $0xeb0] sm:$0xff] }
0x111a   : > { %v6454_v16 = vsub.f32 0.0, %v6449_v63  ;;  %6722 = vmatpush.msrb.mxu1 %v8602_v18  ;;  %v8676_v18 = vld [vmem:[%s15608_s6 + $0xe90] sm:$0xff] }
0x111c   : > { %v9176_v4 = vpop.eup %9175  ;;  %v6457_v10 = vmul.f32 1.442695, %v6454_v16  ;;  %6723 = vmatpush.msrb.mxu1 %v8600_v48  ;;  %v8672_v48 = vld [vmem:[%s15608_s6 + $0xe70] sm:$0xff] }
0x111d   : > { %v14900_v60 = vadd.f32 1.0, %v9176_v4  ;;  %v6402_v51 = vpop.f32.mrf.mxu2 }
0x111e   : > { %9177 = vpow2.f32 %v6457_v10  ;;  %v6403_v3 = vadd.f32 %v6402_v51, %v6380_v39  ;;  %v8605_v10 = vld [vmem:[%s15606_s4 + $0x1c60] sm:$0xff]  ;;  %6724 = vmatpush.msrb.mxu1 %v8598_v26  ;;  %v6223_v51 = vperm.slane %v14763_v15, 0  ;;  %v15165_v26 = vld [vmem:[%s15607_s5 + $0x1c] sm:$0x3] }
0x111f   : > { %9179 = vrcp.f32 %v14900_v60  ;;  %v6472_v49 = vand.u32 2147483648, %v14900_v60  ;;  %v6470_v55 = vand.u32 2147483647, %v14900_v60  ;;  %vm6466_vm10 = vweird.f32 %v14900_v60  ;;  %6674 = vmatpush.msrb.mxu3 %v8605_v10  ;;  %v8687_v10 = vld [vmem:[%s15608_s6 + $0xee8] sm:$0xff] }
0x1120   : > { %6725 = vmatpush.msrb.mxu1 %v8596_v37  ;;  %v8666_v37 = vld [vmem:[%s15608_s6 + $0xe40] sm:$0xff] }
0x1121   : > { %v6473_v14 = vor.u32 1.1754944e-38, %v6472_v49  ;;  %vm6471_vm12 = vcmp.eq.f32.partialorder %v6470_v55, 8.507059e+37  ;;  %6675 = vmatpush.msrb.mxu3 %v8603_v1  ;;  %v8628_v49 = vld [vmem:[%s15606_s4 + $0x1d18] sm:$0xff]  ;;  %v8626_v55 = vld [vmem:[%s15606_s4 + $0x1d08] sm:$0xff] }
0x1122   : > { %v8683_v1 = vld [vmem:[%s15608_s6 + $0xec8] sm:$0xff] }
0x1123   : > { %6676 = vmatpush.msrb.mxu3 %v8601_v54  ;;  %v8679_v54 = vld [vmem:[%s15608_s6 + $0xea8] sm:$0xff] }
0x1124   : > { %v9178_v33 = vpop.eup %9177 }
0x1125   : > { %v9180_v52 = vpop.eup %9179  ;;  %v6460_v57 = vadd.f32 1.0, %v9178_v33  ;;  %6677 = vmatpush.msrb.mxu3 %v8599_v0  ;;  %v8637_v33 = vld [vmem:[%s15606_s4 + $0x1d60] sm:$0xff]  ;;  %v8675_v0 = vld [vmem:[%s15608_s6 + $0xe88] sm:$0xff] }
0x1126   : > { %v6462_v42 = vmul.f32 %v9180_v52, %v14900_v60  ;;  %vm6467_vm4 = vweird.f32 %v9180_v52  ;;  %v8648_v60 = vld [vmem:[%s15606_s4 + $0x1db8] sm:$0xff]  ;;  %6697 = vmatpush.msrb.mxu0 %v8637_v33  ;;  %v8667_v33 = vld [vmem:[%s15608_s6 + $0xe48] sm:$0xff] }
0x1127   : > { %9181 = vrcp.f32 %v6460_v57  ;;  %vm6468_vm11 = vmor %vm6466_vm10, %vm6467_vm4  ;;  %v6487_v23 = vand.u32 2147483648, %v6460_v57  ;;  %v6485_v63 = vand.u32 2147483647, %v6460_v57  ;;  %vm6481_vm14 = vweird.f32 %v6460_v57  ;;  %6738 = vmatpush.msra.mxu2 %v8648_v60  ;;  %6678 = vmatpush.msrb.mxu3 %v8597_v13  ;;  %v8682_v60 = vld [vmem:[%s15608_s6 + $0xec0] sm:$0xff]  ;;  %v8671_v13 = vld [vmem:[%s15608_s6 + $0xe68] sm:$0xff] }
0x1128   : > { %v6463_v25 = vsub.f32 1.0, %v6462_v42  ;;  %9183 = vtanh.f32 %v6400_v56  ;;  %v8635_v56 = vld [vmem:[%s15606_s4 + $0x1d50] sm:$0xff]  ;;  %v8633_v42 = vld [vmem:[%s15606_s4 + $0x1d40] sm:$0xff] }
0x1129   : > { %9185 = vtanh.f32 %v6403_v3  ;;  %v6488_v46 = vor.u32 1.1754944e-38, %v6487_v23  ;;  %vm6486_vm1 = vcmp.eq.f32.partialorder %v6485_v63, 8.507059e+37  ;;  %6739 = vmatpush.msra.mxu2 %v8646_v38  ;;  %6679 = vmatpush.msrb.mxu3 %v8595_v20  ;;  %v8678_v38 = vld [vmem:[%s15608_s6 + $0xea0] sm:$0xff] }
0x112a   : > { %v6464_v47 = vmul.f32 %v9180_v52, %v6463_v25  ;;  %6698 = vmatpush.msrb.mxu0 %v8635_v56  ;;  %v8629_v25 = vld [vmem:[%s15606_s4 + $0x1d20] sm:$0xff] }
0x112b   : > { %6740 = vmatpush.msra.mxu2 %v8644_v12  ;;  %6680 = vmatpush.msrb.mxu3 %v8593_v9  ;;  %v8674_v12 = vld [vmem:[%s15608_s6 + $0xe80] sm:$0xff]  ;;  %v8664_v9 = vld [vmem:[%s15608_s6 + $0xe30] sm:$0xff] }
0x112c   : > { %v6465_v45 = vadd.f32 %v9180_v52, %v6464_v47  ;;  %6699 = vmatpush.msrb.mxu0 %v8633_v42  ;;  %v8625_v47 = vld [vmem:[%s15606_s4 + $0x1d00] sm:$0xff]  ;;  %v8660_v42 = vld [vmem:[%s15608_s6 + $0xe10] sm:$0xff] }
0x112d   : > { %v9182_v22 = vpop.eup %9181  ;;  %6741 = vmatpush.msra.mxu2 %v8642_v8  ;;  %v8670_v8 = vld [vmem:[%s15608_s6 + $0xe60] sm:$0xff] }
0x112e   : > { %v6469_v27 = vsel %vm6468_vm11, %v9180_v52, %v6465_v45  ;;  %v6477_v5 = vmul.f32 %v9182_v22, %v6460_v57  ;;  %v9184_v36 = vpop.eup %9183  ;;  %vm6482_vm13 = vweird.f32 %v9182_v22  ;;  %v8594_v52 = vld [vmem:[%s15606_s4 + $0x1c08] sm:$0xff]  ;;  %v8636_v57 = vld [vmem:[%s15606_s4 + $0x1d58] sm:$0xff]  ;;  %6700 = vmatpush.msrb.mxu0 %v8631_v40  ;;  %v8662_v56 = vld [vmem:[%s15608_s6 + $0xe20] sm:$0xff] }
0x112f   : > { %v6474_v19 = vsel %vm6471_vm12, %v6473_v14, %v6469_v27  ;;  %vm6483_vm15 = vmor %vm6481_vm14, %vm6482_vm13  ;;  %v9186_v43 = vpop.eup %9185  ;;  %6742 = vmatpush.msra.mxu2 %v8640_v35  ;;  %6726 = vmatpush.msrb.mxu1 %v8594_v52  ;;  %v8592_v45 = vld [vmem:[%s15609_s7 + $0x1a] sm:$0x3]  ;;  %v6273_v14 = vrot.slane %v14433_v11, 1  ;;  %vm7201_vm14 = vcmask 122880  }
0x1130   : > { %v6491_v50 = vmul.f32 %v9184_v36, %v6474_v19  ;;  %v6478_v7 = vsub.f32 1.0, %v6477_v5  ;;  %6701 = vmatpush.msrb.mxu0 %v8629_v25  ;;  %v6530_v3 = vperm.slane %v8592_v45, 1  ;;  %v6529_v5 = vperm.slane %v8592_v45, 0  ;;  %v8669_v35 = vld [vmem:[%s15608_s6 + $0xe58] sm:$0xff]  ;;  %v8658_v25 = vld [vmem:[%s15608_s6 + $0xe00] sm:$0xff] }
0x1131   : > { %6743 = vmatpush.msra.mxu2 %v8638_v44  ;;  %v6662_v44 = vperm.slane %v15165_v26, 1  ;;  %v8665_v52 = vld [vmem:[%s15608_s6 + $0xe38] sm:$0xff] }
0x1132   : > { %6549 = vmatmul.f32.vlgmr.msra.gmra.mxu1 %v6491_v50  ;;  %6571 = vmatmul.f32.vlgmr.msrb.gmra.mxu2 %v6491_v50  ;;  %v6479_v24 = vmul.f32 %v9182_v22, %v6478_v7 }
0x1133   : > { %6744 = vmatpush.msra.mxu2 %v8636_v57  ;;  %6702 = vmatpush.msrb.mxu0 %v8627_v31  ;;  %v8663_v57 = vld [vmem:[%s15608_s6 + $0xe28] sm:$0xff] }
0x1134   : > { %v6480_v16 = vadd.f32 %v9182_v22, %v6479_v24 }
0x1135   : > { %6745 = vmatpush.msra.mxu2 %v8634_v34  ;;  %6703 = vmatpush.msrb.mxu0 %v8625_v47  ;;  %v8661_v34 = vld [vmem:[%s15608_s6 + $0xe18] sm:$0xff] }
0x1136   : > { %v6484_v28 = vsel %vm6483_vm15, %v9182_v22, %v6480_v16  ;;  %v6247_v22 = vadd.f32 %v14826_v41, %v6223_v51 }
0x1137   : > { %v6489_v53 = vsel %vm6486_vm1, %v6488_v46, %v6484_v28  ;;  %6746 = vmatpush.msra.mxu2 %v8632_v59 }
0x1138   : > { %v6492_v4 = vmul.f32 %v9186_v43, %v6489_v53  ;;  %v6275_v27 = vadd.f32 %v6273_v14, %v6247_v22  ;;  %v8721_v14 = vld [vmem:[%s15606_s4 + $0x1ef0] sm:$0xff] }
0x1139   : > { %6747 = vmatpush.msra.mxu2 %v8630_v32  ;;  %v8659_v32 = vld [vmem:[%s15608_s6 + $0xe08] sm:$0xff]  ;;  %6964 = vmatpush.msra.mxu1 %v8721_v14 }
0x113a   : > { %6551 = vmatmul.f32.gmra.mxu1 %v6492_v4  ;;  %6574 = vmatmul.f32.gmra.mxu2 %v6492_v4  ;;  %v6579_v7 = vrot.slane %v6275_v27, 2  ;;  %v8686_v4 = vld [vmem:[%s15608_s6 + $0xee0] sm:$0xff] }
0x113b   : > { %6748 = vmatpush.msra.mxu2 %v8628_v49  ;;  %v8719_v27 = vld [vmem:[%s15606_s4 + $0x1ee0] sm:$0xff] }
0x113c   : > { %6965 = vmatpush.msra.mxu1 %v8719_v27  ;;  %v8699_v27 = vld [vmem:[%s15606_s4 + $0x1e40] sm:$0xff] }
0x113d   : > { %6749 = vmatpush.msra.mxu2 %v8626_v55 }
0x11af   : > { %v6550_v39 = vpop.f32.mrf.mxu1 }
0x11b5   : > { %v6572_v36 = vpop.f32.mrf.mxu2 }
0x11b6   : > { %v6573_v19 = vadd.f32 %v6572_v36, %v6530_v3 }
0x11b7   : > { %v6552_v50 = vpop.f32.mrf.mxu1 }
0x11b8   : > { %v6582_v23 = vadd.f32 %v6573_v19, %v14772_v30  ;;  %v6553_v24 = vadd.f32 %v6552_v50, %v6529_v5  ;;  %v8689_v30 = vld [vmem:[%s15608_s6 + $0xef8] sm:$0xff]  ;;  %v8720_v5 = vld [vmem:[%s15606_s4 + $0x1ee8] sm:$0xff]  ;;  %v8717_v50 = vld [vmem:[%s15606_s4 + $0x1ed0] sm:$0xff] }
0x11b9   : > { %6861 = vmatpush.msra.mxu0 %v8689_v30  ;;  %6966 = vmatpush.msra.mxu1 %v8717_v50  ;;  %v8749_v30 = vld [vmem:[%s15606_s4 + $0x1fd0] sm:$0xff] }
0x11ba   : > { %v6584_v15 = vmul.f32 0.999995, %v6582_v23  ;;  %v15089_v63 = vadd.f32 %v6579_v7, %v6553_v24  ;;  %v8718_v7 = vld [vmem:[%s15606_s4 + $0x1ed8] sm:$0xff]  ;;  %v8753_v24 = vld [vmem:[%s15606_s4 + $0x1ff0] sm:$0xff] }
0x11bb   : > { %6862 = vmatpush.msra.mxu0 %v8687_v10  ;;  %6984 = vmatpush.msrb.mxu2 %v8753_v24  ;;  %v8713_v10 = vld [vmem:[%s15606_s4 + $0x1eb0] sm:$0xff] }
0x11bc   : > { %6681 = vmatmul.f32.vlgmr.msrb.gmra.mxu3 %v6584_v15  ;;  %6727 = vmatmul.f32.vlgmr.msrb.gmra.mxu1 %v6584_v15  ;;  %v6588_v28 = vrot.slane %v6584_v15, 4  ;;  %v8754_v15 = vld [vmem:[%s15606_s4 + $0x1ff8] sm:$0xff] }
0x11bd   : > { %v6575_v16 = vpop.f32.mrf.mxu2  ;;  %6863 = vmatpush.msra.mxu0 %v8685_v17  ;;  %v8750_v17 = vld [vmem:[%s15606_s4 + $0x1fd8] sm:$0xff] }
0x11be   : > { %v6576_v46 = vadd.f32 %v6575_v16, %v6530_v3  ;;  %v8722_v3 = vld [vmem:[%s15606_s4 + $0x1ef8] sm:$0xff] }
0x11bf   : > { %6864 = vmatpush.msra.mxu0 %v8683_v1  ;;  %v8748_v1 = vld [vmem:[%s15606_s4 + $0x1fc8] sm:$0xff] }
0x11c0   : > { %v6583_v41 = vadd.f32 %v6576_v46, %v14768_v58  ;;  %v8688_v58 = vld [vmem:[%s15608_s6 + $0xef0] sm:$0xff]  ;;  %v8715_v46 = vld [vmem:[%s15606_s4 + $0x1ec0] sm:$0xff] }
0x11c1   : > { %6839 = vmatpush.msra.mxu3 %v8688_v58  ;;  %6865 = vmatpush.msra.mxu0 %v8681_v62  ;;  %v8752_v58 = vld [vmem:[%s15606_s4 + $0x1fe8] sm:$0xff] }
0x11c2   : > { %v6585_v11 = vmul.f32 0.999995, %v6583_v41  ;;  %v8716_v41 = vld [vmem:[%s15606_s4 + $0x1ec8] sm:$0xff]  ;;  %6967 = vmatpush.msra.mxu1 %v8715_v46 }
0x11c3   : > { %6840 = vmatpush.msra.mxu3 %v8686_v4  ;;  %6866 = vmatpush.msra.mxu0 %v8679_v54  ;;  %v8712_v62 = vld [vmem:[%s15606_s4 + $0x1ea8] sm:$0xff]  ;;  %v8745_v54 = vld [vmem:[%s15606_s4 + $0x1fb0] sm:$0xff] }
0x11c4   : > { %v15092_v43 = vrot.slane %v6585_v11, 4  ;;  %6684 = vmatmul.f32.gmra.mxu3 %v6585_v11  ;;  %6730 = vmatmul.f32.gmra.mxu1 %v6585_v11  ;;  %v8751_v11 = vld [vmem:[%s15606_s4 + $0x1fe0] sm:$0xff] }
0x11c5   : > { %6841 = vmatpush.msra.mxu3 %v8684_v6  ;;  %6867 = vmatpush.msra.mxu0 %v8677_v29  ;;  %v8714_v6 = vld [vmem:[%s15606_s4 + $0x1eb8] sm:$0xff] }
0x11c6   : > { %v15096_v53 = vsel %vm1709_vm9, %v6588_v28, %v15092_v43  ;;  %v6661_v28 = vperm.slane %v15165_v26, 0  ;;  %6985 = vmatpush.msrb.mxu2 %v8751_v11  ;;  %6968 = vmatpush.msra.mxu1 %v8713_v10  ;;  %v8698_v10 = vld [vmem:[%s15606_s4 + $0x1e38] sm:$0xff] }
0x11c7   : > { %6704 = vmatmul.f32.vlgmr.msrb.gmra.mxu0 %v15096_v53  ;;  %6750 = vmatmul.f32.vlgmr.msra.gmra.mxu2 %v15096_v53 }
0x11c8   : > { %6842 = vmatpush.msra.mxu3 %v8682_v60  ;;  %6868 = vmatpush.msra.mxu0 %v8675_v0  ;;  %v8747_v60 = vld [vmem:[%s15606_s4 + $0x1fc0] sm:$0xff]  ;;  %v8710_v0 = vld [vmem:[%s15606_s4 + $0x1e98] sm:$0xff] }
0x11c9   : > { %6986 = vmatpush.msrb.mxu2 %v8749_v30  ;;  %v8697_v30 = vld [vmem:[%s15606_s4 + $0x1e30] sm:$0xff] }
0x11ca   : > { %6843 = vmatpush.msra.mxu3 %v8680_v2  ;;  %6869 = vmatpush.msra.mxu0 %v8673_v21  ;;  %v8711_v2 = vld [vmem:[%s15606_s4 + $0x1ea0] sm:$0xff] }
0x11cb   : > { %6987 = vmatpush.msrb.mxu2 %v8747_v60  ;;  %6969 = vmatpush.msra.mxu1 %v8711_v2  ;;  %v8735_v60 = vld [vmem:[%s15606_s4 + $0x1f60] sm:$0xff]  ;;  %v8736_v2 = vld [vmem:[%s15606_s4 + $0x1f68] sm:$0xff] }
0x11cc   : > { %6844 = vmatpush.msra.mxu3 %v8678_v38  ;;  %6870 = vmatpush.msra.mxu0 %v8671_v13  ;;  %v8743_v13 = vld [vmem:[%s15606_s4 + $0x1fa0] sm:$0xff] }
0x11cd   : > { %6988 = vmatpush.msrb.mxu2 %v8745_v54  ;;  %v8694_v54 = vld [vmem:[%s15606_s4 + $0x1e18] sm:$0xff] }
0x11ce   : > { %6845 = vmatpush.msra.mxu3 %v8676_v18  ;;  %6871 = vmatpush.msra.mxu0 %v8669_v35  ;;  %v8746_v18 = vld [vmem:[%s15606_s4 + $0x1fb8] sm:$0xff] }
0x11cf   : > { %6707 = vmatmul.f32.gmra.mxu0 %v15092_v43  ;;  %6753 = vmatmul.f32.gmra.mxu2 %v15092_v43 }
0x11d0   : > { %6846 = vmatpush.msra.mxu3 %v8674_v12  ;;  %6872 = vmatpush.msra.mxu0 %v8667_v33  ;;  %v8709_v12 = vld [vmem:[%s15606_s4 + $0x1e90] sm:$0xff] }
0x11d1   : > { %6970 = vmatpush.msra.mxu1 %v8709_v12  ;;  %v8741_v33 = vld [vmem:[%s15606_s4 + $0x1f90] sm:$0xff]  ;;  %6989 = vmatpush.msrb.mxu2 %v8743_v13  ;;  %v8731_v12 = vld [vmem:[%s15606_s4 + $0x1f40] sm:$0xff] }
0x11d2   : > { %6847 = vmatpush.msra.mxu3 %v8672_v48  ;;  %6873 = vmatpush.msra.mxu0 %v8665_v52  ;;  %v8727_v13 = vld [vmem:[%s15606_s4 + $0x1f20] sm:$0xff] }
0x11d3   : > { %6990 = vmatpush.msrb.mxu2 %v8741_v33  ;;  %v8724_v33 = vld [vmem:[%s15606_s4 + $0x1f08] sm:$0xff] }
0x11d4   : > { %6848 = vmatpush.msra.mxu3 %v8670_v8  ;;  %6874 = vmatpush.msra.mxu0 %v8663_v57  ;;  %v8706_v57 = vld [vmem:[%s15606_s4 + $0x1e78] sm:$0xff] }
0x11d6   : > { %6849 = vmatpush.msra.mxu3 %v8668_v61  ;;  %6875 = vmatpush.msra.mxu0 %v8661_v34  ;;  %v8744_v61 = vld [vmem:[%s15606_s4 + $0x1fa8] sm:$0xff]  ;;  %v8739_v34 = vld [vmem:[%s15606_s4 + $0x1f80] sm:$0xff] }
0x11d7   : > { %6991 = vmatpush.msrb.mxu2 %v8739_v34 }
0x11d8   : > { %6850 = vmatpush.msra.mxu3 %v8666_v37  ;;  %6876 = vmatpush.msra.mxu0 %v8659_v32  ;;  %v8708_v37 = vld [vmem:[%s15606_s4 + $0x1e88] sm:$0xff] }
0x11da   : > { %6851 = vmatpush.msra.mxu3 %v8664_v9  ;;  %7024 = vmatpush.msrb.mxu0 %v8754_v15 }
0x11dc   : > { %6852 = vmatpush.msra.mxu3 %v8662_v56  ;;  %7025 = vmatpush.msrb.mxu0 %v8752_v58  ;;  %v8705_v56 = vld [vmem:[%s15606_s4 + $0x1e70] sm:$0xff] }
0x11de   : > { %6853 = vmatpush.msra.mxu3 %v8660_v42  ;;  %7026 = vmatpush.msrb.mxu0 %v8750_v17  ;;  %v8695_v17 = vld [vmem:[%s15606_s4 + $0x1e20] sm:$0xff] }
0x11e0   : > { %6854 = vmatpush.msra.mxu3 %v8658_v25  ;;  %7027 = vmatpush.msrb.mxu0 %v8748_v1  ;;  %v8696_v1 = vld [vmem:[%s15606_s4 + $0x1e28] sm:$0xff] }
0x11e2   : > { %7004 = vmatpush.msrb.mxu3 %v8722_v3  ;;  %7028 = vmatpush.msrb.mxu0 %v8746_v18  ;;  %v8734_v18 = vld [vmem:[%s15606_s4 + $0x1f58] sm:$0xff] }
0x11e4   : > { %7005 = vmatpush.msrb.mxu3 %v8720_v5  ;;  %7029 = vmatpush.msrb.mxu0 %v8744_v61  ;;  %v8700_v5 = vld [vmem:[%s15606_s4 + $0x1e48] sm:$0xff] }
0x11e5   : > { %v8728_v61 = vld [vmem:[%s15606_s4 + $0x1f28] sm:$0xff] }
0x11e6   : > { %7006 = vmatpush.msrb.mxu3 %v8718_v7 }
0x11e8   : > { %7007 = vmatpush.msrb.mxu3 %v8716_v41 }
0x11ea   : > { %7008 = vmatpush.msrb.mxu3 %v8714_v6  ;;  %v8738_v6 = vld [vmem:[%s15606_s4 + $0x1f78] sm:$0xff] }
0x11ec   : > { %7009 = vmatpush.msrb.mxu3 %v8712_v62  ;;  %v8693_v62 = vld [vmem:[%s15606_s4 + $0x1e10] sm:$0xff] }
0x11ee   : > { %7010 = vmatpush.msrb.mxu3 %v8710_v0  ;;  %v8692_v0 = vld [vmem:[%s15606_s4 + $0x1e08] sm:$0xff] }
0x11f0   : > { %7011 = vmatpush.msrb.mxu3 %v8708_v37  ;;  %v8723_v37 = vld [vmem:[%s15606_s4 + $0x1f00] sm:$0xff] }
0x11f2   : > { %7012 = vmatpush.msrb.mxu3 %v8706_v57 }
0x1239   : > { %v6728_v20 = vpop.f32.mrf.mxu1 }
0x123a   : > { %v6729_v40 = vadd.f32 %v6728_v20, %v6662_v44  ;;  %v8707_v20 = vld [vmem:[%s15606_s4 + $0x1e80] sm:$0xff] }
0x123b   : > { %6971 = vmatpush.msra.mxu1 %v8707_v20  ;;  %v8726_v20 = vld [vmem:[%s15606_s4 + $0x1f18] sm:$0xff] }
0x123d   : > { %6972 = vmatpush.msra.mxu1 %v8705_v56 }
0x123f   : > { %v6682_v16 = vpop.f32.mrf.mxu3 }
0x1240   : > { %v6683_v38 = vadd.f32 %v6682_v16, %v6661_v28 }
0x1241   : > { %v6731_v47 = vpop.f32.mrf.mxu1 }
0x1242   : > { %v6732_v51 = vadd.f32 %v6731_v47, %v6662_v44  ;;  %v8742_v44 = vld [vmem:[%s15606_s4 + $0x1f98] sm:$0xff] }
0x1243   : > { %7030 = vmatpush.msrb.mxu0 %v8742_v44  ;;  %v15419_v44 = vld [vmem:[%s15609_s7 + $0x1c] sm:$0x3] }
0x1244   : > { %v6705_v4 = vpop.f32.mrf.mxu0 }
0x1245   : > { %v6706_v21 = vadd.f32 %v6705_v4, %v6683_v38  ;;  %v8737_v4 = vld [vmem:[%s15606_s4 + $0x1f70] sm:$0xff] }
0x1246   : > { %6992 = vmatpush.msrb.mxu2 %v8737_v4  ;;  %v8733_v38 = vld [vmem:[%s15606_s4 + $0x1f50] sm:$0xff]  ;;  %v7120_v4 = vld [vmem:[%s15610_s8 + $0x58] sm:$0xff] }
0x1247   : > { %v6685_v9 = vpop.f32.mrf.mxu3 }
0x1248   : > { %v6686_v47 = vadd.f32 %v6685_v9, %v6661_v28  ;;  %6993 = vmatpush.msrb.mxu2 %v8735_v60  ;;  %v6836_v9 = vperm.slane %v15419_v44, 1 }
0x124a   : > { %v6751_v59 = vpop.f32.mrf.mxu2  ;;  %6994 = vmatpush.msrb.mxu2 %v8733_v38  ;;  %v7116_v38 = vld [vmem:[%s15610_s8 + $0x38] sm:$0xff] }
0x124b   : > { %v6752_v31 = vadd.f32 %v6751_v59, %v6729_v40  ;;  %v8740_v40 = vld [vmem:[%s15606_s4 + $0x1f88] sm:$0xff] }
0x124c   : > { %v6708_v25 = vpop.f32.mrf.mxu0  ;;  %7031 = vmatpush.msrb.mxu0 %v8740_v40  ;;  %6995 = vmatpush.msrb.mxu2 %v8731_v12  ;;  %v7114_v12 = vld [vmem:[%s15610_s8 + $0x28] sm:$0xff] }
0x124d   : > { %v6759_v49 = vsub.f32 0.0, %v6752_v31  ;;  %v8703_v31 = vld [vmem:[%s15606_s4 + $0x1e60] sm:$0xff] }
0x124e   : > { %6973 = vmatpush.msra.mxu1 %v8703_v31  ;;  %7032 = vmatpush.msrb.mxu0 %v8738_v6  ;;  %v8771_v31 = vld [vmem:[%s15608_s6 + $0xff0] sm:$0xff] }
0x124f   : > { %v6761_v55 = vmul.f32 1.442695, %v6759_v49  ;;  %v8704_v49 = vld [vmem:[%s15606_s4 + $0x1e68] sm:$0xff] }
0x1250   : > { %7013 = vmatpush.msrb.mxu3 %v8704_v49  ;;  %7033 = vmatpush.msrb.mxu0 %v8736_v2  ;;  %v8769_v49 = vld [vmem:[%s15608_s6 + $0xfd0] sm:$0xff] }
0x1251   : > { %9187 = vpow2.f32 %v6761_v55 }
0x1252   : > { %v6754_v39 = vpop.f32.mrf.mxu2  ;;  %7034 = vmatpush.msrb.mxu0 %v8734_v18  ;;  %v7115_v18 = vld [vmem:[%s15610_s8 + $0x30] sm:$0xff] }
0x1253   : > { %v6755_v45 = vadd.f32 %v6754_v39, %v6732_v51  ;;  %v8701_v51 = vld [vmem:[%s15606_s4 + $0x1e50] sm:$0xff]  ;;  %v8702_v39 = vld [vmem:[%s15606_s4 + $0x1e58] sm:$0xff] }
0x1254   : > { %6974 = vmatpush.msra.mxu1 %v8701_v51  ;;  %7014 = vmatpush.msrb.mxu3 %v8702_v39  ;;  %v8765_v51 = vld [vmem:[%s15608_s6 + $0xf90] sm:$0xff]  ;;  %v8764_v39 = vld [vmem:[%s15608_s6 + $0xf80] sm:$0xff] }
0x1255   : > { %v6760_v22 = vsub.f32 0.0, %v6755_v45 }
0x1256   : > { %6975 = vmatpush.msra.mxu1 %v8699_v27  ;;  %7015 = vmatpush.msrb.mxu3 %v8700_v5  ;;  %v8760_v27 = vld [vmem:[%s15608_s6 + $0xf40] sm:$0xff] }
0x1257   : > { %v9188_v36 = vpop.eup %9187  ;;  %v6763_v19 = vmul.f32 1.442695, %v6760_v22  ;;  %v6709_v22 = vadd.f32 %v6708_v25, %v6686_v47  ;;  %v8767_v47 = vld [vmem:[%s15608_s6 + $0xfb0] sm:$0xff] }
0x1258   : > { %v15222_v23 = vadd.f32 1.0, %v9188_v36  ;;  %6976 = vmatpush.msra.mxu1 %v8697_v30  ;;  %7016 = vmatpush.msrb.mxu3 %v8698_v10  ;;  %v7121_v30 = vld [vmem:[%s15610_s8 + $0x60] sm:$0xff]  ;;  %v7119_v10 = vld [vmem:[%s15610_s8 + $0x50] sm:$0xff] }
0x1259   : > { %9189 = vpow2.f32 %v6763_v19 }
0x125a   : > { %9191 = vrcp.f32 %v15222_v23  ;;  %v6778_v42 = vand.u32 2147483648, %v15222_v23  ;;  %v6776_v32 = vand.u32 2147483647, %v15222_v23  ;;  %vm6772_vm0 = vweird.f32 %v15222_v23  ;;  %6977 = vmatpush.msra.mxu1 %v8695_v17  ;;  %7017 = vmatpush.msrb.mxu3 %v8696_v1  ;;  %v7118_v17 = vld [vmem:[%s15610_s8 + $0x48] sm:$0xff]  ;;  %v7117_v1 = vld [vmem:[%s15610_s8 + $0x40] sm:$0xff] }
0x125c   : > { %v6779_v26 = vor.u32 1.1754944e-38, %v6778_v42  ;;  %vm6777_vm3 = vcmp.eq.f32.partialorder %v6776_v32, 8.507059e+37  ;;  %6978 = vmatpush.msra.mxu1 %v8693_v62  ;;  %7018 = vmatpush.msrb.mxu3 %v8694_v54 }
0x125e   : > { %7019 = vmatpush.msrb.mxu3 %v8692_v0 }
0x125f   : > { %v9190_v29 = vpop.eup %9189 }
0x1260   : > { %v9192_v48 = vpop.eup %9191  ;;  %v15282_v8 = vadd.f32 1.0, %v9190_v29  ;;  %v8691_v29 = vld [vmem:[%s15606_s4 + $0x1e00] sm:$0xff] }
0x1261   : > { %v6768_v35 = vmul.f32 %v9192_v48, %v15222_v23  ;;  %vm6773_vm9 = vweird.f32 %v9192_v48  ;;  %6979 = vmatpush.msra.mxu1 %v8691_v29 }
0x1262   : > { %9193 = vrcp.f32 %v15282_v8  ;;  %vm6774_vm2 = vmor %vm6772_vm0, %vm6773_vm9  ;;  %v6793_v23 = vand.u32 2147483648, %v15282_v8  ;;  %v6791_v15 = vand.u32 2147483647, %v15282_v8  ;;  %vm6787_vm6 = vweird.f32 %v15282_v8 }
0x1263   : > { %v6769_v52 = vsub.f32 1.0, %v6768_v35  ;;  %9195 = vtanh.f32 %v6706_v21  ;;  %v8729_v21 = vld [vmem:[%s15606_s4 + $0x1f30] sm:$0xff]  ;;  %7087 = vmatpush.msrb.mxu1 %v8771_v31  ;;  %v7160_v31 = vld [vmem:[%s15612_s10 + $0x68] sm:$0xff] }
0x1264   : > { %9197 = vtanh.f32 %v6709_v22  ;;  %v6794_v46 = vor.u32 1.1754944e-38, %v6793_v23  ;;  %vm6792_vm8 = vcmp.eq.f32.partialorder %v6791_v15, 8.507059e+37  ;;  %6996 = vmatpush.msrb.mxu2 %v8729_v21  ;;  %v8725_v35 = vld [vmem:[%s15606_s4 + $0x1f10] sm:$0xff]  ;;  %v8762_v22 = vld [vmem:[%s15608_s6 + $0xf60] sm:$0xff] }
0x1265   : > { %v6770_v59 = vmul.f32 %v9192_v48, %v6769_v52 }
0x1266   : > { %6997 = vmatpush.msrb.mxu2 %v8727_v13 }
0x1267   : > { %v6771_v55 = vadd.f32 %v9192_v48, %v6770_v59 }
0x1268   : > { %v9194_v45 = vpop.eup %9193  ;;  %6998 = vmatpush.msrb.mxu2 %v8725_v35 }
0x1269   : > { %v6775_v14 = vsel %vm6774_vm2, %v9192_v48, %v6771_v55  ;;  %v6783_v3 = vmul.f32 %v9194_v45, %v15282_v8  ;;  %v9196_v36 = vpop.eup %9195  ;;  %vm6788_vm5 = vweird.f32 %v9194_v45  ;;  %v8732_v48 = vld [vmem:[%s15606_s4 + $0x1f48] sm:$0xff]  ;;  %v8730_v8 = vld [vmem:[%s15606_s4 + $0x1f38] sm:$0xff]  ;;  %v8766_v55 = vld [vmem:[%s15608_s6 + $0xfa0] sm:$0xff] }
0x126a   : > { %v6780_v19 = vsel %vm6777_vm3, %v6779_v26, %v6775_v14  ;;  %vm6789_vm7 = vmor %vm6787_vm6, %vm6788_vm5  ;;  %v9198_v11 = vpop.eup %9197  ;;  %7035 = vmatpush.msrb.mxu0 %v8732_v48  ;;  %6999 = vmatpush.msrb.mxu2 %v8723_v37  ;;  %v8761_v14 = vld [vmem:[%s15608_s6 + $0xf50] sm:$0xff] }
0x126b   : > { %v6797_v50 = vmul.f32 %v9196_v36, %v6780_v19  ;;  %v6784_v7 = vsub.f32 1.0, %v6783_v3  ;;  %v8755_v3 = vld [vmem:[%s15607_s5 + $0x1e] sm:$0x3]  ;;  %v8759_v36 = vld [vmem:[%s15608_s6 + $0xf30] sm:$0xff] }
0x126c   : > { %7036 = vmatpush.msrb.mxu0 %v8730_v8  ;;  %v6961_v5 = vperm.slane %v8755_v3, 1  ;;  %v6960_v2 = vperm.slane %v8755_v3, 0  ;;  %v7113_v8 = vld [vmem:[%s15610_s8 + $0x20] sm:$0xff] }
0x126d   : > { %6855 = vmatmul.f32.vlgmr.msra.gmra.mxu3 %v6797_v50  ;;  %6877 = vmatmul.f32.vlgmr.msra.gmra.mxu0 %v6797_v50  ;;  %v6785_v24 = vmul.f32 %v9194_v45, %v6784_v7  ;;  %v8758_v50 = vld [vmem:[%s15608_s6 + $0xf20] sm:$0xff] }
0x126e   : > { %7037 = vmatpush.msrb.mxu0 %v8728_v61  ;;  %v7151_v3 = vld [vmem:[%s15612_s10 + $0x20] sm:$0xff] }
0x126f   : > { %v6786_v16 = vadd.f32 %v9194_v45, %v6785_v24  ;;  %v8757_v24 = vld [vmem:[%s15608_s6 + $0xf10] sm:$0xff] }
0x1270   : > { %7038 = vmatpush.msrb.mxu0 %v8726_v20 }
0x1271   : > { %v6790_v41 = vsel %vm6789_vm7, %v9194_v45, %v6786_v16  ;;  %v8763_v45 = vld [vmem:[%s15608_s6 + $0xf70] sm:$0xff]  ;;  %v8756_v16 = vld [vmem:[%s15608_s6 + $0xf00] sm:$0xff] }
0x1272   : > { %v6795_v28 = vsel %vm6792_vm8, %v6794_v46, %v6790_v41  ;;  %7039 = vmatpush.msrb.mxu0 %v8724_v33  ;;  %v7124_v41 = vld [vmem:[%s15610_s8 + $0x78] sm:$0xff] }
0x1273   : > { %v6798_v58 = vmul.f32 %v9198_v11, %v6795_v28  ;;  %v7123_v11 = vld [vmem:[%s15610_s8 + $0x70] sm:$0xff]  ;;  %7126 = vmatpush.msra.mxu2 %v7124_v41 }
0x1275   : > { %6857 = vmatmul.f32.gmra.mxu3 %v6798_v58  ;;  %6880 = vmatmul.f32.gmra.mxu0 %v6798_v58  ;;  %v7122_v58 = vld [vmem:[%s15610_s8 + $0x68] sm:$0xff] }
0x1276   : > { %7127 = vmatpush.msra.mxu2 %v7123_v11 }
0x1278   : > { %7128 = vmatpush.msra.mxu2 %v7122_v58 }
0x127a   : > { %7129 = vmatpush.msra.mxu2 %v7121_v30 }
0x127c   : > { %7130 = vmatpush.msra.mxu2 %v7120_v4 }
0x127e   : > { %7131 = vmatpush.msra.mxu2 %v7119_v10 }
0x1280   : > { %7132 = vmatpush.msra.mxu2 %v7118_v17 }
0x1282   : > { %7133 = vmatpush.msra.mxu2 %v7117_v1 }
0x1284   : > { %7134 = vmatpush.msra.mxu2 %v7116_v38 }
0x1286   : > { %7135 = vmatpush.msra.mxu2 %v7115_v18  ;;  %v7184_v18 = vld [vmem:[%s453_s22] sm:$0x1] }
0x1288   : > { %7136 = vmatpush.msra.mxu2 %v7114_v12 }
0x128a   : > { %7137 = vmatpush.msra.mxu2 %v7113_v8 }
0x12ea   : > { %v6878_v52 = vpop.f32.mrf.mxu0 }
0x12eb   : > { %v6879_v56 = vadd.f32 %v6878_v52, %v6836_v9 }
0x12ed   : > { %v6888_v57 = vadd.f32 %v6879_v56, %v15096_v53  ;;  %v8770_v53 = vld [vmem:[%s15608_s6 + $0xfe0] sm:$0xff] }
0x12ee   : > { %7088 = vmatpush.msrb.mxu1 %v8770_v53  ;;  %v7159_v53 = vld [vmem:[%s15612_s10 + $0x60] sm:$0xff] }
0x12ef   : > { %v6890_v42 = vmul.f32 0.999995, %v6888_v57 }
0x12f0   : > { %v6856_v34 = vpop.f32.mrf.mxu3  ;;  %7089 = vmatpush.msrb.mxu1 %v8769_v49  ;;  %v7158_v49 = vld [vmem:[%s15612_s10 + $0x58] sm:$0xff] }
0x12f1   : > { %6980 = vmatmul.f32.vlgmr.msra.gmra.mxu1 %v6890_v42  ;;  %7020 = vmatmul.f32.vlgmr.msrb.gmra.mxu3 %v6890_v42  ;;  %v7112_v42 = vld [vmem:[%s15610_s8 + $0x18] sm:$0xff]  ;;  %v7111_v34 = vld [vmem:[%s15610_s8 + $0x10] sm:$0xff] }
0x12f2   : > { %v6881_v40 = vpop.f32.mrf.mxu0  ;;  %7138 = vmatpush.msra.mxu2 %v7112_v42 }
0x12f3   : > { %v6882_v59 = vadd.f32 %v6881_v40, %v6836_v9  ;;  %v7110_v40 = vld [vmem:[%s15610_s8 + $0x8] sm:$0xff] }
0x12f4   : > { %7139 = vmatpush.msra.mxu2 %v7111_v34 }
0x12f5   : > { %v6889_v25 = vadd.f32 %v6882_v59, %v15092_v43  ;;  %v8768_v43 = vld [vmem:[%s15608_s6 + $0xfc0] sm:$0xff] }
0x12f6   : > { %7090 = vmatpush.msrb.mxu1 %v8768_v43  ;;  %7140 = vmatpush.msra.mxu2 %v7110_v40  ;;  %v7109_v59 = vld [vmem:[%s15610_s8] sm:$0xff]  ;;  %v7157_v43 = vld [vmem:[%s15612_s10 + $0x50] sm:$0xff] }
0x12f7   : > { %v6891_v32 = vmul.f32 0.999995, %v6889_v25  ;;  %v7162_v25 = vld [vmem:[%s15612_s10 + $0x78] sm:$0xff] }
0x12f8   : > { %7091 = vmatpush.msrb.mxu1 %v8767_v47  ;;  %v15451_v26 = vpop.f32.mrf.mxu3  ;;  %7141 = vmatpush.msra.mxu2 %v7109_v59  ;;  %v7156_v47 = vld [vmem:[%s15612_s10 + $0x48] sm:$0xff] }
0x12f9   : > { %7000 = vmatmul.f32.vlgmr.msrb.gmra.mxu2 %v6891_v32  ;;  %7040 = vmatmul.f32.vlgmr.msrb.gmra.mxu0 %v6891_v32  ;;  %v7161_v32 = vld [vmem:[%s15612_s10 + $0x70] sm:$0xff] }
0x12fa   : > { %7092 = vmatpush.msrb.mxu1 %v8766_v55  ;;  %7164 = vmatpush.msra.mxu3 %v7162_v25  ;;  %v7155_v55 = vld [vmem:[%s15612_s10 + $0x40] sm:$0xff] }
0x12fc   : > { %7093 = vmatpush.msrb.mxu1 %v8765_v51  ;;  %7165 = vmatpush.msra.mxu3 %v7161_v32  ;;  %v7154_v51 = vld [vmem:[%s15612_s10 + $0x38] sm:$0xff] }
0x12fe   : > { %7094 = vmatpush.msrb.mxu1 %v8764_v39  ;;  %7166 = vmatpush.msra.mxu3 %v7160_v31  ;;  %v7153_v39 = vld [vmem:[%s15612_s10 + $0x30] sm:$0xff] }
0x1300   : > { %7095 = vmatpush.msrb.mxu1 %v8763_v45  ;;  %7167 = vmatpush.msra.mxu3 %v7159_v53  ;;  %v6835_v45 = vperm.slane %v15419_v44, 0  ;;  %v7150_v44 = vld [vmem:[%s15612_s10 + $0x18] sm:$0xff] }
0x1302   : > { %7096 = vmatpush.msrb.mxu1 %v8762_v22  ;;  %7168 = vmatpush.msra.mxu3 %v7158_v49  ;;  %v7152_v22 = vld [vmem:[%s15612_s10 + $0x28] sm:$0xff] }
0x1304   : > { %7097 = vmatpush.msrb.mxu1 %v8761_v14  ;;  %7169 = vmatpush.msra.mxu3 %v7157_v43  ;;  %v8772_v14 = vld [vmem:[%s15609_s7 + $0x1e] sm:$0x3] }
0x1306   : > { %7098 = vmatpush.msrb.mxu1 %v8760_v27  ;;  %7170 = vmatpush.msra.mxu3 %v7156_v47  ;;  %v6859_v27 = vadd.f32 %v15451_v26, %v6835_v45  ;;  %v7148_v26 = vld [vmem:[%s15612_s10 + $0x8] sm:$0xff] }
0x1308   : > { %7099 = vmatpush.msrb.mxu1 %v8759_v36  ;;  %7171 = vmatpush.msra.mxu3 %v7155_v55  ;;  %v6885_v36 = vrot.slane %v15089_v63, 4  ;;  %v7147_v63 = vld [vmem:[%s15612_s10] sm:$0xff] }
0x130a   : > { %7100 = vmatpush.msrb.mxu1 %v8758_v50  ;;  %7172 = vmatpush.msra.mxu3 %v7154_v51  ;;  %v6887_v50 = vadd.f32 %v6885_v36, %v6859_v27 }
0x130c   : > { %7101 = vmatpush.msrb.mxu1 %v8757_v24  ;;  %7173 = vmatpush.msra.mxu3 %v7153_v39 }
0x130e   : > { %7102 = vmatpush.msrb.mxu1 %v8756_v16  ;;  %7174 = vmatpush.msra.mxu3 %v7152_v22  ;;  %v7125_v16 = vld [vmem:[%s15611_s9] sm:$0x1] }
0x1310   : > { %7175 = vmatpush.msra.mxu3 %v7151_v3 }
0x1312   : > { %7176 = vmatpush.msra.mxu3 %v7150_v44 }
0x136e   : > { %v6981_v62 = vpop.f32.mrf.mxu1 }
0x136f   : > { %v6982_v29 = vadd.f32 %v6981_v62, %v6960_v2 }
0x1374   : > { %v7021_v19 = vpop.f32.mrf.mxu3 }
0x1375   : > { %v7022_v7 = vadd.f32 %v7021_v19, %v6961_v5  ;;  %v7085_v5 = vperm.slane %v8772_v14, 0 }
0x1376   : > { %v7041_v23 = vpop.f32.mrf.mxu0 }
0x1377   : > { %v7042_v15 = vadd.f32 %v7041_v23, %v7022_v7 }
0x1379   : > { %v7045_v46 = vsub.f32 0.0, %v7042_v15  ;;  %v7149_v15 = vld [vmem:[%s15612_s10 + $0x10] sm:$0xff] }
0x137a   : > { %7177 = vmatpush.msra.mxu3 %v7149_v15 }
0x137b   : > { %v7046_v28 = vmul.f32 1.442695, %v7045_v46 }
0x137c   : > { %v7001_v54 = vpop.f32.mrf.mxu2  ;;  %7178 = vmatpush.msra.mxu3 %v7148_v26 }
0x137d   : > { %9199 = vpow2.f32 %v7046_v28  ;;  %v7002_v48 = vadd.f32 %v7001_v54, %v6982_v29  ;;  %v7163_v28 = vld [vmem:[%s15613_s11] sm:$0x1] }
0x137e   : > { %7179 = vmatpush.msra.mxu3 %v7147_v63 }
0x1383   : > { %v9200_v6 = vpop.eup %9199 }
0x1384   : > { %v7048_v60 = vadd.f32 1.0, %v9200_v6 }
0x1386   : > { %9201 = vrcp.f32 %v7048_v60  ;;  %v7060_v61 = vand.u32 2147483648, %v7048_v60  ;;  %v7058_v20 = vand.u32 2147483647, %v7048_v60  ;;  %vm7054_vm10 = vweird.f32 %v7048_v60 }
0x1387   : > { %9203 = vtanh.f32 %v7002_v48 }
0x1388   : > { %v7061_v33 = vor.u32 1.1754944e-38, %v7060_v61  ;;  %vm7059_vm12 = vcmp.eq.f32.partialorder %v7058_v20, 8.507059e+37 }
0x138c   : > { %v9202_v0 = vpop.eup %9201 }
0x138d   : > { %v7050_v21 = vmul.f32 %v9202_v0, %v7048_v60  ;;  %vm7055_vm4 = vweird.f32 %v9202_v0  ;;  %v9204_v52 = vpop.eup %9203 }
0x138e   : > { %vm7056_vm11 = vmor %vm7054_vm10, %vm7055_vm4 }
0x138f   : > { %v7051_v13 = vsub.f32 1.0, %v7050_v21 }
0x1391   : > { %v7052_v35 = vmul.f32 %v9202_v0, %v7051_v13 }
0x1393   : > { %v7053_v37 = vadd.f32 %v9202_v0, %v7052_v35 }
0x1395   : > { %v7057_v9 = vsel %vm7056_vm11, %v9202_v0, %v7053_v37 }
0x1396   : > { %v7062_v56 = vsel %vm7059_vm12, %v7061_v33, %v7057_v9 }
0x1397   : > { %v7064_v57 = vmul.f32 %v9204_v52, %v7062_v56 }
0x1399   : > { %7103 = vmatmul.f32.vlgmr.msrb.gmra.mxu1 %v7064_v57 }
0x1416   : > { %v7104_v19 = vpop.f32.mrf.mxu1 }
0x1417   : > { %v7105_v7 = vadd.f32 %v7104_v19, %v7085_v5 }
0x1419   : > { %v7107_v23 = vadd.f32 %v7105_v7, %v6887_v50 }
0x141b   : > { %v7108_v24 = vmax.f32 %v7107_v23, 0.0 }
0x141d   : > { %7142 = vmatmul.f32.vlgmr.msra.gmra.mxu2 %v7108_v24 }
0x14a0   : > { %v7143_v46 = vpop.f32.mrf.mxu2 }
0x14a1   : > { %v7144_v41 = vadd.f32 %v7143_v46, %v7125_v16 }
0x14a3   : > { %v7146_v11 = vmax.f32 %v7144_v41, 0.0 }
0x14a5   : > { %7180 = vmatmul.f32.vlgmr.msra.gmra.mxu3 %v7146_v11 }
0x1528   : > { %v7181_v58 = vpop.f32.mrf.mxu3 }
0x1529   : > { %v7182_v30 = vadd.f32 %v7181_v58, %v7163_v28 }
0x152b   : > { %v7185_v4 = vand.u32 2147483647, %v7182_v30  ;;  %v7203_v10 = vsub.f32 0.0, %v7182_v30  ;;  %v7197_v0 = vmax.f32 %v7182_v30, 0.0  ;;  %v7198_v48 = vmul.f32 %v7184_v18, %v7182_v30 }
0x152d   : > { %v7186_v6 = vsub.f32 0.0, %v7185_v4  ;;  %v7204_v17 = vmul.f32 1.442695, %v7203_v10  ;;  %v7199_v20 = vsub.f32 %v7197_v0, %v7198_v48 }
0x152f   : > { %v7187_v60 = vmul.f32 1.442695, %v7186_v6  ;;  %9205 = vpow2.f32 %v7204_v17 }
0x1531   : > { %9207 = vpow2.f32 %v7187_v60 }
0x1535   : > { %v9206_v1 = vpop.eup %9205 }
0x1536   : > { %v7206_v2 = vadd.f32 1.0, %v9206_v1 }
0x1537   : > { %v9208_v62 = vpop.eup %9207 }
0x1538   : > { %v7190_v38 = vadd.f32 1.0, %v9208_v62  ;;  %9209 = vrcp.f32 %v7206_v2  ;;  %v7193_v54 = vmul.f32 0.5, %v9208_v62  ;;  %vm7189_vm13 = vcmp.gt.f32.partialorder %v9208_v62, 0.0001 }
0x1539   : > { %v7218_v37 = vand.u32 2147483648, %v7206_v2  ;;  %v7216_v52 = vand.u32 2147483647, %v7206_v2  ;;  %vm7212_vm1 = vweird.f32 %v7206_v2 }
0x153a   : > { %9211 = vlog2.f32 %v7190_v38  ;;  %v7194_v29 = vsub.f32 1.0, %v7193_v54 }
0x153b   : > { %v7219_v42 = vor.u32 1.1754944e-38, %v7218_v37  ;;  %vm7217_vm0 = vcmp.eq.f32.partialorder %v7216_v52, 8.507059e+37 }
0x153c   : > { %v7195_v61 = vmul.f32 %v9208_v62, %v7194_v29 }
0x153e   : > { %v9210_v12 = vpop.eup %9209 }
0x153f   : > { %v7208_v21 = vmul.f32 %v9210_v12, %v7206_v2  ;;  %vm7213_vm15 = vweird.f32 %v9210_v12 }
0x1540   : > { %v9212_v8 = vpop.eup %9211  ;;  %vm7214_vm9 = vmor %vm7212_vm1, %vm7213_vm15 }
0x1541   : > { %v7192_v13 = vmul.f32 0.6931472, %v9212_v8  ;;  %v7209_v35 = vsub.f32 1.0, %v7208_v21 }
0x1543   : > { %v7196_v33 = vsel %vm7189_vm13, %v7192_v13, %v7195_v61  ;;  %v7210_v9 = vmul.f32 %v9210_v12, %v7209_v35 }
0x1544   : > { %v7200_v56 = vadd.f32 %v7199_v20, %v7196_v33 }
0x1545   : > { %v7211_v57 = vadd.f32 %v9210_v12, %v7210_v9 }
0x1546   : > { %7202 = vst.msk [vmem:[%s459_s24] sm:$0x1] %vm7201_vm14, %v7200_v56 }
0x1547   : > { %v7215_v34 = vsel %vm7214_vm9, %v9210_v12, %v7211_v57 }
0x1548   : > { %v7220_v40 = vsel %vm7217_vm0, %v7219_v42, %v7215_v34 }
0x1549   : > { %7222 = vst.msk [vmem:[%s456_s30] sm:$0x1] %vm7201_vm14, %v7220_v40 }
0x154a PF: > { %s24_s25 = sadd.s32 1, %s9221_s25  }
0x154b   : > { %p21_p4 = scmp.ge.s32.totalorder %s24_s25, 4  }
0x154d   :  { %23 = sbr.rel (!%p21_p4) target bundleno = 1 (0x1), region = 173 }

</bundles_post_ra>
